<compile_context>
chip_gen: v7x
topology: tpu7x:2x2x1
jax: 0.10.0
libtpu: 0.0.40
codegen_flags: <defaults>
</compile_context>

<pallas_src>
import functools

import numpy as np
import jax
import jax.numpy as jnp
from jax.experimental import pallas as pl
from jax.experimental.pallas import tpu as pltpu


# ---------------------------------------------------------------------------
# Static dimension choices for the synthetic backbone (lane-dense).
# ---------------------------------------------------------------------------
C_MID = 128       # backbone channel width (full 128-lane occupancy)
FEAT_DIM = 1000   # ResNeXt feature interface
FEAT_PAD = 1024   # padded to a multiple of 128 lanes (extra columns are zero)
NC_PAD = 128      # classifier output padded to 128 lanes; sliced in wrapper

_VMEM = pl.BlockSpec(memory_space=pltpu.MemorySpace.VMEM)


def _round_up(n, m):
    return ((n + m - 1) // m) * m


def _halo(W):
    """Sublane-aligned halo depth >= max |tap shift| + 1 = (W + 2) + 1."""
    return _round_up(W + 3, 8)


def _padded_rows(B, H, W):
    """Rows of the per-image zero-bordered layout (+ 8-row alignment)."""
    WP = W + 2
    PR = (B * (H + 1) + 1) * WP        # B images, 1 pad row each, 1 final row
    return PR, _round_up(PR, 8)


def _interior_mask(B, H, W, PR_AL):
    """[PR_AL, 1] f32: 1.0 at real-pixel rows of the padded layout, else 0."""
    WP = W + 2
    IS = (H + 1) * WP
    m = np.zeros((PR_AL, 1), np.float32)
    for b in range(B):
        for h in range(H):
            base = b * IS + (h + 1) * WP + 1
            m[base:base + W, 0] = 1.0
    return m


# ---------------------------------------------------------------------------
# Fused forward kernel
# ---------------------------------------------------------------------------
def _mask_resnet_kernel(x_taps_ref, imask_ref,
                        stem_w_ref, stem_b_ref,
                        b1_w_ref, b1_b_ref, b2_w_ref, b2_b_ref,
                        b3_w_ref, b3_b_ref,
                        fc_w_ref, fc_b_ref, cls_w_ref, cls_b_ref,
                        o_ref,
                        hpad_ref, htap_ref,
                        *, B, H, W, PR_AL):
    WP = W + 2
    IS = (H + 1) * WP
    PAD0 = _halo(W)
    imask = imask_ref[...]                                     # [PR_AL, 1] f32

    # ---- stem 3x3 conv: single K = 9*Cin matmul over the wrapper-built
    #      tap-stacked input (padded-image layout -> no per-tap masks). -------
    h0 = jnp.dot(x_taps_ref[...], stem_w_ref[...],
                 preferred_element_type=jnp.float32)
    h0 = jnp.maximum(h0 + stem_b_ref[...], 0.0)                # [PR_AL, C_MID]

    # ---- bottleneck 1x1 (reduce) -------------------------------------------
    h1 = jnp.dot(h0.astype(jnp.bfloat16), b1_w_ref[...],
                 preferred_element_type=jnp.float32)
    h1 = jnp.maximum(h1 + b1_b_ref[...], 0.0)

    # ---- 3x3 conv as ONE K = 9*C_MID matmul --------------------------------
    # Zero only the halo rows of the f32 row buffer; write the masked interior
    # once (the mask keeps the padded-layout border rows exactly zero so every
    # shifted tap reads true zeros at image borders).
    hpad_ref[0:PAD0, :] = jnp.zeros((PAD0, C_MID), jnp.float32)
    hpad_ref[PAD0 + PR_AL:PAD0 + PR_AL + PAD0, :] = (
        jnp.zeros((PAD0, C_MID), jnp.float32))
    hpad_ref[PAD0:PAD0 + PR_AL, :] = h1 * imask

    # Build the bf16 tap-stacked LHS: each tap is one statically shifted read
    # (realignment paid once here) written to its 128-lane-aligned K slot.
    for k in range(9):
        dh, dw = divmod(k, 3)
        s = (dh - 1) * WP + (dw - 1)
        htap_ref[:, k * C_MID:(k + 1) * C_MID] = (
            hpad_ref[PAD0 + s:PAD0 + s + PR_AL, :].astype(jnp.bfloat16))

    h2 = jnp.dot(htap_ref[...], b2_w_ref[...],
                 preferred_element_type=jnp.float32)
    h2 = jnp.maximum(h2 + b2_b_ref[...], 0.0)

    # ---- bottleneck 1x1 (expand) + residual merge + ReLU --------------------
    h3 = jnp.dot(h2.astype(jnp.bfloat16), b3_w_ref[...],
                 preferred_element_type=jnp.float32) + b3_b_ref[...]
    h = jnp.maximum(h3 + h0, 0.0) * imask        # zero halos once for pooling

    # ---- per-image global average pool (contiguous padded block per image) -
    inv = jnp.float32(1.0 / (H * W))
    pooled = jnp.concatenate(
        [jnp.sum(h[b * IS:(b + 1) * IS, :], axis=0, keepdims=True)
         for b in range(B)], axis=0) * inv                      # [B, C_MID]

    # ---- backbone fc -> 1000-d features (padded to 1024 lanes) -------------
    feats = jnp.dot(pooled.astype(jnp.bfloat16), fc_w_ref[...],
                    preferred_element_type=jnp.float32) + fc_b_ref[...]

    # ---- explicit MaskResNet head: ReLU + classifier Linear -----------------
    logits = jnp.dot(jnp.maximum(feats, 0.0).astype(jnp.bfloat16),
                     cls_w_ref[...],
                     preferred_element_type=jnp.float32) + cls_b_ref[...]
    o_ref[...] = logits.astype(o_ref.dtype)


# ---------------------------------------------------------------------------
# Deterministic parameter construction (synthetic weights, no checkpoint).
# BN scale is identity at inference and is folded into the weights.
# Conv weights are tap-major flattened: row index = tap_k * Cin + cin.
# ---------------------------------------------------------------------------
def init_params(key, num_classes, c_in=3):
    ks = jax.random.split(key, 8)
    s = 0.05
    k_stem = _round_up(9 * c_in, 8)

    def w(k, shape):
        return (jax.random.normal(k, shape, jnp.float32) * s).astype(jnp.bfloat16)

    p = {}
    stem = jax.random.normal(ks[0], (9 * c_in, C_MID), jnp.float32) * s
    p["stem_w"] = jnp.pad(stem, ((0, k_stem - 9 * c_in), (0, 0))).astype(jnp.bfloat16)
    p["stem_b"] = jnp.zeros((1, C_MID), jnp.float32)
    # bottleneck: 1x1 -> 3x3 -> 1x1
    p["b1_w"] = w(ks[1], (C_MID, C_MID))
    p["b1_b"] = jnp.zeros((1, C_MID), jnp.float32)
    p["b2_w"] = w(ks[2], (9 * C_MID, C_MID))          # tap-stacked [9*Cin, Cout]
    p["b2_b"] = jnp.zeros((1, C_MID), jnp.float32)
    p["b3_w"] = w(ks[3], (C_MID, C_MID))
    p["b3_b"] = jnp.zeros((1, C_MID), jnp.float32)
    # backbone fc: C_MID -> 1000 features, zero-padded to 1024 lanes
    fc_w = jax.random.normal(ks[4], (C_MID, FEAT_DIM), jnp.float32) * s
    fc_b = jax.random.normal(ks[5], (1, FEAT_DIM), jnp.float32) * s
    p["fc_w"] = jnp.pad(fc_w, ((0, 0), (0, FEAT_PAD - FEAT_DIM))).astype(jnp.bfloat16)
    p["fc_b"] = jnp.pad(fc_b, ((0, 0), (0, FEAT_PAD - FEAT_DIM)))
    # classifier head Linear(1000, num_classes), zero-padded to 128 lanes
    cls_w = jax.random.normal(ks[6], (FEAT_DIM, num_classes), jnp.float32) * s
    cls_b = jax.random.normal(ks[7], (1, num_classes), jnp.float32) * s
    p["cls_w"] = jnp.pad(cls_w, ((0, FEAT_PAD - FEAT_DIM),
                                 (0, NC_PAD - num_classes))).astype(jnp.bfloat16)
    p["cls_b"] = jnp.pad(cls_b, ((0, 0), (0, NC_PAD - num_classes)))
    return p


# ---------------------------------------------------------------------------
# Forward pass (mirrors MaskResNet.forward) — one fused pallas_call.
# ---------------------------------------------------------------------------
@functools.partial(jax.jit, static_argnames=("num_classes",))
def mask_resnet_forward(params, x_nchw, *, num_classes):
    B, C, H, W = x_nchw.shape
    WP = W + 2
    PR, PR_AL = _padded_rows(B, H, W)
    PAD0 = _halo(W)
    k_stem = params["stem_w"].shape[0]

    # NCHW -> NHWC -> per-image zero-bordered row layout (pitch W+2, one zero
    # row above each image + one final zero row) so conv taps see true zeros.
    x = jnp.transpose(x_nchw, (0, 2, 3, 1))                        # [B,H,W,C]
    xp = jnp.pad(x, ((0, 0), (1, 0), (1, 1), (0, 0)))              # [B,H+1,WP,C]
    xp = xp.reshape(B * (H + 1), WP, C)
    xp = jnp.concatenate([xp, jnp.zeros((1, WP, C), xp.dtype)], axis=0)
    xp = jnp.pad(xp.reshape(PR, C), ((0, PR_AL - PR), (0, 0)))     # [PR_AL, C]

    # Wrapper-built stem tap-stack (tiny layout plumbing, K = 9*C lanes).
    # TODO(synk): at real ResNeXt sizes build this per row-tile in-kernel to
    # keep HBM traffic at 1x.
    G = WP + 6
    xe = jnp.pad(xp, ((G, G), (0, 0)))
    taps = []
    for dh in range(3):
        for dw in range(3):
            s = (dh - 1) * WP + (dw - 1)
            taps.append(xe[G + s:G + s + PR_AL, :])
    x_taps = jnp.concatenate(taps, axis=1)                         # [PR_AL, 9*C]
    x_taps = jnp.pad(x_taps, ((0, 0), (0, k_stem - 9 * C))).astype(jnp.bfloat16)

    imask = jnp.asarray(_interior_mask(B, H, W, PR_AL))            # [PR_AL, 1]

    kernel = functools.partial(_mask_resnet_kernel, B=B, H=H, W=W, PR_AL=PR_AL)
    logits_pad = pl.pallas_call(
        kernel,
        out_shape=jax.ShapeDtypeStruct((B, NC_PAD), jnp.float32),
        in_specs=[_VMEM] * 14,
        out_specs=_VMEM,
        scratch_shapes=[
            pltpu.VMEM((2 * PAD0 + PR_AL, C_MID), jnp.float32),    # f32 row buf
            pltpu.VMEM((PR_AL, 9 * C_MID), jnp.bfloat16),          # bf16 tap LHS
        ],
    )(x_taps, imask,
      params["stem_w"], params["stem_b"],
      params["b1_w"], params["b1_b"], params["b2_w"], params["b2_b"],
      params["b3_w"], params["b3_b"],
      params["fc_w"], params["fc_b"], params["cls_w"], params["cls_b"])

    return logits_pad[:, :num_classes]


if __name__ == "__main__":
    key = jax.random.PRNGKey(0)
    k_param, k_data = jax.random.split(key)

    num_classes = 10
    B, C, H, W = 2, 3, 16, 16                   # NCHW input (PyTorch conv layout)
    params = init_params(k_param, num_classes, c_in=C)
    x = jax.random.normal(k_data, (B, C, H, W), jnp.float32)

    logits = mask_resnet_forward(params, x, num_classes=num_classes)
    jax.block_until_ready(logits)
    assert logits.shape == (B, num_classes)
    assert logits.dtype == jnp.float32
    assert bool(jnp.all(jnp.isfinite(logits)))
    print("KERNEL_OK")
</pallas_src>

<mosaic_0001>
module attributes {stable_mosaic.version = 11 : i64} {
  func.func @_mask_resnet_kernel(%arg0: memref<632x32xbf16, #tpu.memory_space<vmem>>, %arg1: memref<632x1xf32, #tpu.memory_space<vmem>>, %arg2: memref<32x128xbf16, #tpu.memory_space<vmem>>, %arg3: memref<1x128xf32, #tpu.memory_space<vmem>>, %arg4: memref<128x128xbf16, #tpu.memory_space<vmem>>, %arg5: memref<1x128xf32, #tpu.memory_space<vmem>>, %arg6: memref<1152x128xbf16, #tpu.memory_space<vmem>>, %arg7: memref<1x128xf32, #tpu.memory_space<vmem>>, %arg8: memref<128x128xbf16, #tpu.memory_space<vmem>>, %arg9: memref<1x128xf32, #tpu.memory_space<vmem>>, %arg10: memref<128x1024xbf16, #tpu.memory_space<vmem>>, %arg11: memref<1x1024xf32, #tpu.memory_space<vmem>>, %arg12: memref<1024x128xbf16, #tpu.memory_space<vmem>>, %arg13: memref<1x128xf32, #tpu.memory_space<vmem>>, %arg14: memref<2x128xf32, #tpu.memory_space<vmem>>, %arg15: memref<680x128xf32, #tpu.memory_space<vmem>>, %arg16: memref<632x1152xbf16, #tpu.memory_space<vmem>>) attributes {dimension_semantics = [], scalar_prefetch = 0 : i64, scratch_operands = 2 : i64, tpu.core_type = #tpu.core_type<tc>} {
    %c0 = arith.constant 0 : index
    %c0_0 = arith.constant 0 : index
    %0 = vector.load %arg1[%c0, %c0_0] : memref<632x1xf32, #tpu.memory_space<vmem>>, vector<632x1xf32>
    %c0_1 = arith.constant 0 : index
    %c0_2 = arith.constant 0 : index
    %1 = vector.load %arg0[%c0_1, %c0_2] : memref<632x32xbf16, #tpu.memory_space<vmem>>, vector<632x32xbf16>
    %c0_3 = arith.constant 0 : index
    %c0_4 = arith.constant 0 : index
    %2 = vector.load %arg2[%c0_3, %c0_4] : memref<32x128xbf16, #tpu.memory_space<vmem>>, vector<32x128xbf16>
    %cst = arith.constant dense<0.000000e+00> : vector<632x128xf32>
    %3 = tpu.matmul %1, %2, %cst {dimension_numbers = #tpu.dot_dimension_numbers<[1], [0], [0], [1], [0, 0, 1, 1], [], []>} : vector<632x32xbf16>, vector<32x128xbf16>, vector<632x128xf32> -> vector<632x128xf32>
    %c0_5 = arith.constant 0 : index
    %c0_6 = arith.constant 0 : index
    %4 = vector.load %arg3[%c0_5, %c0_6] : memref<1x128xf32, #tpu.memory_space<vmem>>, vector<1x128xf32>
    %5 = vector.broadcast %4 : vector<1x128xf32> to vector<632x128xf32>
    %6 = arith.addf %3, %5 : vector<632x128xf32>
    %cst_7 = arith.constant 0.000000e+00 : f32
    %7 = vector.broadcast %cst_7 : f32 to vector<632x128xf32>
    %8 = arith.maximumf %6, %7 : vector<632x128xf32>
    %9 = arith.truncf %8 : vector<632x128xf32> to vector<632x128xbf16>
    %c0_8 = arith.constant 0 : index
    %c0_9 = arith.constant 0 : index
    %10 = vector.load %arg4[%c0_8, %c0_9] : memref<128x128xbf16, #tpu.memory_space<vmem>>, vector<128x128xbf16>
    %cst_10 = arith.constant dense<0.000000e+00> : vector<632x128xf32>
    %11 = tpu.matmul %9, %10, %cst_10 {dimension_numbers = #tpu.dot_dimension_numbers<[1], [0], [0], [1], [0, 0, 1, 1], [], []>} : vector<632x128xbf16>, vector<128x128xbf16>, vector<632x128xf32> -> vector<632x128xf32>
    %c0_11 = arith.constant 0 : index
    %c0_12 = arith.constant 0 : index
    %12 = vector.load %arg5[%c0_11, %c0_12] : memref<1x128xf32, #tpu.memory_space<vmem>>, vector<1x128xf32>
    %13 = vector.broadcast %12 : vector<1x128xf32> to vector<632x128xf32>
    %14 = arith.addf %11, %13 : vector<632x128xf32>
    %cst_13 = arith.constant 0.000000e+00 : f32
    %15 = vector.broadcast %cst_13 : f32 to vector<632x128xf32>
    %16 = arith.maximumf %14, %15 : vector<632x128xf32>
    %cst_14 = arith.constant 0.000000e+00 : f32
    %17 = vector.broadcast %cst_14 : f32 to vector<24x128xf32>
    %c0_15 = arith.constant 0 : index
    %c0_16 = arith.constant 0 : index
    %18 = vector.load %arg15[%c0_15, %c0_16] : memref<680x128xf32, #tpu.memory_space<vmem>>, vector<24x128xf32>
    tpu.vector_store %arg15[%c0_15, %c0_16], %17 {strides = array<i32>} : memref<680x128xf32, #tpu.memory_space<vmem>>, vector<24x128xf32>,
    %cst_17 = arith.constant 0.000000e+00 : f32
    %19 = vector.broadcast %cst_17 : f32 to vector<24x128xf32>
    %c656 = arith.constant 656 : index
    %c0_18 = arith.constant 0 : index
    %20 = vector.load %arg15[%c656, %c0_18] : memref<680x128xf32, #tpu.memory_space<vmem>>, vector<24x128xf32>
    tpu.vector_store %arg15[%c656, %c0_18], %19 {strides = array<i32>} : memref<680x128xf32, #tpu.memory_space<vmem>>, vector<24x128xf32>,
    %21 = vector.broadcast %0 : vector<632x1xf32> to vector<632x128xf32>
    %22 = arith.mulf %16, %21 : vector<632x128xf32>
    %c24 = arith.constant 24 : index
    %c0_19 = arith.constant 0 : index
    %23 = vector.load %arg15[%c24, %c0_19] : memref<680x128xf32, #tpu.memory_space<vmem>>, vector<632x128xf32>
    tpu.vector_store %arg15[%c24, %c0_19], %22 {strides = array<i32>} : memref<680x128xf32, #tpu.memory_space<vmem>>, vector<632x128xf32>,
    %c5 = arith.constant 5 : index
    %c0_20 = arith.constant 0 : index
    %24 = vector.load %arg15[%c5, %c0_20] : memref<680x128xf32, #tpu.memory_space<vmem>>, vector<632x128xf32>
    %25 = arith.truncf %24 : vector<632x128xf32> to vector<632x128xbf16>
    %c0_21 = arith.constant 0 : index
    %c0_22 = arith.constant 0 : index
    %26 = vector.load %arg16[%c0_21, %c0_22] : memref<632x1152xbf16, #tpu.memory_space<vmem>>, vector<632x128xbf16>
    tpu.vector_store %arg16[%c0_21, %c0_22], %25 {strides = array<i32>} : memref<632x1152xbf16, #tpu.memory_space<vmem>>, vector<632x128xbf16>,
    %c6 = arith.constant 6 : index
    %c0_23 = arith.constant 0 : index
    %27 = vector.load %arg15[%c6, %c0_23] : memref<680x128xf32, #tpu.memory_space<vmem>>, vector<632x128xf32>
    %28 = arith.truncf %27 : vector<632x128xf32> to vector<632x128xbf16>
    %c0_24 = arith.constant 0 : index
    %c128 = arith.constant 128 : index
    %29 = vector.load %arg16[%c0_24, %c128] : memref<632x1152xbf16, #tpu.memory_space<vmem>>, vector<632x128xbf16>
    tpu.vector_store %arg16[%c0_24, %c128], %28 {strides = array<i32>} : memref<632x1152xbf16, #tpu.memory_space<vmem>>, vector<632x128xbf16>,
    %c7 = arith.constant 7 : index
    %c0_25 = arith.constant 0 : index
    %30 = vector.load %arg15[%c7, %c0_25] : memref<680x128xf32, #tpu.memory_space<vmem>>, vector<632x128xf32>
    %31 = arith.truncf %30 : vector<632x128xf32> to vector<632x128xbf16>
    %c0_26 = arith.constant 0 : index
    %c256 = arith.constant 256 : index
    %32 = vector.load %arg16[%c0_26, %c256] : memref<632x1152xbf16, #tpu.memory_space<vmem>>, vector<632x128xbf16>
    tpu.vector_store %arg16[%c0_26, %c256], %31 {strides = array<i32>} : memref<632x1152xbf16, #tpu.memory_space<vmem>>, vector<632x128xbf16>,
    %c23 = arith.constant 23 : index
    %c0_27 = arith.constant 0 : index
    %33 = vector.load %arg15[%c23, %c0_27] : memref<680x128xf32, #tpu.memory_space<vmem>>, vector<632x128xf32>
    %34 = arith.truncf %33 : vector<632x128xf32> to vector<632x128xbf16>
    %c0_28 = arith.constant 0 : index
    %c384 = arith.constant 384 : index
    %35 = vector.load %arg16[%c0_28, %c384] : memref<632x1152xbf16, #tpu.memory_space<vmem>>, vector<632x128xbf16>
    tpu.vector_store %arg16[%c0_28, %c384], %34 {strides = array<i32>} : memref<632x1152xbf16, #tpu.memory_space<vmem>>, vector<632x128xbf16>,
    %c24_29 = arith.constant 24 : index
    %c0_30 = arith.constant 0 : index
    %36 = vector.load %arg15[%c24_29, %c0_30] : memref<680x128xf32, #tpu.memory_space<vmem>>, vector<632x128xf32>
    %37 = arith.truncf %36 : vector<632x128xf32> to vector<632x128xbf16>
    %c0_31 = arith.constant 0 : index
    %c512 = arith.constant 512 : index
    %38 = vector.load %arg16[%c0_31, %c512] : memref<632x1152xbf16, #tpu.memory_space<vmem>>, vector<632x128xbf16>
    tpu.vector_store %arg16[%c0_31, %c512], %37 {strides = array<i32>} : memref<632x1152xbf16, #tpu.memory_space<vmem>>, vector<632x128xbf16>,
    %c25 = arith.constant 25 : index
    %c0_32 = arith.constant 0 : index
    %39 = vector.load %arg15[%c25, %c0_32] : memref<680x128xf32, #tpu.memory_space<vmem>>, vector<632x128xf32>
    %40 = arith.truncf %39 : vector<632x128xf32> to vector<632x128xbf16>
    %c0_33 = arith.constant 0 : index
    %c640 = arith.constant 640 : index
    %41 = vector.load %arg16[%c0_33, %c640] : memref<632x1152xbf16, #tpu.memory_space<vmem>>, vector<632x128xbf16>
    tpu.vector_store %arg16[%c0_33, %c640], %40 {strides = array<i32>} : memref<632x1152xbf16, #tpu.memory_space<vmem>>, vector<632x128xbf16>,
    %c41 = arith.constant 41 : index
    %c0_34 = arith.constant 0 : index
    %42 = vector.load %arg15[%c41, %c0_34] : memref<680x128xf32, #tpu.memory_space<vmem>>, vector<632x128xf32>
    %43 = arith.truncf %42 : vector<632x128xf32> to vector<632x128xbf16>
    %c0_35 = arith.constant 0 : index
    %c768 = arith.constant 768 : index
    %44 = vector.load %arg16[%c0_35, %c768] : memref<632x1152xbf16, #tpu.memory_space<vmem>>, vector<632x128xbf16>
    tpu.vector_store %arg16[%c0_35, %c768], %43 {strides = array<i32>} : memref<632x1152xbf16, #tpu.memory_space<vmem>>, vector<632x128xbf16>,
    %c42 = arith.constant 42 : index
    %c0_36 = arith.constant 0 : index
    %45 = vector.load %arg15[%c42, %c0_36] : memref<680x128xf32, #tpu.memory_space<vmem>>, vector<632x128xf32>
    %46 = arith.truncf %45 : vector<632x128xf32> to vector<632x128xbf16>
    %c0_37 = arith.constant 0 : index
    %c896 = arith.constant 896 : index
    %47 = vector.load %arg16[%c0_37, %c896] : memref<632x1152xbf16, #tpu.memory_space<vmem>>, vector<632x128xbf16>
    tpu.vector_store %arg16[%c0_37, %c896], %46 {strides = array<i32>} : memref<632x1152xbf16, #tpu.memory_space<vmem>>, vector<632x128xbf16>,
    %c43 = arith.constant 43 : index
    %c0_38 = arith.constant 0 : index
    %48 = vector.load %arg15[%c43, %c0_38] : memref<680x128xf32, #tpu.memory_space<vmem>>, vector<632x128xf32>
    %49 = arith.truncf %48 : vector<632x128xf32> to vector<632x128xbf16>
    %c0_39 = arith.constant 0 : index
    %c1024 = arith.constant 1024 : index
    %50 = vector.load %arg16[%c0_39, %c1024] : memref<632x1152xbf16, #tpu.memory_space<vmem>>, vector<632x128xbf16>
    tpu.vector_store %arg16[%c0_39, %c1024], %49 {strides = array<i32>} : memref<632x1152xbf16, #tpu.memory_space<vmem>>, vector<632x128xbf16>,
    %c0_40 = arith.constant 0 : index
    %c0_41 = arith.constant 0 : index
    %51 = vector.load %arg16[%c0_40, %c0_41] : memref<632x1152xbf16, #tpu.memory_space<vmem>>, vector<632x1152xbf16>
    %c0_42 = arith.constant 0 : index
    %c0_43 = arith.constant 0 : index
    %52 = vector.load %arg6[%c0_42, %c0_43] : memref<1152x128xbf16, #tpu.memory_space<vmem>>, vector<1152x128xbf16>
    %cst_44 = arith.constant dense<0.000000e+00> : vector<632x128xf32>
    %53 = tpu.matmul %51, %52, %cst_44 {dimension_numbers = #tpu.dot_dimension_numbers<[1], [0], [0], [1], [0, 0, 1, 1], [], []>} : vector<632x1152xbf16>, vector<1152x128xbf16>, vector<632x128xf32> -> vector<632x128xf32>
    %c0_45 = arith.constant 0 : index
    %c0_46 = arith.constant 0 : index
    %54 = vector.load %arg7[%c0_45, %c0_46] : memref<1x128xf32, #tpu.memory_space<vmem>>, vector<1x128xf32>
    %55 = vector.broadcast %54 : vector<1x128xf32> to vector<632x128xf32>
    %56 = arith.addf %53, %55 : vector<632x128xf32>
    %cst_47 = arith.constant 0.000000e+00 : f32
    %57 = vector.broadcast %cst_47 : f32 to vector<632x128xf32>
    %58 = arith.maximumf %56, %57 : vector<632x128xf32>
    %59 = arith.truncf %58 : vector<632x128xf32> to vector<632x128xbf16>
    %c0_48 = arith.constant 0 : index
    %c0_49 = arith.constant 0 : index
    %60 = vector.load %arg8[%c0_48, %c0_49] : memref<128x128xbf16, #tpu.memory_space<vmem>>, vector<128x128xbf16>
    %cst_50 = arith.constant dense<0.000000e+00> : vector<632x128xf32>
    %61 = tpu.matmul %59, %60, %cst_50 {dimension_numbers = #tpu.dot_dimension_numbers<[1], [0], [0], [1], [0, 0, 1, 1], [], []>} : vector<632x128xbf16>, vector<128x128xbf16>, vector<632x128xf32> -> vector<632x128xf32>
    %c0_51 = arith.constant 0 : index
    %c0_52 = arith.constant 0 : index
    %62 = vector.load %arg9[%c0_51, %c0_52] : memref<1x128xf32, #tpu.memory_space<vmem>>, vector<1x128xf32>
    %63 = vector.broadcast %62 : vector<1x128xf32> to vector<632x128xf32>
    %64 = arith.addf %61, %63 : vector<632x128xf32>
    %65 = arith.addf %64, %8 : vector<632x128xf32>
    %cst_53 = arith.constant 0.000000e+00 : f32
    %66 = vector.broadcast %cst_53 : f32 to vector<632x128xf32>
    %67 = arith.maximumf %65, %66 : vector<632x128xf32>
    %68 = vector.broadcast %0 : vector<632x1xf32> to vector<632x128xf32>
    %69 = arith.mulf %67, %68 : vector<632x128xf32>
    %70 = vector.extract_strided_slice %69 {offsets = [0, 0], sizes = [306, 128], strides = [1, 1]} : vector<632x128xf32> to vector<306x128xf32>
    %cst_54 = arith.constant dense<0.000000e+00> : vector<128xf32>
    %71 = vector.multi_reduction <add>, %70, %cst_54 [0] : vector<306x128xf32> to vector<128xf32>
    %72 = vector.shape_cast %71 : vector<128xf32> to vector<1x128xf32>
    %73 = vector.extract_strided_slice %69 {offsets = [306, 0], sizes = [306, 128], strides = [1, 1]} : vector<632x128xf32> to vector<306x128xf32>
    %cst_55 = arith.constant dense<0.000000e+00> : vector<128xf32>
    %74 = vector.multi_reduction <add>, %73, %cst_55 [0] : vector<306x128xf32> to vector<128xf32>
    %75 = vector.shape_cast %74 : vector<128xf32> to vector<1x128xf32>
    %76 = tpu.concatenate %72, %75 in 0 : vector<1x128xf32>, vector<1x128xf32> -> vector<2x128xf32>
    %cst_56 = arith.constant 3.906250e-03 : f32
    %77 = vector.broadcast %cst_56 : f32 to vector<2x128xf32>
    %78 = arith.mulf %76, %77 : vector<2x128xf32>
    %79 = arith.truncf %78 : vector<2x128xf32> to vector<2x128xbf16>
    %c0_57 = arith.constant 0 : index
    %c0_58 = arith.constant 0 : index
    %80 = vector.load %arg10[%c0_57, %c0_58] : memref<128x1024xbf16, #tpu.memory_space<vmem>>, vector<128x1024xbf16>
    %cst_59 = arith.constant dense<0.000000e+00> : vector<2x1024xf32>
    %81 = tpu.matmul %79, %80, %cst_59 {dimension_numbers = #tpu.dot_dimension_numbers<[1], [0], [0], [1], [0, 0, 1, 1], [], []>} : vector<2x128xbf16>, vector<128x1024xbf16>, vector<2x1024xf32> -> vector<2x1024xf32>
    %c0_60 = arith.constant 0 : index
    %c0_61 = arith.constant 0 : index
    %82 = vector.load %arg11[%c0_60, %c0_61] : memref<1x1024xf32, #tpu.memory_space<vmem>>, vector<1x1024xf32>
    %83 = vector.broadcast %82 : vector<1x1024xf32> to vector<2x1024xf32>
    %84 = arith.addf %81, %83 : vector<2x1024xf32>
    %cst_62 = arith.constant 0.000000e+00 : f32
    %85 = vector.broadcast %cst_62 : f32 to vector<2x1024xf32>
    %86 = arith.maximumf %84, %85 : vector<2x1024xf32>
    %87 = arith.truncf %86 : vector<2x1024xf32> to vector<2x1024xbf16>
    %c0_63 = arith.constant 0 : index
    %c0_64 = arith.constant 0 : index
    %88 = vector.load %arg12[%c0_63, %c0_64] : memref<1024x128xbf16, #tpu.memory_space<vmem>>, vector<1024x128xbf16>
    %cst_65 = arith.constant dense<0.000000e+00> : vector<2x128xf32>
    %89 = tpu.matmul %87, %88, %cst_65 {dimension_numbers = #tpu.dot_dimension_numbers<[1], [0], [0], [1], [0, 0, 1, 1], [], []>} : vector<2x1024xbf16>, vector<1024x128xbf16>, vector<2x128xf32> -> vector<2x128xf32>
    %c0_66 = arith.constant 0 : index
    %c0_67 = arith.constant 0 : index
    %90 = vector.load %arg13[%c0_66, %c0_67] : memref<1x128xf32, #tpu.memory_space<vmem>>, vector<1x128xf32>
    %91 = vector.broadcast %90 : vector<1x128xf32> to vector<2x128xf32>
    %92 = arith.addf %89, %91 : vector<2x128xf32>
    %c0_68 = arith.constant 0 : index
    %c0_69 = arith.constant 0 : index
    %93 = vector.load %arg14[%c0_68, %c0_69] : memref<2x128xf32, #tpu.memory_space<vmem>>, vector<2x128xf32>
    tpu.vector_store %arg14[%c0_68, %c0_69], %92 {strides = array<i32>} : memref<2x128xf32, #tpu.memory_space<vmem>>, vector<2x128xf32>,
    return
  }
}

</mosaic_0001>

<bundles_post_ra>
// kernel: mask_resnet_forward.1
= control target key start
LH: loop header
LB: loop body
LE: loop exit
PB: predicated region body
PF: predicated region fallthrough
CT: control target
= control target key end

     0   :  { %19 = vsyncpa [#allocation5], 0  ;;  %s20098_s0 = inlined_call_operand.vmem [shape: bf16[632,32], index: 0, kind: input, shape index: {}]   ;;  %s20099_s1 = inlined_call_operand.vmem [shape: f32[632,1], index: 1, kind: input, shape index: {}]   ;;  %s20100_s2 = inlined_call_operand.vmem [shape: bf16[32,128], index: 2, kind: input, shape index: {}]   ;;  %s20101_s3 = inlined_call_operand.vmem [shape: f32[1,128], index: 3, kind: input, shape index: {}]   ;;  %s20102_s4 = inlined_call_operand.vmem [shape: bf16[128,128], index: 4, kind: input, shape index: {}]   ;;  %s20103_s5 = inlined_call_operand.vmem [shape: f32[1,128], index: 5, kind: input, shape index: {}]   ;;  %s20104_s6 = inlined_call_operand.vmem [shape: bf16[1152,128], index: 6, kind: input, shape index: {}]   ;;  %s20105_s7 = inlined_call_operand.vmem [shape: f32[1,128], index: 7, kind: input, shape index: {}]   ;;  %s20106_s8 = inlined_call_operand.vmem [shape: bf16[128,128], index: 8, kind: input, shape index: {}]   ;;  %s20107_s9 = inlined_call_operand.vmem [shape: f32[1,128], index: 9, kind: input, shape index: {}]   ;;  %s20108_s10 = inlined_call_operand.vmem [shape: bf16[128,1024], index: 10, kind: input, shape index: {}]   ;;  %s20109_s11 = inlined_call_operand.vmem [shape: f32[1,1024], index: 11, kind: input, shape index: {}]   ;;  %s20110_s12 = inlined_call_operand.hbm [shape: bf16[1024,128], index: 12, kind: input, shape index: {}]   ;;  %s20111_s13 = inlined_call_operand.vmem [shape: f32[1,128], index: 13, kind: input, shape index: {}]   ;;  %s20112_s14 = inlined_call_operand.hbm [shape: f32[2,128], index: 14, kind: output, shape index: {}]  }
   0x1   :  { %20 = vsyncpa [#allocation6], 0  ;;  %s17230_s29 = smov [#allocation4]   ;;  %s17182_s17 = scalar_lea.hbm %s20110_s12, 8192 }
   0x2   :  { %s50_s30 = sshll.u32 %s17230_s29, 4  ;;  %p17183_p0 = scmp.ne.s32.totalorder %s20110_s12, %s17182_s17  ;;  %s51_s30 = int_to_ptr.vmem [resolvable:$true] %s50_s30 }
   0x3   :  { %p17186_p1 = scmp.lt.u32.totalorder %s17182_s17, %s20110_s12 }
   0x5   :  { %p17188_p2 = pnand %p17186_p1, %p17183_p0 }
   0x7   :  { %17191 = shalt.err (!%p17188_p2)
}
   0x8   :  { %s17192_s22 = scalar_lea.vmem %s51_s30, 8192  ;;  %p17197_p4 = scmp.lt.s32.totalorder %s51_s30, %s51_s30 }
   0x9   :  { %p17193_p3 = scmp.ne.s32.totalorder %s51_s30, %s17192_s22  ;;  %p17198_p5 = scmp.lt.s32.totalorder %s17192_s22, %s17192_s22 }
   0xb   :  { %p17199_p6 = por %p17198_p5, %p17197_p4 }
   0xd   :  { %p17200_p7 = pnand %p17199_p6, %p17193_p3 }
   0xf   :  { %17203 = shalt.err (!%p17200_p7)
}
  0x10   :  { %s17231_s23 = smov 64   ;;  %s17232_s24 = smov 4  }
  0x11   :  { %56 = dma.hbm_to_vmem [thread:$0]  %s20110_s12, 8192, %s51_s30, [#allocation5], %s17231_s23, %s17231_s23, %s17232_s24  }
  0x12   :  { %17226 = dma.done.wait [#allocation5], 8192  }
  0x13   :  { %17227 = vsyncadd [#allocation5], 4294959104  ;;  %v20141_v0 = vmov 0   ;;  %v16468_v1 = vld [vmem:[%s20100_s2] sm:$0xff]   ;;  %v16469_v2 = vld [vmem:[%s20100_s2 + $0x8] sm:$0xff]   ;;  %vm442_vm0 = vcmask 261120  }
  0x14   :  { %16466 = vset.pattern.permute.xlu0 %v20141_v0  ;;  %16467 = vset.pattern.permute.xlu1 %v20141_v0  ;;  %v16470_v3 = vld [vmem:[%s20098_s0] sm:$0xff]   ;;  %v16471_v4 = vld [vmem:[%s20098_s0 + $0x8] sm:$0xff]   ;;  %v16472_v5 = vld [vmem:[%s20098_s0 + $0x10] sm:$0xff]   ;;  %vm11742_vm1 = vcmask 1041408   ;;  %vm11790_vm2 = vcmask 1045504   ;;  %vm11952_vm3 = vcmask 1040384  }
  0x15   :  { %15616 = vmatprep.subr.bf16.mxu0 %v16468_v1  ;;  %15988 = vmatprep.subr.bf16.mxu1 %v16468_v1  ;;  %v16473_v6 = vld [vmem:[%s20098_s0 + $0x18] sm:$0xff]   ;;  %v16474_v7 = vld [vmem:[%s20098_s0 + $0x20] sm:$0xff]   ;;  %v16475_v8 = vld [vmem:[%s20098_s0 + $0x28] sm:$0xff]  }
  0x16   :  { %15617 = vmatpush3.bf16.msra.mxu0 %v16468_v1  ;;  %15990 = vmatpush3.bf16.msra.mxu1 %v16468_v1  ;;  %v16476_v9 = vld [vmem:[%s20098_s0 + $0x30] sm:$0xff]   ;;  %v16477_v10 = vld [vmem:[%s20098_s0 + $0x38] sm:$0xff]   ;;  %v16478_v11 = vld [vmem:[%s20098_s0 + $0x40] sm:$0xff]  }
  0x17   :  { %15618 = vmatprep.subr.bf16.mxu0 %v16469_v2  ;;  %15620 = vmatprep.mubr.msk.bf16.mxu0 %vm442_vm0, %v16470_v3  ;;  %v16500_v12 = vld [vmem:[%s20098_s0 + $0xf0] sm:$0xff]   ;;  %v16501_v13 = vld [vmem:[%s20098_s0 + $0xf8] sm:$0xff]   ;;  %v16502_v14 = vld [vmem:[%s20098_s0 + $0x100] sm:$0xff]  }
  0x18   :  { %15989 = vmatprep.subr.bf16.mxu1 %v16469_v2  ;;  %15680 = vmatprep.mubr.msk.bf16.mxu1 %vm442_vm0, %v16500_v12  ;;  %v16479_v15 = vld [vmem:[%s20098_s0 + $0x48] sm:$0xff]   ;;  %v16480_v16 = vld [vmem:[%s20098_s0 + $0x50] sm:$0xff]   ;;  %v63_v19 = vld [vmem:[%s20099_s1] sm:$0xff] }
  0x19   :  { %v16503_v17 = vld [vmem:[%s20098_s0 + $0x108] sm:$0xff]   ;;  %v16504_v18 = vld [vmem:[%s20098_s0 + $0x110] sm:$0xff]   ;;  %1544 = vperm.xlu0 %16466, %v63_v19   ;;  %v66_v22 = vld [vmem:[%s20099_s1 + $0x18] sm:$0xff] }
  0x1a   :  { %15619 = vmatpush3.bf16.msra.mxu0 %v16469_v2  ;;  %15991 = vmatpush3.bf16.msra.mxu1 %v16469_v2  ;;  %v65_v20 = vld [vmem:[%s20099_s1 + $0x10] sm:$0xff]  ;;  %v64_v21 = vld [vmem:[%s20099_s1 + $0x8] sm:$0xff]  ;;  %v16481_v23 = vld [vmem:[%s20098_s0 + $0x58] sm:$0xff]  }
  0x1b   :  { %9526 = vmatprep.subr.bf16.mxu0 %v20141_v0  ;;  %1554 = vperm.xlu1 %16467, %v65_v20   ;;  %v16482_v24 = vld [vmem:[%s20098_s0 + $0x60] sm:$0xff]   ;;  %v16505_v26 = vld [vmem:[%s20098_s0 + $0x118] sm:$0xff]   ;;  %v68_v29 = vld [vmem:[%s20099_s1 + $0x28] sm:$0xff] }
  0x1c   :  { %v16510_v25 = vld [vmem:[%s20102_s4] sm:$0xff]   ;;  %v16511_v30 = vld [vmem:[%s20102_s4 + $0x8] sm:$0xff]   ;;  %v69_v31 = vld [vmem:[%s20099_s1 + $0x30] sm:$0xff] }
  0x1d   :  { %15621 = vmatmul.mubr.msk.bf16.vlgmr.msra.gmra.mrb[0].mxu0 %vm442_vm0, %v16471_v4  ;;  %15681 = vmatmul.mubr.msk.bf16.vlgmr.msra.gmra.mrb[0].mxu1 %vm442_vm0, %v16501_v13  ;;  %v67_v27 = vld [vmem:[%s20099_s1 + $0x20] sm:$0xff]  ;;  %v16512_v32 = vld [vmem:[%s20102_s4 + $0x10] sm:$0xff]   ;;  %v16483_v33 = vld [vmem:[%s20098_s0 + $0x68] sm:$0xff]  }
  0x1e   :  { %15624 = vmatprep.mubr.msk.bf16.mxu0 %vm442_vm0, %v16472_v5  ;;  %15684 = vmatprep.mubr.msk.bf16.mxu1 %vm442_vm0, %v16502_v14  ;;  %v16506_v28 = vld [vmem:[%s20098_s0 + $0x120] sm:$0xff]   ;;  %v70_v34 = vld [vmem:[%s20099_s1 + $0x38] sm:$0xff]  ;;  %v16484_v35 = vld [vmem:[%s20098_s0 + $0x70] sm:$0xff]  }
  0x1f   :  { %1549 = vperm.xlu0 %16466, %v64_v21   ;;  %1559 = vperm.xlu1 %16467, %v66_v22   ;;  %v16507_v36 = vld [vmem:[%s20098_s0 + $0x128] sm:$0xff]   ;;  %v16508_v37 = vld [vmem:[%s20098_s0 + $0x130] sm:$0xff]   ;;  %v71_v38 = vld [vmem:[%s20099_s1 + $0x40] sm:$0xff] }
  0x20   :  { %15700 = vmatprep.subr.bf16.mxu1 %v16510_v25  ;;  %v72_v39 = vld [vmem:[%s20099_s1 + $0x48] sm:$0xff]  ;;  %v16513_v40 = vld [vmem:[%s20102_s4 + $0x18] sm:$0xff]   ;;  %v73_v41 = vld [vmem:[%s20099_s1 + $0x50] sm:$0xff] }
  0x21   :  { %15701 = vmatpush3.bf16.msra.mxu1 %v16510_v25  ;;  %v74_v42 = vld [vmem:[%s20099_s1 + $0x58] sm:$0xff]  ;;  %v16486_v44 = vld [vmem:[%s20098_s0 + $0x80] sm:$0xff]   ;;  %v76_v48 = vld [vmem:[%s20099_s1 + $0x68] sm:$0xff] }
  0x22   :  { %15702 = vmatprep.subr.bf16.mxu1 %v16511_v30  ;;  %v16485_v43 = vld [vmem:[%s20098_s0 + $0x78] sm:$0xff]   ;;  %v75_v46 = vld [vmem:[%s20099_s1 + $0x60] sm:$0xff]  ;;  %v16515_v49 = vld [vmem:[%s20102_s4 + $0x28] sm:$0xff]  }
  0x23   :  { %1564 = vperm.xlu0 %16466, %v67_v27   ;;  %1569 = vperm.xlu1 %16467, %v68_v29   ;;  %v16509_v45 = vld [vmem:[%s20098_s0 + $0x138] ss:$0 sps:$4 sm:$0xff]   ;;  %v16514_v47 = vld [vmem:[%s20102_s4 + $0x20] sm:$0xff]   ;;  %v77_v50 = vld [vmem:[%s20099_s1 + $0x70] sm:$0xff] }
  0x24   :  { %v78_v51 = vld [vmem:[%s20099_s1 + $0x78] sm:$0xff]  ;;  %v16487_v52 = vld [vmem:[%s20098_s0 + $0x88] sm:$0xff]   ;;  %v16488_v53 = vld [vmem:[%s20098_s0 + $0x90] sm:$0xff]  }
  0x25   :  { %15625 = vmatmul.mubr.msk.bf16.gmra.mrb[4].mxu0 %vm442_vm0, %v16473_v6  ;;  %15685 = vmatmul.mubr.msk.bf16.gmra.mrb[4].mxu1 %vm442_vm0, %v16503_v17  ;;  %v79_v54 = vld [vmem:[%s20099_s1 + $0x80] sm:$0xff]  ;;  %v80_v55 = vld [vmem:[%s20099_s1 + $0x88] sm:$0xff]  ;;  %v81_v56 = vld [vmem:[%s20099_s1 + $0x90] sm:$0xff] }
  0x26   :  { %15628 = vmatprep.mubr.msk.bf16.mxu0 %vm442_vm0, %v16474_v7  ;;  %15688 = vmatprep.mubr.msk.bf16.mxu1 %vm442_vm0, %v16504_v18  ;;  %v82_v57 = vld [vmem:[%s20099_s1 + $0x98] sm:$0xff]  ;;  %v16490_v59 = vld [vmem:[%s20098_s0 + $0xa0] sm:$0xff]   ;;  %v84_v61 = vld [vmem:[%s20099_s1 + $0xa8] sm:$0xff] }
  0x27   :  { %1574 = vperm.xlu0 %16466, %v69_v31   ;;  %15703 = vmatpush3.bf16.msra.mxu1 %v16511_v30  ;;  %v16489_v58 = vld [vmem:[%s20098_s0 + $0x98] sm:$0xff]   ;;  %v83_v60 = vld [vmem:[%s20099_s1 + $0xa0] sm:$0xff]  ;;  %v85_v62 = vld [vmem:[%s20099_s1 + $0xb0] sm:$0xff] }
  0x28   :  { %15704 = vmatprep.subr.bf16.mxu1 %v16512_v32  ;;  %1579 = vperm.xlu1 %16467, %v70_v34   ;;  %v86_v63 = vld [vmem:[%s20099_s1 + $0xb8] sm:$0xff]  ;;  %v16491_v1 = vld [vmem:[%s20098_s0 + $0xa8] sm:$0xff]   ;;  %v16492_v2 = vld [vmem:[%s20098_s0 + $0xb0] sm:$0xff]  }
  0x29   :  { %v87_v3 = vld [vmem:[%s20099_s1 + $0xc0] sm:$0xff]  ;;  %v89_v4 = vld [vmem:[%s20099_s1 + $0xd0] sm:$0xff]  ;;  %v16493_v5 = vld [vmem:[%s20098_s0 + $0xb8] sm:$0xff]  }
  0x2a   :  { %v16494_v6 = vld [vmem:[%s20098_s0 + $0xc0] sm:$0xff]   ;;  %v90_v12 = vld [vmem:[%s20099_s1 + $0xd8] sm:$0xff]  ;;  %v16495_v13 = vld [vmem:[%s20098_s0 + $0xc8] sm:$0xff]  }
  0x2b   :  { %1584 = vperm.xlu0 %16466, %v71_v38   ;;  %15705 = vmatpush3.bf16.msra.mxu1 %v16512_v32  ;;  %v91_v7 = vld [vmem:[%s20099_s1 + $0xe0] sm:$0xff]  ;;  %v16496_v14 = vld [vmem:[%s20098_s0 + $0xd0] sm:$0xff]   ;;  %v94_v18 = vld [vmem:[%s20099_s1 + $0xf8] sm:$0xff] }
  0x2c   :  { %1589 = vperm.xlu1 %16467, %v72_v39   ;;  %15706 = vmatprep.subr.bf16.mxu1 %v16513_v40  ;;  %v97_v17 = vld [vmem:[%s20099_s1 + $0x110] sm:$0xff]  ;;  %v16497_v19 = vld [vmem:[%s20098_s0 + $0xd8] sm:$0xff]   ;;  %v16498_v20 = vld [vmem:[%s20098_s0 + $0xe0] sm:$0xff]  }
  0x2d   :  { %15629 = vmatmul.mubr.msk.bf16.gmra.mrb[8].mxu0 %vm442_vm0, %v16475_v8  ;;  %15689 = vmatmul.mubr.msk.bf16.gmra.mrb[8].mxu1 %vm442_vm0, %v16505_v26  ;;  %v16516_v8 = vld [vmem:[%s20102_s4 + $0x30] sm:$0xff]   ;;  %v99_v21 = vld [vmem:[%s20099_s1 + $0x120] sm:$0xff]  ;;  %v96_v22 = vld [vmem:[%s20099_s1 + $0x108] sm:$0xff] }
  0x2e   :  { %15632 = vmatprep.mubr.msk.bf16.mxu0 %vm442_vm0, %v16476_v9  ;;  %15692 = vmatprep.mubr.msk.bf16.mxu1 %vm442_vm0, %v16506_v28  ;;  %v88_v9 = vld [vmem:[%s20099_s1 + $0xc8] sm:$0xff]  ;;  %v103_v26 = vld [vmem:[%s20099_s1 + $0x140] sm:$0xff]  ;;  %v105_v28 = vld [vmem:[%s20099_s1 + $0x150] sm:$0xff] }
  0x2f   :  { %1594 = vperm.xlu0 %16466, %v73_v41   ;;  %15707 = vmatpush3.bf16.msra.mxu1 %v16513_v40  ;;  %v16499_v25 = vld [vmem:[%s20098_s0 + $0xe8] sm:$0xff]   ;;  %v102_v29 = vld [vmem:[%s20099_s1 + $0x138] sm:$0xff]  ;;  %v107_v30 = vld [vmem:[%s20099_s1 + $0x160] sm:$0xff] }
  0x30   :  { %1599 = vperm.xlu1 %16467, %v74_v42   ;;  %15708 = vmatprep.subr.bf16.mxu1 %v16514_v47  ;;  %v100_v27 = vld [vmem:[%s20099_s1 + $0x128] sm:$0xff]  ;;  %v109_v32 = vld [vmem:[%s20099_s1 + $0x170] sm:$0xff]  ;;  %v111_v34 = vld [vmem:[%s20099_s1 + $0x180] sm:$0xff] }
  0x31   :  { %v104_v31 = vld [vmem:[%s20099_s1 + $0x148] sm:$0xff]  ;;  %v115_v38 = vld [vmem:[%s20099_s1 + $0x1a0] sm:$0xff]  ;;  %v117_v40 = vld [vmem:[%s20099_s1 + $0x1b0] sm:$0xff] }
  0x32   :  { %v112_v39 = vld [vmem:[%s20099_s1 + $0x188] sm:$0xff]  ;;  %v114_v41 = vld [vmem:[%s20099_s1 + $0x198] sm:$0xff]  ;;  %v119_v42 = vld [vmem:[%s20099_s1 + $0x1c0] sm:$0xff] }
  0x33   :  { %1604 = vperm.xlu0 %16466, %v75_v46   ;;  %15709 = vmatpush3.bf16.msra.mxu1 %v16514_v47  ;;  %v123_v46 = vld [vmem:[%s20099_s1 + $0x1e0] sm:$0xff]  ;;  %v120_v47 = vld [vmem:[%s20099_s1 + $0x1c8] sm:$0xff] }
  0x34   :  { %1609 = vperm.xlu1 %16467, %v76_v48   ;;  %15710 = vmatprep.subr.bf16.mxu1 %v16515_v49  ;;  %v125_v48 = vld [vmem:[%s20099_s1 + $0x1f0] sm:$0xff] }
  0x35   :  { %15633 = vmatmul.mubr.msk.bf16.gmra.mrb[12].mxu0 %vm442_vm0, %v16477_v10  ;;  %15693 = vmatmul.mubr.msk.bf16.gmra.mrb[12].mxu1 %vm442_vm0, %v16507_v36  ;;  %v93_v10 = vld [vmem:[%s20099_s1 + $0xf0] sm:$0xff] }
  0x36   :  { %15636 = vmatprep.mubr.msk.bf16.mxu0 %vm442_vm0, %v16478_v11  ;;  %15696 = vmatprep.mubr.msk.bf16.mxu1 %vm442_vm0, %v16508_v37  ;;  %v16517_v11 = vld [vmem:[%s20102_s4 + $0x38] sm:$0xff]   ;;  %v113_v36 = vld [vmem:[%s20099_s1 + $0x190] sm:$0xff] }
  0x37   :  { %1614 = vperm.xlu0 %16466, %v77_v50   ;;  %15711 = vmatpush3.bf16.msra.mxu1 %v16515_v49  ;;  %v110_v37 = vld [vmem:[%s20099_s1 + $0x178] sm:$0xff]  ;;  %v124_v50 = vld [vmem:[%s20099_s1 + $0x1e8] sm:$0xff] }
  0x38   :  { %1619 = vperm.xlu1 %16467, %v78_v51   ;;  %15712 = vmatprep.subr.bf16.mxu1 %v16516_v8  ;;  %v122_v49 = vld [vmem:[%s20099_s1 + $0x1d8] sm:$0xff]  ;;  %v127_v51 = vld [vmem:[%s20099_s1 + $0x200] sm:$0xff] }
  0x3b   :  { %1624 = vperm.xlu0 %16466, %v79_v54   ;;  %15713 = vmatpush3.bf16.msra.mxu1 %v16516_v8  ;;  %v128_v54 = vld [vmem:[%s20099_s1 + $0x208] sm:$0xff] }
  0x3c   :  { %1629 = vperm.xlu1 %16467, %v80_v55   ;;  %15714 = vmatprep.subr.bf16.mxu1 %v16517_v11  ;;  %v131_v55 = vld [vmem:[%s20099_s1 + $0x220] sm:$0xff] }
  0x3d   :  { %15637 = vmatmul.mubr.msk.bf16.gmra.mrb[16].mxu0 %vm442_vm0, %v16479_v15  ;;  %15697 = vmatmul.mubr.msk.bf16.gmra.mrb[16].mxu1 %vm442_vm0, %v16509_v45  ;;  %v95_v15 = vld [vmem:[%s20099_s1 + $0x100] sm:$0xff]  ;;  %v118_v45 = vld [vmem:[%s20099_s1 + $0x1b8] sm:$0xff] }
  0x3e   :  { %15640 = vmatprep.mubr.msk.bf16.mxu0 %vm442_vm0, %v16480_v16  ;;  %v92_v16 = vld [vmem:[%s20099_s1 + $0xe8] sm:$0xff] }
  0x3f   :  { %1634 = vperm.xlu0 %16466, %v81_v56   ;;  %15715 = vmatpush3.bf16.msra.mxu1 %v16517_v11  ;;  %v130_v56 = vld [vmem:[%s20099_s1 + $0x218] sm:$0xff] }
  0x40   :  { %1639 = vperm.xlu1 %16467, %v82_v57   ;;  %9174 = vmatprep.subr.bf16.mxu1 %v20141_v0  ;;  %v133_v57 = vld [vmem:[%s20099_s1 + $0x230] sm:$0xff] }
  0x43   :  { %1644 = vperm.xlu0 %16466, %v83_v60   ;;  %v134_v60 = vld [vmem:[%s20099_s1 + $0x238] sm:$0xff] }
  0x44   :  { %1649 = vperm.xlu1 %16467, %v84_v61   ;;  %v137_v61 = vld [vmem:[%s20099_s1 + $0x250] sm:$0xff] }
  0x45   :  { %15641 = vmatmul.mubr.msk.bf16.gmra.mrb[20].mxu0 %vm442_vm0, %v16481_v23  ;;  %v101_v23 = vld [vmem:[%s20099_s1 + $0x130] sm:$0xff] }
  0x46   :  { %15644 = vmatprep.mubr.msk.bf16.mxu0 %vm442_vm0, %v16482_v24  ;;  %v98_v24 = vld [vmem:[%s20099_s1 + $0x118] sm:$0xff] }
  0x47   :  { %1654 = vperm.xlu0 %16466, %v85_v62   ;;  %v136_v62 = vld [vmem:[%s20099_s1 + $0x248] sm:$0xff] }
  0x48   :  { %1659 = vperm.xlu1 %16467, %v86_v63   ;;  %v139_v63 = vld [vmem:[%s20099_s1 + $0x260] sm:$0xff] }
  0x4b   :  { %1664 = vperm.xlu0 %16466, %v87_v3   ;;  %v140_v3 = vld [vmem:[%s20099_s1 + $0x268] sm:$0xff] }
  0x4c   :  { %1669 = vperm.xlu1 %16467, %v88_v9  }
  0x4d   :  { %15645 = vmatmul.mubr.msk.bf16.gmra.mrb[24].mxu0 %vm442_vm0, %v16483_v33  ;;  %v106_v33 = vld [vmem:[%s20099_s1 + $0x158] sm:$0xff] }
  0x4e   :  { %15648 = vmatprep.mubr.msk.bf16.mxu0 %vm442_vm0, %v16484_v35  ;;  %v108_v35 = vld [vmem:[%s20099_s1 + $0x168] sm:$0xff] }
  0x4f   :  { %1674 = vperm.xlu0 %16466, %v89_v4   ;;  %v17757_v4 = vld [vmem:[%s20101_s3] ss:$0 sm:$0xff] }
  0x50   :  { %1679 = vperm.xlu1 %16467, %v90_v12   ;;  %v16518_v12 = vld [vmem:[%s20104_s6 + $0x80] sm:$0xff]  }
  0x51   :  { %9527 = vmatpush1.bf16.msra.mxu0 %v16518_v12 }
  0x52   :  { %9528 = vmatprep.subr.bf16.mxu0 %v20141_v0 }
  0x53   :  { %1684 = vperm.xlu0 %16466, %v91_v7  }
  0x54   :  { %1689 = vperm.xlu1 %16467, %v92_v16  }
  0x55   :  { %15649 = vmatmul.mubr.msk.bf16.gmra.mrb[28].mxu0 %vm442_vm0, %v16485_v43  ;;  %v116_v43 = vld [vmem:[%s20099_s1 + $0x1a8] sm:$0xff] }
  0x56   :  { %15652 = vmatprep.mubr.msk.bf16.mxu0 %vm442_vm0, %v16486_v44  ;;  %v121_v44 = vld [vmem:[%s20099_s1 + $0x1d0] sm:$0xff] }
  0x57   :  { %1694 = vperm.xlu0 %16466, %v93_v10  }
  0x58   :  { %1699 = vperm.xlu1 %16467, %v94_v18  }
  0x5b   :  { %1704 = vperm.xlu0 %16466, %v95_v15  }
  0x5c   :  { %1709 = vperm.xlu1 %16467, %v96_v22  }
  0x5d   :  { %15653 = vmatmul.mubr.msk.bf16.gmra.mrb[32].mxu0 %vm442_vm0, %v16487_v52  ;;  %v126_v52 = vld [vmem:[%s20099_s1 + $0x1f8] sm:$0xff] }
  0x5e   :  { %15656 = vmatprep.mubr.msk.bf16.mxu0 %vm442_vm0, %v16488_v53  ;;  %v129_v53 = vld [vmem:[%s20099_s1 + $0x210] sm:$0xff] }
  0x5f   :  { %1714 = vperm.xlu0 %16466, %v97_v17  }
  0x60   :  { %1719 = vperm.xlu1 %16467, %v98_v24  }
  0x63   :  { %1724 = vperm.xlu0 %16466, %v99_v21  }
  0x64   :  { %1729 = vperm.xlu1 %16467, %v100_v27  }
  0x65   :  { %15657 = vmatmul.mubr.msk.bf16.gmra.mrb[36].mxu0 %vm442_vm0, %v16489_v58  ;;  %v132_v58 = vld [vmem:[%s20099_s1 + $0x228] sm:$0xff] }
  0x66   :  { %15660 = vmatprep.mubr.msk.bf16.mxu0 %vm442_vm0, %v16490_v59  ;;  %v135_v59 = vld [vmem:[%s20099_s1 + $0x240] sm:$0xff] }
  0x67   :  { %1734 = vperm.xlu0 %16466, %v101_v23  }
  0x68   :  { %1739 = vperm.xlu1 %16467, %v102_v29  }
  0x6b   :  { %1744 = vperm.xlu0 %16466, %v103_v26  }
  0x6c   :  { %1749 = vperm.xlu1 %16467, %v104_v31  }
  0x6d   :  { %15661 = vmatmul.mubr.msk.bf16.gmra.mrb[40].mxu0 %vm442_vm0, %v16491_v1  ;;  %v138_v1 = vld [vmem:[%s20099_s1 + $0x258] sm:$0xff] }
  0x6e   :  { %15664 = vmatprep.mubr.msk.bf16.mxu0 %vm442_vm0, %v16492_v2  ;;  %v141_v2 = vld [vmem:[%s20099_s1 + $0x270] sm:$0xff] }
  0x6f   :  { %1754 = vperm.xlu0 %16466, %v105_v28   ;;  %v16519_v28 = vld [vmem:[%s20104_s6 + $0x88] sm:$0xff]  }
  0x70   :  { %1759 = vperm.xlu1 %16467, %v106_v33   ;;  %9529 = vmatpush1.bf16.msra.mxu0 %v16519_v28 }
  0x71   :  { %9530 = vmatprep.subr.bf16.mxu0 %v20141_v0 }
  0x73   :  { %1764 = vperm.xlu0 %16466, %v107_v30  }
  0x74   :  { %1769 = vperm.xlu1 %16467, %v108_v35  }
  0x75   :  { %15665 = vmatmul.mubr.msk.bf16.gmra.mrb[44].mxu0 %vm442_vm0, %v16493_v5 }
  0x76   :  { %15668 = vmatprep.mubr.msk.bf16.mxu0 %vm442_vm0, %v16494_v6 }
  0x77   :  { %1774 = vperm.xlu0 %16466, %v109_v32  }
  0x78   :  { %1779 = vperm.xlu1 %16467, %v110_v37  }
  0x7b   :  { %1784 = vperm.xlu0 %16466, %v111_v34  }
  0x7c   :  { %1789 = vperm.xlu1 %16467, %v112_v39  }
  0x7d   :  { %15669 = vmatmul.mubr.msk.bf16.gmra.mrb[48].mxu0 %vm442_vm0, %v16495_v13 }
  0x7e   :  { %15672 = vmatprep.mubr.msk.bf16.mxu0 %vm442_vm0, %v16496_v14 }
  0x7f   :  { %1794 = vperm.xlu0 %16466, %v113_v36  }
  0x80   :  { %1799 = vperm.xlu1 %16467, %v114_v41  }
  0x83   :  { %1804 = vperm.xlu0 %16466, %v115_v38  }
  0x84   :  { %1809 = vperm.xlu1 %16467, %v116_v43   ;;  %v16520_v43 = vld [vmem:[%s20104_s6 + $0x90] sm:$0xff]  }
  0x85   :  { %15673 = vmatmul.mubr.msk.bf16.gmra.mrb[52].mxu0 %vm442_vm0, %v16497_v19 }
  0x86   :  { %15676 = vmatprep.mubr.msk.bf16.mxu0 %vm442_vm0, %v16498_v20  ;;  %9531 = vmatpush1.bf16.msra.mxu0 %v16520_v43 }
  0x87   :  { %1814 = vperm.xlu0 %16466, %v117_v40   ;;  %9532 = vmatprep.subr.bf16.mxu0 %v20141_v0 }
  0x88   :  { %1819 = vperm.xlu1 %16467, %v118_v45  }
  0x8b   :  { %1824 = vperm.xlu0 %16466, %v119_v42  }
  0x8c   :  { %1829 = vperm.xlu1 %16467, %v120_v47  }
  0x8d   :  { %15677 = vmatmul.mubr.msk.bf16.gmra.mrb[56].mxu0 %vm442_vm0, %v16499_v25 }
  0x8f   :  { %1834 = vperm.xlu0 %16466, %v121_v44  }
  0x90   :  { %1839 = vperm.xlu1 %16467, %v122_v49  }
  0x93   :  { %1844 = vperm.xlu0 %16466, %v123_v46  }
  0x94   :  { %1849 = vperm.xlu1 %16467, %v124_v50  }
  0x97   :  { %1854 = vperm.xlu0 %16466, %v125_v48  }
  0x98   :  { %1859 = vperm.xlu1 %16467, %v126_v52  }
  0x9b   :  { %1864 = vperm.xlu0 %16466, %v127_v51  }
  0x9c   :  { %1869 = vperm.xlu1 %16467, %v128_v54  }
  0x9f   :  { %1874 = vperm.xlu0 %16466, %v129_v53  }
  0xa0   :  { %1879 = vperm.xlu1 %16467, %v130_v56  }
  0xa3   :  { %1884 = vperm.xlu0 %16466, %v131_v55  }
  0xa4   :  { %1889 = vperm.xlu1 %16467, %v132_v58  }
  0xa7   :  { %1894 = vperm.xlu0 %16466, %v133_v57  }
  0xa8   :  { %1899 = vperm.xlu1 %16467, %v134_v60  }
  0xab   :  { %1904 = vperm.xlu0 %16466, %v135_v59  }
  0xac   :  { %1909 = vperm.xlu1 %16467, %v136_v62  }
  0xaf   :  { %1914 = vperm.xlu0 %16466, %v137_v61   ;;  %v16521_v61 = vld [vmem:[%s20104_s6 + $0x98] sm:$0xff]  }
  0xb0   :  { %1919 = vperm.xlu1 %16467, %v138_v1   ;;  %9533 = vmatpush1.bf16.msra.mxu0 %v16521_v61 }
  0xb1   :  { %9534 = vmatprep.subr.bf16.mxu0 %v20141_v0 }
  0xb3   :  { %1924 = vperm.xlu0 %16466, %v139_v63  }
  0xb4   :  { %1929 = vperm.xlu1 %16467, %v140_v3  }
  0xb7   :  { %1934 = vperm.xlu0 %16466, %v141_v2  }
  0xf0   :  { %v15622_v5 = vpop.f32.mrb[0].mxu0  ;;  %v17846_v53 = vpop.f32.mrb[0].mxu1 }
  0xf1   :  { %v597_v6 = vpop.f32.mrb[1].mxu0  ;;  %v17763_v9 = vadd.f32 %v15622_v5, %v17757_v4  ;;  %v17851_v56 = vpop.f32.mrb[1].mxu1 }
  0xf2   :  { %v17760_v7 = vadd.f32 %v17757_v4, %v597_v6  ;;  %v15623_v8 = vpop.f32.mrb[2].mxu0  ;;  %v17857_v60 = vpop.f32.mrb[2].mxu1 }
  0xf3   :  { %20347 = vst [vmem:[#allocation11_spill] sm:$0xff] %v17763_v9  ;;  %v17766_v10 = vadd.f32 %v15623_v8, %v17757_v4  ;;  %v600_v11 = vpop.f32.mrb[3].mxu0  ;;  %v20140_v17 = vmax.f32 %v17763_v9, 0.0  ;;  %v17866_v1 = vpop.f32.mrb[3].mxu1 }
  0xf4   :  { %20346 = vst [vmem:[#allocation10_spill] sm:$0xff] %v17760_v7  ;;  %v17772_v13 = vadd.f32 %v17757_v4, %v600_v11  ;;  %v20139_v15 = vmax.f32 %v17760_v7, 0.0 }
  0xf5   :  { %20348 = vst [vmem:[#allocation12_spill] sm:$0xff] %v17766_v10  ;;  %v20138_v14 = vmax.f32 %v17766_v10, 0.0 }
  0xf6   :  { %20349 = vst [vmem:[#allocation13_spill] sm:$0xff] %v17772_v13  ;;  %v20137_v16 = vmax.f32 %v17772_v13, 0.0 }
  0xf7   :  { %v995_v20 = vpack.c.bf16 %v20138_v14, %v20140_v17 }
  0xf8   :  { %v994_v18 = vpack.c.bf16 %v20137_v16, %v20139_v15  ;;  %v15626_v19 = vpop.f32.mrb[4].mxu0 }
  0xf9   :  { %v17788_v21 = vadd.f32 %v15626_v19, %v17757_v4  ;;  %v613_v22 = vpop.f32.mrb[5].mxu0 }
  0xfa   :  { %v17791_v23 = vadd.f32 %v17757_v4, %v613_v22  ;;  %v15627_v24 = vpop.f32.mrb[6].mxu0  ;;  %15716 = vmatprep.mubr.bf16.mxu1 %v994_v18  ;;  %v17882_v18 = vpop.f32.mrb[4].mxu1 }
  0xfb   :  { %20350 = vst [vmem:[#allocation14_spill] sm:$0xff] %v17788_v21  ;;  %v20136_v25 = vmax.f32 %v17788_v21, 0.0  ;;  %v17795_v26 = vadd.f32 %v15627_v24, %v17757_v4  ;;  %v616_v27 = vpop.f32.mrb[7].mxu0  ;;  %15717 = vmatmul.mubr.bf16.vlgmr.msra.gmra.mrb[20].mxu1 %v995_v20  ;;  %v17887_v22 = vpop.f32.mrb[5].mxu1 }
  0xfc   :  { %20351 = vst [vmem:[#allocation15_spill] sm:$0xff] %v17791_v23  ;;  %v20131_v29 = vmax.f32 %v17791_v23, 0.0  ;;  %v17802_v30 = vadd.f32 %v17757_v4, %v616_v27 }
  0xfd   :  { %20352 = vst [vmem:[#allocation16_spill] sm:$0xff] %v17795_v26  ;;  %v20130_v31 = vmax.f32 %v17795_v26, 0.0 }
  0xfe   :  { %20353 = vst [vmem:[#allocation17_spill] sm:$0xff] %v17802_v30  ;;  %v20129_v32 = vmax.f32 %v17802_v30, 0.0 }
  0xff   :  { %v997_v33 = vpack.c.bf16 %v20130_v31, %v20136_v25 }
 0x100   :  { %v996_v34 = vpack.c.bf16 %v20129_v32, %v20131_v29  ;;  %v15630_v35 = vpop.f32.mrb[8].mxu0 }
 0x101   :  { %v17816_v36 = vadd.f32 %v15630_v35, %v17757_v4  ;;  %v629_v37 = vpop.f32.mrb[9].mxu0 }
 0x102   :  { %v17819_v38 = vadd.f32 %v17757_v4, %v629_v37  ;;  %v15631_v39 = vpop.f32.mrb[10].mxu0  ;;  %15720 = vmatprep.mubr.bf16.mxu1 %v996_v34  ;;  %v16522_v34 = vld [vmem:[%s20104_s6 + $0xa0] sm:$0xff]  }
 0x103   :  { %20354 = vst [vmem:[#allocation18_spill] sm:$0xff] %v17816_v36  ;;  %v20128_v40 = vmax.f32 %v17816_v36, 0.0  ;;  %v17823_v41 = vadd.f32 %v15631_v39, %v17757_v4  ;;  %v632_v42 = vpop.f32.mrb[11].mxu0  ;;  %15721 = vmatmul.mubr.bf16.gmra.mrb[24].mxu1 %v997_v33  ;;  %v17893_v33 = vpop.f32.mrb[6].mxu1  ;;  %9535 = vmatpush1.bf16.msra.mxu0 %v16522_v34 }
 0x104   :  { %20355 = vst [vmem:[#allocation19_spill] sm:$0xff] %v17819_v38  ;;  %v20127_v44 = vmax.f32 %v17819_v38, 0.0  ;;  %v17830_v45 = vadd.f32 %v17757_v4, %v632_v42  ;;  %v17902_v39 = vpop.f32.mrb[7].mxu1  ;;  %v16525_v42 = vld [vmem:[%s20104_s6] sm:$0xff]   ;;  %9536 = vmatprep.subr.bf16.mxu0 %v20141_v0 }
 0x105   :  { %20356 = vst [vmem:[#allocation20_spill] sm:$0xff] %v17823_v41  ;;  %v20126_v46 = vmax.f32 %v17823_v41, 0.0  ;;  %9175 = vmatpush1.bf16.msra.mxu1 %v16525_v42 }
 0x106   :  { %20357 = vst [vmem:[#allocation21_spill] sm:$0xff] %v17830_v45  ;;  %v20125_v47 = vmax.f32 %v17830_v45, 0.0  ;;  %9176 = vmatprep.subr.bf16.mxu1 %v20141_v0 }
 0x107   :  { %v999_v48 = vpack.c.bf16 %v20126_v46, %v20128_v40  ;;  %v16533_v40 = vld [vmem:[%s20104_s6 + $0x28] sm:$0xff]  }
 0x108   :  { %v998_v49 = vpack.c.bf16 %v20125_v47, %v20127_v44  ;;  %v15634_v50 = vpop.f32.mrb[12].mxu0 }
 0x109   :  { %v17844_v51 = vadd.f32 %v15634_v50, %v17757_v4  ;;  %v645_v52 = vpop.f32.mrb[13].mxu0 }
 0x10a   :  { %v17849_v54 = vadd.f32 %v17757_v4, %v645_v52  ;;  %v15635_v55 = vpop.f32.mrb[14].mxu0  ;;  %15724 = vmatprep.mubr.bf16.mxu1 %v998_v49 }
 0x10b   :  { %20358 = vst [vmem:[#allocation22_spill] sm:$0xff] %v17844_v51  ;;  %v20124_v57 = vmax.f32 %v17844_v51, 0.0  ;;  %v17855_v58 = vadd.f32 %v15635_v55, %v17757_v4  ;;  %v648_v59 = vpop.f32.mrb[15].mxu0  ;;  %15725 = vmatmul.mubr.bf16.gmra.mrb[28].mxu1 %v999_v48  ;;  %v16523_v48 = vld [vmem:[%s20104_s6 + $0xa8] sm:$0xff]  }
 0x10c   :  { %20359 = vst [vmem:[#allocation23_spill] sm:$0xff] %v17849_v54  ;;  %v20119_v62 = vmax.f32 %v17849_v54, 0.0  ;;  %v17864_v63 = vadd.f32 %v17757_v4, %v648_v59  ;;  %v16526_v59 = vld [vmem:[%s20104_s6 + $0x8] sm:$0xff]   ;;  %9537 = vmatpush1.bf16.msra.mxu0 %v16523_v48 }
 0x10d   :  { %20360 = vst [vmem:[#allocation24_spill] sm:$0xff] %v17855_v58  ;;  %v20118_v2 = vmax.f32 %v17855_v58, 0.0  ;;  %9538 = vmatprep.subr.bf16.mxu0 %v20141_v0  ;;  %9177 = vmatpush1.bf16.msra.mxu1 %v16526_v59 }
 0x10e   :  { %20361 = vst [vmem:[#allocation25_spill] sm:$0xff] %v17864_v63  ;;  %v20117_v3 = vmax.f32 %v17864_v63, 0.0  ;;  %9178 = vmatprep.subr.bf16.mxu1 %v20141_v0 }
 0x10f   :  { %v1001_v5 = vpack.c.bf16 %v20118_v2, %v20124_v57 }
 0x110   :  { %v1000_v6 = vpack.c.bf16 %v20117_v3, %v20119_v62  ;;  %v15638_v8 = vpop.f32.mrb[16].mxu0 }
 0x111   :  { %v17880_v11 = vadd.f32 %v15638_v8, %v17757_v4  ;;  %v661_v12 = vpop.f32.mrb[17].mxu0  ;;  %v16524_v8 = vld [vmem:[%s20104_s6 + $0xb0] sm:$0xff]  }
 0x112   :  { %v17885_v19 = vadd.f32 %v17757_v4, %v661_v12  ;;  %v15639_v20 = vpop.f32.mrb[18].mxu0  ;;  %15728 = vmatprep.mubr.bf16.mxu1 %v1000_v6  ;;  %v17928_v6 = vpop.f32.mrb[8].mxu1  ;;  %9539 = vmatpush1.bf16.msra.mxu0 %v16524_v8 }
 0x113   :  { %20362 = vst [vmem:[#allocation26_spill] sm:$0xff] %v17880_v11  ;;  %v20116_v24 = vmax.f32 %v17880_v11, 0.0  ;;  %v17891_v27 = vadd.f32 %v15639_v20, %v17757_v4  ;;  %v664_v28 = vpop.f32.mrb[19].mxu0  ;;  %15729 = vmatmul.mubr.bf16.gmra.mrb[32].mxu1 %v1001_v5  ;;  %9540 = vmatprep.subr.bf16.mxu0 %v20141_v0 }
 0x114   :  { %20363 = vst [vmem:[#allocation27_spill] sm:$0xff] %v17885_v19  ;;  %v20115_v35 = vmax.f32 %v17885_v19, 0.0  ;;  %v17900_v37 = vadd.f32 %v17757_v4, %v664_v28  ;;  %v17936_v28 = vpop.f32.mrb[9].mxu1 }
 0x115   :  { %20364 = vst [vmem:[#allocation28_spill] sm:$0xff] %v17891_v27  ;;  %v20114_v43 = vmax.f32 %v17891_v27, 0.0  ;;  %v17943_v48 = vpop.f32.mrb[10].mxu1 }
 0x116   :  { %20365 = vst [vmem:[#allocation29_spill] sm:$0xff] %v17900_v37  ;;  %v20113_v49 = vmax.f32 %v17900_v37, 0.0 }
 0x117   :  { %v1003_v50 = vpack.c.bf16 %v20114_v43, %v20116_v24  ;;  %v17949_v43 = vpop.f32.mrb[11].mxu1  ;;  %v16530_v24 = vld [vmem:[%s20104_s6 + $0x18] sm:$0xff]  }
 0x118   :  { %v1002_v52 = vpack.c.bf16 %v20113_v49, %v20115_v35  ;;  %v15642_v55 = vpop.f32.mrb[20].mxu0  ;;  %v17975_v62 = vpop.f32.mrb[12].mxu1 }
 0x119   :  { %v17926_v61 = vadd.f32 %v15642_v55, %v17757_v4  ;;  %v677_v5 = vpop.f32.mrb[21].mxu0 }
 0x11a   :  { %v17934_v12 = vadd.f32 %v17757_v4, %v677_v5  ;;  %v15643_v20 = vpop.f32.mrb[22].mxu0  ;;  %15732 = vmatprep.mubr.bf16.mxu1 %v1002_v52  ;;  %v16528_v52 = vld [vmem:[%s20104_s6 + $0x10] sm:$0xff]  }
 0x11b   :  { %20366 = vst [vmem:[#allocation30_spill] sm:$0xff] %v17926_v61  ;;  %v20123_v34 = vmax.f32 %v17926_v61, 0.0  ;;  %v17941_v42 = vadd.f32 %v15643_v20, %v17757_v4  ;;  %v680_v55 = vpop.f32.mrb[23].mxu0  ;;  %15733 = vmatmul.mubr.bf16.gmra.mrb[36].mxu1 %v1003_v50  ;;  %v16527_v50 = vld [vmem:[%s20104_s6 + $0xb8] sm:$0xff]  }
 0x11c   :  { %20367 = vst [vmem:[#allocation31_spill] sm:$0xff] %v17934_v12  ;;  %v20122_v49 = vmax.f32 %v17934_v12, 0.0  ;;  %v17947_v5 = vadd.f32 %v17757_v4, %v680_v55  ;;  %9179 = vmatpush1.bf16.msra.mxu1 %v16528_v52  ;;  %9541 = vmatpush1.bf16.msra.mxu0 %v16527_v50 }
 0x11d   :  { %20368 = vst [vmem:[#allocation32_spill] sm:$0xff] %v17941_v42  ;;  %v20120_v35 = vmax.f32 %v17941_v42, 0.0  ;;  %9180 = vmatprep.subr.bf16.mxu1 %v20141_v0  ;;  %9542 = vmatprep.subr.bf16.mxu0 %v20141_v0 }
 0x11e   :  { %20369 = vst [vmem:[#allocation33_spill] sm:$0xff] %v17947_v5  ;;  %v20121_v20 = vmax.f32 %v17947_v5, 0.0 }
 0x11f   :  { %v1005_v59 = vpack.c.bf16 %v20120_v35, %v20123_v34  ;;  %v16529_v35 = vld [vmem:[%s20104_s6 + $0xc0] sm:$0xff]  }
 0x120   :  { %v1004_v8 = vpack.c.bf16 %v20121_v20, %v20122_v49  ;;  %v15646_v55 = vpop.f32.mrb[24].mxu0  ;;  %v17984_v49 = vpop.f32.mrb[13].mxu1  ;;  %9181 = vmatpush1.bf16.msra.mxu1 %v16530_v24  ;;  %9543 = vmatpush1.bf16.msra.mxu0 %v16529_v35 }
 0x121   :  { %v17973_v3 = vadd.f32 %v15646_v55, %v17757_v4  ;;  %v693_v2 = vpop.f32.mrb[25].mxu0  ;;  %v17991_v57 = vpop.f32.mrb[14].mxu1  ;;  %9182 = vmatprep.subr.bf16.mxu1 %v20141_v0  ;;  %9544 = vmatprep.subr.bf16.mxu0 %v20141_v0 }
 0x122   :  { %v17982_v20 = vadd.f32 %v17757_v4, %v693_v2  ;;  %v15647_v52 = vpop.f32.mrb[26].mxu0  ;;  %15736 = vmatprep.mubr.bf16.mxu1 %v1004_v8  ;;  %v17997_v46 = vpop.f32.mrb[15].mxu1  ;;  %v16531_v8 = vld [vmem:[%s20104_s6 + $0x20] sm:$0xff]  }
 0x123   :  { %20370 = vst [vmem:[#allocation34_spill] sm:$0xff] %v17973_v3  ;;  %v20135_v55 = vmax.f32 %v17973_v3, 0.0  ;;  %v17989_v34 = vadd.f32 %v15647_v52, %v17757_v4  ;;  %v696_v50 = vpop.f32.mrb[27].mxu0  ;;  %15737 = vmatmul.mubr.bf16.gmra.mrb[40].mxu1 %v1005_v59  ;;  %v16532_v59 = vld [vmem:[%s20104_s6 + $0xc8] sm:$0xff]   ;;  %v18023_v29 = vpop.f32.mrb[16].mxu1 }
 0x124   :  { %20371 = vst [vmem:[#allocation35_spill] sm:$0xff] %v17982_v20  ;;  %v20134_v47 = vmax.f32 %v17982_v20, 0.0  ;;  %v17995_v2 = vadd.f32 %v17757_v4, %v696_v50  ;;  %9183 = vmatpush1.bf16.msra.mxu1 %v16531_v8  ;;  %9545 = vmatpush1.bf16.msra.mxu0 %v16532_v59 }
 0x125   :  { %20372 = vst [vmem:[#allocation36_spill] sm:$0xff] %v17989_v34  ;;  %v20132_v44 = vmax.f32 %v17989_v34, 0.0  ;;  %9184 = vmatprep.subr.bf16.mxu1 %v20141_v0  ;;  %9546 = vmatprep.subr.bf16.mxu0 %v20141_v0 }
 0x126   :  { %20373 = vst [vmem:[#allocation37_spill] sm:$0xff] %v17995_v2  ;;  %v20133_v52 = vmax.f32 %v17995_v2, 0.0  ;;  %v20379_v2 = vmov 0  }
 0x127   :  { %v1007_v24 = vpack.c.bf16 %v20132_v44, %v20135_v55  ;;  %v16535_v44 = vld [vmem:[%s20104_s6 + $0xd0] sm:$0xff]  }
 0x128   :  { %v1006_v35 = vpack.c.bf16 %v20133_v52, %v20134_v47  ;;  %v15650_v50 = vpop.f32.mrb[28].mxu0  ;;  %v18032_v47 = vpop.f32.mrb[17].mxu1  ;;  %9185 = vmatpush1.bf16.msra.mxu1 %v16533_v40  ;;  %9547 = vmatpush1.bf16.msra.mxu0 %v16535_v44  ;;  %v16536_v44 = vld [vmem:[%s20104_s6 + $0x38] sm:$0xff]  }
 0x129   :  { %v18021_v32 = vadd.f32 %v15650_v50, %v17757_v4  ;;  %v709_v31 = vpop.f32.mrb[29].mxu0  ;;  %v15699_v59 = vpop.f32.mrb[18].mxu1  ;;  %9186 = vmatprep.subr.bf16.mxu1 %v20141_v0  ;;  %9548 = vmatprep.subr.bf16.mxu0 %v20141_v0 }
 0x12a   :  { %v18030_v52 = vadd.f32 %v17757_v4, %v709_v31  ;;  %v15651_v8 = vpop.f32.mrb[30].mxu0  ;;  %15740 = vmatprep.mubr.bf16.mxu1 %v1006_v35  ;;  %v18043_v31 = vpop.f32.mrb[19].mxu1  ;;  %v16534_v35 = vld [vmem:[%s20104_s6 + $0x30] sm:$0xff]  }
 0x12b   :  { %20374 = vst [vmem:[#allocation38_spill] sm:$0xff] %v18021_v32  ;;  %v20145_v50 = vmax.f32 %v18021_v32, 0.0  ;;  %v18037_v55 = vadd.f32 %v15651_v8, %v17757_v4  ;;  %v712_v25 = vpop.f32.mrb[31].mxu0  ;;  %15741 = vmatmul.mubr.bf16.gmra.mrb[44].mxu1 %v1007_v24  ;;  %v16538_v24 = vld [vmem:[%s20104_s6 + $0xd8] sm:$0xff]  }
 0x12c   :  { %20375 = vst [vmem:[#allocation39_spill] sm:$0xff] %v18030_v52  ;;  %v20147_v16 = vmax.f32 %v18030_v52, 0.0  ;;  %v18041_v14 = vadd.f32 %v17757_v4, %v712_v25  ;;  %9187 = vmatpush1.bf16.msra.mxu1 %v16534_v35  ;;  %9549 = vmatpush1.bf16.msra.mxu0 %v16538_v24 }
 0x12d   :  { %20376 = vst [vmem:[#allocation40_spill] sm:$0xff] %v18037_v55  ;;  %v20144_v15 = vmax.f32 %v18037_v55, 0.0  ;;  %9188 = vmatprep.subr.bf16.mxu1 %v20379_v2  ;;  %9550 = vmatprep.subr.bf16.mxu0 %v20379_v2 }
 0x12e   :  { %20377 = vst [vmem:[#allocation41_spill] sm:$0xff] %v18041_v14  ;;  %v20146_v8 = vmax.f32 %v18041_v14, 0.0 }
 0x12f   :  { %v1009_v25 = vpack.c.bf16 %v20144_v15, %v20145_v50 }
 0x130   :  { %v1008_v40 = vpack.c.bf16 %v20146_v8, %v20147_v16  ;;  %v15654_v59 = vpop.f32.mrb[32].mxu0  ;;  %9189 = vmatpush1.bf16.msra.mxu1 %v16536_v44  ;;  %v16539_v44 = vld [vmem:[%s20104_s6 + $0x48] sm:$0xff]  }
 0x131   :  { %v18067_v17 = vadd.f32 %v15654_v59, %v17757_v4  ;;  %v725_v0 = vpop.f32.mrb[33].mxu0  ;;  %9190 = vmatprep.subr.bf16.mxu1 %v20379_v2 }
 0x132   :  { %v18071_v15 = vadd.f32 %v17757_v4, %v725_v0  ;;  %v15655_v50 = vpop.f32.mrb[34].mxu0  ;;  %15744 = vmatprep.mubr.bf16.mxu1 %v1008_v40  ;;  %v16537_v0 = vld [vmem:[%s20104_s6 + $0x40] sm:$0xff]  }
 0x133   :  { %20378 = vst [vmem:[#allocation42_spill] sm:$0xff] %v18067_v17  ;;  %v20153_v35 = vmax.f32 %v18067_v17, 0.0  ;;  %v18076_v8 = vadd.f32 %v15655_v50, %v17757_v4  ;;  %v728_v16 = vpop.f32.mrb[35].mxu0  ;;  %15745 = vmatmul.mubr.bf16.gmra.mrb[48].mxu1 %v1009_v25 }
 0x134   :  { %20380 = vst [vmem:[#allocation43_spill] sm:$0xff] %v18071_v15  ;;  %v20155_v59 = vmax.f32 %v18071_v15, 0.0  ;;  %v18080_v14 = vadd.f32 %v17757_v4, %v728_v16  ;;  %9191 = vmatpush1.bf16.msra.mxu1 %v16537_v0 }
 0x135   :  { %20381 = vst [vmem:[#allocation44_spill] sm:$0xff] %v18076_v8  ;;  %v20152_v24 = vmax.f32 %v18076_v8, 0.0  ;;  %9192 = vmatprep.subr.bf16.mxu1 %v20379_v2 }
 0x136   :  { %20382 = vst [vmem:[#allocation45_spill] sm:$0xff] %v18080_v14  ;;  %v20154_v40 = vmax.f32 %v18080_v14, 0.0 }
 0x137   :  { %v1011_v50 = vpack.c.bf16 %v20152_v24, %v20153_v35 }
 0x138   :  { %v1010_v16 = vpack.c.bf16 %v20154_v40, %v20155_v59  ;;  %v15658_v25 = vpop.f32.mrb[36].mxu0  ;;  %9193 = vmatpush1.bf16.msra.mxu1 %v16539_v44 }
 0x139   :  { %v18100_v55 = vadd.f32 %v15658_v25, %v17757_v4  ;;  %v741_v52 = vpop.f32.mrb[37].mxu0  ;;  %9194 = vmatprep.subr.bf16.mxu1 %v20379_v2 }
 0x13a   :  { %v18104_v8 = vadd.f32 %v17757_v4, %v741_v52  ;;  %v15659_v24 = vpop.f32.mrb[38].mxu0  ;;  %15748 = vmatprep.mubr.bf16.mxu1 %v1010_v16 }
 0x13b   :  { %20383 = vst [vmem:[#allocation46_spill] sm:$0xff] %v18100_v55  ;;  %v20162_v35 = vmax.f32 %v18100_v55, 0.0  ;;  %v18108_v40 = vadd.f32 %v15659_v24, %v17757_v4  ;;  %v744_v0 = vpop.f32.mrb[39].mxu0  ;;  %15749 = vmatmul.mubr.bf16.gmra.mrb[52].mxu1 %v1011_v50 }
 0x13c   :  { %20384 = vst [vmem:[#allocation47_spill] sm:$0xff] %v18104_v8  ;;  %v20164_v59 = vmax.f32 %v18104_v8, 0.0  ;;  %v18112_v25 = vadd.f32 %v17757_v4, %v744_v0 }
 0x13d   :  { %20385 = vst [vmem:[#allocation48_spill] sm:$0xff] %v18108_v40  ;;  %v20161_v14 = vmax.f32 %v18108_v40, 0.0 }
 0x13e   :  { %20386 = vst [vmem:[#allocation49_spill] sm:$0xff] %v18112_v25  ;;  %v20163_v52 = vmax.f32 %v18112_v25, 0.0 }
 0x13f   :  { %v1013_v24 = vpack.c.bf16 %v20161_v14, %v20162_v35 }
 0x140   :  { %v1012_v50 = vpack.c.bf16 %v20163_v52, %v20164_v59  ;;  %v15662_v16 = vpop.f32.mrb[40].mxu0 }
 0x141   :  { %v18126_v0 = vadd.f32 %v15662_v16, %v17757_v4  ;;  %v757_v44 = vpop.f32.mrb[41].mxu0 }
 0x142   :  { %v18129_v15 = vadd.f32 %v17757_v4, %v757_v44  ;;  %v15663_v17 = vpop.f32.mrb[42].mxu0  ;;  %15752 = vmatprep.mubr.bf16.mxu1 %v1012_v50 }
 0x143   :  { %20387 = vst [vmem:[#allocation50_spill] sm:$0xff] %v18126_v0  ;;  %v20172_v55 = vmax.f32 %v18126_v0, 0.0  ;;  %v18133_v40 = vadd.f32 %v15663_v17, %v17757_v4  ;;  %v760_v14 = vpop.f32.mrb[43].mxu0  ;;  %15753 = vmatmul.mubr.bf16.gmra.mrb[56].mxu1 %v1013_v24 }
 0x144   :  { %20388 = vst [vmem:[#allocation51_spill] sm:$0xff] %v18129_v15  ;;  %v20171_v35 = vmax.f32 %v18129_v15, 0.0  ;;  %v18137_v52 = vadd.f32 %v17757_v4, %v760_v14 }
 0x145   :  { %20389 = vst [vmem:[#allocation52_spill] sm:$0xff] %v18133_v40  ;;  %v20169_v16 = vmax.f32 %v18133_v40, 0.0 }
 0x146   :  { %20390 = vst [vmem:[#allocation53_spill] sm:$0xff] %v18137_v52  ;;  %v20170_v59 = vmax.f32 %v18137_v52, 0.0 }
 0x147   :  { %v1015_v50 = vpack.c.bf16 %v20169_v16, %v20172_v55 }
 0x148   :  { %v1014_v17 = vpack.c.bf16 %v20170_v59, %v20171_v35  ;;  %v15666_v24 = vpop.f32.mrb[44].mxu0  ;;  %v16540_v59 = vld [vmem:[%s20104_s6 + $0x50] sm:$0xff]  }
 0x149   :  { %v18150_v44 = vadd.f32 %v15666_v24, %v17757_v4  ;;  %v773_v14 = vpop.f32.mrb[45].mxu0  ;;  %9195 = vmatpush1.bf16.msra.mxu1 %v16540_v59  ;;  %v17234_v59 = vmov 0.0  }
 0x14a   :  { %v18153_v25 = vadd.f32 %v17757_v4, %v773_v14  ;;  %v15667_v8 = vpop.f32.mrb[46].mxu0  ;;  %15756 = vmatprep.mubr.bf16.mxu1 %v1014_v17  ;;  %9196 = vmatprep.subr.bf16.mxu1 %v20379_v2  ;;  %1536 = vst [vmem:[#allocation2] sm:$0xff] %v17234_v59  ;;  %1537 = vst [vmem:[#allocation2 + $0x8] sm:$0xff] %v17234_v59 }
 0x14b   :  { %20391 = vst [vmem:[#allocation54_spill] sm:$0xff] %v18150_v44  ;;  %v20175_v0 = vmax.f32 %v18150_v44, 0.0  ;;  %v18157_v40 = vadd.f32 %v15667_v8, %v17757_v4  ;;  %v776_v16 = vpop.f32.mrb[47].mxu0  ;;  %15757 = vmatmul.mubr.bf16.gmra.mrb[60].mxu1 %v1015_v50  ;;  %v16542_v50 = vld [vmem:[%s20104_s6 + $0x58] sm:$0xff]   ;;  %1538 = vst [vmem:[#allocation2 + $0x10] sm:$0xff] %v17234_v59 }
 0x14c   :  { %20392 = vst [vmem:[#allocation55_spill] sm:$0xff] %v18153_v25  ;;  %v20178_v24 = vmax.f32 %v18153_v25, 0.0  ;;  %v18164_v35 = vadd.f32 %v17757_v4, %v776_v16  ;;  %1541 = vst [vmem:[#allocation2 + $0x2a0] sm:$0xff] %v17234_v59 }
 0x14d   :  { %20393 = vst [vmem:[#allocation56_spill] sm:$0xff] %v18157_v40  ;;  %v20174_v14 = vmax.f32 %v18157_v40, 0.0  ;;  %1539 = vst [vmem:[#allocation2 + $0x290] sm:$0xff] %v17234_v59  ;;  %9197 = vmatpush1.bf16.msra.mxu1 %v16542_v50 }
 0x14e   :  { %20394 = vst [vmem:[#allocation57_spill] sm:$0xff] %v18164_v35  ;;  %v20177_v17 = vmax.f32 %v18164_v35, 0.0  ;;  %1540 = vst [vmem:[#allocation2 + $0x298] sm:$0xff] %v17234_v59  ;;  %9198 = vmatprep.subr.bf16.mxu1 %v20379_v2 }
 0x14f   :  { %v1017_v8 = vpack.c.bf16 %v20174_v14, %v20175_v0 }
 0x150   :  { %v1016_v16 = vpack.c.bf16 %v20177_v17, %v20178_v24  ;;  %v15670_v55 = vpop.f32.mrb[48].mxu0 }
 0x151   :  { %v18181_v40 = vadd.f32 %v15670_v55, %v17757_v4  ;;  %v789_v14 = vpop.f32.mrb[49].mxu0  ;;  %v16543_v55 = vld [vmem:[%s20104_s6 + $0x60] sm:$0xff]  }
 0x152   :  { %v18184_v0 = vadd.f32 %v17757_v4, %v789_v14  ;;  %v15671_v25 = vpop.f32.mrb[50].mxu0  ;;  %15760 = vmatprep.mubr.bf16.mxu1 %v1016_v16  ;;  %9199 = vmatpush1.bf16.msra.mxu1 %v16543_v55  ;;  %v2095_v50 = vld [vmem:[#allocation2 + $0x5] sm:$0xff]  ;;  %v2096_v44 = vld [vmem:[#allocation2 + $0xd] sm:$0xff] }
 0x153   :  { %20395 = vst [vmem:[#allocation58_spill] sm:$0xff] %v18181_v40  ;;  %v20189_v17 = vmax.f32 %v18181_v40, 0.0  ;;  %v18189_v24 = vadd.f32 %v15671_v25, %v17757_v4  ;;  %v792_v35 = vpop.f32.mrb[51].mxu0  ;;  %15761 = vmatmul.mubr.bf16.gmra.mrb[64].mxu1 %v1017_v8  ;;  %v16541_v25 = vld [vmem:[%s20104_s6 + $0xe0] sm:$0xff]   ;;  %9200 = vmatprep.subr.bf16.mxu1 %v20379_v2  ;;  %v14631_v32 = vpack.c.bf16 %v2095_v50, %v2095_v50  ;;  %v2571_v40 = vld [vmem:[#allocation2 + $0xe] sm:$0xff] }
 0x154   :  { %20396 = vst [vmem:[#allocation59_spill] sm:$0xff] %v18184_v0  ;;  %v18196_v14 = vadd.f32 %v17757_v4, %v792_v35  ;;  %v16545_v35 = vld [vmem:[%s20104_s6 + $0x68] sm:$0xff]   ;;  %v20399_v55 = vmax.f32 %v18184_v0, 0.0  ;;  %9551 = vmatpush1.bf16.msra.mxu0 %v16541_v25  ;;  %v14632_v34 = vpack.c.bf16 %v2096_v44, %v2096_v44  ;;  %v14711_v3 = vpack.c.bf16 %v2571_v40, %v2571_v40 }
 0x155   :  { %20397 = vst [vmem:[#allocation60_spill] sm:$0xff] %v18189_v24  ;;  %v20188_v16 = vmax.f32 %v18189_v24, 0.0  ;;  %v2570_v20 = vld [vmem:[#allocation2 + $0x6] sm:$0xff]  ;;  %9552 = vmatprep.subr.bf16.mxu0 %v20379_v2  ;;  %2491 = vst [vmem:[#allocation3] sm:$0xf] %v14631_v32 }
 0x156   :  { %20398 = vst [vmem:[#allocation61_spill] sm:$0xff] %v18196_v14  ;;  %v20197_v59 = vmax.f32 %v18196_v14, 0.0  ;;  %9201 = vmatpush1.bf16.msra.mxu1 %v16545_v35  ;;  %2492 = vst [vmem:[#allocation3 + $0x24] sm:$0xf] %v14632_v34  ;;  %v3045_v34 = vld [vmem:[#allocation2 + $0x7] sm:$0xff] }
 0x157   :  { %v1019_v8 = vpack.c.bf16 %v20188_v16, %v20189_v17  ;;  %v14710_v17 = vpack.c.bf16 %v2570_v20, %v2570_v20  ;;  %9202 = vmatprep.subr.bf16.mxu1 %v20379_v2  ;;  %v16546_v20 = vld [vmem:[%s20104_s6 + $0x70] sm:$0xff]   ;;  %2967 = vst [vmem:[#allocation3 + $0x28] sm:$0xf] %v14711_v3  ;;  %v14789_v25 = vpack.c.bf16 %v3045_v34, %v3045_v34 }
 0x158   :  { %v1018_v52 = vpack.c.bf16 %v20197_v59, %v20399_v55  ;;  %v15674_v15 = vpop.f32.mrb[52].mxu0 }
 0x159   :  { %v18216_v24 = vadd.f32 %v15674_v15, %v17757_v4  ;;  %v805_v16 = vpop.f32.mrb[53].mxu0  ;;  %2966 = vst [vmem:[#allocation3 + $0x4] sm:$0xf] %v14710_v17  ;;  %v16548_v17 = vld [vmem:[%s20104_s6 + $0x78] sm:$0xff]   ;;  %3441 = vst [vmem:[#allocation3 + $0x8] sm:$0xf] %v14789_v25 }
 0x15a   :  { %v18220_v0 = vadd.f32 %v17757_v4, %v805_v16  ;;  %v15675_v14 = vpop.f32.mrb[54].mxu0  ;;  %15764 = vmatprep.mubr.bf16.mxu1 %v1018_v52  ;;  %9203 = vmatpush1.bf16.msra.mxu1 %v16546_v20  ;;  %v16544_v16 = vld [vmem:[%s20104_s6 + $0xe8] sm:$0xff]   ;;  %v18257_v20 = vadd.f32 %v17757_v4, %v17866_v1  ;;  %v16547_v25 = vld [vmem:[%s20104_s6 + $0xf0] sm:$0xff]  }
 0x15b   :  { %20400 = vst [vmem:[#allocation62_spill] sm:$0xff] %v18216_v24  ;;  %v20194_v44 = vmax.f32 %v18216_v24, 0.0  ;;  %v18225_v15 = vadd.f32 %v15675_v14, %v17757_v4  ;;  %v808_v50 = vpop.f32.mrb[55].mxu0  ;;  %15765 = vmatmul.mubr.bf16.gmra.mrb[68].mxu1 %v1019_v8  ;;  %9204 = vmatprep.subr.bf16.mxu1 %v20379_v2  ;;  %v3046_v8 = vld [vmem:[#allocation2 + $0xf] sm:$0xff] }
 0x15c   :  { %20401 = vst [vmem:[#allocation63_spill] sm:$0xff] %v18220_v0  ;;  %v20196_v40 = vmax.f32 %v18220_v0, 0.0  ;;  %v18232_v52 = vadd.f32 %v17757_v4, %v808_v50  ;;  %v18253_v50 = vadd.f32 %v17757_v4, %v17851_v56  ;;  %20405 = vst [vmem:[#allocation67_spill] sm:$0xff] %v18257_v20  ;;  %9553 = vmatpush1.bf16.msra.mxu0 %v16544_v16 }
 0x15d   :  { %20402 = vst [vmem:[#allocation64_spill] sm:$0xff] %v18225_v15  ;;  %v20193_v32 = vmax.f32 %v18225_v15, 0.0  ;;  %v14790_v34 = vpack.c.bf16 %v3046_v8, %v3046_v8  ;;  %9554 = vmatprep.subr.bf16.mxu0 %v20379_v2 }
 0x15e   :  { %20403 = vst [vmem:[#allocation65_spill] sm:$0xff] %v18232_v52  ;;  %v20195_v14 = vmax.f32 %v18232_v52, 0.0  ;;  %20404 = vst [vmem:[#allocation66_spill] sm:$0xff] %v18253_v50  ;;  %9205 = vmatpush1.bf16.msra.mxu1 %v16548_v17 }
 0x15f   :  { %v1021_v3 = vpack.c.bf16 %v20193_v32, %v20194_v44  ;;  %3442 = vst [vmem:[#allocation3 + $0x2c] sm:$0xf] %v14790_v34  ;;  %v18288_v34 = vadd.f32 %v17846_v53, %v17757_v4 }
 0x160   :  { %v1020_v35 = vpack.c.bf16 %v20195_v14, %v20196_v40  ;;  %v15678_v55 = vpop.f32.mrb[56].mxu0  ;;  %9555 = vmatpush1.bf16.msra.mxu0 %v16547_v25  ;;  %v16552_v25 = vld [vmem:[%s20104_s6 + $0xf8] sm:$0xff]  }
 0x161   :  { %v18260_v32 = vadd.f32 %v15678_v55, %v17757_v4  ;;  %v821_v44 = vpop.f32.mrb[57].mxu0  ;;  %9556 = vmatprep.subr.bf16.mxu0 %v20379_v2  ;;  %20410 = vst [vmem:[#allocation72_spill] sm:$0xff] %v18288_v34 }
 0x162   :  { %v18264_v14 = vadd.f32 %v17757_v4, %v821_v44  ;;  %v15679_v40 = vpop.f32.mrb[58].mxu0  ;;  %15768 = vmatprep.mubr.bf16.mxu1 %v1020_v35  ;;  %v20204_v44 = vmax.f32 %v18253_v50, 0.0  ;;  %v20202_v35 = vmax.f32 %v18257_v20, 0.0 }
 0x163   :  { %20406 = vst [vmem:[#allocation68_spill] sm:$0xff] %v18260_v32  ;;  %v20199_v56 = vmax.f32 %v18260_v32, 0.0  ;;  %v18268_v1 = vadd.f32 %v15679_v40, %v17757_v4  ;;  %v824_v16 = vpop.f32.mrb[59].mxu0  ;;  %15769 = vmatmul.mubr.bf16.gmra.mrb[72].mxu1 %v1021_v3 }
 0x164   :  { %20407 = vst [vmem:[#allocation69_spill] sm:$0xff] %v18264_v14  ;;  %v20201_v8 = vmax.f32 %v18264_v14, 0.0  ;;  %v18275_v17 = vadd.f32 %v17757_v4, %v824_v16  ;;  %v18292_v16 = vadd.f32 %v17857_v60, %v17757_v4  ;;  %v1024_v53 = vpack.c.bf16 %v20202_v35, %v20204_v44  ;;  %9557 = vmatpush1.bf16.msra.mxu0 %v16552_v25 }
 0x165   :  { %20408 = vst [vmem:[#allocation70_spill] sm:$0xff] %v18268_v1  ;;  %v20198_v55 = vmax.f32 %v18268_v1, 0.0  ;;  %v18311_v60 = vadd.f32 %v17757_v4, %v17902_v39  ;;  %9878 = vmatprep.subr.bf16.mxu0 %v20379_v2  ;;  %v18320_v35 = vadd.f32 %v17882_v18, %v17757_v4  ;;  %v18324_v39 = vadd.f32 %v17893_v33, %v17757_v4 }
 0x166   :  { %20409 = vst [vmem:[#allocation71_spill] sm:$0xff] %v18275_v17  ;;  %v20200_v40 = vmax.f32 %v18275_v17, 0.0  ;;  %20411 = vst [vmem:[#allocation73_spill] sm:$0xff] %v18292_v16  ;;  %v18340_v18 = vadd.f32 %v17757_v4, %v17949_v43  ;;  %v18348_v44 = vadd.f32 %v17928_v6, %v17757_v4  ;;  %v18368_v6 = vadd.f32 %v17757_v4, %v17997_v46 }
 0x167   :  { %v1023_v3 = vpack.c.bf16 %v20198_v55, %v20199_v56  ;;  %v18303_v55 = vadd.f32 %v17757_v4, %v17887_v22  ;;  %20413 = vst [vmem:[#allocation75_spill] sm:$0xff] %v18311_v60  ;;  %v20209_v56 = vmax.f32 %v18288_v34, 0.0  ;;  %20414 = vst [vmem:[#allocation76_spill] sm:$0xff] %v18320_v35  ;;  %v20208_v33 = vmax.f32 %v18320_v35, 0.0 }
 0x168   :  { %v1022_v59 = vpack.c.bf16 %v20200_v40, %v20201_v8  ;;  %v20203_v40 = vmax.f32 %v18292_v16, 0.0  ;;  %v20205_v8 = vmax.f32 %v18311_v60, 0.0  ;;  %20415 = vst [vmem:[#allocation77_spill] sm:$0xff] %v18324_v39  ;;  %20417 = vst [vmem:[#allocation79_spill] sm:$0xff] %v18340_v18  ;;  %v18382_v46 = vadd.f32 %v17991_v57, %v17757_v4 }
 0x169   :  { %20412 = vst [vmem:[#allocation74_spill] sm:$0xff] %v18303_v55  ;;  %v20206_v22 = vmax.f32 %v18303_v55, 0.0  ;;  %20418 = vst [vmem:[#allocation80_spill] sm:$0xff] %v18348_v44  ;;  %v18460_v55 = vld [vmem:[%s20103_s5] ss:$0 sm:$0xff] }
 0x16a   :  { %15772 = vmatprep.mubr.bf16.mxu1 %v1022_v59  ;;  %v1025_v59 = vpack.c.bf16 %v20203_v40, %v20209_v56  ;;  %20421 = vst [vmem:[#allocation83_spill] sm:$0xff] %v18368_v6  ;;  %v18378_v56 = vadd.f32 %v17975_v62, %v17757_v4  ;;  %20424 = vst [vmem:[#allocation86_spill] sm:$0xff] %v18382_v46  ;;  %v905_v62 = vadd.f32 %v17757_v4, %v18043_v31 }
 0x16b   :  { %15773 = vmatmul.mubr.bf16.gmra.mrb[76].mxu1 %v1023_v3  ;;  %v18332_v3 = vadd.f32 %v17757_v4, %v17936_v28  ;;  %v1026_v25 = vpack.c.bf16 %v20205_v8, %v20206_v22  ;;  %v20210_v28 = vmax.f32 %v18340_v18, 0.0  ;;  %v18352_v8 = vadd.f32 %v17943_v48, %v17757_v4 }
 0x16c   :  { %15776 = vmatprep.mubr.bf16.mxu1 %v1024_v53  ;;  %v20207_v53 = vmax.f32 %v18324_v39, 0.0  ;;  %v20214_v48 = vmax.f32 %v18348_v44, 0.0  ;;  %20423 = vst [vmem:[#allocation85_spill] sm:$0xff] %v18378_v56  ;;  %v20221_v57 = vmax.f32 %v18378_v56, 0.0 }
 0x16d   :  { %20416 = vst [vmem:[#allocation78_spill] sm:$0xff] %v18332_v3  ;;  %v20211_v40 = vmax.f32 %v18332_v3, 0.0  ;;  %20419 = vst [vmem:[#allocation81_spill] sm:$0xff] %v18352_v8  ;;  %v20213_v22 = vmax.f32 %v18352_v8, 0.0 }
 0x16e   :  { %v1027_v43 = vpack.c.bf16 %v20207_v53, %v20208_v33  ;;  %v18374_v33 = vpop.permute.xlu0 %1544 }
 0x16f   :  { %20422 = vst [vmem:[#allocation84_spill] sm:$0xff] %v18374_v33 }
 0x173   :  { %15777 = vmatmul.mubr.bf16.gmra.mrb[80].mxu1 %v1025_v59  ;;  %v18360_v59 = vadd.f32 %v17757_v4, %v17984_v49  ;;  %v20216_v49 = vmax.f32 %v18368_v6, 0.0  ;;  %v910_v6 = vadd.f32 %v18023_v29, %v17757_v4 }
 0x174   :  { %15780 = vmatprep.mubr.bf16.mxu1 %v1026_v25  ;;  %v1028_v25 = vpack.c.bf16 %v20210_v28, %v20211_v40  ;;  %v20220_v40 = vmax.f32 %v18382_v46, 0.0 }
 0x175   :  { %20420 = vst [vmem:[#allocation82_spill] sm:$0xff] %v18360_v59  ;;  %v20217_v53 = vmax.f32 %v18360_v59, 0.0  ;;  %v16551_v59 = vld [vmem:[#allocation3 + $0x4] ss:$36 sps:$4 sm:$0xff]  }
 0x176   :  { %v1031_v31 = vpack.c.bf16 %v20220_v40, %v20221_v57  ;;  %v16549_v40 = vld [vmem:[#allocation3] ss:$36 sps:$4 sm:$0xff]  }
 0x177   :  { %v1030_v28 = vpack.c.bf16 %v20216_v49, %v20217_v53  ;;  %v993_v53 = vmax.f32 %v910_v6, 0.0 }
 0x17b   :  { %15781 = vmatmul.mubr.bf16.gmra.mrb[84].mxu1 %v1027_v43  ;;  %v1029_v43 = vpack.c.bf16 %v20213_v22, %v20214_v48  ;;  %v992_v22 = vmax.f32 %v905_v62, 0.0  ;;  %v18401_v48 = vpop.permute.xlu0 %1549  ;;  %v1033_v62 = vpack.c.bf16 %v993_v53, %v993_v53 }
 0x17c   :  { %15784 = vmatprep.mubr.bf16.mxu1 %v1028_v25  ;;  %v18390_v25 = vadd.f32 %v17757_v4, %v18032_v47  ;;  %20426 = vst [vmem:[#allocation88_spill] sm:$0xff] %v18401_v48  ;;  %v18403_v47 = vpop.permute.xlu1 %1554 }
 0x17d   :  { %20427 = vst [vmem:[#allocation89_spill] sm:$0xff] %v18403_v47 }
 0x17e   :  { %20425 = vst [vmem:[#allocation87_spill] sm:$0xff] %v18390_v25  ;;  %v20222_v18 = vmax.f32 %v18390_v25, 0.0 }
 0x180   :  { %v1032_v49 = vpack.c.bf16 %v992_v22, %v20222_v18 }
 0x183   :  { %15785 = vmatmul.mubr.bf16.gmra.mrb[88].mxu1 %v1029_v43  ;;  %v18413_v43 = vpop.permute.xlu0 %1564 }
 0x184   :  { %15788 = vmatprep.mubr.bf16.mxu1 %v1030_v28  ;;  %20428 = vst [vmem:[#allocation90_spill] sm:$0xff] %v18413_v43  ;;  %v18415_v28 = vpop.permute.xlu1 %1559 }
 0x185   :  { %20429 = vst [vmem:[#allocation91_spill] sm:$0xff] %v18415_v28 }
 0x187   :  { %v18417_v8 = vpop.permute.xlu0 %1574 }
 0x188   :  { %20430 = vst [vmem:[#allocation92_spill] sm:$0xff] %v18417_v8  ;;  %v18419_v4 = vpop.permute.xlu1 %1569 }
 0x189   :  { %20431 = vst [vmem:[#allocation93_spill] sm:$0xff] %v18419_v4 }
 0x18b   :  { %15789 = vmatmul.mubr.bf16.gmra.mrb[92].mxu1 %v1031_v31  ;;  %v18421_v29 = vpop.permute.xlu0 %1584 }
 0x18c   :  { %15792 = vmatprep.mubr.bf16.mxu1 %v1032_v49  ;;  %20432 = vst [vmem:[#allocation94_spill] sm:$0xff] %v18421_v29  ;;  %v18423_v57 = vpop.permute.xlu1 %1579 }
 0x18d   :  { %20433 = vst [vmem:[#allocation95_spill] sm:$0xff] %v18423_v57 }
 0x18f   :  { %v18425_v22 = vpop.permute.xlu0 %1594 }
 0x190   :  { %20434 = vst [vmem:[#allocation96_spill] sm:$0xff] %v18425_v22  ;;  %v18427_v6 = vpop.permute.xlu1 %1589 }
 0x191   :  { %20435 = vst [vmem:[#allocation97_spill] sm:$0xff] %v18427_v6 }
 0x193   :  { %15793 = vmatmul.mubr.bf16.gmra.mrb[96].mxu1 %v1033_v62  ;;  %v18429_v31 = vpop.permute.xlu0 %1604 }
 0x194   :  { %9206 = vmatprep.mubr.bf16.mxu1 %v16551_v59  ;;  %20436 = vst [vmem:[#allocation98_spill] sm:$0xff] %v18429_v31  ;;  %v18431_v53 = vpop.permute.xlu1 %1599 }
 0x195   :  { %20437 = vst [vmem:[#allocation99_spill] sm:$0xff] %v18431_v53 }
 0x197   :  { %v18433_v49 = vpop.permute.xlu0 %1614 }
 0x198   :  { %20438 = vst [vmem:[#allocation100_spill] sm:$0xff] %v18433_v49  ;;  %v18435_v18 = vpop.permute.xlu1 %1609 }
 0x199   :  { %20439 = vst [vmem:[#allocation101_spill] sm:$0xff] %v18435_v18 }
 0x19b   :  { %9207 = vmatmul.mubr.bf16.vlgmr.msra.gmra.mrb[100].mxu1 %v16549_v40  ;;  %v18437_v62 = vpop.permute.xlu0 %1624 }
 0x19c   :  { %20440 = vst [vmem:[#allocation102_spill] sm:$0xff] %v18437_v62  ;;  %v18439_v59 = vpop.permute.xlu1 %1619 }
 0x19d   :  { %20441 = vst [vmem:[#allocation103_spill] sm:$0xff] %v18439_v59 }
 0x19f   :  { %v18441_v25 = vpop.permute.xlu0 %1634 }
 0x1a0   :  { %20442 = vst [vmem:[#allocation104_spill] sm:$0xff] %v18441_v25  ;;  %v18443_v46 = vpop.permute.xlu1 %1629 }
 0x1a1   :  { %20443 = vst [vmem:[#allocation105_spill] sm:$0xff] %v18443_v46 }
 0x1a3   :  { %v18445_v40 = vpop.permute.xlu0 %1644 }
 0x1a4   :  { %20444 = vst [vmem:[#allocation106_spill] sm:$0xff] %v18445_v40  ;;  %v18447_v56 = vpop.permute.xlu1 %1639 }
 0x1a5   :  { %20445 = vst [vmem:[#allocation107_spill] sm:$0xff] %v18447_v56 }
 0x1a7   :  { %v18449_v3 = vpop.permute.xlu0 %1654 }
 0x1a8   :  { %20446 = vst [vmem:[#allocation108_spill] sm:$0xff] %v18449_v3  ;;  %v18451_v44 = vpop.permute.xlu1 %1649 }
 0x1a9   :  { %20447 = vst [vmem:[#allocation109_spill] sm:$0xff] %v18451_v44 }
 0x1ab   :  { %v18453_v60 = vpop.permute.xlu0 %1664 }
 0x1ac   :  { %20448 = vst [vmem:[#allocation110_spill] sm:$0xff] %v18453_v60  ;;  %v18455_v39 = vpop.permute.xlu1 %1659 }
 0x1ad   :  { %20449 = vst [vmem:[#allocation111_spill] sm:$0xff] %v18455_v39 }
 0x1af   :  { %v18462_v35 = vpop.permute.xlu0 %1674 }
 0x1b0   :  { %20450 = vst [vmem:[#allocation112_spill] sm:$0xff] %v18462_v35  ;;  %v18464_v20 = vpop.permute.xlu1 %1669 }
 0x1b1   :  { %20451 = vst [vmem:[#allocation113_spill] sm:$0xff] %v18464_v20 }
 0x1b3   :  { %v18470_v24 = vpop.permute.xlu0 %1684 }
 0x1b4   :  { %20452 = vst [vmem:[#allocation114_spill] sm:$0xff] %v18470_v24  ;;  %v18473_v12 = vpop.permute.xlu1 %1679 }
 0x1b5   :  { %20453 = vst [vmem:[#allocation115_spill] sm:$0xff] %v18473_v12 }
 0x1b7   :  { %v18480_v37 = vpop.permute.xlu0 %1694 }
 0x1b8   :  { %20454 = vst [vmem:[#allocation116_spill] sm:$0xff] %v18480_v37 }
 0x1ce   :  { %v15718_v16 = vpop.f32.mrb[20].mxu1 }
 0x1cf   :  { %v1148_v50 = vadd.f32 %v15718_v16, %v18460_v55  ;;  %v1139_v34 = vpop.f32.mrb[21].mxu1 }
 0x1d0   :  { %v1140_v17 = vadd.f32 %v18460_v55, %v1139_v34  ;;  %v15719_v1 = vpop.f32.mrb[22].mxu1 }
 0x1d1   :  { %v1459_v14 = vmax.f32 %v1148_v50, 0.0  ;;  %v1151_v32 = vadd.f32 %v15719_v1, %v18460_v55  ;;  %v1142_v52 = vpop.f32.mrb[23].mxu1 }
 0x1d2   :  { %v1457_v15 = vmax.f32 %v1140_v17, 0.0  ;;  %v1143_v0 = vadd.f32 %v18460_v55, %v1142_v52 }
 0x1d3   :  { %v1939_v5 = vmul.f32 %v18403_v47, %v1459_v14  ;;  %v1460_v42 = vmax.f32 %v1151_v32, 0.0 }
 0x1d4   :  { %v1937_v16 = vmul.f32 %v18374_v33, %v1457_v15  ;;  %v1458_v61 = vmax.f32 %v1143_v0, 0.0  ;;  %v18483_v15 = vpop.permute.xlu1 %1689 }
 0x1d5   :  { %2018 = vst [vmem:[#allocation2 + $0x28] sm:$0xff] %v1939_v5  ;;  %v1940_v34 = vmul.f32 %v18415_v28, %v1460_v42  ;;  %20455 = vst [vmem:[#allocation117_spill] sm:$0xff] %v18483_v15 }
 0x1d6   :  { %2016 = vst [vmem:[#allocation2 + $0x18] sm:$0xff] %v1937_v16  ;;  %v1938_v50 = vmul.f32 %v18401_v48, %v1458_v61  ;;  %v15722_v1 = vpop.f32.mrb[24].mxu1 }
 0x1d7   :  { %2019 = vst [vmem:[#allocation2 + $0x30] sm:$0xff] %v1940_v34  ;;  %v1164_v52 = vadd.f32 %v15722_v1, %v18460_v55  ;;  %v1155_v17 = vpop.f32.mrb[25].mxu1 }
 0x1d8   :  { %2017 = vst [vmem:[#allocation2 + $0x20] sm:$0xff] %v1938_v50  ;;  %v1156_v14 = vadd.f32 %v18460_v55, %v1155_v17  ;;  %v15723_v32 = vpop.f32.mrb[26].mxu1 }
 0x1d9   :  { %v1463_v27 = vmax.f32 %v1164_v52, 0.0  ;;  %v1167_v0 = vadd.f32 %v15723_v32, %v18460_v55  ;;  %v1158_v5 = vpop.f32.mrb[27].mxu1 }
 0x1da   :  { %v1461_v42 = vmax.f32 %v1156_v14, 0.0  ;;  %v1159_v61 = vadd.f32 %v18460_v55, %v1158_v5 }
 0x1db   :  { %v1943_v16 = vmul.f32 %v18417_v8, %v1463_v27  ;;  %v1464_v34 = vmax.f32 %v1167_v0, 0.0  ;;  %v18490_v0 = vpop.permute.xlu0 %1704 }
 0x1dc   :  { %v1941_v1 = vmul.f32 %v18413_v43, %v1461_v42  ;;  %v1462_v50 = vmax.f32 %v1159_v61, 0.0  ;;  %20456 = vst [vmem:[#allocation118_spill] sm:$0xff] %v18490_v0 }
 0x1dd   :  { %2022 = vst [vmem:[#allocation2 + $0x48] sm:$0xff] %v1943_v16  ;;  %v1944_v17 = vmul.f32 %v18423_v57, %v1464_v34  ;;  %v2097_v19 = vld [vmem:[#allocation2 + $0x15] sm:$0xff] }
 0x1de   :  { %v2572_v11 = vld [vmem:[#allocation2 + $0x16] sm:$0xff]  ;;  %2020 = vst [vmem:[#allocation2 + $0x38] sm:$0xff] %v1941_v1  ;;  %v1942_v32 = vmul.f32 %v18419_v4, %v1462_v50  ;;  %v15726_v63 = vpop.f32.mrb[28].mxu1  ;;  %v14633_v58 = vpack.c.bf16 %v2097_v19, %v2097_v19  ;;  %v2100_v5 = vld [vmem:[#allocation2 + $0x2d] sm:$0xff]  ;;  %v18493_v50 = vpop.permute.xlu1 %1699 }
 0x1df   :  { %v3520_v52 = vld [vmem:[#allocation2 + $0x17] sm:$0xff]  ;;  %v14712_v14 = vpack.c.bf16 %v2572_v11, %v2572_v11  ;;  %v2575_v51 = vld [vmem:[#allocation2 + $0x2e] sm:$0xff]  ;;  %2023 = vst [vmem:[#allocation2 + $0x50] sm:$0xff] %v1944_v17  ;;  %v1180_v42 = vadd.f32 %v15726_v63, %v18460_v55  ;;  %v1171_v61 = vpop.f32.mrb[29].mxu1  ;;  %v3521_v45 = vld [vmem:[#allocation2 + $0x1f] sm:$0xff]  ;;  %v14636_v41 = vpack.c.bf16 %v2100_v5, %v2100_v5 }
 0x1e0   :  { %v14868_v54 = vpack.c.bf16 %v3520_v52, %v3520_v52  ;;  %v3523_v27 = vld [vmem:[#allocation2 + $0x2f] sm:$0xff]  ;;  %v2098_v16 = vld [vmem:[#allocation2 + $0x1d] sm:$0xff]  ;;  %v14715_v1 = vpack.c.bf16 %v2575_v51, %v2575_v51  ;;  %20457 = vst [vmem:[#allocation119_spill] sm:$0xff] %v18493_v50  ;;  %2021 = vst [vmem:[#allocation2 + $0x40] sm:$0xff] %v1942_v32  ;;  %v1172_v11 = vadd.f32 %v18460_v55, %v1171_v61  ;;  %v15727_v19 = vpop.f32.mrb[30].mxu1 }
 0x1e1   :  { %v2573_v34 = vld [vmem:[#allocation2 + $0x1e] sm:$0xff]  ;;  %v14871_v38 = vpack.c.bf16 %v3523_v27, %v3523_v27  ;;  %v14634_v52 = vpack.c.bf16 %v2098_v16, %v2098_v16  ;;  %2493 = vst [vmem:[#allocation3 + $0x48] sm:$0xf] %v14633_v58  ;;  %2968 = vst [vmem:[#allocation3 + $0x4c] sm:$0xf] %v14712_v14  ;;  %v14869_v17 = vpack.c.bf16 %v3521_v45, %v3521_v45  ;;  %v2574_v57 = vld [vmem:[#allocation2 + $0x26] sm:$0xff] }
 0x1e2   :  { %v14713_v36 = vpack.c.bf16 %v2573_v34, %v2573_v34  ;;  %3916 = vst [vmem:[#allocation3 + $0xc] sm:$0xf] %v14868_v54  ;;  %v2099_v63 = vld [vmem:[#allocation2 + $0x25] sm:$0xff]  ;;  %3443 = vst [vmem:[#allocation3 + $0x50] sm:$0xf] %v14868_v54  ;;  %v1467_v4 = vmax.f32 %v1180_v42, 0.0  ;;  %v1183_v51 = vadd.f32 %v15727_v19, %v18460_v55  ;;  %v14714_v32 = vpack.c.bf16 %v2574_v57, %v2574_v57  ;;  %v18500_v57 = vpop.permute.xlu0 %1714 }
 0x1e3   :  { %v3522_v8 = vld [vmem:[#allocation2 + $0x27] sm:$0xff]  ;;  %v1174_v5 = vpop.f32.mrb[31].mxu1  ;;  %v14635_v27 = vpack.c.bf16 %v2099_v63, %v2099_v63  ;;  %2496 = vst [vmem:[#allocation3 + $0xb4] sm:$0xf] %v14636_v41  ;;  %2971 = vst [vmem:[#allocation3 + $0xb8] sm:$0xf] %v14715_v1  ;;  %v18503_v1 = vpop.permute.xlu1 %1709 }
 0x1e4   :  { %3919 = vst [vmem:[#allocation3 + $0x78] sm:$0xf] %v14871_v38  ;;  %3446 = vst [vmem:[#allocation3 + $0xbc] sm:$0xf] %v14871_v38  ;;  %v1465_v61 = vmax.f32 %v1172_v11, 0.0  ;;  %v1175_v58 = vadd.f32 %v18460_v55, %v1174_v5  ;;  %v14870_v45 = vpack.c.bf16 %v3522_v8, %v3522_v8  ;;  %v1947_v54 = vmul.f32 %v18425_v22, %v1467_v4 }
 0x1e5   :  { %2494 = vst [vmem:[#allocation3 + $0x6c] sm:$0xf] %v14634_v52  ;;  %2969 = vst [vmem:[#allocation3 + $0x70] sm:$0xf] %v14713_v36  ;;  %v1468_v14 = vmax.f32 %v1183_v51, 0.0  ;;  %v2101_v16 = vld [vmem:[#allocation2 + $0x35] sm:$0xff] }
 0x1e6   :  { %3917 = vst [vmem:[#allocation3 + $0x30] sm:$0xf] %v14869_v17  ;;  %3444 = vst [vmem:[#allocation3 + $0x74] sm:$0xf] %v14869_v17  ;;  %v1945_v42 = vmul.f32 %v18421_v29, %v1465_v61  ;;  %v1466_v41 = vmax.f32 %v1175_v58, 0.0  ;;  %v2576_v36 = vld [vmem:[#allocation2 + $0x36] sm:$0xff]  ;;  %v14637_v11 = vpack.c.bf16 %v2101_v16, %v2101_v16 }
 0x1e7   :  { %2495 = vst [vmem:[#allocation3 + $0x90] sm:$0xf] %v14635_v27  ;;  %2970 = vst [vmem:[#allocation3 + $0x94] sm:$0xf] %v14714_v32  ;;  %v1948_v38 = vmul.f32 %v18431_v53, %v1468_v14  ;;  %v3524_v34 = vld [vmem:[#allocation2 + $0x37] sm:$0xff]  ;;  %v15730_v4 = vpop.f32.mrb[32].mxu1  ;;  %v14716_v19 = vpack.c.bf16 %v2576_v36, %v2576_v36 }
 0x1e8   :  { %3918 = vst [vmem:[#allocation3 + $0x54] sm:$0xf] %v14870_v45  ;;  %3445 = vst [vmem:[#allocation3 + $0x98] sm:$0xf] %v14870_v45  ;;  %v1946_v8 = vmul.f32 %v18427_v6, %v1466_v41  ;;  %v14872_v52 = vpack.c.bf16 %v3524_v34, %v3524_v34  ;;  %v2104_v17 = vld [vmem:[#allocation2 + $0x4d] sm:$0xff]  ;;  %v5897_v5 = vld [vmem:[#allocation2 + $0x3b] sm:$0xff]  ;;  %v1196_v32 = vadd.f32 %v15730_v4, %v18460_v55 }
 0x1e9   :  { %20458 = vst [vmem:[#allocation120_spill] sm:$0xff] %v18500_v57  ;;  %2026 = vst [vmem:[#allocation2 + $0x68] sm:$0xff] %v1947_v54  ;;  %v2579_v63 = vld [vmem:[#allocation2 + $0x4e] sm:$0xff]  ;;  %v5898_v27 = vld [vmem:[#allocation2 + $0x43] sm:$0xff]  ;;  %v1187_v61 = vpop.f32.mrb[33].mxu1  ;;  %v14640_v58 = vpack.c.bf16 %v2104_v17, %v2104_v17  ;;  %v15265_v14 = vpack.c.bf16 %v5897_v5, %v5897_v5 }
 0x1ea   :  { %20459 = vst [vmem:[#allocation121_spill] sm:$0xff] %v18503_v1  ;;  %2024 = vst [vmem:[#allocation2 + $0x58] sm:$0xff] %v1945_v42  ;;  %v3527_v51 = vld [vmem:[#allocation2 + $0x4f] sm:$0xff]  ;;  %v14719_v45 = vpack.c.bf16 %v2579_v63, %v2579_v63  ;;  %v15266_v42 = vpack.c.bf16 %v5898_v27, %v5898_v27  ;;  %v1188_v41 = vadd.f32 %v18460_v55, %v1187_v61  ;;  %v15731_v16 = vpop.f32.mrb[34].mxu1  ;;  %v16559_v36 = vld [vmem:[%s20104_s6 + $0x100] sm:$0xff]  }
 0x1eb   :  { %2027 = vst [vmem:[#allocation2 + $0x70] sm:$0xff] %v1948_v38  ;;  %v14875_v54 = vpack.c.bf16 %v3527_v51, %v3527_v51  ;;  %2025 = vst [vmem:[#allocation2 + $0x60] sm:$0xff] %v1946_v8  ;;  %v2102_v34 = vld [vmem:[#allocation2 + $0x3d] sm:$0xff]  ;;  %v1471_v38 = vmax.f32 %v1196_v32, 0.0  ;;  %v1199_v4 = vadd.f32 %v15731_v16, %v18460_v55  ;;  %v1190_v17 = vpop.f32.mrb[35].mxu1  ;;  %v18516_v16 = vpop.permute.xlu1 %1719 }
 0x1ec   :  { %2497 = vst [vmem:[#allocation3 + $0xd8] sm:$0xf] %v14637_v11  ;;  %2972 = vst [vmem:[#allocation3 + $0xdc] sm:$0xf] %v14716_v19  ;;  %v16553_v63 = vld [vmem:[#allocation3 + $0x4c] ss:$36 sps:$4 sm:$0xff]   ;;  %v14638_v51 = vpack.c.bf16 %v2102_v34, %v2102_v34  ;;  %v1191_v5 = vadd.f32 %v18460_v55, %v1190_v17  ;;  %v18513_v19 = vpop.permute.xlu0 %1724 }
 0x1ed   :  { %3920 = vst [vmem:[#allocation3 + $0x9c] sm:$0xf] %v14872_v52  ;;  %3447 = vst [vmem:[#allocation3 + $0xe0] sm:$0xf] %v14872_v52  ;;  %v1469_v8 = vmax.f32 %v1188_v41, 0.0  ;;  %v1951_v52 = vmul.f32 %v18433_v49, %v1471_v38  ;;  %v1472_v32 = vmax.f32 %v1199_v4, 0.0  ;;  %9214 = vmatprep.mubr.bf16.mxu1 %v16553_v63 }
 0x1ee   :  { %2500 = vst [vmem:[#allocation3 + $0x144] sm:$0xf] %v14640_v58  ;;  %2975 = vst [vmem:[#allocation3 + $0x148] sm:$0xf] %v14719_v45  ;;  %v16555_v27 = vld [vmem:[#allocation3 + $0x8] ss:$36 sps:$4 sm:$0xff]  }
 0x1ef   :  { %3923 = vst [vmem:[#allocation3 + $0x108] sm:$0xf] %v14875_v54  ;;  %3450 = vst [vmem:[#allocation3 + $0x14c] sm:$0xf] %v14875_v54  ;;  %v16557_v11 = vld [vmem:[#allocation3 + $0xc] ss:$36 sps:$4 sm:$0xff]   ;;  %v1949_v58 = vmul.f32 %v18429_v31, %v1469_v8 }
 0x1f0   :  { %6293 = vst [vmem:[#allocation3 + $0x68] sm:$0xf] %v15265_v14  ;;  %6294 = vst [vmem:[#allocation3 + $0x8c] sm:$0xf] %v15266_v42  ;;  %v16558_v61 = vld [vmem:[#allocation3 + $0x48] ss:$36 sps:$4 sm:$0xff]   ;;  %9558 = vmatprep.mubr.bf16.mxu0 %v16557_v11  ;;  %v1952_v42 = vmul.f32 %v18439_v59, %v1472_v32 }
 0x1f1   :  { %20460 = vst [vmem:[#allocation122_spill] sm:$0xff] %v18513_v19  ;;  %2498 = vst [vmem:[#allocation3 + $0xfc] sm:$0xf] %v14638_v51  ;;  %v1470_v45 = vmax.f32 %v1191_v5, 0.0  ;;  %v16560_v54 = vld [vmem:[#allocation3 + $0x94] ss:$36 sps:$4 sm:$0xff]   ;;  %9215 = vmatmul.mubr.bf16.gmra.mrb[104].mxu1 %v16558_v61  ;;  %9559 = vmatmul.mubr.bf16.vlgmr.msra.gmra.mrb[60].mxu0 %v16555_v27 }
 0x1f2   :  { %20461 = vst [vmem:[#allocation123_spill] sm:$0xff] %v18516_v16  ;;  %v16576_v14 = vld [vmem:[%s20104_s6 + $0x108] sm:$0xff]   ;;  %2030 = vst [vmem:[#allocation2 + $0x88] sm:$0xff] %v1951_v52  ;;  %v16562_v41 = vld [vmem:[#allocation3 + $0x54] ss:$36 sps:$4 sm:$0xff]   ;;  %9879 = vmatpush1.bf16.msra.mxu0 %v16559_v36  ;;  %v15734_v17 = vpop.f32.mrb[36].mxu1  ;;  %9222 = vmatprep.mubr.bf16.mxu1 %v16560_v54 }
 0x1f3   :  { %v2577_v34 = vld [vmem:[#allocation2 + $0x3e] sm:$0xff]  ;;  %2028 = vst [vmem:[#allocation2 + $0x78] sm:$0xff] %v1949_v58  ;;  %v1950_v4 = vmul.f32 %v18435_v18, %v1470_v45  ;;  %v2578_v5 = vld [vmem:[#allocation2 + $0x46] sm:$0xff]  ;;  %2031 = vst [vmem:[#allocation2 + $0x90] sm:$0xff] %v1952_v42  ;;  %v1212_v32 = vadd.f32 %v15734_v17, %v18460_v55  ;;  %9566 = vmatprep.mubr.bf16.mxu0 %v16562_v41  ;;  %v1203_v27 = vpop.f32.mrb[37].mxu1  ;;  %9880 = vmatprep.subr.bf16.mxu0 %v20379_v2  ;;  %v18532_v41 = vpop.permute.xlu0 %1734 }
 0x1f4   :  { %v3525_v38 = vld [vmem:[#allocation2 + $0x3f] sm:$0xff]  ;;  %v14717_v63 = vpack.c.bf16 %v2577_v34, %v2577_v34  ;;  %v3526_v11 = vld [vmem:[#allocation2 + $0x47] sm:$0xff]  ;;  %v14718_v59 = vpack.c.bf16 %v2578_v5, %v2578_v5  ;;  %v1204_v36 = vadd.f32 %v18460_v55, %v1203_v27  ;;  %v15735_v54 = vpop.f32.mrb[38].mxu1  ;;  %v2105_v34 = vld [vmem:[#allocation2 + $0x55] sm:$0xff]  ;;  %20462 = vst [vmem:[#allocation124_spill] sm:$0xff] %v18532_v41 }
 0x1f5   :  { %v14873_v51 = vpack.c.bf16 %v3525_v38, %v3525_v38  ;;  %v2103_v8 = vld [vmem:[#allocation2 + $0x45] sm:$0xff]  ;;  %v5901_v49 = vld [vmem:[#allocation2 + $0x5b] sm:$0xff]  ;;  %v14874_v58 = vpack.c.bf16 %v3526_v11, %v3526_v11  ;;  %2029 = vst [vmem:[#allocation2 + $0x80] sm:$0xff] %v1950_v4  ;;  %v18530_v42 = vld [vmem:[%s20104_s6 + $0x110] sm:$0xff]   ;;  %v1475_v38 = vmax.f32 %v1212_v32, 0.0  ;;  %v1206_v4 = vpop.f32.mrb[39].mxu1 }
 0x1f6   :  { %v5902_v52 = vld [vmem:[#allocation2 + $0x63] sm:$0xff]  ;;  %v14639_v61 = vpack.c.bf16 %v2103_v8, %v2103_v8  ;;  %v15269_v31 = vpack.c.bf16 %v5901_v49, %v5901_v49  ;;  %2973 = vst [vmem:[#allocation3 + $0x100] sm:$0xf] %v14717_v63  ;;  %v1215_v49 = vadd.f32 %v15735_v54, %v18460_v55  ;;  %v16564_v17 = vld [vmem:[#allocation3 + $0x90] ss:$36 sps:$4 sm:$0xff]   ;;  %v1473_v27 = vmax.f32 %v1204_v36, 0.0  ;;  %9881 = vmatpush1.bf16.msra.mxu0 %v16576_v14 }
 0x1f7   :  { %v15270_v45 = vpack.c.bf16 %v5902_v52, %v5902_v52  ;;  %3921 = vst [vmem:[#allocation3 + $0xc0] sm:$0xf] %v14873_v51  ;;  %3448 = vst [vmem:[#allocation3 + $0x104] sm:$0xf] %v14873_v51  ;;  %v16565_v8 = vld [vmem:[#allocation3 + $0x50] ss:$36 sps:$4 sm:$0xff]   ;;  %v14641_v51 = vpack.c.bf16 %v2105_v34, %v2105_v34  ;;  %v18535_v52 = vpop.permute.xlu1 %1729  ;;  %v1207_v32 = vadd.f32 %v18460_v55, %v1206_v4  ;;  %9882 = vmatprep.subr.bf16.mxu0 %v20379_v2 }
 0x1f8   :  { %2499 = vst [vmem:[#allocation3 + $0x120] sm:$0xf] %v14639_v61  ;;  %2974 = vst [vmem:[#allocation3 + $0x124] sm:$0xf] %v14718_v59  ;;  %v2106_v63 = vld [vmem:[#allocation2 + $0x5d] sm:$0xff]  ;;  %v2107_v61 = vld [vmem:[#allocation2 + $0x65] sm:$0xff]  ;;  %v1955_v59 = vmul.f32 %v18441_v25, %v1475_v38 }
 0x1f9   :  { %3922 = vst [vmem:[#allocation3 + $0xe4] sm:$0xf] %v14874_v58  ;;  %v2580_v5 = vld [vmem:[#allocation2 + $0x56] sm:$0xff]  ;;  %v2581_v11 = vld [vmem:[#allocation2 + $0x5e] sm:$0xff]  ;;  %3449 = vst [vmem:[#allocation3 + $0x128] sm:$0xf] %v14874_v58  ;;  %v14642_v54 = vpack.c.bf16 %v2106_v63, %v2106_v63  ;;  %v14643_v36 = vpack.c.bf16 %v2107_v61, %v2107_v61  ;;  %9223 = vmatmul.mubr.bf16.gmra.mrb[108].mxu1 %v16564_v17  ;;  %9567 = vmatmul.mubr.bf16.gmra.mrb[64].mxu0 %v16565_v8 }
 0x1fa   :  { %20463 = vst [vmem:[#allocation125_spill] sm:$0xff] %v18535_v52  ;;  %6297 = vst [vmem:[#allocation3 + $0xf8] sm:$0xf] %v15269_v31  ;;  %v14720_v18 = vpack.c.bf16 %v2580_v5, %v2580_v5  ;;  %v3528_v53 = vld [vmem:[#allocation2 + $0x57] sm:$0xff]  ;;  %v3529_v22 = vld [vmem:[#allocation2 + $0x5f] sm:$0xff]  ;;  %v1476_v6 = vmax.f32 %v1215_v49, 0.0  ;;  %v14721_v34 = vpack.c.bf16 %v2581_v11, %v2581_v11  ;;  %v1953_v31 = vmul.f32 %v18437_v62, %v1473_v27 }
 0x1fb   :  { %6298 = vst [vmem:[#allocation3 + $0x11c] sm:$0xf] %v15270_v45  ;;  %2501 = vst [vmem:[#allocation3 + $0x168] sm:$0xf] %v14641_v51  ;;  %v14876_v29 = vpack.c.bf16 %v3528_v53, %v3528_v53  ;;  %v2108_v58 = vld [vmem:[#allocation2 + $0x6d] sm:$0xff]  ;;  %v1474_v45 = vmax.f32 %v1207_v32, 0.0  ;;  %v14877_v14 = vpack.c.bf16 %v3529_v22, %v3529_v22  ;;  %9883 = vmatpush1.bf16.msra.mxu0 %v18530_v42 }
 0x1fc   :  { %v2582_v43 = vld [vmem:[#allocation2 + $0x66] sm:$0xff]  ;;  %v2583_v30 = vld [vmem:[#allocation2 + $0x6e] sm:$0xff]  ;;  %2502 = vst [vmem:[#allocation3 + $0x18c] sm:$0xf] %v14642_v54  ;;  %2976 = vst [vmem:[#allocation3 + $0x16c] sm:$0xf] %v14720_v18  ;;  %v1956_v38 = vmul.f32 %v18447_v56, %v1476_v6  ;;  %v14644_v53 = vpack.c.bf16 %v2108_v58, %v2108_v58  ;;  %v18549_v54 = vpop.permute.xlu0 %1744  ;;  %9884 = vmatprep.subr.bf16.mxu0 %v20379_v2 }
 0x1fd   :  { %v3530_v4 = vld [vmem:[#allocation2 + $0x67] sm:$0xff]  ;;  %v3531_v63 = vld [vmem:[#allocation2 + $0x6f] sm:$0xff]  ;;  %2034 = vst [vmem:[#allocation2 + $0xa8] sm:$0xff] %v1955_v59  ;;  %2977 = vst [vmem:[#allocation3 + $0x190] sm:$0xf] %v14721_v34  ;;  %v14722_v49 = vpack.c.bf16 %v2582_v43, %v2582_v43  ;;  %v1954_v22 = vmul.f32 %v18443_v46, %v1474_v45  ;;  %v15738_v27 = vpop.f32.mrb[40].mxu1  ;;  %v14723_v6 = vpack.c.bf16 %v2583_v30, %v2583_v30 }
 0x1fe   :  { %3924 = vst [vmem:[#allocation3 + $0x12c] sm:$0xf] %v14876_v29  ;;  %3451 = vst [vmem:[#allocation3 + $0x170] sm:$0xf] %v14876_v29  ;;  %v2109_v51 = vld [vmem:[#allocation2 + $0x75] sm:$0xff]  ;;  %v14878_v17 = vpack.c.bf16 %v3530_v4, %v3530_v4  ;;  %v14879_v8 = vpack.c.bf16 %v3531_v63, %v3531_v63  ;;  %v2112_v43 = vld [vmem:[#allocation2 + $0x8d] sm:$0xff]  ;;  %v1228_v34 = vadd.f32 %v15738_v27, %v18460_v55 }
 0x1ff   :  { %v2584_v5 = vld [vmem:[#allocation2 + $0x76] sm:$0xff]  ;;  %2032 = vst [vmem:[#allocation2 + $0x98] sm:$0xff] %v1953_v31  ;;  %3925 = vst [vmem:[#allocation3 + $0x150] sm:$0xf] %v14877_v14  ;;  %v2587_v29 = vld [vmem:[#allocation2 + $0x8e] sm:$0xff]  ;;  %v1219_v58 = vpop.f32.mrb[41].mxu1  ;;  %v14645_v31 = vpack.c.bf16 %v2109_v51, %v2109_v51 }
 0x200   :  { %v3532_v11 = vld [vmem:[#allocation2 + $0x77] sm:$0xff]  ;;  %2503 = vst [vmem:[#allocation3 + $0x1b0] sm:$0xf] %v14643_v36  ;;  %3452 = vst [vmem:[#allocation3 + $0x194] sm:$0xf] %v14877_v14  ;;  %v3535_v32 = vld [vmem:[#allocation2 + $0x8f] sm:$0xff]  ;;  %v14724_v30 = vpack.c.bf16 %v2584_v5, %v2584_v5  ;;  %v18553_v14 = vpop.permute.xlu1 %1739  ;;  %v1220_v56 = vadd.f32 %v18460_v55, %v1219_v58 }
 0x201   :  { %v18545_v18 = vld [vmem:[%s20104_s6 + $0x118] sm:$0xff]   ;;  %20464 = vst [vmem:[#allocation126_spill] sm:$0xff] %v18549_v54  ;;  %v5906_v59 = vld [vmem:[#allocation2 + $0x83] sm:$0xff]  ;;  %2035 = vst [vmem:[#allocation2 + $0xb0] sm:$0xff] %v1956_v38  ;;  %v14880_v45 = vpack.c.bf16 %v3532_v11, %v3532_v11  ;;  %v15739_v38 = vpop.f32.mrb[42].mxu1  ;;  %v14727_v11 = vpack.c.bf16 %v2587_v29, %v2587_v29 }
 0x202   :  { %v5905_v61 = vld [vmem:[#allocation2 + $0x7b] sm:$0xff]  ;;  %2504 = vst [vmem:[#allocation3 + $0x1d4] sm:$0xf] %v14644_v53  ;;  %2978 = vst [vmem:[#allocation3 + $0x1b4] sm:$0xf] %v14722_v49  ;;  %v15274_v36 = vpack.c.bf16 %v5906_v59, %v5906_v59  ;;  %v14648_v53 = vpack.c.bf16 %v2112_v43, %v2112_v43  ;;  %v1479_v49 = vmax.f32 %v1228_v34, 0.0  ;;  %v1231_v51 = vadd.f32 %v15739_v38, %v18460_v55 }
 0x203   :  { %20465 = vst [vmem:[#allocation127_spill] sm:$0xff] %v18553_v14  ;;  %v15273_v42 = vpack.c.bf16 %v5905_v61, %v5905_v61  ;;  %2033 = vst [vmem:[#allocation2 + $0xa0] sm:$0xff] %v1954_v22  ;;  %v16566_v4 = vld [vmem:[#allocation3 + $0xdc] ss:$36 sps:$4 sm:$0xff]   ;;  %v1222_v5 = vpop.f32.mrb[43].mxu1  ;;  %v14883_v22 = vpack.c.bf16 %v3535_v32, %v3535_v32  ;;  %9885 = vmatpush1.bf16.msra.mxu0 %v18545_v18  ;;  %v5422_v33 = vld [vmem:[#allocation2 + $0x3a] sm:$0xff] }
 0x204   :  { %v16568_v63 = vld [vmem:[#allocation3 + $0x9c] ss:$36 sps:$4 sm:$0xff]   ;;  %2979 = vst [vmem:[#allocation3 + $0x1d8] sm:$0xf] %v14723_v6  ;;  %3926 = vst [vmem:[#allocation3 + $0x174] sm:$0xf] %v14878_v17  ;;  %9230 = vmatprep.mubr.bf16.mxu1 %v16566_v4  ;;  %v1959_v43 = vmul.f32 %v18449_v3, %v1479_v49  ;;  %9886 = vmatprep.subr.bf16.mxu0 %v20379_v2 }
 0x205   :  { %3927 = vst [vmem:[#allocation3 + $0x198] sm:$0xf] %v14879_v8  ;;  %3453 = vst [vmem:[#allocation3 + $0x1b8] sm:$0xf] %v14878_v17  ;;  %v16623_v27 = vld [vmem:[%s20104_s6 + $0x120] sm:$0xff]   ;;  %9574 = vmatprep.mubr.bf16.mxu0 %v16568_v63  ;;  %v1477_v6 = vmax.f32 %v1220_v56, 0.0  ;;  %v1223_v17 = vadd.f32 %v18460_v55, %v1222_v5  ;;  %v18565_v56 = vpop.permute.xlu0 %1754 }
 0x206   :  { %3454 = vst [vmem:[#allocation3 + $0x1dc] sm:$0xf] %v14879_v8  ;;  %2505 = vst [vmem:[#allocation3 + $0x1f8] sm:$0xf] %v14645_v31  ;;  %v16570_v8 = vld [vmem:[#allocation3 + $0xd8] ss:$36 sps:$4 sm:$0xff]  }
 0x207   :  { %2980 = vst [vmem:[#allocation3 + $0x1fc] sm:$0xf] %v14724_v30  ;;  %3928 = vst [vmem:[#allocation3 + $0x1bc] sm:$0xf] %v14880_v45  ;;  %v1480_v61 = vmax.f32 %v1231_v51, 0.0  ;;  %v1957_v32 = vmul.f32 %v18445_v40, %v1477_v6  ;;  %v1478_v34 = vmax.f32 %v1223_v17, 0.0  ;;  %9231 = vmatmul.mubr.bf16.gmra.mrb[112].mxu1 %v16570_v8  ;;  %v18568_v30 = vpop.permute.xlu1 %1749  ;;  %9887 = vmatpush1.bf16.msra.mxu0 %v16623_v27 }
 0x208   :  { %3455 = vst [vmem:[#allocation3 + $0x200] sm:$0xf] %v14880_v45  ;;  %6301 = vst [vmem:[#allocation3 + $0x188] sm:$0xf] %v15273_v42  ;;  %v16571_v59 = vld [vmem:[#allocation3 + $0x98] ss:$36 sps:$4 sm:$0xff]   ;;  %9888 = vmatprep.subr.bf16.mxu0 %v20379_v2 }
 0x209   :  { %6302 = vst [vmem:[#allocation3 + $0x1ac] sm:$0xf] %v15274_v36  ;;  %2508 = vst [vmem:[#allocation3 + $0x264] sm:$0xf] %v14648_v53  ;;  %v16572_v29 = vld [vmem:[#allocation3 + $0x124] ss:$36 sps:$4 sm:$0xff]   ;;  %v1960_v31 = vmul.f32 %v18455_v39, %v1480_v61  ;;  %9575 = vmatmul.mubr.bf16.gmra.mrb[68].mxu0 %v16571_v59  ;;  %v1958_v45 = vmul.f32 %v18451_v44, %v1478_v34 }
 0x20a   :  { %2983 = vst [vmem:[#allocation3 + $0x268] sm:$0xf] %v14727_v11  ;;  %3931 = vst [vmem:[#allocation3 + $0x228] sm:$0xf] %v14883_v22  ;;  %v16574_v58 = vld [vmem:[#allocation3 + $0xe4] ss:$36 sps:$4 sm:$0xff]   ;;  %9238 = vmatprep.mubr.bf16.mxu1 %v16572_v29 }
 0x20b   :  { %3458 = vst [vmem:[#allocation3 + $0x26c] sm:$0xf] %v14883_v22  ;;  %20466 = vst [vmem:[#allocation128_spill] sm:$0xff] %v18565_v56  ;;  %v15742_v42 = vpop.f32.mrb[44].mxu1  ;;  %9582 = vmatprep.mubr.bf16.mxu0 %v16574_v58  ;;  %v5909_v18 = vld [vmem:[#allocation2 + $0x9b] sm:$0xff]  ;;  %v5910_v36 = vld [vmem:[#allocation2 + $0xa3] sm:$0xff] }
 0x20c   :  { %2038 = vst [vmem:[#allocation2 + $0xc8] sm:$0xff] %v1959_v43  ;;  %20467 = vst [vmem:[#allocation129_spill] sm:$0xff] %v18568_v30  ;;  %v1244_v4 = vadd.f32 %v15742_v42, %v18460_v55  ;;  %v1235_v63 = vpop.f32.mrb[45].mxu1  ;;  %v16640_v38 = vld [vmem:[%s20104_s6 + $0x128] sm:$0xff]   ;;  %v15277_v53 = vpack.c.bf16 %v5909_v18, %v5909_v18  ;;  %v15278_v49 = vpack.c.bf16 %v5910_v36, %v5910_v36  ;;  %v2110_v43 = vld [vmem:[#allocation2 + $0x7d] sm:$0xff] }
 0x20d   :  { %2036 = vst [vmem:[#allocation2 + $0xb8] sm:$0xff] %v1957_v32  ;;  %2039 = vst [vmem:[#allocation2 + $0xd0] sm:$0xff] %v1960_v31  ;;  %v1236_v51 = vadd.f32 %v18460_v55, %v1235_v63  ;;  %v15743_v5 = vpop.f32.mrb[46].mxu1  ;;  %v16577_v17 = vld [vmem:[#allocation3 + $0x120] ss:$36 sps:$4 sm:$0xff]   ;;  %v16655_v27 = vld [vmem:[%s20104_s6 + $0x130] sm:$0xff]   ;;  %v14646_v34 = vpack.c.bf16 %v2110_v43, %v2110_v43  ;;  %v18582_v31 = vpop.permute.xlu0 %1764  ;;  %9889 = vmatpush1.bf16.msra.mxu0 %v16640_v38 }
 0x20e   :  { %2037 = vst [vmem:[#allocation2 + $0xc0] sm:$0xff] %v1958_v45  ;;  %v1483_v11 = vmax.f32 %v1244_v4, 0.0  ;;  %v1247_v22 = vadd.f32 %v15743_v5, %v18460_v55  ;;  %v1238_v6 = vpop.f32.mrb[47].mxu1  ;;  %v16578_v8 = vld [vmem:[#allocation3 + $0xe0] ss:$36 sps:$4 sm:$0xff]   ;;  %v2585_v58 = vld [vmem:[#allocation2 + $0x7e] sm:$0xff]  ;;  %v18585_v4 = vpop.permute.xlu1 %1759  ;;  %9890 = vmatprep.subr.bf16.mxu0 %v20379_v2 }
 0x20f   :  { %6305 = vst [vmem:[#allocation3 + $0x218] sm:$0xf] %v15277_v53  ;;  %6306 = vst [vmem:[#allocation3 + $0x23c] sm:$0xf] %v15278_v49  ;;  %v1481_v61 = vmax.f32 %v1236_v51, 0.0  ;;  %v1239_v59 = vadd.f32 %v18460_v55, %v1238_v6  ;;  %v14725_v18 = vpack.c.bf16 %v2585_v58, %v2585_v58  ;;  %v3533_v36 = vld [vmem:[#allocation2 + $0x7f] sm:$0xff]  ;;  %9239 = vmatmul.mubr.bf16.gmra.mrb[116].mxu1 %v16577_v17 }
 0x210   :  { %v16579_v29 = vld [vmem:[#allocation3 + $0x16c] ss:$36 sps:$4 sm:$0xff]   ;;  %20468 = vst [vmem:[#allocation130_spill] sm:$0xff] %v18582_v31  ;;  %v1963_v45 = vmul.f32 %v18462_v35, %v1483_v11  ;;  %v1484_v42 = vmax.f32 %v1247_v22, 0.0  ;;  %20469 = vst [vmem:[#allocation131_spill] sm:$0xff] %v18585_v4  ;;  %v14881_v49 = vpack.c.bf16 %v3533_v36, %v3533_v36  ;;  %v2111_v51 = vld [vmem:[#allocation2 + $0x85] sm:$0xff] }
 0x211   :  { %v16581_v32 = vld [vmem:[#allocation3 + $0x12c] ss:$36 sps:$4 sm:$0xff]   ;;  %v1961_v63 = vmul.f32 %v18453_v60, %v1481_v61  ;;  %v1482_v53 = vmax.f32 %v1239_v59, 0.0  ;;  %2506 = vst [vmem:[#allocation3 + $0x21c] sm:$0xf] %v14646_v34  ;;  %v2586_v5 = vld [vmem:[#allocation2 + $0x86] sm:$0xff]  ;;  %9583 = vmatmul.mubr.bf16.gmra.mrb[72].mxu0 %v16578_v8  ;;  %v14647_v11 = vpack.c.bf16 %v2111_v51, %v2111_v51  ;;  %9246 = vmatprep.mubr.bf16.mxu1 %v16579_v29 }
 0x212   :  { %2042 = vst [vmem:[#allocation2 + $0xe8] sm:$0xff] %v1963_v45  ;;  %v1964_v6 = vmul.f32 %v18473_v12, %v1484_v42  ;;  %2981 = vst [vmem:[#allocation3 + $0x220] sm:$0xf] %v14725_v18  ;;  %v14726_v22 = vpack.c.bf16 %v2586_v5, %v2586_v5  ;;  %v3534_v38 = vld [vmem:[#allocation2 + $0x87] sm:$0xff]  ;;  %v2113_v43 = vld [vmem:[#allocation2 + $0x95] sm:$0xff]  ;;  %v15746_v59 = vpop.f32.mrb[48].mxu1  ;;  %9590 = vmatprep.mubr.bf16.mxu0 %v16581_v32  ;;  %9891 = vmatpush1.bf16.msra.mxu0 %v16655_v27 }
 0x213   :  { %v2114_v58 = vld [vmem:[#allocation2 + $0x9d] sm:$0xff]  ;;  %2040 = vst [vmem:[#allocation2 + $0xd8] sm:$0xff] %v1961_v63  ;;  %v1962_v61 = vmul.f32 %v18464_v20, %v1482_v53  ;;  %3929 = vst [vmem:[#allocation3 + $0x1e0] sm:$0xf] %v14881_v49  ;;  %v14882_v34 = vpack.c.bf16 %v3534_v38, %v3534_v38  ;;  %v14649_v45 = vpack.c.bf16 %v2113_v43, %v2113_v43  ;;  %v1251_v5 = vpop.f32.mrb[49].mxu1  ;;  %v2115_v35 = vld [vmem:[#allocation2 + $0xa5] sm:$0xff]  ;;  %9892 = vmatprep.subr.bf16.mxu0 %v20379_v2 }
 0x214   :  { %3456 = vst [vmem:[#allocation3 + $0x224] sm:$0xf] %v14881_v49  ;;  %v2588_v36 = vld [vmem:[#allocation2 + $0x96] sm:$0xff]  ;;  %v2589_v42 = vld [vmem:[#allocation2 + $0x9e] sm:$0xff]  ;;  %2043 = vst [vmem:[#allocation2 + $0xf0] sm:$0xff] %v1964_v6  ;;  %v1260_v51 = vadd.f32 %v15746_v59, %v18460_v55  ;;  %v14650_v63 = vpack.c.bf16 %v2114_v58, %v2114_v58  ;;  %v1252_v38 = vadd.f32 %v18460_v55, %v1251_v5  ;;  %v15747_v43 = vpop.f32.mrb[50].mxu1 }
 0x215   :  { %v3536_v17 = vld [vmem:[#allocation2 + $0x97] sm:$0xff]  ;;  %v5914_v18 = vld [vmem:[#allocation2 + $0xc3] sm:$0xff]  ;;  %2507 = vst [vmem:[#allocation3 + $0x240] sm:$0xf] %v14647_v11  ;;  %2982 = vst [vmem:[#allocation3 + $0x244] sm:$0xf] %v14726_v22  ;;  %v14728_v53 = vpack.c.bf16 %v2588_v36, %v2588_v36  ;;  %v14729_v12 = vpack.c.bf16 %v2589_v42, %v2589_v42  ;;  %v18594_v11 = vpop.permute.xlu0 %1774  ;;  %v1263_v27 = vadd.f32 %v15747_v43, %v18460_v55 }
 0x216   :  { %v5913_v8 = vld [vmem:[#allocation2 + $0xbb] sm:$0xff]  ;;  %v15282_v49 = vpack.c.bf16 %v5914_v18, %v5914_v18  ;;  %2041 = vst [vmem:[#allocation2 + $0xe0] sm:$0xff] %v1962_v61  ;;  %3930 = vst [vmem:[#allocation3 + $0x204] sm:$0xf] %v14882_v34  ;;  %v14884_v6 = vpack.c.bf16 %v3536_v17, %v3536_v17  ;;  %v2116_v59 = vld [vmem:[#allocation2 + $0xad] sm:$0xff]  ;;  %v1487_v22 = vmax.f32 %v1260_v51, 0.0  ;;  %v18597_v18 = vpop.permute.xlu1 %1769 }
 0x217   :  { %v3537_v29 = vld [vmem:[#allocation2 + $0x9f] sm:$0xff]  ;;  %v15281_v32 = vpack.c.bf16 %v5913_v8, %v5913_v8  ;;  %2509 = vst [vmem:[#allocation3 + $0x288] sm:$0xf] %v14649_v45  ;;  %3457 = vst [vmem:[#allocation3 + $0x248] sm:$0xf] %v14882_v34  ;;  %v1254_v58 = vpop.f32.mrb[51].mxu1  ;;  %v14651_v45 = vpack.c.bf16 %v2115_v35, %v2115_v35  ;;  %v14652_v43 = vpack.c.bf16 %v2116_v59, %v2116_v59 }
 0x218   :  { %v2590_v20 = vld [vmem:[#allocation2 + $0xa6] sm:$0xff]  ;;  %20470 = vst [vmem:[#allocation132_spill] sm:$0xff] %v18594_v11  ;;  %v16583_v36 = vld [vmem:[#allocation3 + $0x168] ss:$36 sps:$4 sm:$0xff]   ;;  %2510 = vst [vmem:[#allocation3 + $0x2ac] sm:$0xf] %v14650_v63  ;;  %v14885_v42 = vpack.c.bf16 %v3537_v29, %v3537_v29  ;;  %v1255_v51 = vadd.f32 %v18460_v55, %v1254_v58 }
 0x219   :  { %v16584_v61 = vld [vmem:[#allocation3 + $0x128] ss:$36 sps:$4 sm:$0xff]   ;;  %2984 = vst [vmem:[#allocation3 + $0x28c] sm:$0xf] %v14728_v53  ;;  %2985 = vst [vmem:[#allocation3 + $0x2b0] sm:$0xf] %v14729_v12  ;;  %v14730_v60 = vpack.c.bf16 %v2590_v20, %v2590_v20  ;;  %v1967_v12 = vmul.f32 %v18480_v37, %v1487_v22  ;;  %9247 = vmatmul.mubr.bf16.gmra.mrb[120].mxu1 %v16583_v36 }
 0x21a   :  { %v2591_v34 = vld [vmem:[#allocation2 + $0xae] sm:$0xff]  ;;  %20471 = vst [vmem:[#allocation133_spill] sm:$0xff] %v18597_v18  ;;  %6309 = vst [vmem:[#allocation3 + $0x2a8] sm:$0xf] %v15281_v32  ;;  %v1485_v5 = vmax.f32 %v1252_v38, 0.0  ;;  %v2118_v63 = vld [vmem:[#allocation2 + $0xbd] sm:$0xff]  ;;  %9591 = vmatmul.mubr.bf16.gmra.mrb[76].mxu0 %v16584_v61 }
 0x21b   :  { %v3538_v17 = vld [vmem:[#allocation2 + $0xa7] sm:$0xff]  ;;  %v3539_v8 = vld [vmem:[#allocation2 + $0xaf] sm:$0xff]  ;;  %6310 = vst [vmem:[#allocation3 + $0x2cc] sm:$0xf] %v15282_v49  ;;  %3932 = vst [vmem:[#allocation3 + $0x24c] sm:$0xf] %v14884_v6  ;;  %v14731_v3 = vpack.c.bf16 %v2591_v34, %v2591_v34 }
 0x21c   :  { %3459 = vst [vmem:[#allocation3 + $0x290] sm:$0xf] %v14884_v6  ;;  %v2117_v39 = vld [vmem:[#allocation2 + $0xb5] sm:$0xff]  ;;  %v1488_v35 = vmax.f32 %v1263_v27, 0.0  ;;  %3933 = vst [vmem:[#allocation3 + $0x270] sm:$0xf] %v14885_v42  ;;  %v14886_v32 = vpack.c.bf16 %v3538_v17, %v3538_v17  ;;  %v1965_v55 = vmul.f32 %v18470_v24, %v1485_v5  ;;  %v14887_v20 = vpack.c.bf16 %v3539_v8, %v3539_v8  ;;  %v18604_v17 = vpop.permute.xlu0 %1784 }
 0x21d   :  { %v2592_v53 = vld [vmem:[#allocation2 + $0xb6] sm:$0xff]  ;;  %2511 = vst [vmem:[#allocation3 + $0x2d0] sm:$0xf] %v14651_v45  ;;  %3460 = vst [vmem:[#allocation3 + $0x2b4] sm:$0xf] %v14885_v42  ;;  %v2593_v49 = vld [vmem:[#allocation2 + $0xbe] sm:$0xff]  ;;  %v14653_v6 = vpack.c.bf16 %v2117_v39, %v2117_v39  ;;  %v14654_v27 = vpack.c.bf16 %v2118_v63, %v2118_v63 }
 0x21e   :  { %v16585_v29 = vld [vmem:[#allocation3 + $0x1b4] ss:$36 sps:$4 sm:$0xff]   ;;  %v1486_v58 = vmax.f32 %v1255_v51, 0.0  ;;  %2512 = vst [vmem:[#allocation3 + $0x2f4] sm:$0xf] %v14652_v43  ;;  %2046 = vst [vmem:[#allocation2 + $0x108] sm:$0xff] %v1967_v12  ;;  %v1968_v22 = vmul.f32 %v18493_v50, %v1488_v35  ;;  %v14732_v42 = vpack.c.bf16 %v2592_v53, %v2592_v53  ;;  %v18612_v43 = vpop.permute.xlu1 %1779 }
 0x21f   :  { %v3540_v38 = vld [vmem:[#allocation2 + $0xb7] sm:$0xff]  ;;  %2986 = vst [vmem:[#allocation3 + $0x2d4] sm:$0xf] %v14730_v60  ;;  %v3541_v44 = vld [vmem:[#allocation2 + $0xbf] sm:$0xff]  ;;  %2987 = vst [vmem:[#allocation3 + $0x2f8] sm:$0xf] %v14731_v3  ;;  %9254 = vmatprep.mubr.bf16.mxu1 %v16585_v29  ;;  %v14733_v60 = vpack.c.bf16 %v2593_v49, %v2593_v49 }
 0x220   :  { %v16587_v59 = vld [vmem:[#allocation3 + $0x174] ss:$36 sps:$4 sm:$0xff]   ;;  %3934 = vst [vmem:[#allocation3 + $0x294] sm:$0xf] %v14886_v32  ;;  %3461 = vst [vmem:[#allocation3 + $0x2d8] sm:$0xf] %v14886_v32  ;;  %v1966_v45 = vmul.f32 %v18483_v15, %v1486_v58  ;;  %v14888_v39 = vpack.c.bf16 %v3540_v38, %v3540_v38  ;;  %v14889_v51 = vpack.c.bf16 %v3541_v44, %v3541_v44 }
 0x221   :  { %2044 = vst [vmem:[#allocation2 + $0xf8] sm:$0xff] %v1965_v55  ;;  %v15750_v34 = vpop.f32.mrb[52].mxu1  ;;  %9598 = vmatprep.mubr.bf16.mxu0 %v16587_v59  ;;  %3935 = vst [vmem:[#allocation3 + $0x2b8] sm:$0xf] %v14887_v20  ;;  %v5917_v36 = vld [vmem:[#allocation2 + $0xdb] sm:$0xff]  ;;  %v5918_v61 = vld [vmem:[#allocation2 + $0xe3] sm:$0xff] }
 0x222   :  { %2513 = vst [vmem:[#allocation3 + $0x318] sm:$0xf] %v14653_v6  ;;  %3462 = vst [vmem:[#allocation3 + $0x2fc] sm:$0xf] %v14887_v20  ;;  %v18609_v3 = vld [vmem:[%s20103_s5] ss:$0 sm:$0xff]  ;;  %v15285_v63 = vpack.c.bf16 %v5917_v36, %v5917_v36  ;;  %v15286_v53 = vpack.c.bf16 %v5918_v61, %v5918_v61 }
 0x223   :  { %20472 = vst [vmem:[#allocation134_spill] sm:$0xff] %v18604_v17  ;;  %2047 = vst [vmem:[#allocation2 + $0x110] sm:$0xff] %v1968_v22  ;;  %v1276_v8 = vadd.f32 %v18609_v3, %v15750_v34  ;;  %v1267_v5 = vpop.f32.mrb[53].mxu1  ;;  %v16589_v55 = vld [vmem:[#allocation3 + $0x1b0] ss:$36 sps:$4 sm:$0xff]   ;;  %v2119_v61 = vld [vmem:[#allocation2 + $0xc5] sm:$0xff] }
 0x224   :  { %2514 = vst [vmem:[#allocation3 + $0x33c] sm:$0xf] %v14654_v27  ;;  %2988 = vst [vmem:[#allocation3 + $0x31c] sm:$0xf] %v14732_v42  ;;  %v1268_v12 = vadd.f32 %v18609_v3, %v1267_v5  ;;  %v15751_v35 = vpop.f32.mrb[54].mxu1  ;;  %9255 = vmatmul.mubr.bf16.gmra.mrb[124].mxu1 %v16589_v55  ;;  %v5423_v13 = vld [vmem:[#allocation2 + $0x42] sm:$0xff] }
 0x225   :  { %20473 = vst [vmem:[#allocation135_spill] sm:$0xff] %v18612_v43  ;;  %2045 = vst [vmem:[#allocation2 + $0x100] sm:$0xff] %v1966_v45  ;;  %v1491_v29 = vmax.f32 %v1276_v8, 0.0  ;;  %v1279_v32 = vadd.f32 %v18609_v3, %v15751_v35  ;;  %v1270_v49 = vpop.f32.mrb[55].mxu1  ;;  %v16590_v20 = vld [vmem:[#allocation3 + $0x170] ss:$36 sps:$4 sm:$0xff]   ;;  %v18619_v45 = vpop.permute.xlu0 %1794 }
 0x226   :  { %2989 = vst [vmem:[#allocation3 + $0x340] sm:$0xf] %v14733_v60  ;;  %3936 = vst [vmem:[#allocation3 + $0x2dc] sm:$0xf] %v14888_v39  ;;  %v1489_v44 = vmax.f32 %v1268_v12, 0.0  ;;  %v1271_v38 = vadd.f32 %v18609_v3, %v1270_v49  ;;  %9599 = vmatmul.mubr.bf16.gmra.mrb[80].mxu0 %v16590_v20  ;;  %v18622_v60 = vpop.permute.xlu1 %1789  ;;  %v15754_v36 = vpop.f32.mrb[56].mxu1 }
 0x227   :  { %3463 = vst [vmem:[#allocation3 + $0x320] sm:$0xf] %v14888_v39  ;;  %3937 = vst [vmem:[#allocation3 + $0x300] sm:$0xf] %v14889_v51  ;;  %v1971_v58 = vmul.f32 %v18500_v57, %v1491_v29  ;;  %v1492_v59 = vmax.f32 %v1279_v32, 0.0  ;;  %v2596_v57 = vld [vmem:[#allocation2 + $0xd6] sm:$0xff] }
 0x228   :  { %3464 = vst [vmem:[#allocation3 + $0x344] sm:$0xf] %v14889_v51  ;;  %6313 = vst [vmem:[#allocation3 + $0x338] sm:$0xf] %v15285_v63  ;;  %v16592_v6 = vld [vmem:[#allocation3 + $0x1fc] ss:$36 sps:$4 sm:$0xff]   ;;  %v1969_v22 = vmul.f32 %v18490_v0, %v1489_v44  ;;  %v1292_v51 = vadd.f32 %v18609_v3, %v15754_v36 }
 0x229   :  { %6314 = vst [vmem:[#allocation3 + $0x35c] sm:$0xf] %v15286_v53  ;;  %v1490_v27 = vmax.f32 %v1271_v38, 0.0  ;;  %v16594_v42 = vld [vmem:[#allocation3 + $0x1bc] ss:$36 sps:$4 sm:$0xff]   ;;  %20474 = vst [vmem:[#allocation136_spill] sm:$0xff] %v18619_v45  ;;  %v1972_v34 = vmul.f32 %v18516_v16, %v1492_v59  ;;  %9262 = vmatprep.mubr.bf16.mxu1 %v16592_v6  ;;  %v14655_v53 = vpack.c.bf16 %v2119_v61, %v2119_v61 }
 0x22a   :  { %2050 = vst [vmem:[#allocation2 + $0x128] sm:$0xff] %v1971_v58  ;;  %20475 = vst [vmem:[#allocation137_spill] sm:$0xff] %v18622_v60  ;;  %9606 = vmatprep.mubr.bf16.mxu0 %v16594_v42  ;;  %v1283_v63 = vpop.f32.mrb[57].mxu1  ;;  %v1495_v49 = vmax.f32 %v1292_v51, 0.0  ;;  %v16596_v55 = vld [vmem:[#allocation3 + $0x1f8] ss:$36 sps:$4 sm:$0xff]  }
 0x22b   :  { %2048 = vst [vmem:[#allocation2 + $0x118] sm:$0xff] %v1969_v22  ;;  %v1970_v39 = vmul.f32 %v18503_v1, %v1490_v27  ;;  %2051 = vst [vmem:[#allocation2 + $0x130] sm:$0xff] %v1972_v34  ;;  %v1284_v29 = vadd.f32 %v18609_v3, %v1283_v63  ;;  %v15755_v32 = vpop.f32.mrb[58].mxu1  ;;  %v16597_v58 = vld [vmem:[#allocation3 + $0x1b8] ss:$36 sps:$4 sm:$0xff]   ;;  %v2120_v27 = vld [vmem:[#allocation2 + $0xcd] sm:$0xff]  ;;  %v18629_v34 = vpop.permute.xlu0 %1804 }
 0x22c   :  { %v5921_v8 = vld [vmem:[#allocation2 + $0xfb] sm:$0xff]  ;;  %v5922_v5 = vld [vmem:[#allocation2 + $0x103] sm:$0xff]  ;;  %v1295_v44 = vadd.f32 %v18609_v3, %v15755_v32  ;;  %v1286_v38 = vpop.f32.mrb[59].mxu1  ;;  %2515 = vst [vmem:[#allocation3 + $0x360] sm:$0xf] %v14655_v53  ;;  %20476 = vst [vmem:[#allocation138_spill] sm:$0xff] %v18629_v34  ;;  %v14656_v61 = vpack.c.bf16 %v2120_v27, %v2120_v27  ;;  %v18632_v53 = vpop.permute.xlu1 %1799  ;;  %9263 = vmatmul.mubr.bf16.gmra.mrb[128].mxu1 %v16596_v55 }
 0x22d   :  { %v15289_v12 = vpack.c.bf16 %v5921_v8, %v5921_v8  ;;  %v15290_v35 = vpack.c.bf16 %v5922_v5, %v5922_v5  ;;  %2049 = vst [vmem:[#allocation2 + $0x120] sm:$0xff] %v1970_v39  ;;  %v1493_v59 = vmax.f32 %v1284_v29, 0.0  ;;  %v1287_v20 = vadd.f32 %v18609_v3, %v1286_v38  ;;  %v16598_v6 = vld [vmem:[#allocation3 + $0x244] ss:$36 sps:$4 sm:$0xff]   ;;  %20477 = vst [vmem:[#allocation139_spill] sm:$0xff] %v18632_v53  ;;  %v2121_v38 = vld [vmem:[#allocation2 + $0xd5] sm:$0xff] }
 0x22e   :  { %v16600_v22 = vld [vmem:[#allocation3 + $0x204] ss:$36 sps:$4 sm:$0xff]   ;;  %v1975_v39 = vmul.f32 %v18532_v41, %v1495_v49  ;;  %v1496_v36 = vmax.f32 %v1295_v44, 0.0  ;;  %v2122_v16 = vld [vmem:[#allocation2 + $0xdd] sm:$0xff]  ;;  %9607 = vmatmul.mubr.bf16.gmra.mrb[84].mxu0 %v16597_v58  ;;  %2516 = vst [vmem:[#allocation3 + $0x384] sm:$0xf] %v14656_v61  ;;  %v14657_v44 = vpack.c.bf16 %v2121_v38, %v2121_v38  ;;  %9270 = vmatprep.mubr.bf16.mxu1 %v16598_v6 }
 0x22f   :  { %6317 = vst [vmem:[#allocation3 + $0x3c8] sm:$0xf] %v15289_v12  ;;  %6318 = vst [vmem:[#allocation3 + $0x3ec] sm:$0xf] %v15290_v35  ;;  %v2594_v42 = vld [vmem:[#allocation2 + $0xc6] sm:$0xff]  ;;  %v2595_v8 = vld [vmem:[#allocation2 + $0xce] sm:$0xff]  ;;  %v1973_v12 = vmul.f32 %v18513_v19, %v1493_v59  ;;  %9614 = vmatprep.mubr.bf16.mxu0 %v16600_v22 }
 0x230   :  { %v14734_v5 = vpack.c.bf16 %v2594_v42, %v2594_v42  ;;  %v3542_v51 = vld [vmem:[#allocation2 + $0xc7] sm:$0xff]  ;;  %v3543_v63 = vld [vmem:[#allocation2 + $0xcf] sm:$0xff]  ;;  %v1494_v35 = vmax.f32 %v1287_v20, 0.0  ;;  %v14735_v29 = vpack.c.bf16 %v2595_v8, %v2595_v8  ;;  %2054 = vst [vmem:[#allocation2 + $0x148] sm:$0xff] %v1975_v39  ;;  %v1976_v1 = vmul.f32 %v18553_v14, %v1496_v36  ;;  %v2597_v27 = vld [vmem:[#allocation2 + $0xde] sm:$0xff]  ;;  %v15758_v20 = vpop.f32.mrb[60].mxu1  ;;  %v18639_v14 = vpop.permute.xlu0 %1814 }
 0x231   :  { %v14890_v32 = vpack.c.bf16 %v3542_v51, %v3542_v51  ;;  %v14891_v49 = vpack.c.bf16 %v3543_v63, %v3543_v63  ;;  %v3544_v42 = vld [vmem:[#allocation2 + $0xd7] sm:$0xff]  ;;  %v3545_v41 = vld [vmem:[#allocation2 + $0xdf] sm:$0xff]  ;;  %2052 = vst [vmem:[#allocation2 + $0x138] sm:$0xff] %v1973_v12  ;;  %v14658_v39 = vpack.c.bf16 %v2122_v16, %v2122_v16  ;;  %v14736_v8 = vpack.c.bf16 %v2596_v57, %v2596_v57  ;;  %v2124_v58 = vld [vmem:[#allocation2 + $0xed] sm:$0xff]  ;;  %v1299_v63 = vpop.f32.mrb[61].mxu1 }
 0x232   :  { %2990 = vst [vmem:[#allocation3 + $0x364] sm:$0xf] %v14734_v5  ;;  %v1974_v59 = vmul.f32 %v18535_v52, %v1494_v35  ;;  %2991 = vst [vmem:[#allocation3 + $0x388] sm:$0xf] %v14735_v29  ;;  %v2123_v55 = vld [vmem:[#allocation2 + $0xe5] sm:$0xff]  ;;  %v1308_v51 = vadd.f32 %v18609_v3, %v15758_v20  ;;  %v14737_v12 = vpack.c.bf16 %v2597_v27, %v2597_v27  ;;  %v2599_v35 = vld [vmem:[#allocation2 + $0xee] sm:$0xff] }
 0x233   :  { %3938 = vst [vmem:[#allocation3 + $0x324] sm:$0xf] %v14890_v32  ;;  %3465 = vst [vmem:[#allocation3 + $0x368] sm:$0xf] %v14890_v32  ;;  %v2598_v36 = vld [vmem:[#allocation2 + $0xe6] sm:$0xff]  ;;  %v14892_v6 = vpack.c.bf16 %v3544_v42, %v3544_v42  ;;  %v14893_v22 = vpack.c.bf16 %v3545_v41, %v3545_v41  ;;  %v1300_v57 = vadd.f32 %v18609_v3, %v1299_v63  ;;  %v15759_v32 = vpop.f32.mrb[62].mxu1 }
 0x234   :  { %v5925_v61 = vld [vmem:[#allocation2 + $0x11b] sm:$0xff]  ;;  %v5926_v5 = vld [vmem:[#allocation2 + $0x123] sm:$0xff]  ;;  %2055 = vst [vmem:[#allocation2 + $0x150] sm:$0xff] %v1976_v1  ;;  %3939 = vst [vmem:[#allocation3 + $0x348] sm:$0xf] %v14891_v49  ;;  %v14659_v38 = vpack.c.bf16 %v2123_v55, %v2123_v55  ;;  %v1302_v27 = vpop.f32.mrb[63].mxu1  ;;  %v18642_v55 = vpop.permute.xlu1 %1809  ;;  %v14739_v19 = vpack.c.bf16 %v2599_v35, %v2599_v35 }
 0x235   :  { %2517 = vst [vmem:[#allocation3 + $0x3a8] sm:$0xf] %v14657_v44  ;;  %3466 = vst [vmem:[#allocation3 + $0x38c] sm:$0xf] %v14891_v49  ;;  %v15293_v29 = vpack.c.bf16 %v5925_v61, %v5925_v61  ;;  %v15294_v16 = vpack.c.bf16 %v5926_v5, %v5926_v5  ;;  %v3546_v1 = vld [vmem:[#allocation2 + $0xe7] sm:$0xff]  ;;  %v3547_v52 = vld [vmem:[#allocation2 + $0xef] sm:$0xff]  ;;  %v1311_v49 = vadd.f32 %v18609_v3, %v15759_v32 }
 0x236   :  { %2053 = vst [vmem:[#allocation2 + $0x140] sm:$0xff] %v1974_v59  ;;  %2518 = vst [vmem:[#allocation3 + $0x3cc] sm:$0xf] %v14658_v39  ;;  %v2125_v20 = vld [vmem:[#allocation2 + $0xf5] sm:$0xff]  ;;  %v1499_v44 = vmax.f32 %v1308_v51, 0.0  ;;  %v14660_v59 = vpack.c.bf16 %v2124_v58, %v2124_v58  ;;  %v14738_v61 = vpack.c.bf16 %v2598_v36, %v2598_v36  ;;  %v2126_v39 = vld [vmem:[#allocation2 + $0xfd] sm:$0xff]  ;;  %v1303_v51 = vadd.f32 %v18609_v3, %v1302_v27 }
 0x237   :  { %2992 = vst [vmem:[#allocation3 + $0x3ac] sm:$0xf] %v14736_v8  ;;  %20478 = vst [vmem:[#allocation140_spill] sm:$0xff] %v18639_v14  ;;  %v16602_v41 = vld [vmem:[#allocation3 + $0x240] ss:$36 sps:$4 sm:$0xff]   ;;  %v2600_v8 = vld [vmem:[#allocation2 + $0xf6] sm:$0xff] }
 0x238   :  { %v16603_v42 = vld [vmem:[#allocation3 + $0x200] ss:$36 sps:$4 sm:$0xff]   ;;  %2993 = vst [vmem:[#allocation3 + $0x3d0] sm:$0xf] %v14737_v12  ;;  %3940 = vst [vmem:[#allocation3 + $0x36c] sm:$0xf] %v14892_v6  ;;  %v14894_v12 = vpack.c.bf16 %v3546_v1, %v3546_v1  ;;  %v1979_v58 = vmul.f32 %v18565_v56, %v1499_v44  ;;  %v14740_v35 = vpack.c.bf16 %v2600_v8, %v2600_v8  ;;  %9271 = vmatmul.mubr.bf16.gmra.mrb[132].mxu1 %v16602_v41  ;;  %v18649_v41 = vpop.permute.xlu0 %1824 }
 0x239   :  { %3941 = vst [vmem:[#allocation3 + $0x390] sm:$0xf] %v14893_v22  ;;  %3467 = vst [vmem:[#allocation3 + $0x3b0] sm:$0xf] %v14892_v6  ;;  %v1497_v5 = vmax.f32 %v1300_v57, 0.0  ;;  %v2601_v0 = vld [vmem:[#allocation2 + $0xfe] sm:$0xff]  ;;  %v14895_v6 = vpack.c.bf16 %v3547_v52, %v3547_v52  ;;  %9615 = vmatmul.mubr.bf16.gmra.mrb[88].mxu0 %v16603_v42 }
 0x23a   :  { %3468 = vst [vmem:[#allocation3 + $0x3d4] sm:$0xf] %v14893_v22  ;;  %20479 = vst [vmem:[#allocation141_spill] sm:$0xff] %v18642_v55  ;;  %v16604_v63 = vld [vmem:[#allocation3 + $0x28c] ss:$36 sps:$4 sm:$0xff]   ;;  %v1500_v36 = vmax.f32 %v1311_v49, 0.0  ;;  %v14661_v22 = vpack.c.bf16 %v2125_v20, %v2125_v20  ;;  %v14741_v52 = vpack.c.bf16 %v2601_v0, %v2601_v0 }
 0x23b   :  { %6321 = vst [vmem:[#allocation3 + $0x458] sm:$0xf] %v15293_v29  ;;  %6322 = vst [vmem:[#allocation3 + $0x47c] sm:$0xf] %v15294_v16  ;;  %v16606_v32 = vld [vmem:[#allocation3 + $0x24c] ss:$36 sps:$4 sm:$0xff]   ;;  %v1977_v57 = vmul.f32 %v18549_v54, %v1497_v5  ;;  %9278 = vmatprep.mubr.bf16.mxu1 %v16604_v63 }
 0x23c   :  { %2519 = vst [vmem:[#allocation3 + $0x3f0] sm:$0xf] %v14659_v38  ;;  %v3548_v50 = vld [vmem:[#allocation2 + $0xf7] sm:$0xff]  ;;  %2520 = vst [vmem:[#allocation3 + $0x414] sm:$0xf] %v14660_v59  ;;  %v3549_v37 = vld [vmem:[#allocation2 + $0xff] sm:$0xff]  ;;  %v14662_v38 = vpack.c.bf16 %v2126_v39, %v2126_v39  ;;  %v1980_v44 = vmul.f32 %v18585_v4, %v1500_v36  ;;  %9622 = vmatprep.mubr.bf16.mxu0 %v16606_v32  ;;  %v18652_v32 = vpop.permute.xlu1 %1819 }
 0x23d   :  { %2994 = vst [vmem:[#allocation3 + $0x3f4] sm:$0xf] %v14738_v61  ;;  %v2127_v29 = vld [vmem:[#allocation2 + $0x105] sm:$0xff]  ;;  %v2128_v16 = vld [vmem:[#allocation2 + $0x10d] sm:$0xff]  ;;  %v1498_v27 = vmax.f32 %v1303_v51, 0.0  ;;  %2058 = vst [vmem:[#allocation2 + $0x168] sm:$0xff] %v1979_v58  ;;  %v14896_v20 = vpack.c.bf16 %v3548_v50, %v3548_v50  ;;  %v14897_v61 = vpack.c.bf16 %v3549_v37, %v3549_v37 }
 0x23e   :  { %2995 = vst [vmem:[#allocation3 + $0x418] sm:$0xf] %v14739_v19  ;;  %3942 = vst [vmem:[#allocation3 + $0x3b4] sm:$0xf] %v14894_v12  ;;  %v2602_v1 = vld [vmem:[#allocation2 + $0x106] sm:$0xff]  ;;  %v2603_v15 = vld [vmem:[#allocation2 + $0x10e] sm:$0xff]  ;;  %v14663_v39 = vpack.c.bf16 %v2127_v29, %v2127_v29 }
 0x23f   :  { %3469 = vst [vmem:[#allocation3 + $0x3f8] sm:$0xf] %v14894_v12  ;;  %3943 = vst [vmem:[#allocation3 + $0x3d8] sm:$0xf] %v14895_v6  ;;  %v3550_v49 = vld [vmem:[#allocation2 + $0x107] sm:$0xff]  ;;  %v1978_v19 = vmul.f32 %v18568_v30, %v1498_v27  ;;  %v15762_v59 = vpop.f32.mrb[64].mxu1  ;;  %v14664_v12 = vpack.c.bf16 %v2128_v16, %v2128_v16  ;;  %v14742_v58 = vpack.c.bf16 %v2602_v1, %v2602_v1 }
 0x240   :  { %2521 = vst [vmem:[#allocation3 + $0x438] sm:$0xf] %v14661_v22  ;;  %3470 = vst [vmem:[#allocation3 + $0x41c] sm:$0xf] %v14895_v6  ;;  %v3551_v8 = vld [vmem:[#allocation2 + $0x10f] sm:$0xff]  ;;  %v5929_v42 = vld [vmem:[#allocation2 + $0x13b] sm:$0xff]  ;;  %v1324_v0 = vadd.f32 %v18609_v3, %v15762_v59  ;;  %v14743_v63 = vpack.c.bf16 %v2603_v15, %v2603_v15  ;;  %v14898_v29 = vpack.c.bf16 %v3550_v49, %v3550_v49 }
 0x241   :  { %2056 = vst [vmem:[#allocation2 + $0x158] sm:$0xff] %v1977_v57  ;;  %2522 = vst [vmem:[#allocation3 + $0x45c] sm:$0xf] %v14662_v38  ;;  %v5895_v5 = vld [vmem:[#allocation2 + $0x2b] sm:$0xff]  ;;  %v5930_v51 = vld [vmem:[#allocation2 + $0x143] sm:$0xff]  ;;  %v1315_v50 = vpop.f32.mrb[65].mxu1  ;;  %v15297_v37 = vpack.c.bf16 %v5929_v42, %v5929_v42  ;;  %v14899_v15 = vpack.c.bf16 %v3551_v8, %v3551_v8  ;;  %v18659_v8 = vpop.permute.xlu0 %1834 }
 0x242   :  { %2996 = vst [vmem:[#allocation3 + $0x43c] sm:$0xf] %v14740_v35  ;;  %20480 = vst [vmem:[#allocation142_spill] sm:$0xff] %v18649_v41  ;;  %v15298_v36 = vpack.c.bf16 %v5930_v51, %v5930_v51  ;;  %v1316_v6 = vadd.f32 %v18609_v3, %v1315_v50  ;;  %v15763_v22 = vpop.f32.mrb[66].mxu1  ;;  %v1503_v57 = vmax.f32 %v1324_v0, 0.0  ;;  %v15263_v16 = vpack.c.bf16 %v5895_v5, %v5895_v5  ;;  %v2129_v42 = vld [vmem:[#allocation2 + $0x115] sm:$0xff]  ;;  %v18662_v51 = vpop.permute.xlu1 %1829 }
 0x243   :  { %2059 = vst [vmem:[#allocation2 + $0x170] sm:$0xff] %v1980_v44  ;;  %2997 = vst [vmem:[#allocation3 + $0x460] sm:$0xf] %v14741_v52  ;;  %v1327_v27 = vadd.f32 %v18609_v3, %v15763_v22  ;;  %v1318_v38 = vpop.f32.mrb[67].mxu1  ;;  %v16609_v44 = vld [vmem:[#allocation3 + $0x288] ss:$36 sps:$4 sm:$0xff]  }
 0x244   :  { %3944 = vst [vmem:[#allocation3 + $0x3fc] sm:$0xf] %v14896_v20  ;;  %3471 = vst [vmem:[#allocation3 + $0x440] sm:$0xf] %v14896_v20  ;;  %v1501_v35 = vmax.f32 %v1316_v6, 0.0  ;;  %v1319_v1 = vadd.f32 %v18609_v3, %v1318_v38  ;;  %v1983_v52 = vmul.f32 %v18594_v11, %v1503_v57  ;;  %9279 = vmatmul.mubr.bf16.gmra.mrb[136].mxu1 %v16609_v44  ;;  %v15766_v50 = vpop.f32.mrb[68].mxu1 }
 0x245   :  { %20481 = vst [vmem:[#allocation143_spill] sm:$0xff] %v18652_v32  ;;  %2057 = vst [vmem:[#allocation2 + $0x160] sm:$0xff] %v1978_v19  ;;  %v1504_v20 = vmax.f32 %v1327_v27, 0.0  ;;  %v16610_v49 = vld [vmem:[#allocation3 + $0x248] ss:$36 sps:$4 sm:$0xff]   ;;  %v4964_v9 = vld [vmem:[#allocation2 + $0xc1] sm:$0xff] }
 0x246   :  { %3945 = vst [vmem:[#allocation3 + $0x420] sm:$0xf] %v14897_v61  ;;  %2523 = vst [vmem:[#allocation3 + $0x480] sm:$0xf] %v14663_v39  ;;  %v1981_v19 = vmul.f32 %v18582_v31, %v1501_v35  ;;  %v1502_v59 = vmax.f32 %v1319_v1, 0.0  ;;  %9623 = vmatmul.mubr.bf16.gmra.mrb[92].mxu0 %v16610_v49  ;;  %v3558_v31 = vld [vmem:[#allocation2 + $0x147] sm:$0xff] }
 0x247   :  { %3472 = vst [vmem:[#allocation3 + $0x464] sm:$0xf] %v14897_v61  ;;  %2524 = vst [vmem:[#allocation3 + $0x4a4] sm:$0xf] %v14664_v12  ;;  %v16611_v61 = vld [vmem:[#allocation3 + $0x2d4] ss:$36 sps:$4 sm:$0xff]   ;;  %v1984_v5 = vmul.f32 %v18612_v43, %v1504_v20  ;;  %v14665_v12 = vpack.c.bf16 %v2129_v42, %v2129_v42 }
 0x248   :  { %2998 = vst [vmem:[#allocation3 + $0x484] sm:$0xf] %v14742_v58  ;;  %2999 = vst [vmem:[#allocation3 + $0x4a8] sm:$0xf] %v14743_v63  ;;  %v16613_v39 = vld [vmem:[#allocation3 + $0x294] ss:$36 sps:$4 sm:$0xff]   ;;  %v1982_v0 = vmul.f32 %v18597_v18, %v1502_v59  ;;  %9286 = vmatprep.mubr.bf16.mxu1 %v16611_v61 }
 0x249   :  { %6325 = vst [vmem:[#allocation3 + $0x4e8] sm:$0xf] %v15297_v37  ;;  %6326 = vst [vmem:[#allocation3 + $0x50c] sm:$0xf] %v15298_v36  ;;  %9630 = vmatprep.mubr.bf16.mxu0 %v16613_v39  ;;  %v1340_v37 = vadd.f32 %v18609_v3, %v15766_v50  ;;  %v1331_v36 = vpop.f32.mrb[69].mxu1  ;;  %v2130_v61 = vld [vmem:[#allocation2 + $0x11d] sm:$0xff]  ;;  %v18672_v39 = vpop.permute.xlu1 %1839 }
 0x24a   :  { %3946 = vst [vmem:[#allocation3 + $0x444] sm:$0xf] %v14898_v29  ;;  %3473 = vst [vmem:[#allocation3 + $0x488] sm:$0xf] %v14898_v29  ;;  %v1332_v29 = vadd.f32 %v18609_v3, %v1331_v36  ;;  %v15767_v57 = vpop.f32.mrb[70].mxu1  ;;  %v2604_v50 = vld [vmem:[#allocation2 + $0x116] sm:$0xff] }
 0x24b   :  { %3947 = vst [vmem:[#allocation3 + $0x468] sm:$0xf] %v14899_v15  ;;  %3474 = vst [vmem:[#allocation3 + $0x4ac] sm:$0xf] %v14899_v15  ;;  %v1507_v27 = vmax.f32 %v1340_v37, 0.0  ;;  %v1343_v38 = vadd.f32 %v18609_v3, %v15767_v57  ;;  %v1334_v15 = vpop.f32.mrb[71].mxu1  ;;  %v14744_v37 = vpack.c.bf16 %v2604_v50, %v2604_v50 }
 0x24c   :  { %6291 = vst [vmem:[#allocation3 + $0x20] sm:$0xf] %v15263_v16  ;;  %20482 = vst [vmem:[#allocation144_spill] sm:$0xff] %v18659_v8  ;;  %v5933_v58 = vld [vmem:[#allocation2 + $0x15b] sm:$0xff]  ;;  %v5934_v63 = vld [vmem:[#allocation2 + $0x163] sm:$0xff]  ;;  %v1505_v16 = vmax.f32 %v1332_v29, 0.0  ;;  %v1335_v35 = vadd.f32 %v18609_v3, %v1334_v15 }
 0x24d   :  { %2062 = vst [vmem:[#allocation2 + $0x188] sm:$0xff] %v1983_v52  ;;  %20483 = vst [vmem:[#allocation145_spill] sm:$0xff] %v18662_v51  ;;  %v15301_v6 = vpack.c.bf16 %v5933_v58, %v5933_v58  ;;  %v15302_v22 = vpack.c.bf16 %v5934_v63, %v5934_v63  ;;  %v16615_v1 = vld [vmem:[#allocation3 + $0x2d0] ss:$36 sps:$4 sm:$0xff]   ;;  %v18669_v52 = vpop.permute.xlu0 %1844  ;;  %v1987_v20 = vmul.f32 %v18619_v45, %v1507_v27  ;;  %v1508_v49 = vmax.f32 %v1343_v38, 0.0  ;;  %v2132_v29 = vld [vmem:[#allocation2 + $0x12d] sm:$0xff] }
 0x24e   :  { %2060 = vst [vmem:[#allocation2 + $0x178] sm:$0xff] %v1981_v19  ;;  %2063 = vst [vmem:[#allocation2 + $0x190] sm:$0xff] %v1984_v5  ;;  %v16616_v44 = vld [vmem:[#allocation3 + $0x290] ss:$36 sps:$4 sm:$0xff]   ;;  %v16617_v19 = vld [vmem:[#allocation3 + $0x31c] ss:$36 sps:$4 sm:$0xff]   ;;  %v1985_v5 = vmul.f32 %v18604_v17, %v1505_v16  ;;  %9287 = vmatmul.mubr.bf16.gmra.mrb[140].mxu1 %v16615_v1  ;;  %v14668_v50 = vpack.c.bf16 %v2132_v29, %v2132_v29 }
 0x24f   :  { %2061 = vst [vmem:[#allocation2 + $0x180] sm:$0xff] %v1982_v0  ;;  %2525 = vst [vmem:[#allocation3 + $0x4c8] sm:$0xf] %v14665_v12  ;;  %v16619_v59 = vld [vmem:[#allocation3 + $0x2dc] ss:$36 sps:$4 sm:$0xff]   ;;  %v1506_v42 = vmax.f32 %v1335_v35, 0.0  ;;  %v14666_v0 = vpack.c.bf16 %v2130_v61, %v2130_v61  ;;  %v1988_v63 = vmul.f32 %v18632_v53, %v1508_v49  ;;  %9631 = vmatmul.mubr.bf16.gmra.mrb[96].mxu0 %v16616_v44  ;;  %9294 = vmatprep.mubr.bf16.mxu1 %v16617_v19 }
 0x250   :  { %6329 = vst [vmem:[#allocation3 + $0x578] sm:$0xf] %v15301_v6  ;;  %6330 = vst [vmem:[#allocation3 + $0x59c] sm:$0xf] %v15302_v22  ;;  %v2605_v12 = vld [vmem:[#allocation2 + $0x11e] sm:$0xff]  ;;  %v15770_v27 = vpop.f32.mrb[72].mxu1  ;;  %9638 = vmatprep.mubr.bf16.mxu0 %v16619_v59 }
 0x251   :  { %20484 = vst [vmem:[#allocation146_spill] sm:$0xff] %v18669_v52  ;;  %20485 = vst [vmem:[#allocation147_spill] sm:$0xff] %v18672_v39  ;;  %v3552_v58 = vld [vmem:[#allocation2 + $0x117] sm:$0xff]  ;;  %v14745_v36 = vpack.c.bf16 %v2605_v12, %v2605_v12  ;;  %v3553_v6 = vld [vmem:[#allocation2 + $0x11f] sm:$0xff]  ;;  %v1986_v57 = vmul.f32 %v18622_v60, %v1506_v42  ;;  %v1356_v44 = vadd.f32 %v18609_v3, %v15770_v27  ;;  %v1347_v61 = vpop.f32.mrb[73].mxu1 }
 0x252   :  { %2066 = vst [vmem:[#allocation2 + $0x1a8] sm:$0xff] %v1987_v20  ;;  %v2131_v22 = vld [vmem:[#allocation2 + $0x125] sm:$0xff]  ;;  %2064 = vst [vmem:[#allocation2 + $0x198] sm:$0xff] %v1985_v5  ;;  %v14900_v38 = vpack.c.bf16 %v3552_v58, %v3552_v58  ;;  %v14901_v15 = vpack.c.bf16 %v3553_v6, %v3553_v6  ;;  %v2607_v35 = vld [vmem:[#allocation2 + $0x12e] sm:$0xff]  ;;  %v15771_v58 = vpop.f32.mrb[74].mxu1 }
 0x253   :  { %2526 = vst [vmem:[#allocation3 + $0x4ec] sm:$0xf] %v14666_v0  ;;  %v2606_v16 = vld [vmem:[#allocation2 + $0x126] sm:$0xff]  ;;  %2067 = vst [vmem:[#allocation2 + $0x1b0] sm:$0xff] %v1988_v63  ;;  %v14667_v5 = vpack.c.bf16 %v2131_v22, %v2131_v22  ;;  %v3555_v12 = vld [vmem:[#allocation2 + $0x12f] sm:$0xff]  ;;  %v1348_v0 = vadd.f32 %v18609_v3, %v1347_v61  ;;  %v14747_v6 = vpack.c.bf16 %v2607_v35, %v2607_v35  ;;  %v1350_v29 = vpop.f32.mrb[75].mxu1 }
 0x254   :  { %v3554_v20 = vld [vmem:[#allocation2 + $0x127] sm:$0xff]  ;;  %3000 = vst [vmem:[#allocation3 + $0x4cc] sm:$0xf] %v14744_v37  ;;  %3001 = vst [vmem:[#allocation3 + $0x4f0] sm:$0xf] %v14745_v36  ;;  %v14746_v42 = vpack.c.bf16 %v2606_v16, %v2606_v16  ;;  %v2133_v63 = vld [vmem:[#allocation2 + $0x135] sm:$0xff]  ;;  %v18679_v37 = vpop.permute.xlu0 %1854  ;;  %v1359_v22 = vadd.f32 %v18609_v3, %v15771_v58 }
 0x255   :  { %2065 = vst [vmem:[#allocation2 + $0x1a0] sm:$0xff] %v1986_v57  ;;  %3948 = vst [vmem:[#allocation3 + $0x48c] sm:$0xf] %v14900_v38  ;;  %v2134_v27 = vld [vmem:[#allocation2 + $0x13d] sm:$0xff]  ;;  %v1511_v36 = vmax.f32 %v1356_v44, 0.0  ;;  %v14902_v57 = vpack.c.bf16 %v3554_v20, %v3554_v20  ;;  %v1509_v53 = vmax.f32 %v1348_v0, 0.0  ;;  %v1351_v44 = vadd.f32 %v18609_v3, %v1350_v29 }
 0x256   :  { %v5937_v49 = vld [vmem:[#allocation2 + $0x17b] sm:$0xff]  ;;  %v5938_v1 = vld [vmem:[#allocation2 + $0x183] sm:$0xff]  ;;  %3949 = vst [vmem:[#allocation3 + $0x4b0] sm:$0xf] %v14901_v15  ;;  %3475 = vst [vmem:[#allocation3 + $0x4d0] sm:$0xf] %v14900_v38  ;;  %v14669_v58 = vpack.c.bf16 %v2133_v63, %v2133_v63  ;;  %v14670_v45 = vpack.c.bf16 %v2134_v27, %v2134_v27 }
 0x257   :  { %v15305_v19 = vpack.c.bf16 %v5937_v49, %v5937_v49  ;;  %v15306_v59 = vpack.c.bf16 %v5938_v1, %v5938_v1  ;;  %3476 = vst [vmem:[#allocation3 + $0x4f4] sm:$0xf] %v14901_v15  ;;  %v2608_v60 = vld [vmem:[#allocation2 + $0x136] sm:$0xff]  ;;  %20486 = vst [vmem:[#allocation148_spill] sm:$0xff] %v18679_v37  ;;  %v16621_v16 = vld [vmem:[#allocation3 + $0x318] ss:$36 sps:$4 sm:$0xff]   ;;  %v14903_v1 = vpack.c.bf16 %v3555_v12, %v3555_v12  ;;  %v18682_v15 = vpop.permute.xlu1 %1849 }
 0x258   :  { %v16622_v49 = vld [vmem:[#allocation3 + $0x2d8] ss:$36 sps:$4 sm:$0xff]   ;;  %2527 = vst [vmem:[#allocation3 + $0x510] sm:$0xf] %v14667_v5  ;;  %2528 = vst [vmem:[#allocation3 + $0x534] sm:$0xf] %v14668_v50  ;;  %v1989_v63 = vmul.f32 %v18629_v34, %v1509_v53  ;;  %9295 = vmatmul.mubr.bf16.gmra.mrb[144].mxu1 %v16621_v16 }
 0x259   :  { %3002 = vst [vmem:[#allocation3 + $0x514] sm:$0xf] %v14746_v42  ;;  %v2609_v61 = vld [vmem:[#allocation2 + $0x13e] sm:$0xff]  ;;  %20487 = vst [vmem:[#allocation149_spill] sm:$0xff] %v18682_v15  ;;  %v16624_v17 = vld [vmem:[#allocation3 + $0x364] ss:$36 sps:$4 sm:$0xff]   ;;  %v1991_v42 = vmul.f32 %v18639_v14, %v1511_v36  ;;  %9639 = vmatmul.mubr.bf16.gmra.mrb[100].mxu0 %v16622_v49  ;;  %v18692_v49 = vpop.permute.xlu0 %1864 }
 0x25a   :  { %v3556_v35 = vld [vmem:[#allocation2 + $0x137] sm:$0xff]  ;;  %v3557_v38 = vld [vmem:[#allocation2 + $0x13f] sm:$0xff]  ;;  %6333 = vst [vmem:[#allocation3 + $0x608] sm:$0xf] %v15305_v19  ;;  %6334 = vst [vmem:[#allocation3 + $0x62c] sm:$0xf] %v15306_v59  ;;  %v14748_v19 = vpack.c.bf16 %v2608_v60, %v2608_v60  ;;  %v14749_v59 = vpack.c.bf16 %v2609_v61, %v2609_v61  ;;  %9302 = vmatprep.mubr.bf16.mxu1 %v16624_v17 }
 0x25b   :  { %3003 = vst [vmem:[#allocation3 + $0x538] sm:$0xf] %v14747_v6  ;;  %v16672_v5 = vld [vmem:[%s20104_s6 + $0x138] sm:$0xff]   ;;  %v2135_v20 = vld [vmem:[#allocation2 + $0x145] sm:$0xff]  ;;  %v2136_v50 = vld [vmem:[#allocation2 + $0x14d] sm:$0xff]  ;;  %v1512_v12 = vmax.f32 %v1359_v22, 0.0  ;;  %v14904_v29 = vpack.c.bf16 %v3556_v35, %v3556_v35  ;;  %v14905_v43 = vpack.c.bf16 %v3557_v38, %v3557_v38 }
 0x25c   :  { %v16626_v18 = vld [vmem:[#allocation3 + $0x324] ss:$36 sps:$4 sm:$0xff]   ;;  %3950 = vst [vmem:[#allocation3 + $0x4d4] sm:$0xf] %v14902_v57  ;;  %3951 = vst [vmem:[#allocation3 + $0x4f8] sm:$0xf] %v14903_v1  ;;  %9893 = vmatpush1.bf16.msra.mxu0 %v16672_v5  ;;  %v14671_v60 = vpack.c.bf16 %v2135_v20, %v2135_v20 }
 0x25d   :  { %3477 = vst [vmem:[#allocation3 + $0x518] sm:$0xf] %v14902_v57  ;;  %3478 = vst [vmem:[#allocation3 + $0x53c] sm:$0xf] %v14903_v1  ;;  %v2610_v0 = vld [vmem:[#allocation2 + $0x146] sm:$0xff]  ;;  %v2611_v6 = vld [vmem:[#allocation2 + $0x14e] sm:$0xff]  ;;  %v1992_v14 = vmul.f32 %v18652_v32, %v1512_v12  ;;  %v14672_v57 = vpack.c.bf16 %v2136_v50, %v2136_v50  ;;  %9646 = vmatprep.mubr.bf16.mxu0 %v16626_v18  ;;  %9894 = vmatprep.subr.bf16.mxu0 %v20379_v2  ;;  %v18696_v12 = vpop.permute.xlu1 %1859 }
 0x25e   :  { %v1510_v27 = vmax.f32 %v1351_v44, 0.0  ;;  %2529 = vst [vmem:[#allocation3 + $0x558] sm:$0xf] %v14669_v58  ;;  %2530 = vst [vmem:[#allocation3 + $0x57c] sm:$0xf] %v14670_v45  ;;  %v3559_v36 = vld [vmem:[#allocation2 + $0x14f] sm:$0xff]  ;;  %v14750_v38 = vpack.c.bf16 %v2610_v0, %v2610_v0  ;;  %v14751_v44 = vpack.c.bf16 %v2611_v6, %v2611_v6 }
 0x25f   :  { %v2137_v22 = vld [vmem:[#allocation2 + $0x155] sm:$0xff]  ;;  %2070 = vst [vmem:[#allocation2 + $0x1c8] sm:$0xff] %v1991_v42  ;;  %3004 = vst [vmem:[#allocation3 + $0x55c] sm:$0xf] %v14748_v19  ;;  %v2138_v1 = vld [vmem:[#allocation2 + $0x15d] sm:$0xff]  ;;  %v15774_v35 = vpop.f32.mrb[76].mxu1  ;;  %v14906_v42 = vpack.c.bf16 %v3558_v31, %v3558_v31  ;;  %v14907_v17 = vpack.c.bf16 %v3559_v36, %v3559_v36 }
 0x260   :  { %3005 = vst [vmem:[#allocation3 + $0x580] sm:$0xf] %v14749_v59  ;;  %v2612_v53 = vld [vmem:[#allocation2 + $0x156] sm:$0xff]  ;;  %v2613_v61 = vld [vmem:[#allocation2 + $0x15e] sm:$0xff]  ;;  %2068 = vst [vmem:[#allocation2 + $0x1b8] sm:$0xff] %v1989_v63  ;;  %v1990_v45 = vmul.f32 %v18642_v55, %v1510_v27  ;;  %v1372_v20 = vadd.f32 %v18609_v3, %v15774_v35  ;;  %v1363_v50 = vpop.f32.mrb[77].mxu1  ;;  %v14673_v18 = vpack.c.bf16 %v2137_v22, %v2137_v22 }
 0x261   :  { %3952 = vst [vmem:[#allocation3 + $0x51c] sm:$0xf] %v14904_v29  ;;  %3953 = vst [vmem:[#allocation3 + $0x540] sm:$0xf] %v14905_v43  ;;  %v3560_v16 = vld [vmem:[#allocation2 + $0x157] sm:$0xff]  ;;  %v5942_v5 = vld [vmem:[#allocation2 + $0x1a3] sm:$0xff]  ;;  %v1364_v59 = vadd.f32 %v18609_v3, %v1363_v50  ;;  %v14752_v31 = vpack.c.bf16 %v2612_v53, %v2612_v53 }
 0x262   :  { %3479 = vst [vmem:[#allocation3 + $0x560] sm:$0xf] %v14904_v29  ;;  %3480 = vst [vmem:[#allocation3 + $0x584] sm:$0xf] %v14905_v43  ;;  %v5941_v58 = vld [vmem:[#allocation2 + $0x19b] sm:$0xff]  ;;  %v15310_v43 = vpack.c.bf16 %v5942_v5, %v5942_v5  ;;  %v15775_v0 = vpop.f32.mrb[78].mxu1  ;;  %v14753_v29 = vpack.c.bf16 %v2613_v61, %v2613_v61 }
 0x263   :  { %20488 = vst [vmem:[#allocation150_spill] sm:$0xff] %v18692_v49  ;;  %2071 = vst [vmem:[#allocation2 + $0x1d0] sm:$0xff] %v1992_v14  ;;  %v15309_v19 = vpack.c.bf16 %v5941_v58, %v5941_v58  ;;  %v14674_v14 = vpack.c.bf16 %v2138_v1, %v2138_v1  ;;  %v1515_v6 = vmax.f32 %v1372_v20, 0.0  ;;  %v1375_v63 = vadd.f32 %v18609_v3, %v15775_v0  ;;  %v1366_v27 = vpop.f32.mrb[79].mxu1  ;;  %v16629_v35 = vld [vmem:[#allocation3 + $0x320] ss:$36 sps:$4 sm:$0xff]   ;;  %v18703_v20 = vpop.permute.xlu0 %1874 }
 0x264   :  { %2531 = vst [vmem:[#allocation3 + $0x5a0] sm:$0xf] %v14671_v60  ;;  %2532 = vst [vmem:[#allocation3 + $0x5c4] sm:$0xf] %v14672_v57  ;;  %v1513_v36 = vmax.f32 %v1364_v59, 0.0  ;;  %v1367_v22 = vadd.f32 %v18609_v3, %v1366_v27  ;;  %v14908_v57 = vpack.c.bf16 %v3560_v16, %v3560_v16  ;;  %9647 = vmatmul.mubr.bf16.gmra.mrb[104].mxu0 %v16629_v35  ;;  %v18706_v16 = vpop.permute.xlu1 %1869  ;;  %v4036_v34 = vld [vmem:[#allocation2 + $0x160] sm:$0xff] }
 0x265   :  { %20489 = vst [vmem:[#allocation151_spill] sm:$0xff] %v18696_v12  ;;  %2069 = vst [vmem:[#allocation2 + $0x1c0] sm:$0xff] %v1990_v45  ;;  %v16628_v60 = vld [vmem:[#allocation3 + $0x360] ss:$36 sps:$4 sm:$0xff]   ;;  %v1995_v1 = vmul.f32 %v18659_v8, %v1515_v6  ;;  %v1516_v45 = vmax.f32 %v1375_v63, 0.0  ;;  %v4517_v30 = vld [vmem:[#allocation2 + $0x191] sm:$0xff] }
 0x266   :  { %3006 = vst [vmem:[#allocation3 + $0x5a4] sm:$0xf] %v14750_v38  ;;  %3007 = vst [vmem:[#allocation3 + $0x5c8] sm:$0xf] %v14751_v44  ;;  %v16630_v38 = vld [vmem:[#allocation3 + $0x3ac] ss:$36 sps:$4 sm:$0xff]   ;;  %v1993_v53 = vmul.f32 %v18649_v41, %v1513_v36  ;;  %9303 = vmatmul.mubr.bf16.gmra.mrb[148].mxu1 %v16628_v60 }
 0x267   :  { %3954 = vst [vmem:[#allocation3 + $0x564] sm:$0xf] %v14906_v42  ;;  %3955 = vst [vmem:[#allocation3 + $0x588] sm:$0xf] %v14907_v17  ;;  %v3561_v44 = vld [vmem:[#allocation2 + $0x15f] sm:$0xff]  ;;  %v1514_v61 = vmax.f32 %v1367_v22, 0.0  ;;  %v1996_v3 = vmul.f32 %v18672_v39, %v1516_v45  ;;  %9310 = vmatprep.mubr.bf16.mxu1 %v16630_v38  ;;  %v18722_v45 = vpop.permute.xlu0 %1884 }
 0x268   :  { %2533 = vst [vmem:[#allocation3 + $0x5e8] sm:$0xf] %v14673_v18  ;;  %3481 = vst [vmem:[#allocation3 + $0x5a8] sm:$0xf] %v14906_v42  ;;  %v16632_v58 = vld [vmem:[#allocation3 + $0x36c] ss:$36 sps:$4 sm:$0xff]   ;;  %v14909_v5 = vpack.c.bf16 %v3561_v44, %v3561_v44 }
 0x269   :  { %3482 = vst [vmem:[#allocation3 + $0x5cc] sm:$0xf] %v14907_v17  ;;  %6337 = vst [vmem:[#allocation3 + $0x698] sm:$0xf] %v15309_v19  ;;  %v1994_v50 = vmul.f32 %v18662_v51, %v1514_v61  ;;  %v15778_v42 = vpop.f32.mrb[80].mxu1  ;;  %9654 = vmatprep.mubr.bf16.mxu0 %v16632_v58  ;;  %v16687_v17 = vld [vmem:[%s20104_s6 + $0x140] sm:$0xff]  }
 0x26a   :  { %6338 = vst [vmem:[#allocation3 + $0x6bc] sm:$0xf] %v15310_v43  ;;  %2534 = vst [vmem:[#allocation3 + $0x60c] sm:$0xf] %v14674_v14  ;;  %v18715_v43 = vld [vmem:[%s20103_s5] ss:$0 sm:$0xff]  ;;  %9895 = vmatpush1.bf16.msra.mxu0 %v16687_v17 }
 0x26b   :  { %3008 = vst [vmem:[#allocation3 + $0x5ec] sm:$0xf] %v14752_v31  ;;  %3009 = vst [vmem:[#allocation3 + $0x610] sm:$0xf] %v14753_v29  ;;  %v1388_v59 = vadd.f32 %v18715_v43, %v15778_v42  ;;  %v1379_v0 = vpop.f32.mrb[81].mxu1  ;;  %9896 = vmatprep.subr.bf16.mxu0 %v20379_v2  ;;  %v3567_v51 = vld [vmem:[#allocation2 + $0x18f] sm:$0xff] }
 0x26c   :  { %3956 = vst [vmem:[#allocation3 + $0x5ac] sm:$0xf] %v14908_v57  ;;  %3483 = vst [vmem:[#allocation3 + $0x5f0] sm:$0xf] %v14908_v57  ;;  %v5945_v18 = vld [vmem:[#allocation2 + $0x1bb] sm:$0xff]  ;;  %v5946_v19 = vld [vmem:[#allocation2 + $0x1c3] sm:$0xff]  ;;  %v1380_v63 = vadd.f32 %v18715_v43, %v1379_v0 }
 0x26d   :  { %20490 = vst [vmem:[#allocation152_spill] sm:$0xff] %v18703_v20  ;;  %2074 = vst [vmem:[#allocation2 + $0x1e8] sm:$0xff] %v1995_v1  ;;  %v15313_v14 = vpack.c.bf16 %v5945_v18, %v5945_v18  ;;  %v15314_v6 = vpack.c.bf16 %v5946_v19, %v5946_v19  ;;  %v15779_v27 = vpop.f32.mrb[82].mxu1  ;;  %v1519_v31 = vmax.f32 %v1388_v59, 0.0  ;;  %v16634_v57 = vld [vmem:[#allocation3 + $0x3a8] ss:$36 sps:$4 sm:$0xff]  }
 0x26e   :  { %20491 = vst [vmem:[#allocation153_spill] sm:$0xff] %v18706_v16  ;;  %2072 = vst [vmem:[#allocation2 + $0x1d8] sm:$0xff] %v1993_v53  ;;  %v1391_v29 = vadd.f32 %v18715_v43, %v15779_v27  ;;  %v1382_v36 = vpop.f32.mrb[83].mxu1  ;;  %v1517_v22 = vmax.f32 %v1380_v63, 0.0  ;;  %v16635_v1 = vld [vmem:[#allocation3 + $0x368] ss:$36 sps:$4 sm:$0xff]   ;;  %v18725_v53 = vpop.permute.xlu1 %1879  ;;  %9311 = vmatmul.mubr.bf16.gmra.mrb[152].mxu1 %v16634_v57 }
 0x26f   :  { %3957 = vst [vmem:[#allocation3 + $0x5d0] sm:$0xf] %v14909_v5  ;;  %3484 = vst [vmem:[#allocation3 + $0x614] sm:$0xf] %v14909_v5  ;;  %v1383_v60 = vadd.f32 %v18715_v43, %v1382_v36  ;;  %v1999_v35 = vmul.f32 %v18679_v37, %v1519_v31  ;;  %v16636_v44 = vld [vmem:[#allocation3 + $0x3f4] ss:$36 sps:$4 sm:$0xff]   ;;  %9655 = vmatmul.mubr.bf16.gmra.mrb[108].mxu0 %v16635_v1 }
 0x270   :  { %2075 = vst [vmem:[#allocation2 + $0x1f0] sm:$0xff] %v1996_v3  ;;  %2073 = vst [vmem:[#allocation2 + $0x1e0] sm:$0xff] %v1994_v50  ;;  %v1520_v38 = vmax.f32 %v1391_v29, 0.0  ;;  %v1997_v61 = vmul.f32 %v18669_v52, %v1517_v22  ;;  %v16638_v5 = vld [vmem:[#allocation3 + $0x3b4] ss:$36 sps:$4 sm:$0xff]   ;;  %v2139_v3 = vld [vmem:[#allocation2 + $0x165] sm:$0xff]  ;;  %9318 = vmatprep.mubr.bf16.mxu1 %v16636_v44 }
 0x271   :  { %6341 = vst [vmem:[#allocation3 + $0x728] sm:$0xf] %v15313_v14  ;;  %6342 = vst [vmem:[#allocation3 + $0x74c] sm:$0xf] %v15314_v6  ;;  %v1518_v58 = vmax.f32 %v1383_v60, 0.0  ;;  %v2140_v50 = vld [vmem:[#allocation2 + $0x16d] sm:$0xff]  ;;  %v14675_v17 = vpack.c.bf16 %v2139_v3, %v2139_v3  ;;  %9662 = vmatprep.mubr.bf16.mxu0 %v16638_v5 }
 0x272   :  { %20492 = vst [vmem:[#allocation154_spill] sm:$0xff] %v18722_v45  ;;  %20493 = vst [vmem:[#allocation155_spill] sm:$0xff] %v18725_v53  ;;  %v2000_v42 = vmul.f32 %v18696_v12, %v1520_v38  ;;  %v14676_v18 = vpack.c.bf16 %v2140_v50, %v2140_v50  ;;  %v15782_v59 = vpop.f32.mrb[84].mxu1  ;;  %v2614_v0 = vld [vmem:[#allocation2 + $0x166] sm:$0xff]  ;;  %v2615_v14 = vld [vmem:[#allocation2 + $0x16e] sm:$0xff]  ;;  %v18732_v50 = vpop.permute.xlu0 %1894 }
 0x273   :  { %2078 = vst [vmem:[#allocation2 + $0x208] sm:$0xff] %v1999_v35  ;;  %2076 = vst [vmem:[#allocation2 + $0x1f8] sm:$0xff] %v1997_v61  ;;  %v1998_v19 = vmul.f32 %v18682_v15, %v1518_v58  ;;  %v3562_v6 = vld [vmem:[#allocation2 + $0x167] sm:$0xff]  ;;  %v1404_v31 = vadd.f32 %v18715_v43, %v15782_v59  ;;  %v1395_v29 = vpop.f32.mrb[85].mxu1  ;;  %v14754_v36 = vpack.c.bf16 %v2614_v0, %v2614_v0  ;;  %v3563_v60 = vld [vmem:[#allocation2 + $0x16f] sm:$0xff] }
 0x274   :  { %2079 = vst [vmem:[#allocation2 + $0x210] sm:$0xff] %v2000_v42  ;;  %2535 = vst [vmem:[#allocation3 + $0x630] sm:$0xf] %v14675_v17  ;;  %v14755_v22 = vpack.c.bf16 %v2615_v14, %v2615_v14  ;;  %v14910_v57 = vpack.c.bf16 %v3562_v6, %v3562_v6  ;;  %v1396_v38 = vadd.f32 %v18715_v43, %v1395_v29  ;;  %v15783_v44 = vpop.f32.mrb[86].mxu1  ;;  %v2141_v58 = vld [vmem:[#allocation2 + $0x175] sm:$0xff]  ;;  %v2142_v5 = vld [vmem:[#allocation2 + $0x17d] sm:$0xff]  ;;  %v18735_v29 = vpop.permute.xlu1 %1889 }
 0x275   :  { %2536 = vst [vmem:[#allocation3 + $0x654] sm:$0xf] %v14676_v18  ;;  %2077 = vst [vmem:[#allocation2 + $0x200] sm:$0xff] %v1998_v19  ;;  %v14911_v61 = vpack.c.bf16 %v3563_v60, %v3563_v60  ;;  %v2616_v3 = vld [vmem:[#allocation2 + $0x176] sm:$0xff]  ;;  %v1523_v42 = vmax.f32 %v1404_v31, 0.0  ;;  %v1407_v17 = vadd.f32 %v18715_v43, %v15783_v44  ;;  %v1398_v18 = vpop.f32.mrb[87].mxu1  ;;  %v14677_v14 = vpack.c.bf16 %v2141_v58, %v2141_v58 }
 0x276   :  { %20494 = vst [vmem:[#allocation156_spill] sm:$0xff] %v18732_v50  ;;  %v16641_v59 = vld [vmem:[#allocation3 + $0x3f0] ss:$36 sps:$4 sm:$0xff]   ;;  %3010 = vst [vmem:[#allocation3 + $0x634] sm:$0xf] %v14754_v36  ;;  %v14678_v19 = vpack.c.bf16 %v2142_v5, %v2142_v5  ;;  %v1521_v60 = vmax.f32 %v1396_v38, 0.0  ;;  %v1399_v31 = vadd.f32 %v18715_v43, %v1398_v18  ;;  %v14756_v12 = vpack.c.bf16 %v2616_v3, %v2616_v3 }
 0x277   :  { %v5949_v63 = vld [vmem:[#allocation2 + $0x1db] sm:$0xff]  ;;  %v5950_v27 = vld [vmem:[#allocation2 + $0x1e3] sm:$0xff]  ;;  %3011 = vst [vmem:[#allocation3 + $0x658] sm:$0xf] %v14755_v22  ;;  %3958 = vst [vmem:[#allocation3 + $0x5f4] sm:$0xf] %v14910_v57  ;;  %9319 = vmatmul.mubr.bf16.gmra.mrb[156].mxu1 %v16641_v59 }
 0x278   :  { %v15317_v1 = vpack.c.bf16 %v5949_v63, %v5949_v63  ;;  %v15318_v35 = vpack.c.bf16 %v5950_v27, %v5950_v27  ;;  %v16642_v0 = vld [vmem:[#allocation3 + $0x3b0] ss:$36 sps:$4 sm:$0xff]   ;;  %3485 = vst [vmem:[#allocation3 + $0x638] sm:$0xf] %v14910_v57  ;;  %20495 = vst [vmem:[#allocation157_spill] sm:$0xff] %v18735_v29  ;;  %v2143_v22 = vld [vmem:[#allocation2 + $0x185] sm:$0xff]  ;;  %v2003_v57 = vmul.f32 %v18703_v20, %v1523_v42 }
 0x279   :  { %v2617_v6 = vld [vmem:[#allocation2 + $0x17e] sm:$0xff]  ;;  %3959 = vst [vmem:[#allocation3 + $0x618] sm:$0xf] %v14911_v61  ;;  %3486 = vst [vmem:[#allocation3 + $0x65c] sm:$0xf] %v14911_v61  ;;  %v2144_v58 = vld [vmem:[#allocation2 + $0x18d] sm:$0xff]  ;;  %v2001_v18 = vmul.f32 %v18692_v49, %v1521_v60  ;;  %v14679_v3 = vpack.c.bf16 %v2143_v22, %v2143_v22  ;;  %9663 = vmatmul.mubr.bf16.gmra.mrb[112].mxu0 %v16642_v0 }
 0x27a   :  { %v3564_v63 = vld [vmem:[#allocation2 + $0x177] sm:$0xff]  ;;  %v3565_v27 = vld [vmem:[#allocation2 + $0x17f] sm:$0xff]  ;;  %6345 = vst [vmem:[#allocation3 + $0x7b8] sm:$0xf] %v15317_v1  ;;  %6346 = vst [vmem:[#allocation3 + $0x7dc] sm:$0xf] %v15318_v35  ;;  %v14757_v36 = vpack.c.bf16 %v2617_v6, %v2617_v6  ;;  %v14680_v61 = vpack.c.bf16 %v2144_v58, %v2144_v58  ;;  %v18745_v58 = vpop.permute.xlu0 %1904 }
 0x27b   :  { %v16643_v44 = vld [vmem:[#allocation3 + $0x43c] ss:$36 sps:$4 sm:$0xff]   ;;  %v1524_v52 = vmax.f32 %v1407_v17, 0.0  ;;  %2537 = vst [vmem:[#allocation3 + $0x678] sm:$0xf] %v14677_v14  ;;  %v14912_v37 = vpack.c.bf16 %v3564_v63, %v3564_v63  ;;  %v14913_v1 = vpack.c.bf16 %v3565_v27, %v3565_v27  ;;  %v2619_v35 = vld [vmem:[#allocation2 + $0x18e] sm:$0xff] }
 0x27c   :  { %v16645_v15 = vld [vmem:[#allocation3 + $0x3fc] ss:$36 sps:$4 sm:$0xff]   ;;  %2538 = vst [vmem:[#allocation3 + $0x69c] sm:$0xf] %v14678_v19  ;;  %v1522_v39 = vmax.f32 %v1399_v31, 0.0  ;;  %v2145_v42 = vld [vmem:[#allocation2 + $0x195] sm:$0xff]  ;;  %v14759_v63 = vpack.c.bf16 %v2619_v35, %v2619_v35  ;;  %9326 = vmatprep.mubr.bf16.mxu1 %v16643_v44 }
 0x27d   :  { %v2618_v5 = vld [vmem:[#allocation2 + $0x186] sm:$0xff]  ;;  %3012 = vst [vmem:[#allocation3 + $0x67c] sm:$0xf] %v14756_v12  ;;  %3013 = vst [vmem:[#allocation3 + $0x6a0] sm:$0xf] %v14757_v36  ;;  %v2146_v17 = vld [vmem:[#allocation2 + $0x19d] sm:$0xff]  ;;  %v2004_v14 = vmul.f32 %v18725_v53, %v1524_v52  ;;  %9670 = vmatprep.mubr.bf16.mxu0 %v16645_v15  ;;  %v14915_v52 = vpack.c.bf16 %v3567_v51, %v3567_v51 }
 0x27e   :  { %v3566_v38 = vld [vmem:[#allocation2 + $0x187] sm:$0xff]  ;;  %2082 = vst [vmem:[#allocation2 + $0x228] sm:$0xff] %v2003_v57  ;;  %3960 = vst [vmem:[#allocation3 + $0x63c] sm:$0xf] %v14912_v37  ;;  %v14758_v19 = vpack.c.bf16 %v2618_v5, %v2618_v5  ;;  %v2620_v12 = vld [vmem:[#allocation2 + $0x196] sm:$0xff]  ;;  %v2002_v60 = vmul.f32 %v18706_v16, %v1522_v39  ;;  %v15786_v31 = vpop.f32.mrb[88].mxu1  ;;  %v14681_v39 = vpack.c.bf16 %v2145_v42, %v2145_v42 }
 0x27f   :  { %v16704_v6 = vld [vmem:[%s20104_s6 + $0x148] sm:$0xff]   ;;  %3961 = vst [vmem:[#allocation3 + $0x660] sm:$0xf] %v14913_v1  ;;  %3487 = vst [vmem:[#allocation3 + $0x680] sm:$0xf] %v14912_v37  ;;  %v2621_v27 = vld [vmem:[#allocation2 + $0x19e] sm:$0xff]  ;;  %v14914_v36 = vpack.c.bf16 %v3566_v38, %v3566_v38  ;;  %v1420_v57 = vadd.f32 %v18715_v43, %v15786_v31  ;;  %v14682_v15 = vpack.c.bf16 %v2146_v17, %v2146_v17  ;;  %v18748_v38 = vpop.permute.xlu1 %1899 }
 0x280   :  { %3488 = vst [vmem:[#allocation3 + $0x6a4] sm:$0xf] %v14913_v1  ;;  %2080 = vst [vmem:[#allocation2 + $0x218] sm:$0xff] %v2001_v18  ;;  %v3568_v59 = vld [vmem:[#allocation2 + $0x197] sm:$0xff]  ;;  %v3569_v0 = vld [vmem:[#allocation2 + $0x19f] sm:$0xff]  ;;  %v1411_v1 = vpop.f32.mrb[89].mxu1  ;;  %9897 = vmatpush1.bf16.msra.mxu0 %v16704_v6  ;;  %v14760_v44 = vpack.c.bf16 %v2620_v12, %v2620_v12 }
 0x281   :  { %2539 = vst [vmem:[#allocation3 + $0x6c0] sm:$0xf] %v14679_v3  ;;  %2540 = vst [vmem:[#allocation3 + $0x6e4] sm:$0xf] %v14680_v61  ;;  %v2147_v22 = vld [vmem:[#allocation2 + $0x1a5] sm:$0xff]  ;;  %v5953_v5 = vld [vmem:[#allocation2 + $0x1fb] sm:$0xff]  ;;  %v1412_v3 = vadd.f32 %v18715_v43, %v1411_v1  ;;  %9898 = vmatprep.subr.bf16.mxu0 %v20379_v2  ;;  %v14917_v12 = vpack.c.bf16 %v3569_v0, %v3569_v0 }
 0x282   :  { %20496 = vst [vmem:[#allocation158_spill] sm:$0xff] %v18745_v58  ;;  %v5954_v37 = vld [vmem:[#allocation2 + $0x203] sm:$0xff]  ;;  %2083 = vst [vmem:[#allocation2 + $0x230] sm:$0xff] %v2004_v14  ;;  %v2148_v35 = vld [vmem:[#allocation2 + $0x1ad] sm:$0xff]  ;;  %v15321_v51 = vpack.c.bf16 %v5953_v5, %v5953_v5  ;;  %v15787_v61 = vpop.f32.mrb[90].mxu1  ;;  %v14761_v14 = vpack.c.bf16 %v2621_v27, %v2621_v27  ;;  %v1527_v6 = vmax.f32 %v1420_v57, 0.0 }
 0x283   :  { %3014 = vst [vmem:[#allocation3 + $0x6c4] sm:$0xf] %v14758_v19  ;;  %3015 = vst [vmem:[#allocation3 + $0x6e8] sm:$0xf] %v14759_v63  ;;  %v15322_v18 = vpack.c.bf16 %v5954_v37, %v5954_v37  ;;  %v2622_v19 = vld [vmem:[#allocation2 + $0x1a6] sm:$0xff]  ;;  %v1423_v42 = vadd.f32 %v18715_v43, %v15787_v61  ;;  %v1414_v17 = vpop.f32.mrb[91].mxu1  ;;  %v14916_v63 = vpack.c.bf16 %v3568_v59, %v3568_v59 }
 0x284   :  { %20497 = vst [vmem:[#allocation159_spill] sm:$0xff] %v18748_v38  ;;  %2081 = vst [vmem:[#allocation2 + $0x220] sm:$0xff] %v2002_v60  ;;  %v1525_v60 = vmax.f32 %v1412_v3, 0.0  ;;  %v1415_v31 = vadd.f32 %v18715_v43, %v1414_v17  ;;  %v16647_v27 = vld [vmem:[#allocation3 + $0x438] ss:$36 sps:$4 sm:$0xff]   ;;  %v14684_v5 = vpack.c.bf16 %v2148_v35, %v2148_v35  ;;  %v2623_v37 = vld [vmem:[#allocation2 + $0x1ae] sm:$0xff]  ;;  %v2007_v57 = vmul.f32 %v18732_v50, %v1527_v6 }
 0x285   :  { %3962 = vst [vmem:[#allocation3 + $0x684] sm:$0xf] %v14914_v36  ;;  %3963 = vst [vmem:[#allocation3 + $0x6a8] sm:$0xf] %v14915_v52  ;;  %v1528_v1 = vmax.f32 %v1423_v42, 0.0  ;;  %v14763_v59 = vpack.c.bf16 %v2623_v37, %v2623_v37  ;;  %9327 = vmatmul.mubr.bf16.gmra.mrb[160].mxu1 %v16647_v27  ;;  %v3570_v35 = vld [vmem:[#allocation2 + $0x1a7] sm:$0xff] }
 0x286   :  { %3489 = vst [vmem:[#allocation3 + $0x6c8] sm:$0xf] %v14914_v36  ;;  %3490 = vst [vmem:[#allocation3 + $0x6ec] sm:$0xf] %v14915_v52  ;;  %v16648_v36 = vld [vmem:[#allocation3 + $0x3f8] ss:$36 sps:$4 sm:$0xff]   ;;  %v14683_v52 = vpack.c.bf16 %v2147_v22, %v2147_v22  ;;  %v2005_v0 = vmul.f32 %v18722_v45, %v1525_v60 }
 0x287   :  { %2541 = vst [vmem:[#allocation3 + $0x708] sm:$0xf] %v14681_v39  ;;  %2542 = vst [vmem:[#allocation3 + $0x72c] sm:$0xf] %v14682_v15  ;;  %v16649_v61 = vld [vmem:[#allocation3 + $0x484] ss:$36 sps:$4 sm:$0xff]   ;;  %v14762_v39 = vpack.c.bf16 %v2622_v19, %v2622_v19  ;;  %v2008_v22 = vmul.f32 %v18748_v38, %v1528_v1  ;;  %9671 = vmatmul.mubr.bf16.gmra.mrb[116].mxu0 %v16648_v36  ;;  %v14918_v19 = vpack.c.bf16 %v3570_v35, %v3570_v35 }
 0x288   :  { %3016 = vst [vmem:[#allocation3 + $0x70c] sm:$0xf] %v14760_v44  ;;  %6349 = vst [vmem:[#allocation3 + $0x848] sm:$0xf] %v15321_v51  ;;  %v1526_v15 = vmax.f32 %v1415_v31, 0.0  ;;  %v18756_v51 = vpop.permute.xlu0 %1914  ;;  %9334 = vmatprep.mubr.bf16.mxu1 %v16649_v61  ;;  %v5944_v38 = vld [vmem:[#allocation2 + $0x1b3] sm:$0xff] }
 0x289   :  { %6350 = vst [vmem:[#allocation3 + $0x86c] sm:$0xf] %v15322_v18  ;;  %3017 = vst [vmem:[#allocation3 + $0x730] sm:$0xf] %v14761_v14  ;;  %v16651_v44 = vld [vmem:[#allocation3 + $0x444] ss:$36 sps:$4 sm:$0xff]   ;;  %v18759_v18 = vpop.permute.xlu1 %1909 }
 0x28a   :  { %3964 = vst [vmem:[#allocation3 + $0x6cc] sm:$0xf] %v14916_v63  ;;  %3965 = vst [vmem:[#allocation3 + $0x6f0] sm:$0xf] %v14917_v12  ;;  %v2006_v3 = vmul.f32 %v18735_v29, %v1526_v15  ;;  %v15790_v14 = vpop.f32.mrb[92].mxu1  ;;  %9678 = vmatprep.mubr.bf16.mxu0 %v16651_v44  ;;  %v3571_v15 = vld [vmem:[#allocation2 + $0x1af] sm:$0xff] }
 0x28b   :  { %3491 = vst [vmem:[#allocation3 + $0x710] sm:$0xf] %v14916_v63  ;;  %3492 = vst [vmem:[#allocation3 + $0x734] sm:$0xf] %v14917_v12  ;;  %v5957_v6 = vld [vmem:[#allocation2 + $0x21b] sm:$0xff]  ;;  %v5958_v42 = vld [vmem:[#allocation2 + $0x223] sm:$0xff]  ;;  %v1436_v17 = vadd.f32 %v18715_v43, %v15790_v14 }
 0x28c   :  { %2543 = vst [vmem:[#allocation3 + $0x750] sm:$0xf] %v14683_v52  ;;  %2544 = vst [vmem:[#allocation3 + $0x774] sm:$0xf] %v14684_v5  ;;  %v1427_v63 = vpop.f32.mrb[93].mxu1  ;;  %v15325_v12 = vpack.c.bf16 %v5957_v6, %v5957_v6  ;;  %v15326_v60 = vpack.c.bf16 %v5958_v42, %v5958_v42  ;;  %v18767_v44 = vpop.permute.xlu0 %1924  ;;  %v16719_v42 = vld [vmem:[%s20104_s6 + $0x150] sm:$0xff]  }
 0x28d   :  { %20498 = vst [vmem:[#allocation160_spill] sm:$0xff] %v18756_v51  ;;  %2086 = vst [vmem:[#allocation2 + $0x248] sm:$0xff] %v2007_v57  ;;  %v1428_v31 = vadd.f32 %v18715_v43, %v1427_v63  ;;  %v15791_v27 = vpop.f32.mrb[94].mxu1  ;;  %v1531_v36 = vmax.f32 %v1436_v17, 0.0  ;;  %v16653_v1 = vld [vmem:[#allocation3 + $0x480] ss:$36 sps:$4 sm:$0xff]   ;;  %9899 = vmatpush1.bf16.msra.mxu0 %v16719_v42 }
 0x28e   :  { %3018 = vst [vmem:[#allocation3 + $0x754] sm:$0xf] %v14762_v39  ;;  %3019 = vst [vmem:[#allocation3 + $0x778] sm:$0xf] %v14763_v59  ;;  %v1439_v52 = vadd.f32 %v18715_v43, %v15791_v27  ;;  %v1430_v5 = vpop.f32.mrb[95].mxu1  ;;  %9335 = vmatmul.mubr.bf16.gmra.mrb[164].mxu1 %v16653_v1  ;;  %9900 = vmatprep.subr.bf16.mxu0 %v20379_v2  ;;  %v2629_v29 = vld [vmem:[#allocation2 + $0x1de] sm:$0xff] }
 0x28f   :  { %20499 = vst [vmem:[#allocation161_spill] sm:$0xff] %v18759_v18  ;;  %2084 = vst [vmem:[#allocation2 + $0x238] sm:$0xff] %v2005_v0  ;;  %v1529_v37 = vmax.f32 %v1428_v31, 0.0  ;;  %v1431_v57 = vadd.f32 %v18715_v43, %v1430_v5  ;;  %v2011_v61 = vmul.f32 %v18756_v51, %v1531_v36  ;;  %v16654_v59 = vld [vmem:[#allocation3 + $0x440] ss:$36 sps:$4 sm:$0xff]   ;;  %v15794_v63 = vpop.f32.mrb[96].mxu1 }
 0x290   :  { %2087 = vst [vmem:[#allocation2 + $0x250] sm:$0xff] %v2008_v22  ;;  %2085 = vst [vmem:[#allocation2 + $0x240] sm:$0xff] %v2006_v3  ;;  %v1532_v39 = vmax.f32 %v1439_v52, 0.0  ;;  %v16656_v0 = vld [vmem:[#allocation3 + $0x4cc] ss:$36 sps:$4 sm:$0xff]   ;;  %v18769_v22 = vpop.permute.xlu1 %1919  ;;  %9679 = vmatmul.mubr.bf16.gmra.mrb[120].mxu0 %v16654_v59  ;;  %v1452_v52 = vadd.f32 %v18715_v43, %v15794_v63  ;;  %v1443_v5 = vpop.f32.mrb[97].mxu1 }
 0x291   :  { %3966 = vst [vmem:[#allocation3 + $0x714] sm:$0xf] %v14918_v19  ;;  %3493 = vst [vmem:[#allocation3 + $0x758] sm:$0xf] %v14918_v19  ;;  %v2009_v35 = vmul.f32 %v18745_v58, %v1529_v37  ;;  %v1530_v3 = vmax.f32 %v1431_v57, 0.0  ;;  %v14919_v19 = vpack.c.bf16 %v3571_v15, %v3571_v15  ;;  %9342 = vmatprep.mubr.bf16.mxu1 %v16656_v0  ;;  %v2624_v31 = vld [vmem:[#allocation2 + $0x1b6] sm:$0xff] }
 0x292   :  { %6353 = vst [vmem:[#allocation3 + $0x8d8] sm:$0xf] %v15325_v12  ;;  %6354 = vst [vmem:[#allocation3 + $0x8fc] sm:$0xf] %v15326_v60  ;;  %v16658_v14 = vld [vmem:[#allocation3 + $0x48c] ss:$36 sps:$4 sm:$0xff]   ;;  %v2012_v6 = vmul.f32 %v18769_v22, %v1532_v39  ;;  %v14764_v1 = vpack.c.bf16 %v2624_v31, %v2624_v31  ;;  %v1444_v59 = vadd.f32 %v18715_v43, %v1443_v5 }
 0x293   :  { %20500 = vst [vmem:[#allocation162_spill] sm:$0xff] %v18767_v44  ;;  %20501 = vst [vmem:[#allocation163_spill] sm:$0xff] %v18769_v22  ;;  %v2010_v17 = vmul.f32 %v18759_v18, %v1530_v3  ;;  %9686 = vmatprep.mubr.bf16.mxu0 %v16658_v14  ;;  %v2149_v12 = vld [vmem:[#allocation2 + $0x1b5] sm:$0xff]  ;;  %v2150_v60 = vld [vmem:[#allocation2 + $0x1bd] sm:$0xff]  ;;  %v15795_v0 = vpop.f32.mrb[98].mxu1  ;;  %v1535_v14 = vmax.f32 %v1452_v52, 0.0 }
 0x294   :  { %2090 = vst [vmem:[#allocation2 + $0x268] sm:$0xff] %v2011_v61  ;;  %2088 = vst [vmem:[#allocation2 + $0x258] sm:$0xff] %v2009_v35  ;;  %v14685_v37 = vpack.c.bf16 %v2149_v12, %v2149_v12  ;;  %v14686_v57 = vpack.c.bf16 %v2150_v60, %v2150_v60  ;;  %v2625_v15 = vld [vmem:[#allocation2 + $0x1be] sm:$0xff]  ;;  %v16661_v63 = vld [vmem:[#allocation3 + $0x488] ss:$36 sps:$4 sm:$0xff]   ;;  %v1533_v5 = vmax.f32 %v1444_v59, 0.0 }
 0x295   :  { %3967 = vst [vmem:[#allocation3 + $0x738] sm:$0xf] %v14919_v19  ;;  %3494 = vst [vmem:[#allocation3 + $0x77c] sm:$0xf] %v14919_v19  ;;  %v3572_v35 = vld [vmem:[#allocation2 + $0x1b7] sm:$0xff]  ;;  %v3573_v3 = vld [vmem:[#allocation2 + $0x1bf] sm:$0xff]  ;;  %v14765_v42 = vpack.c.bf16 %v2625_v15, %v2625_v15 }
 0x296   :  { %2091 = vst [vmem:[#allocation2 + $0x270] sm:$0xff] %v2012_v6  ;;  %2089 = vst [vmem:[#allocation2 + $0x260] sm:$0xff] %v2010_v17  ;;  %v1446_v19 = vpop.f32.mrb[99].mxu1  ;;  %v16660_v6 = vld [vmem:[#allocation3 + $0x4c8] ss:$36 sps:$4 sm:$0xff]   ;;  %v14920_v12 = vpack.c.bf16 %v3572_v35, %v3572_v35  ;;  %v14921_v60 = vpack.c.bf16 %v3573_v3, %v3573_v3  ;;  %v2151_v31 = vld [vmem:[#allocation2 + $0x1c5] sm:$0xff] }
 0x297   :  { %v5961_v27 = vld [vmem:[#allocation2 + $0x23b] sm:$0xff]  ;;  %v5962_v36 = vld [vmem:[#allocation2 + $0x243] sm:$0xff]  ;;  %2545 = vst [vmem:[#allocation3 + $0x798] sm:$0xf] %v14685_v37  ;;  %2546 = vst [vmem:[#allocation3 + $0x7bc] sm:$0xf] %v14686_v57  ;;  %v1447_v0 = vadd.f32 %v18715_v43, %v1446_v19  ;;  %v14687_v22 = vpack.c.bf16 %v2151_v31, %v2151_v31  ;;  %v2013_v43 = vmul.f32 %v18767_v44, %v1533_v5  ;;  %9343 = vmatmul.mubr.bf16.gmra.mrb[168].mxu1 %v16660_v6 }
 0x298   :  { %v15329_v61 = vpack.c.bf16 %v5961_v27, %v5961_v27  ;;  %v15330_v39 = vpack.c.bf16 %v5962_v36, %v5962_v36  ;;  %3020 = vst [vmem:[#allocation3 + $0x79c] sm:$0xf] %v14764_v1  ;;  %v2152_v17 = vld [vmem:[#allocation2 + $0x1cd] sm:$0xff]  ;;  %v1935_v36 = vpop.permute.xlu0 %1934  ;;  %v16662_v18 = vld [vmem:[#allocation3 + $0x514] ss:$36 sps:$4 sm:$0xff]   ;;  %9687 = vmatmul.mubr.bf16.gmra.mrb[124].mxu0 %v16661_v63  ;;  %v2155_v63 = vld [vmem:[#allocation2 + $0x1e5] sm:$0xff] }
 0x299   :  { %v2626_v27 = vld [vmem:[#allocation2 + $0x1c6] sm:$0xff]  ;;  %v16664_v52 = vld [vmem:[#allocation3 + $0x4d4] ss:$36 sps:$4 sm:$0xff]   ;;  %v14688_v58 = vpack.c.bf16 %v2152_v17, %v2152_v17  ;;  %v2627_v51 = vld [vmem:[#allocation2 + $0x1ce] sm:$0xff]  ;;  %v2015_v15 = vmul.f32 %v1935_v36, %v1535_v14  ;;  %3021 = vst [vmem:[#allocation3 + $0x7c0] sm:$0xf] %v14765_v42  ;;  %v1930_v36 = vpop.permute.xlu1 %1929  ;;  %9350 = vmatprep.mubr.bf16.mxu1 %v16662_v18  ;;  %v14691_v18 = vpack.c.bf16 %v2155_v63, %v2155_v63 }
 0x29a   :  { %6357 = vst [vmem:[#allocation3 + $0x968] sm:$0xf] %v15329_v61  ;;  %6358 = vst [vmem:[#allocation3 + $0x98c] sm:$0xf] %v15330_v39  ;;  %v3574_v37 = vld [vmem:[#allocation2 + $0x1c7] sm:$0xff]  ;;  %v3575_v57 = vld [vmem:[#allocation2 + $0x1cf] sm:$0xff]  ;;  %v14766_v1 = vpack.c.bf16 %v2626_v27, %v2626_v27  ;;  %v14767_v35 = vpack.c.bf16 %v2627_v51, %v2627_v51  ;;  %9694 = vmatprep.mubr.bf16.mxu0 %v16664_v52 }
 0x29b   :  { %3968 = vst [vmem:[#allocation3 + $0x75c] sm:$0xf] %v14920_v12  ;;  %3969 = vst [vmem:[#allocation3 + $0x780] sm:$0xf] %v14921_v60  ;;  %v14922_v61 = vpack.c.bf16 %v3574_v37, %v3574_v37  ;;  %v2153_v39 = vld [vmem:[#allocation2 + $0x1d5] sm:$0xff]  ;;  %v2154_v59 = vld [vmem:[#allocation2 + $0x1dd] sm:$0xff]  ;;  %v14923_v31 = vpack.c.bf16 %v3575_v57, %v3575_v57 }
 0x29c   :  { %3495 = vst [vmem:[#allocation3 + $0x7a0] sm:$0xf] %v14920_v12  ;;  %3496 = vst [vmem:[#allocation3 + $0x7c4] sm:$0xf] %v14921_v60  ;;  %v2628_v3 = vld [vmem:[#allocation2 + $0x1d6] sm:$0xff]  ;;  %v1534_v19 = vmax.f32 %v1447_v0, 0.0  ;;  %v14689_v17 = vpack.c.bf16 %v2153_v39, %v2153_v39  ;;  %v14690_v51 = vpack.c.bf16 %v2154_v59, %v2154_v59  ;;  %v14769_v60 = vpack.c.bf16 %v2629_v29, %v2629_v29 }
 0x29d   :  { %2547 = vst [vmem:[#allocation3 + $0x7e0] sm:$0xf] %v14687_v22  ;;  %2548 = vst [vmem:[#allocation3 + $0x804] sm:$0xf] %v14688_v58  ;;  %v3576_v14 = vld [vmem:[#allocation2 + $0x1d7] sm:$0xff]  ;;  %v3577_v42 = vld [vmem:[#allocation2 + $0x1df] sm:$0xff]  ;;  %v14768_v12 = vpack.c.bf16 %v2628_v3, %v2628_v3 }
 0x29e   :  { %2094 = vst [vmem:[#allocation2 + $0x288] sm:$0xff] %v2015_v15  ;;  %3022 = vst [vmem:[#allocation3 + $0x7e4] sm:$0xf] %v14766_v1  ;;  %v2014_v27 = vmul.f32 %v1930_v36, %v1534_v19  ;;  %v18782_v58 = vpop.f32.mrb[100].mxu1  ;;  %v14924_v22 = vpack.c.bf16 %v3576_v14, %v3576_v14  ;;  %v14925_v5 = vpack.c.bf16 %v3577_v42, %v3577_v42  ;;  %v16736_v6 = vld [vmem:[%s20104_s6 + $0x158] sm:$0xff]   ;;  %v2156_v0 = vld [vmem:[#allocation2 + $0x1ed] sm:$0xff] }
 0x29f   :  { %3023 = vst [vmem:[#allocation3 + $0x808] sm:$0xf] %v14767_v35  ;;  %3970 = vst [vmem:[#allocation3 + $0x7a4] sm:$0xf] %v14922_v61  ;;  %v5965_v37 = vld [vmem:[#allocation2 + $0x25b] sm:$0xff]  ;;  %v5966_v29 = vld [vmem:[#allocation2 + $0x263] sm:$0xff]  ;;  %v14692_v52 = vpack.c.bf16 %v2156_v0, %v2156_v0  ;;  %9901 = vmatpush1.bf16.msra.mxu0 %v16736_v6 }
 0x2a0   :  { %3497 = vst [vmem:[#allocation3 + $0x7e8] sm:$0xf] %v14922_v61  ;;  %2092 = vst [vmem:[#allocation2 + $0x278] sm:$0xff] %v2013_v43  ;;  %v9210_v57 = vpop.f32.mrb[101].mxu1  ;;  %v2630_v15 = vld [vmem:[#allocation2 + $0x1e6] sm:$0xff]  ;;  %v15333_v1 = vpack.c.bf16 %v5965_v37, %v5965_v37  ;;  %v15334_v35 = vpack.c.bf16 %v5966_v29, %v5966_v29  ;;  %v2631_v39 = vld [vmem:[#allocation2 + $0x1ee] sm:$0xff]  ;;  %9902 = vmatprep.subr.bf16.mxu0 %v20379_v2 }
 0x2a1   :  { %3971 = vst [vmem:[#allocation3 + $0x7c8] sm:$0xf] %v14923_v31  ;;  %2549 = vst [vmem:[#allocation3 + $0x828] sm:$0xf] %v14689_v17  ;;  %v18787_v61 = vpop.f32.mrb[102].mxu1  ;;  %v14770_v59 = vpack.c.bf16 %v2630_v15, %v2630_v15  ;;  %v3578_v3 = vld [vmem:[#allocation2 + $0x1e7] sm:$0xff]  ;;  %v14771_v19 = vpack.c.bf16 %v2631_v39, %v2631_v39 }
 0x2a2   :  { %3498 = vst [vmem:[#allocation3 + $0x80c] sm:$0xf] %v14923_v31  ;;  %2550 = vst [vmem:[#allocation3 + $0x84c] sm:$0xf] %v14690_v51  ;;  %v9213_v43 = vpop.f32.mrb[103].mxu1  ;;  %v3579_v31 = vld [vmem:[#allocation2 + $0x1ef] sm:$0xff]  ;;  %v14926_v17 = vpack.c.bf16 %v3578_v3, %v3578_v3 }
 0x2a3   :  { %3024 = vst [vmem:[#allocation3 + $0x82c] sm:$0xf] %v14768_v12  ;;  %3025 = vst [vmem:[#allocation3 + $0x850] sm:$0xf] %v14769_v60  ;;  %v2157_v14 = vld [vmem:[#allocation2 + $0x1f5] sm:$0xff]  ;;  %v2158_v42 = vld [vmem:[#allocation2 + $0x1fd] sm:$0xff]  ;;  %v14927_v51 = vpack.c.bf16 %v3579_v31, %v3579_v31 }
 0x2a4   :  { %2093 = vst [vmem:[#allocation2 + $0x280] sm:$0xff] %v2014_v27  ;;  %3972 = vst [vmem:[#allocation3 + $0x7ec] sm:$0xf] %v14924_v22  ;;  %v16666_v36 = vld [vmem:[#allocation3 + $0x510] ss:$36 sps:$4 sm:$0xff]   ;;  %v14693_v12 = vpack.c.bf16 %v2157_v14, %v2157_v14  ;;  %v14694_v60 = vpack.c.bf16 %v2158_v42, %v2158_v42  ;;  %v2159_v31 = vld [vmem:[#allocation2 + $0x205] sm:$0xff] }
 0x2a5   :  { %3973 = vst [vmem:[#allocation3 + $0x810] sm:$0xf] %v14925_v5  ;;  %3499 = vst [vmem:[#allocation3 + $0x830] sm:$0xf] %v14924_v22  ;;  %v16667_v27 = vld [vmem:[#allocation3 + $0x4d0] ss:$36 sps:$4 sm:$0xff]   ;;  %9351 = vmatmul.mubr.bf16.gmra.mrb[172].mxu1 %v16666_v36  ;;  %v14695_v42 = vpack.c.bf16 %v2159_v31, %v2159_v31 }
 0x2a6   :  { %3500 = vst [vmem:[#allocation3 + $0x854] sm:$0xf] %v14925_v5  ;;  %2551 = vst [vmem:[#allocation3 + $0x870] sm:$0xf] %v14691_v18  ;;  %v16668_v22 = vld [vmem:[#allocation3 + $0x55c] ss:$36 sps:$4 sm:$0xff]   ;;  %9695 = vmatmul.mubr.bf16.gmra.mrb[128].mxu0 %v16667_v27 }
 0x2a7   :  { %2552 = vst [vmem:[#allocation3 + $0x894] sm:$0xf] %v14692_v52  ;;  %6361 = vst [vmem:[#allocation3 + $0x9f8] sm:$0xf] %v15333_v1  ;;  %v16670_v5 = vld [vmem:[#allocation3 + $0x51c] ss:$36 sps:$4 sm:$0xff]   ;;  %9358 = vmatprep.mubr.bf16.mxu1 %v16668_v22 }
 0x2a8   :  { %6362 = vst [vmem:[#allocation3 + $0xa1c] sm:$0xf] %v15334_v35  ;;  %3026 = vst [vmem:[#allocation3 + $0x874] sm:$0xf] %v14770_v59  ;;  %9702 = vmatprep.mubr.bf16.mxu0 %v16670_v5  ;;  %v16673_v29 = vld [vmem:[#allocation3 + $0x558] ss:$36 sps:$4 sm:$0xff]  }
 0x2a9   :  { %3027 = vst [vmem:[#allocation3 + $0x898] sm:$0xf] %v14771_v19  ;;  %3974 = vst [vmem:[#allocation3 + $0x834] sm:$0xf] %v14926_v17  ;;  %v16674_v57 = vld [vmem:[#allocation3 + $0x518] ss:$36 sps:$4 sm:$0xff]  }
 0x2aa   :  { %3501 = vst [vmem:[#allocation3 + $0x878] sm:$0xf] %v14926_v17  ;;  %3975 = vst [vmem:[#allocation3 + $0x858] sm:$0xf] %v14927_v51  ;;  %v16675_v18 = vld [vmem:[#allocation3 + $0x5a4] ss:$36 sps:$4 sm:$0xff]  }
 0x2ab   :  { %2553 = vst [vmem:[#allocation3 + $0x8b8] sm:$0xf] %v14693_v12  ;;  %2554 = vst [vmem:[#allocation3 + $0x8dc] sm:$0xf] %v14694_v60  ;;  %v5969_v6 = vld [vmem:[#allocation2 + $0x27b] sm:$0xff]  ;;  %v5970_v63 = vld [vmem:[#allocation2 + $0x283] sm:$0xff] }
 0x2ac   :  { %3502 = vst [vmem:[#allocation3 + $0x89c] sm:$0xf] %v14927_v51  ;;  %v15337_v0 = vpack.c.bf16 %v5969_v6, %v5969_v6  ;;  %v15338_v37 = vpack.c.bf16 %v5970_v63, %v5970_v63  ;;  %v16677_v52 = vld [vmem:[#allocation3 + $0x564] ss:$36 sps:$4 sm:$0xff]   ;;  %v2632_v15 = vld [vmem:[#allocation2 + $0x1f6] sm:$0xff]  ;;  %v2633_v1 = vld [vmem:[#allocation2 + $0x1fe] sm:$0xff] }
 0x2ad   :  { %9359 = vmatmul.mubr.bf16.gmra.mrb[176].mxu1 %v16673_v29  ;;  %v3580_v35 = vld [vmem:[#allocation2 + $0x1f7] sm:$0xff]  ;;  %v14772_v39 = vpack.c.bf16 %v2632_v15, %v2632_v15  ;;  %v14773_v59 = vpack.c.bf16 %v2633_v1, %v2633_v1  ;;  %v3581_v3 = vld [vmem:[#allocation2 + $0x1ff] sm:$0xff]  ;;  %v2160_v14 = vld [vmem:[#allocation2 + $0x20d] sm:$0xff]  ;;  %2555 = vst [vmem:[#allocation3 + $0x900] sm:$0xf] %v14695_v42 }
 0x2ae   :  { %6365 = vst [vmem:[#allocation3 + $0xa88] sm:$0xf] %v15337_v0  ;;  %6366 = vst [vmem:[#allocation3 + $0xaac] sm:$0xf] %v15338_v37  ;;  %9703 = vmatmul.mubr.bf16.gmra.mrb[132].mxu0 %v16674_v57  ;;  %9366 = vmatprep.mubr.bf16.mxu1 %v16675_v18  ;;  %v14928_v43 = vpack.c.bf16 %v3580_v35, %v3580_v35  ;;  %v16751_v19 = vld [vmem:[%s20104_s6 + $0x160] sm:$0xff]   ;;  %v14929_v17 = vpack.c.bf16 %v3581_v3, %v3581_v3  ;;  %v2635_v51 = vld [vmem:[#allocation2 + $0x20e] sm:$0xff] }
 0x2af   :  { %9710 = vmatprep.mubr.bf16.mxu0 %v16677_v52  ;;  %v2634_v36 = vld [vmem:[#allocation2 + $0x206] sm:$0xff]  ;;  %3028 = vst [vmem:[#allocation3 + $0x8bc] sm:$0xf] %v14772_v39  ;;  %3029 = vst [vmem:[#allocation3 + $0x8e0] sm:$0xf] %v14773_v59  ;;  %9903 = vmatpush1.bf16.msra.mxu0 %v16751_v19  ;;  %v14696_v12 = vpack.c.bf16 %v2160_v14, %v2160_v14  ;;  %v14775_v27 = vpack.c.bf16 %v2635_v51, %v2635_v51  ;;  %v3583_v5 = vld [vmem:[#allocation2 + $0x20f] sm:$0xff] }
 0x2b0   :  { %3976 = vst [vmem:[#allocation3 + $0x87c] sm:$0xf] %v14928_v43  ;;  %v14774_v60 = vpack.c.bf16 %v2634_v36, %v2634_v36  ;;  %3503 = vst [vmem:[#allocation3 + $0x8c0] sm:$0xf] %v14928_v43  ;;  %v3582_v22 = vld [vmem:[#allocation2 + $0x207] sm:$0xff]  ;;  %v2161_v6 = vld [vmem:[#allocation2 + $0x215] sm:$0xff]  ;;  %v14931_v29 = vpack.c.bf16 %v3583_v5, %v3583_v5  ;;  %9904 = vmatprep.subr.bf16.mxu0 %v20379_v2 }
 0x2b1   :  { %v16679_v63 = vld [vmem:[#allocation3 + $0x5a0] ss:$36 sps:$4 sm:$0xff]   ;;  %3977 = vst [vmem:[#allocation3 + $0x8a0] sm:$0xf] %v14929_v17  ;;  %3504 = vst [vmem:[#allocation3 + $0x8e4] sm:$0xf] %v14929_v17  ;;  %v14930_v37 = vpack.c.bf16 %v3582_v22, %v3582_v22  ;;  %v14697_v18 = vpack.c.bf16 %v2161_v6, %v2161_v6 }
 0x2b2   :  { %v16680_v0 = vld [vmem:[#allocation3 + $0x560] ss:$36 sps:$4 sm:$0xff]   ;;  %v2162_v57 = vld [vmem:[#allocation2 + $0x21d] sm:$0xff]  ;;  %v16681_v1 = vld [vmem:[#allocation3 + $0x5ec] ss:$36 sps:$4 sm:$0xff]  }
 0x2b3   :  { %v2636_v52 = vld [vmem:[#allocation2 + $0x216] sm:$0xff]  ;;  %v2637_v15 = vld [vmem:[#allocation2 + $0x21e] sm:$0xff]  ;;  %2556 = vst [vmem:[#allocation3 + $0x924] sm:$0xf] %v14696_v12  ;;  %3030 = vst [vmem:[#allocation3 + $0x904] sm:$0xf] %v14774_v60  ;;  %v14698_v39 = vpack.c.bf16 %v2162_v57, %v2162_v57 }
 0x2b4   :  { %v16683_v35 = vld [vmem:[#allocation3 + $0x5ac] ss:$36 sps:$4 sm:$0xff]   ;;  %3031 = vst [vmem:[#allocation3 + $0x928] sm:$0xf] %v14775_v27  ;;  %v14776_v59 = vpack.c.bf16 %v2636_v52, %v2636_v52  ;;  %v14777_v3 = vpack.c.bf16 %v2637_v15, %v2637_v15  ;;  %v3585_v19 = vld [vmem:[#allocation2 + $0x21f] sm:$0xff]  ;;  %v3586_v5 = vld [vmem:[#allocation2 + $0x227] sm:$0xff] }
 0x2b5   :  { %v3584_v43 = vld [vmem:[#allocation2 + $0x217] sm:$0xff]  ;;  %v2163_v31 = vld [vmem:[#allocation2 + $0x225] sm:$0xff]  ;;  %3978 = vst [vmem:[#allocation3 + $0x8c4] sm:$0xf] %v14930_v37  ;;  %3979 = vst [vmem:[#allocation3 + $0x8e8] sm:$0xf] %v14931_v29  ;;  %v14933_v14 = vpack.c.bf16 %v3585_v19, %v3585_v19  ;;  %9367 = vmatmul.mubr.bf16.gmra.mrb[180].mxu1 %v16679_v63 }
 0x2b6   :  { %2557 = vst [vmem:[#allocation3 + $0x948] sm:$0xf] %v14697_v18  ;;  %3505 = vst [vmem:[#allocation3 + $0x908] sm:$0xf] %v14930_v37  ;;  %v14932_v17 = vpack.c.bf16 %v3584_v43, %v3584_v43  ;;  %v2164_v42 = vld [vmem:[#allocation2 + $0x22d] sm:$0xff]  ;;  %v14699_v36 = vpack.c.bf16 %v2163_v31, %v2163_v31  ;;  %9711 = vmatmul.mubr.bf16.gmra.mrb[136].mxu0 %v16680_v0  ;;  %v14934_v37 = vpack.c.bf16 %v3586_v5, %v3586_v5  ;;  %v2165_v18 = vld [vmem:[#allocation2 + $0x235] sm:$0xff] }
 0x2b7   :  { %3506 = vst [vmem:[#allocation3 + $0x92c] sm:$0xf] %v14931_v29  ;;  %v2638_v51 = vld [vmem:[#allocation2 + $0x226] sm:$0xff]  ;;  %v2639_v22 = vld [vmem:[#allocation2 + $0x22e] sm:$0xff]  ;;  %2558 = vst [vmem:[#allocation3 + $0x96c] sm:$0xf] %v14698_v39  ;;  %v14700_v12 = vpack.c.bf16 %v2164_v42, %v2164_v42  ;;  %9374 = vmatprep.mubr.bf16.mxu1 %v16681_v1  ;;  %9718 = vmatprep.mubr.bf16.mxu0 %v16683_v35  ;;  %v14701_v39 = vpack.c.bf16 %v2165_v18, %v2165_v18 }
 0x2b8   :  { %3032 = vst [vmem:[#allocation3 + $0x94c] sm:$0xf] %v14776_v59  ;;  %3033 = vst [vmem:[#allocation3 + $0x970] sm:$0xf] %v14777_v3  ;;  %v14778_v60 = vpack.c.bf16 %v2638_v51, %v2638_v51  ;;  %v14779_v27 = vpack.c.bf16 %v2639_v22, %v2639_v22  ;;  %v3587_v6 = vld [vmem:[#allocation2 + $0x22f] sm:$0xff]  ;;  %v2166_v52 = vld [vmem:[#allocation2 + $0x23d] sm:$0xff] }
 0x2b9   :  { %v16768_v57 = vld [vmem:[%s20104_s6 + $0x168] sm:$0xff]   ;;  %3980 = vst [vmem:[#allocation3 + $0x90c] sm:$0xf] %v14932_v17  ;;  %3981 = vst [vmem:[#allocation3 + $0x930] sm:$0xf] %v14933_v14  ;;  %v14935_v29 = vpack.c.bf16 %v3587_v6, %v3587_v6  ;;  %v2640_v15 = vld [vmem:[#allocation2 + $0x236] sm:$0xff]  ;;  %v14702_v59 = vpack.c.bf16 %v2166_v52, %v2166_v52 }
 0x2ba   :  { %2559 = vst [vmem:[#allocation3 + $0x990] sm:$0xf] %v14699_v36  ;;  %3507 = vst [vmem:[#allocation3 + $0x950] sm:$0xf] %v14932_v17  ;;  %v2641_v3 = vld [vmem:[#allocation2 + $0x23e] sm:$0xff]  ;;  %v14780_v63 = vpack.c.bf16 %v2640_v15, %v2640_v15  ;;  %9905 = vmatpush1.bf16.msra.mxu0 %v16768_v57  ;;  %v2642_v57 = vld [vmem:[#allocation2 + $0x246] sm:$0xff] }
 0x2bb   :  { %3508 = vst [vmem:[#allocation3 + $0x974] sm:$0xf] %v14933_v14  ;;  %2560 = vst [vmem:[#allocation3 + $0x9b4] sm:$0xf] %v14700_v12  ;;  %v3588_v0 = vld [vmem:[#allocation2 + $0x237] sm:$0xff]  ;;  %v3589_v43 = vld [vmem:[#allocation2 + $0x23f] sm:$0xff]  ;;  %v14781_v19 = vpack.c.bf16 %v2641_v3, %v2641_v3  ;;  %9906 = vmatprep.subr.bf16.mxu0 %v20379_v2  ;;  %v14782_v18 = vpack.c.bf16 %v2642_v57, %v2642_v57 }
 0x2bc   :  { %3034 = vst [vmem:[#allocation3 + $0x994] sm:$0xf] %v14778_v60  ;;  %3035 = vst [vmem:[#allocation3 + $0x9b8] sm:$0xf] %v14779_v27  ;;  %v14936_v31 = vpack.c.bf16 %v3588_v0, %v3588_v0  ;;  %v14937_v17 = vpack.c.bf16 %v3589_v43, %v3589_v43  ;;  %v16685_v1 = vld [vmem:[#allocation3 + $0x5e8] ss:$36 sps:$4 sm:$0xff]  }
 0x2bd   :  { %3982 = vst [vmem:[#allocation3 + $0x954] sm:$0xf] %v14934_v37  ;;  %3983 = vst [vmem:[#allocation3 + $0x978] sm:$0xf] %v14935_v29  ;;  %v16686_v35 = vld [vmem:[#allocation3 + $0x5a8] ss:$36 sps:$4 sm:$0xff]   ;;  %9375 = vmatmul.mubr.bf16.gmra.mrb[184].mxu1 %v16685_v1 }
 0x2be   :  { %3509 = vst [vmem:[#allocation3 + $0x998] sm:$0xf] %v14934_v37  ;;  %3510 = vst [vmem:[#allocation3 + $0x9bc] sm:$0xf] %v14935_v29  ;;  %v16688_v14 = vld [vmem:[#allocation3 + $0x634] ss:$36 sps:$4 sm:$0xff]   ;;  %9719 = vmatmul.mubr.bf16.gmra.mrb[140].mxu0 %v16686_v35 }
 0x2bf   :  { %2561 = vst [vmem:[#allocation3 + $0x9d8] sm:$0xf] %v14701_v39  ;;  %2562 = vst [vmem:[#allocation3 + $0x9fc] sm:$0xf] %v14702_v59  ;;  %v16690_v42 = vld [vmem:[#allocation3 + $0x5f4] ss:$36 sps:$4 sm:$0xff]   ;;  %9382 = vmatprep.mubr.bf16.mxu1 %v16688_v14 }
 0x2c0   :  { %3036 = vst [vmem:[#allocation3 + $0x9dc] sm:$0xf] %v14780_v63  ;;  %3037 = vst [vmem:[#allocation3 + $0xa00] sm:$0xf] %v14781_v19  ;;  %9726 = vmatprep.mubr.bf16.mxu0 %v16690_v42  ;;  %v16692_v36 = vld [vmem:[#allocation3 + $0x630] ss:$36 sps:$4 sm:$0xff]  }
 0x2c1   :  { %3984 = vst [vmem:[#allocation3 + $0x99c] sm:$0xf] %v14936_v31  ;;  %3985 = vst [vmem:[#allocation3 + $0x9c0] sm:$0xf] %v14937_v17  ;;  %v16693_v51 = vld [vmem:[#allocation3 + $0x5f0] ss:$36 sps:$4 sm:$0xff]  }
 0x2c2   :  { %3511 = vst [vmem:[#allocation3 + $0x9e0] sm:$0xf] %v14936_v31  ;;  %3512 = vst [vmem:[#allocation3 + $0xa04] sm:$0xf] %v14937_v17  ;;  %v16694_v22 = vld [vmem:[#allocation3 + $0x67c] ss:$36 sps:$4 sm:$0xff]  }
 0x2c3   :  { %v16696_v12 = vld [vmem:[#allocation3 + $0x63c] ss:$36 sps:$4 sm:$0xff]   ;;  %v2168_v27 = vld [vmem:[#allocation2 + $0x24d] sm:$0xff]  ;;  %v2169_v0 = vld [vmem:[#allocation2 + $0x255] sm:$0xff]  ;;  %3038 = vst [vmem:[#allocation3 + $0xa24] sm:$0xf] %v14782_v18 }
 0x2c4   :  { %v2167_v60 = vld [vmem:[#allocation2 + $0x245] sm:$0xff]  ;;  %v14704_v6 = vpack.c.bf16 %v2168_v27, %v2168_v27  ;;  %v2643_v37 = vld [vmem:[#allocation2 + $0x24e] sm:$0xff]  ;;  %v2170_v43 = vld [vmem:[#allocation2 + $0x25d] sm:$0xff]  ;;  %v14705_v31 = vpack.c.bf16 %v2169_v0, %v2169_v0 }
 0x2c5   :  { %9383 = vmatmul.mubr.bf16.gmra.mrb[188].mxu1 %v16692_v36  ;;  %v14703_v5 = vpack.c.bf16 %v2167_v60, %v2167_v60  ;;  %v3590_v29 = vld [vmem:[#allocation2 + $0x247] sm:$0xff]  ;;  %v14783_v52 = vpack.c.bf16 %v2643_v37, %v2643_v37  ;;  %v3591_v15 = vld [vmem:[#allocation2 + $0x24f] sm:$0xff]  ;;  %v14706_v17 = vpack.c.bf16 %v2170_v43, %v2170_v43  ;;  %v2645_v1 = vld [vmem:[#allocation2 + $0x25e] sm:$0xff] }
 0x2c6   :  { %9727 = vmatmul.mubr.bf16.gmra.mrb[144].mxu0 %v16693_v51  ;;  %9390 = vmatprep.mubr.bf16.mxu1 %v16694_v22  ;;  %v14938_v39 = vpack.c.bf16 %v3590_v29, %v3590_v29  ;;  %v16783_v59 = vld [vmem:[%s20104_s6 + $0x170] sm:$0xff]   ;;  %v16784_v3 = vld [vmem:[%s20104_s6 + $0x200] sm:$0xff]   ;;  %2564 = vst [vmem:[#allocation3 + $0xa44] sm:$0xf] %v14704_v6  ;;  %v14939_v63 = vpack.c.bf16 %v3591_v15, %v3591_v15  ;;  %v16789_v27 = vld [vmem:[%s20104_s6 + $0x208] sm:$0xff]  }
 0x2c7   :  { %9734 = vmatprep.mubr.bf16.mxu0 %v16696_v12  ;;  %2563 = vst [vmem:[#allocation3 + $0xa20] sm:$0xf] %v14703_v5  ;;  %v2644_v19 = vld [vmem:[#allocation2 + $0x256] sm:$0xff]  ;;  %3039 = vst [vmem:[#allocation3 + $0xa48] sm:$0xf] %v14783_v52  ;;  %9907 = vmatpush1.bf16.msra.mxu0 %v16783_v59  ;;  %v3593_v42 = vld [vmem:[#allocation2 + $0x25f] sm:$0xff]  ;;  %v14785_v22 = vpack.c.bf16 %v2645_v1, %v2645_v1 }
 0x2c8   :  { %3986 = vst [vmem:[#allocation3 + $0x9e4] sm:$0xf] %v14938_v39  ;;  %15796 = vmatprep.subr.bf16.mxu1 %v16784_v3  ;;  %v14784_v35 = vpack.c.bf16 %v2644_v19, %v2644_v19  ;;  %3513 = vst [vmem:[#allocation3 + $0xa28] sm:$0xf] %v14938_v39  ;;  %v3592_v14 = vld [vmem:[#allocation2 + $0x257] sm:$0xff]  ;;  %v14941_v60 = vpack.c.bf16 %v3593_v42, %v3593_v42  ;;  %v2171_v5 = vld [vmem:[#allocation2 + $0x265] sm:$0xff]  ;;  %9908 = vmatprep.subr.bf16.mxu0 %v20379_v2 }
 0x2c9   :  { %v16698_v36 = vld [vmem:[#allocation3 + $0x678] ss:$36 sps:$4 sm:$0xff]   ;;  %3987 = vst [vmem:[#allocation3 + $0xa08] sm:$0xf] %v14939_v63  ;;  %3514 = vst [vmem:[#allocation3 + $0xa4c] sm:$0xf] %v14939_v63  ;;  %v14940_v12 = vpack.c.bf16 %v3592_v14, %v3592_v14  ;;  %15797 = vmatpush3.bf16.msra.mxu1 %v16784_v3  ;;  %v14707_v37 = vpack.c.bf16 %v2171_v5, %v2171_v5 }
 0x2ca   :  { %v16699_v51 = vld [vmem:[#allocation3 + $0x638] ss:$36 sps:$4 sm:$0xff]   ;;  %v16700_v6 = vld [vmem:[#allocation3 + $0x6c4] ss:$36 sps:$4 sm:$0xff]   ;;  %2565 = vst [vmem:[#allocation3 + $0xa68] sm:$0xf] %v14705_v31  ;;  %15798 = vmatprep.subr.bf16.mxu1 %v16789_v27 }
 0x2cb   :  { %2566 = vst [vmem:[#allocation3 + $0xa8c] sm:$0xf] %v14706_v17  ;;  %3040 = vst [vmem:[#allocation3 + $0xa6c] sm:$0xf] %v14784_v35  ;;  %v2172_v57 = vld [vmem:[#allocation2 + $0x26d] sm:$0xff]  ;;  %v2173_v31 = vld [vmem:[#allocation2 + $0x275] sm:$0xff] }
 0x2cc   :  { %v2646_v29 = vld [vmem:[#allocation2 + $0x266] sm:$0xff]  ;;  %v2647_v18 = vld [vmem:[#allocation2 + $0x26e] sm:$0xff]  ;;  %3041 = vst [vmem:[#allocation3 + $0xa90] sm:$0xf] %v14785_v22  ;;  %3988 = vst [vmem:[#allocation3 + $0xa2c] sm:$0xf] %v14940_v12  ;;  %v14708_v15 = vpack.c.bf16 %v2172_v57, %v2172_v57  ;;  %v14709_v1 = vpack.c.bf16 %v2173_v31, %v2173_v31 }
 0x2cd   :  { %v16702_v52 = vld [vmem:[#allocation3 + $0x684] ss:$36 sps:$4 sm:$0xff]   ;;  %3989 = vst [vmem:[#allocation3 + $0xa50] sm:$0xf] %v14941_v60  ;;  %v14786_v39 = vpack.c.bf16 %v2646_v29, %v2646_v29  ;;  %v14787_v59 = vpack.c.bf16 %v2647_v18, %v2647_v18  ;;  %3515 = vst [vmem:[#allocation3 + $0xa70] sm:$0xf] %v14940_v12  ;;  %9391 = vmatmul.mubr.bf16.gmra.mrb[192].mxu1 %v16698_v36 }
 0x2ce   :  { %3516 = vst [vmem:[#allocation3 + $0xa94] sm:$0xf] %v14941_v60  ;;  %v3594_v3 = vld [vmem:[#allocation2 + $0x267] sm:$0xff]  ;;  %v3595_v63 = vld [vmem:[#allocation2 + $0x26f] sm:$0xff]  ;;  %2567 = vst [vmem:[#allocation3 + $0xab0] sm:$0xf] %v14707_v37  ;;  %9735 = vmatmul.mubr.bf16.gmra.mrb[148].mxu0 %v16699_v51  ;;  %9398 = vmatprep.mubr.bf16.mxu1 %v16700_v6 }
 0x2cf   :  { %v16792_v0 = vld [vmem:[%s20104_s6 + $0x210] sm:$0xff]   ;;  %v14942_v43 = vpack.c.bf16 %v3594_v3, %v3594_v3  ;;  %v14943_v19 = vpack.c.bf16 %v3595_v63, %v3595_v63  ;;  %2568 = vst [vmem:[#allocation3 + $0xad4] sm:$0xf] %v14708_v15  ;;  %3042 = vst [vmem:[#allocation3 + $0xab4] sm:$0xf] %v14786_v39  ;;  %v3597_v42 = vld [vmem:[#allocation2 + $0x27f] sm:$0xff]  ;;  %9742 = vmatprep.mubr.bf16.mxu0 %v16702_v52  ;;  %15799 = vmatpush3.bf16.msra.mxu1 %v16789_v27 }
 0x2d0   :  { %v2648_v17 = vld [vmem:[#allocation2 + $0x276] sm:$0xff]  ;;  %3043 = vst [vmem:[#allocation3 + $0xad8] sm:$0xf] %v14787_v59  ;;  %v14945_v36 = vpack.c.bf16 %v3597_v42, %v3597_v42  ;;  %v3598_v51 = vld [vmem:[#allocation2 + $0x287] sm:$0xff]  ;;  %2569 = vst [vmem:[#allocation3 + $0xaf8] sm:$0xf] %v14709_v1  ;;  %15800 = vmatprep.subr.bf16.mxu1 %v16792_v0 }
 0x2d1   :  { %v14788_v35 = vpack.c.bf16 %v2648_v17, %v2648_v17  ;;  %v3596_v14 = vld [vmem:[#allocation2 + $0x277] sm:$0xff]  ;;  %3990 = vst [vmem:[#allocation3 + $0xa74] sm:$0xf] %v14942_v43  ;;  %3991 = vst [vmem:[#allocation3 + $0xa98] sm:$0xf] %v14943_v19  ;;  %v14946_v60 = vpack.c.bf16 %v3598_v51, %v3598_v51  ;;  %v16800_v27 = vld [vmem:[%s20104_s6 + $0x220] sm:$0xff]  }
 0x2d2   :  { %v16805_v22 = vld [vmem:[%s20104_s6 + $0x178] sm:$0xff]   ;;  %3517 = vst [vmem:[#allocation3 + $0xab8] sm:$0xf] %v14942_v43  ;;  %3518 = vst [vmem:[#allocation3 + $0xadc] sm:$0xf] %v14943_v19  ;;  %v14944_v12 = vpack.c.bf16 %v3596_v14, %v3596_v14  ;;  %v16806_v18 = vld [vmem:[%s20104_s6 + $0x228] sm:$0xff]  }
 0x2d3   :  { %3044 = vst [vmem:[#allocation3 + $0xafc] sm:$0xf] %v14788_v35  ;;  %9909 = vmatpush1.bf16.msra.mxu0 %v16805_v22  ;;  %v16797_v5 = vld [vmem:[%s20104_s6 + $0x218] sm:$0xff]   ;;  %3993 = vst [vmem:[#allocation3 + $0xae0] sm:$0xf] %v14945_v36  ;;  %15801 = vmatpush3.bf16.msra.mxu1 %v16792_v0  ;;  %v16808_v63 = vld [vmem:[%s20104_s6 + $0x230] sm:$0xff]  }
 0x2d4   :  { %3992 = vst [vmem:[#allocation3 + $0xabc] sm:$0xf] %v14944_v12  ;;  %3519 = vst [vmem:[#allocation3 + $0xb00] sm:$0xf] %v14944_v12  ;;  %10230 = vmatprep.subr.bf16.mxu0 %v20379_v2  ;;  %v16705_v6 = vld [vmem:[#allocation3 + $0x6c0] ss:$36 sps:$4 sm:$0xff]   ;;  %15802 = vmatprep.subr.bf16.mxu1 %v16797_v5 }
 0x2d5   :  { %3994 = vst [vmem:[#allocation3 + $0xb04] sm:$0xf] %v14946_v60  ;;  %v16706_v57 = vld [vmem:[#allocation3 + $0x680] ss:$36 sps:$4 sm:$0xff]   ;;  %v16707_v37 = vld [vmem:[#allocation3 + $0x70c] ss:$36 sps:$4 sm:$0xff]   ;;  %9399 = vmatmul.mubr.bf16.gmra.mrb[196].mxu1 %v16705_v6 }
 0x2d6   :  { %v16709_v29 = vld [vmem:[#allocation3 + $0x6cc] ss:$36 sps:$4 sm:$0xff]   ;;  %9743 = vmatmul.mubr.bf16.gmra.mrb[152].mxu0 %v16706_v57  ;;  %9406 = vmatprep.mubr.bf16.mxu1 %v16707_v37  ;;  %v16713_v59 = vld [vmem:[#allocation3 + $0x754] ss:$36 sps:$4 sm:$0xff]   ;;  %v5899_v42 = vld [vmem:[#allocation2 + $0x4b] sm:$0xff] }
 0x2d7   :  { %9750 = vmatprep.mubr.bf16.mxu0 %v16709_v29  ;;  %15803 = vmatpush3.bf16.msra.mxu1 %v16797_v5  ;;  %v16711_v52 = vld [vmem:[#allocation3 + $0x708] ss:$36 sps:$4 sm:$0xff]   ;;  %v16715_v3 = vld [vmem:[#allocation3 + $0x714] ss:$36 sps:$4 sm:$0xff]   ;;  %v15267_v36 = vpack.c.bf16 %v5899_v42, %v5899_v42  ;;  %v3997_v5 = vld [vmem:[#allocation2 + $0x28] sm:$0xff] }
 0x2d8   :  { %15804 = vmatprep.subr.bf16.mxu1 %v16800_v27  ;;  %v16712_v15 = vld [vmem:[#allocation3 + $0x6c8] ss:$36 sps:$4 sm:$0xff]   ;;  %v3995_v43 = vld [vmem:[#allocation2 + $0x18] sm:$0xff]  ;;  %v3996_v19 = vld [vmem:[#allocation2 + $0x20] sm:$0xff]  ;;  %v14949_v57 = vpack.c.bf16 %v3997_v5, %v3997_v5 }
 0x2d9   :  { %v5896_v39 = vld [vmem:[#allocation2 + $0x33] sm:$0xff]  ;;  %v14947_v17 = vpack.c.bf16 %v3995_v43, %v3995_v43  ;;  %v14948_v1 = vpack.c.bf16 %v3996_v19, %v3996_v19  ;;  %v4471_v35 = vld [vmem:[#allocation2 + $0x21] sm:$0xff]  ;;  %6295 = vst [vmem:[#allocation3 + $0xb0] sm:$0xf] %v15267_v36  ;;  %v4472_v29 = vld [vmem:[#allocation2 + $0x29] sm:$0xff] }
 0x2da   :  { %v15264_v0 = vpack.c.bf16 %v5896_v39, %v5896_v39  ;;  %v4470_v31 = vld [vmem:[#allocation2 + $0x19] sm:$0xff]  ;;  %v15027_v12 = vpack.c.bf16 %v4471_v35, %v4471_v35  ;;  %v3998_v6 = vld [vmem:[#allocation2 + $0x30] sm:$0xff]  ;;  %4393 = vst [vmem:[#allocation3 + $0x58] sm:$0xf] %v14949_v57  ;;  %v4491_v44 = vld [vmem:[#allocation2 + $0xc1] sm:$0xff] }
 0x2db   :  { %15805 = vmatpush3.bf16.msra.mxu1 %v16800_v27  ;;  %v15026_v14 = vpack.c.bf16 %v4470_v31, %v4470_v31  ;;  %v5900_v22 = vld [vmem:[#allocation2 + $0x53] sm:$0xff]  ;;  %4391 = vst [vmem:[#allocation3 + $0x10] sm:$0xf] %v14947_v17  ;;  %4392 = vst [vmem:[#allocation3 + $0x34] sm:$0xf] %v14948_v1  ;;  %v14950_v37 = vpack.c.bf16 %v3998_v6, %v3998_v6  ;;  %v5907_v42 = vld [vmem:[#allocation2 + $0x8b] sm:$0xff] }
 0x2dc   :  { %15806 = vmatprep.subr.bf16.mxu1 %v16806_v18  ;;  %6292 = vst [vmem:[#allocation3 + $0x44] sm:$0xf] %v15264_v0  ;;  %v15268_v51 = vpack.c.bf16 %v5900_v22, %v5900_v22  ;;  %v16811_v60 = vld [vmem:[%s20104_s6 + $0x238] sm:$0xff]   ;;  %4867 = vst [vmem:[#allocation3 + $0x38] sm:$0xf] %v15027_v12  ;;  %v15275_v5 = vpack.c.bf16 %v5907_v42, %v5907_v42  ;;  %v18830_v42 = vpop.f32.mrb[104].mxu1 }
 0x2dd   :  { %9407 = vmatmul.mubr.bf16.gmra.mrb[200].mxu1 %v16711_v52  ;;  %4866 = vst [vmem:[#allocation3 + $0x14] sm:$0xf] %v15026_v14  ;;  %v4473_v27 = vld [vmem:[#allocation2 + $0x31] sm:$0xff]  ;;  %4394 = vst [vmem:[#allocation3 + $0x7c] sm:$0xf] %v14950_v37  ;;  %v4474_v35 = vld [vmem:[#allocation2 + $0x39] sm:$0xff] }
 0x2de   :  { %9751 = vmatmul.mubr.bf16.gmra.mrb[156].mxu0 %v16712_v15  ;;  %9414 = vmatprep.mubr.bf16.mxu1 %v16713_v59  ;;  %6296 = vst [vmem:[#allocation3 + $0xd4] sm:$0xf] %v15268_v51  ;;  %v5903_v52 = vld [vmem:[#allocation2 + $0x6b] sm:$0xff]  ;;  %v15028_v15 = vpack.c.bf16 %v4472_v29, %v4472_v29  ;;  %v15029_v39 = vpack.c.bf16 %v4473_v27, %v4473_v27  ;;  %v5904_v59 = vld [vmem:[#allocation2 + $0x73] sm:$0xff]  ;;  %v4475_v14 = vld [vmem:[#allocation2 + $0x41] sm:$0xff] }
 0x2df   :  { %9758 = vmatprep.mubr.bf16.mxu0 %v16715_v3  ;;  %15807 = vmatpush3.bf16.msra.mxu1 %v16806_v18  ;;  %v15271_v3 = vpack.c.bf16 %v5903_v52, %v5903_v52  ;;  %v16717_v0 = vld [vmem:[#allocation3 + $0x750] ss:$36 sps:$4 sm:$0xff]   ;;  %v15272_v19 = vpack.c.bf16 %v5904_v59, %v5904_v59  ;;  %v4000_v18 = vld [vmem:[#allocation2 + $0x40] sm:$0xff]  ;;  %v15030_v12 = vpack.c.bf16 %v4474_v35, %v4474_v35  ;;  %v4001_v37 = vld [vmem:[#allocation2 + $0x48] sm:$0xff] }
 0x2e0   :  { %15808 = vmatprep.subr.bf16.mxu1 %v16808_v63  ;;  %v16718_v43 = vld [vmem:[#allocation3 + $0x710] ss:$36 sps:$4 sm:$0xff]   ;;  %4868 = vst [vmem:[#allocation3 + $0x5c] sm:$0xf] %v15028_v15  ;;  %4869 = vst [vmem:[#allocation3 + $0x80] sm:$0xf] %v15029_v39  ;;  %v14952_v1 = vpack.c.bf16 %v4000_v18, %v4000_v18  ;;  %v15031_v36 = vpack.c.bf16 %v4475_v14, %v4475_v14 }
 0x2e1   :  { %v3999_v31 = vld [vmem:[#allocation2 + $0x38] sm:$0xff]  ;;  %6299 = vst [vmem:[#allocation3 + $0x140] sm:$0xf] %v15271_v3  ;;  %v16720_v22 = vld [vmem:[#allocation3 + $0x79c] ss:$36 sps:$4 sm:$0xff]   ;;  %v4002_v29 = vld [vmem:[#allocation2 + $0x50] sm:$0xff] }
 0x2e2   :  { %v14951_v17 = vpack.c.bf16 %v3999_v31, %v3999_v31  ;;  %6300 = vst [vmem:[#allocation3 + $0x164] sm:$0xf] %v15272_v19  ;;  %v5908_v51 = vld [vmem:[#allocation2 + $0x93] sm:$0xff]  ;;  %v16722_v6 = vld [vmem:[#allocation3 + $0x75c] ss:$36 sps:$4 sm:$0xff]   ;;  %v14954_v27 = vpack.c.bf16 %v4002_v29, %v4002_v29 }
 0x2e3   :  { %15809 = vmatpush3.bf16.msra.mxu1 %v16808_v63  ;;  %4396 = vst [vmem:[#allocation3 + $0xc4] sm:$0xf] %v14952_v1  ;;  %v15276_v57 = vpack.c.bf16 %v5908_v51, %v5908_v51  ;;  %4870 = vst [vmem:[#allocation3 + $0xa4] sm:$0xf] %v15030_v12  ;;  %v14953_v63 = vpack.c.bf16 %v4001_v37, %v4001_v37  ;;  %v4476_v52 = vld [vmem:[#allocation2 + $0x49] sm:$0xff]  ;;  %v4477_v15 = vld [vmem:[#allocation2 + $0x51] sm:$0xff] }
 0x2e4   :  { %15810 = vmatprep.subr.bf16.mxu1 %v16811_v60  ;;  %4395 = vst [vmem:[#allocation3 + $0xa0] sm:$0xf] %v14951_v17  ;;  %4871 = vst [vmem:[#allocation3 + $0xc8] sm:$0xf] %v15031_v36  ;;  %v5911_v39 = vld [vmem:[#allocation2 + $0xab] sm:$0xff]  ;;  %v15032_v3 = vpack.c.bf16 %v4476_v52, %v4476_v52  ;;  %v5912_v18 = vld [vmem:[#allocation2 + $0xb3] sm:$0xff] }
 0x2e5   :  { %9415 = vmatmul.mubr.bf16.gmra.mrb[204].mxu1 %v16717_v0  ;;  %6303 = vst [vmem:[#allocation3 + $0x1d0] sm:$0xf] %v15275_v5  ;;  %6304 = vst [vmem:[#allocation3 + $0x1f4] sm:$0xf] %v15276_v57  ;;  %v16724_v59 = vld [vmem:[#allocation3 + $0x798] ss:$36 sps:$4 sm:$0xff]   ;;  %v15033_v0 = vpack.c.bf16 %v4477_v15, %v4477_v15  ;;  %v15280_v1 = vpack.c.bf16 %v5912_v18, %v5912_v18 }
 0x2e6   :  { %9759 = vmatmul.mubr.bf16.gmra.mrb[160].mxu0 %v16718_v43  ;;  %9422 = vmatprep.mubr.bf16.mxu1 %v16720_v22  ;;  %4397 = vst [vmem:[#allocation3 + $0xe8] sm:$0xf] %v14953_v63  ;;  %4398 = vst [vmem:[#allocation3 + $0x10c] sm:$0xf] %v14954_v27  ;;  %v15279_v43 = vpack.c.bf16 %v5911_v39, %v5911_v39  ;;  %v16725_v19 = vld [vmem:[#allocation3 + $0x758] ss:$36 sps:$4 sm:$0xff]  }
 0x2e7   :  { %9766 = vmatprep.mubr.bf16.mxu0 %v16722_v6  ;;  %15811 = vmatpush3.bf16.msra.mxu1 %v16811_v60  ;;  %v16726_v31 = vld [vmem:[#allocation3 + $0x7e4] ss:$36 sps:$4 sm:$0xff]   ;;  %4872 = vst [vmem:[#allocation3 + $0xec] sm:$0xf] %v15032_v3  ;;  %4873 = vst [vmem:[#allocation3 + $0x110] sm:$0xf] %v15033_v0 }
 0x2e8   :  { %6307 = vst [vmem:[#allocation3 + $0x260] sm:$0xf] %v15279_v43  ;;  %v16728_v17 = vld [vmem:[#allocation3 + $0x7a4] ss:$36 sps:$4 sm:$0xff]   ;;  %6308 = vst [vmem:[#allocation3 + $0x284] sm:$0xf] %v15280_v1 }
 0x2e9   :  { %v4003_v60 = vld [vmem:[#allocation2 + $0x58] sm:$0xff]  ;;  %v4004_v35 = vld [vmem:[#allocation2 + $0x60] sm:$0xff]  ;;  %v5915_v5 = vld [vmem:[#allocation2 + $0xcb] sm:$0xff]  ;;  %v9218_v57 = vpop.f32.mrb[105].mxu1 }
 0x2ea   :  { %v4478_v14 = vld [vmem:[#allocation2 + $0x59] sm:$0xff]  ;;  %v14955_v22 = vpack.c.bf16 %v4003_v60, %v4003_v60  ;;  %v14956_v12 = vpack.c.bf16 %v4004_v35, %v4004_v35  ;;  %v4479_v36 = vld [vmem:[#allocation2 + $0x61] sm:$0xff]  ;;  %v15283_v63 = vpack.c.bf16 %v5915_v5, %v5915_v5  ;;  %v18832_v52 = vpop.f32.mrb[106].mxu1  ;;  %v4006_v43 = vld [vmem:[#allocation2 + $0x70] sm:$0xff] }
 0x2eb   :  { %v15034_v51 = vpack.c.bf16 %v4478_v14, %v4478_v14  ;;  %v5916_v6 = vld [vmem:[#allocation2 + $0xd3] sm:$0xff]  ;;  %v16730_v37 = vld [vmem:[#allocation3 + $0x7e0] ss:$36 sps:$4 sm:$0xff]   ;;  %v15035_v29 = vpack.c.bf16 %v4479_v36, %v4479_v36  ;;  %v9221_v39 = vpop.f32.mrb[107].mxu1  ;;  %v14958_v18 = vpack.c.bf16 %v4006_v43, %v4006_v43  ;;  %v4008_v5 = vld [vmem:[#allocation2 + $0x80] sm:$0xff] }
 0x2ec   :  { %v15284_v27 = vpack.c.bf16 %v5916_v6, %v5916_v6  ;;  %v16731_v15 = vld [vmem:[#allocation3 + $0x7a0] ss:$36 sps:$4 sm:$0xff]   ;;  %4399 = vst [vmem:[#allocation3 + $0x130] sm:$0xf] %v14955_v22  ;;  %4400 = vst [vmem:[#allocation3 + $0x154] sm:$0xf] %v14956_v12 }
 0x2ed   :  { %9423 = vmatmul.mubr.bf16.gmra.mrb[208].mxu1 %v16724_v59  ;;  %4874 = vst [vmem:[#allocation3 + $0x134] sm:$0xf] %v15034_v51  ;;  %v16732_v59 = vld [vmem:[#allocation3 + $0x82c] ss:$36 sps:$4 sm:$0xff]   ;;  %4875 = vst [vmem:[#allocation3 + $0x158] sm:$0xf] %v15035_v29 }
 0x2ee   :  { %9767 = vmatmul.mubr.bf16.gmra.mrb[164].mxu0 %v16725_v19  ;;  %9430 = vmatprep.mubr.bf16.mxu1 %v16726_v31  ;;  %6311 = vst [vmem:[#allocation3 + $0x2f0] sm:$0xf] %v15283_v63  ;;  %6312 = vst [vmem:[#allocation3 + $0x314] sm:$0xf] %v15284_v27  ;;  %v4005_v3 = vld [vmem:[#allocation2 + $0x68] sm:$0xff]  ;;  %v5920_v14 = vld [vmem:[#allocation2 + $0xf3] sm:$0xff]  ;;  %v14960_v27 = vpack.c.bf16 %v4008_v5, %v4008_v5 }
 0x2ef   :  { %9774 = vmatprep.mubr.bf16.mxu0 %v16728_v17  ;;  %v16734_v0 = vld [vmem:[#allocation3 + $0x7ec] ss:$36 sps:$4 sm:$0xff]   ;;  %v14957_v19 = vpack.c.bf16 %v4005_v3, %v4005_v3  ;;  %v4480_v31 = vld [vmem:[#allocation2 + $0x69] sm:$0xff]  ;;  %4402 = vst [vmem:[#allocation3 + $0x19c] sm:$0xf] %v14958_v18  ;;  %v15288_v12 = vpack.c.bf16 %v5920_v14, %v5920_v14  ;;  %v18834_v51 = vpop.f32.mrb[108].mxu1 }
 0x2f0   :  { %v4481_v17 = vld [vmem:[#allocation2 + $0x71] sm:$0xff]  ;;  %v15036_v1 = vpack.c.bf16 %v4480_v31, %v4480_v31  ;;  %v4482_v57 = vld [vmem:[#allocation2 + $0x79] sm:$0xff]  ;;  %v9226_v29 = vpop.f32.mrb[109].mxu1  ;;  %4404 = vst [vmem:[#allocation3 + $0x1e4] sm:$0xf] %v14960_v27  ;;  %v4499_v20 = vld [vmem:[#allocation2 + $0x101] sm:$0xff] }
 0x2f1   :  { %4401 = vst [vmem:[#allocation3 + $0x178] sm:$0xf] %v14957_v19  ;;  %v15037_v60 = vpack.c.bf16 %v4481_v17, %v4481_v17  ;;  %v5919_v35 = vld [vmem:[#allocation2 + $0xeb] sm:$0xff]  ;;  %v4007_v36 = vld [vmem:[#allocation2 + $0x78] sm:$0xff]  ;;  %6316 = vst [vmem:[#allocation3 + $0x3a4] sm:$0xf] %v15288_v12 }
 0x2f2   :  { %4876 = vst [vmem:[#allocation3 + $0x17c] sm:$0xf] %v15036_v1  ;;  %v15287_v22 = vpack.c.bf16 %v5919_v35, %v5919_v35  ;;  %v14959_v6 = vpack.c.bf16 %v4007_v36, %v4007_v36  ;;  %v16737_v63 = vld [vmem:[#allocation3 + $0x828] ss:$36 sps:$4 sm:$0xff]   ;;  %v16739_v17 = vld [vmem:[#allocation3 + $0x874] ss:$36 sps:$4 sm:$0xff]  }
 0x2f3   :  { %4877 = vst [vmem:[#allocation3 + $0x1a0] sm:$0xf] %v15037_v60  ;;  %v5924_v3 = vld [vmem:[#allocation2 + $0x113] sm:$0xff]  ;;  %v4009_v1 = vld [vmem:[#allocation2 + $0x88] sm:$0xff]  ;;  %v16741_v60 = vld [vmem:[#allocation3 + $0x834] ss:$36 sps:$4 sm:$0xff]  }
 0x2f4   :  { %6315 = vst [vmem:[#allocation3 + $0x380] sm:$0xf] %v15287_v22  ;;  %v16738_v43 = vld [vmem:[#allocation3 + $0x7e8] ss:$36 sps:$4 sm:$0xff]   ;;  %4403 = vst [vmem:[#allocation3 + $0x1c0] sm:$0xf] %v14959_v6  ;;  %v15292_v31 = vpack.c.bf16 %v5924_v3, %v5924_v3  ;;  %v14961_v35 = vpack.c.bf16 %v4009_v1, %v4009_v1 }
 0x2f5   :  { %9431 = vmatmul.mubr.bf16.gmra.mrb[212].mxu1 %v16730_v37  ;;  %v4483_v37 = vld [vmem:[#allocation2 + $0x81] sm:$0xff]  ;;  %v4010_v14 = vld [vmem:[#allocation2 + $0x90] sm:$0xff]  ;;  %v16770_v45 = vld [vmem:[#allocation3 + $0x950] ss:$36 sps:$4 sm:$0xff]  }
 0x2f6   :  { %9775 = vmatmul.mubr.bf16.gmra.mrb[168].mxu0 %v16731_v15  ;;  %9438 = vmatprep.mubr.bf16.mxu1 %v16732_v59  ;;  %v15038_v15 = vpack.c.bf16 %v4482_v57, %v4482_v57  ;;  %v15039_v39 = vpack.c.bf16 %v4483_v37, %v4483_v37  ;;  %v5923_v59 = vld [vmem:[#allocation2 + $0x10b] sm:$0xff]  ;;  %6320 = vst [vmem:[#allocation3 + $0x434] sm:$0xf] %v15292_v31  ;;  %4405 = vst [vmem:[#allocation3 + $0x208] sm:$0xf] %v14961_v35  ;;  %v5928_v27 = vld [vmem:[#allocation2 + $0x133] sm:$0xff] }
 0x2f7   :  { %9782 = vmatprep.mubr.bf16.mxu0 %v16734_v0  ;;  %v18836_v0 = vpop.f32.mrb[110].mxu1  ;;  %v15291_v19 = vpack.c.bf16 %v5923_v59, %v5923_v59  ;;  %v4484_v22 = vld [vmem:[#allocation2 + $0x89] sm:$0xff]  ;;  %v14962_v12 = vpack.c.bf16 %v4010_v14, %v4010_v14  ;;  %v4485_v36 = vld [vmem:[#allocation2 + $0x91] sm:$0xff]  ;;  %v4486_v35 = vld [vmem:[#allocation2 + $0x99] sm:$0xff] }
 0x2f8   :  { %v9229_v18 = vpop.f32.mrb[111].mxu1  ;;  %4878 = vst [vmem:[#allocation3 + $0x1c4] sm:$0xf] %v15038_v15  ;;  %4879 = vst [vmem:[#allocation3 + $0x1e8] sm:$0xf] %v15039_v39  ;;  %v15040_v5 = vpack.c.bf16 %v4484_v22, %v4484_v22  ;;  %v5927_v6 = vld [vmem:[#allocation2 + $0x12b] sm:$0xff]  ;;  %v15041_v57 = vpack.c.bf16 %v4485_v36, %v4485_v36  ;;  %v15042_v22 = vpack.c.bf16 %v4486_v35, %v4486_v35 }
 0x2f9   :  { %6319 = vst [vmem:[#allocation3 + $0x410] sm:$0xf] %v15291_v19  ;;  %v15295_v37 = vpack.c.bf16 %v5927_v6, %v5927_v6  ;;  %v18838_v29 = vpop.f32.mrb[112].mxu1  ;;  %4406 = vst [vmem:[#allocation3 + $0x22c] sm:$0xf] %v14962_v12  ;;  %v4011_v59 = vld [vmem:[#allocation2 + $0x98] sm:$0xff] }
 0x2fa   :  { %4880 = vst [vmem:[#allocation3 + $0x20c] sm:$0xf] %v15040_v5  ;;  %v9234_v15 = vpop.f32.mrb[113].mxu1  ;;  %v16743_v39 = vld [vmem:[#allocation3 + $0x870] ss:$36 sps:$4 sm:$0xff]   ;;  %v14963_v19 = vpack.c.bf16 %v4011_v59, %v4011_v59  ;;  %v4012_v18 = vld [vmem:[#allocation2 + $0xa0] sm:$0xff] }
 0x2fb   :  { %4881 = vst [vmem:[#allocation3 + $0x230] sm:$0xf] %v15041_v57  ;;  %6323 = vst [vmem:[#allocation3 + $0x4a0] sm:$0xf] %v15295_v37  ;;  %v18840_v3 = vpop.f32.mrb[114].mxu1  ;;  %v4487_v14 = vld [vmem:[#allocation2 + $0xa1] sm:$0xff] }
 0x2fc   :  { %v9237_v31 = vpop.f32.mrb[115].mxu1  ;;  %v16747_v1 = vld [vmem:[#allocation3 + $0x87c] ss:$36 sps:$4 sm:$0xff]   ;;  %4407 = vst [vmem:[#allocation3 + $0x250] sm:$0xf] %v14963_v19  ;;  %v5932_v36 = vld [vmem:[#allocation2 + $0x153] sm:$0xff]  ;;  %v15043_v5 = vpack.c.bf16 %v4487_v14, %v4487_v14 }
 0x2fd   :  { %9439 = vmatmul.mubr.bf16.gmra.mrb[216].mxu1 %v16737_v63  ;;  %v15296_v63 = vpack.c.bf16 %v5928_v27, %v5928_v27  ;;  %v5931_v12 = vld [vmem:[#allocation2 + $0x14b] sm:$0xff]  ;;  %v15300_v57 = vpack.c.bf16 %v5932_v36, %v5932_v36  ;;  %v18842_v37 = vpop.f32.mrb[116].mxu1  ;;  %4882 = vst [vmem:[#allocation3 + $0x254] sm:$0xf] %v15042_v22  ;;  %v16749_v15 = vld [vmem:[#allocation3 + $0x8b8] ss:$36 sps:$4 sm:$0xff]  }
 0x2fe   :  { %9783 = vmatmul.mubr.bf16.gmra.mrb[172].mxu0 %v16738_v43  ;;  %9446 = vmatprep.mubr.bf16.mxu1 %v16739_v17  ;;  %v16744_v43 = vld [vmem:[#allocation3 + $0x830] ss:$36 sps:$4 sm:$0xff]   ;;  %v16745_v17 = vld [vmem:[#allocation3 + $0x8bc] ss:$36 sps:$4 sm:$0xff]   ;;  %v15299_v6 = vpack.c.bf16 %v5931_v12, %v5931_v12  ;;  %v9242_v27 = vpop.f32.mrb[117].mxu1  ;;  %v4014_v31 = vld [vmem:[#allocation2 + $0xb0] sm:$0xff] }
 0x2ff   :  { %9790 = vmatprep.mubr.bf16.mxu0 %v16741_v60  ;;  %6324 = vst [vmem:[#allocation3 + $0x4c4] sm:$0xf] %v15296_v63  ;;  %v14964_v60 = vpack.c.bf16 %v4012_v18, %v4012_v18  ;;  %v16750_v63 = vld [vmem:[#allocation3 + $0x878] ss:$36 sps:$4 sm:$0xff]   ;;  %4883 = vst [vmem:[#allocation3 + $0x278] sm:$0xf] %v15043_v5 }
 0x300   :  { %6327 = vst [vmem:[#allocation3 + $0x530] sm:$0xf] %v15299_v6  ;;  %6328 = vst [vmem:[#allocation3 + $0x554] sm:$0xf] %v15300_v57  ;;  %v18844_v59 = vpop.f32.mrb[118].mxu1  ;;  %v4489_v35 = vld [vmem:[#allocation2 + $0xb1] sm:$0xff] }
 0x301   :  { %4408 = vst [vmem:[#allocation3 + $0x274] sm:$0xf] %v14964_v60  ;;  %v16754_v19 = vld [vmem:[#allocation3 + $0x8c4] ss:$36 sps:$4 sm:$0xff]   ;;  %v15045_v12 = vpack.c.bf16 %v4489_v35, %v4489_v35  ;;  %v4015_v6 = vld [vmem:[#allocation2 + $0xb8] sm:$0xff]  ;;  %v4016_v57 = vld [vmem:[#allocation2 + $0xc0] sm:$0xff]  ;;  %v15047_v35 = vpack.c.bf16 %v4491_v44, %v4491_v44 }
 0x302   :  { %v4488_v60 = vld [vmem:[#allocation2 + $0xa9] sm:$0xff]  ;;  %v5936_v36 = vld [vmem:[#allocation2 + $0x173] sm:$0xff]  ;;  %v4024_v53 = vld [vmem:[#allocation2 + $0x100] sm:$0xff] }
 0x303   :  { %v5935_v14 = vld [vmem:[#allocation2 + $0x16b] sm:$0xff]  ;;  %v15044_v22 = vpack.c.bf16 %v4488_v60, %v4488_v60  ;;  %v15304_v5 = vpack.c.bf16 %v5936_v36, %v5936_v36  ;;  %4885 = vst [vmem:[#allocation3 + $0x2c0] sm:$0xf] %v15045_v12  ;;  %4887 = vst [vmem:[#allocation3 + $0x308] sm:$0xf] %v15047_v35  ;;  %v15312_v35 = vpack.c.bf16 %v5944_v38, %v5944_v38  ;;  %v4494_v38 = vld [vmem:[#allocation2 + $0xd9] sm:$0xff] }
 0x304   :  { %v15303_v27 = vpack.c.bf16 %v5935_v14, %v5935_v14  ;;  %v5940_v14 = vld [vmem:[#allocation2 + $0x193] sm:$0xff]  ;;  %v4017_v12 = vld [vmem:[#allocation2 + $0xc8] sm:$0xff]  ;;  %v16793_v32 = vld [vmem:[#allocation3 + $0xab4] ss:$36 sps:$4 sm:$0xff]  }
 0x305   :  { %9447 = vmatmul.mubr.bf16.gmra.mrb[220].mxu1 %v16743_v39  ;;  %v4013_v39 = vld [vmem:[#allocation2 + $0xa8] sm:$0xff]  ;;  %4884 = vst [vmem:[#allocation3 + $0x29c] sm:$0xf] %v15044_v22  ;;  %6332 = vst [vmem:[#allocation3 + $0x5e4] sm:$0xf] %v15304_v5  ;;  %v4018_v5 = vld [vmem:[#allocation2 + $0xd0] sm:$0xff]  ;;  %v14969_v44 = vpack.c.bf16 %v4017_v12, %v4017_v12 }
 0x306   :  { %9791 = vmatmul.mubr.bf16.gmra.mrb[176].mxu0 %v16744_v43  ;;  %9454 = vmatprep.mubr.bf16.mxu1 %v16745_v17  ;;  %v16752_v43 = vld [vmem:[#allocation3 + $0x904] ss:$36 sps:$4 sm:$0xff]   ;;  %v14965_v18 = vpack.c.bf16 %v4013_v39, %v4013_v39  ;;  %v9245_v17 = vpop.f32.mrb[119].mxu1  ;;  %6331 = vst [vmem:[#allocation3 + $0x5c0] sm:$0xf] %v15303_v27  ;;  %v14967_v39 = vpack.c.bf16 %v4015_v6, %v4015_v6  ;;  %v4498_v49 = vld [vmem:[#allocation2 + $0xf9] sm:$0xff] }
 0x307   :  { %9798 = vmatprep.mubr.bf16.mxu0 %v16747_v1  ;;  %v14966_v1 = vpack.c.bf16 %v4014_v31, %v4014_v31  ;;  %v14968_v31 = vpack.c.bf16 %v4016_v57, %v4016_v57  ;;  %v4490_v17 = vld [vmem:[#allocation2 + $0xb9] sm:$0xff]  ;;  %v16757_v22 = vld [vmem:[#allocation3 + $0x8c0] ss:$36 sps:$4 sm:$0xff]   ;;  %4413 = vst [vmem:[#allocation3 + $0x328] sm:$0xf] %v14969_v44  ;;  %v4521_v24 = vld [vmem:[#allocation2 + $0x1b1] sm:$0xff] }
 0x308   :  { %4409 = vst [vmem:[#allocation3 + $0x298] sm:$0xf] %v14965_v18  ;;  %v5939_v18 = vld [vmem:[#allocation2 + $0x18b] sm:$0xff]  ;;  %v15046_v60 = vpack.c.bf16 %v4490_v17, %v4490_v17  ;;  %4411 = vst [vmem:[#allocation3 + $0x2e0] sm:$0xf] %v14967_v39  ;;  %v14970_v17 = vpack.c.bf16 %v4018_v5, %v4018_v5  ;;  %v4519_v54 = vld [vmem:[#allocation2 + $0x1a1] sm:$0xff] }
 0x309   :  { %4410 = vst [vmem:[#allocation3 + $0x2bc] sm:$0xf] %v14966_v1  ;;  %4412 = vst [vmem:[#allocation3 + $0x304] sm:$0xf] %v14968_v31  ;;  %v15308_v1 = vpack.c.bf16 %v5940_v14, %v5940_v14  ;;  %v16758_v27 = vld [vmem:[#allocation3 + $0x94c] ss:$36 sps:$4 sm:$0xff]  }
 0x30a   :  { %4886 = vst [vmem:[#allocation3 + $0x2e4] sm:$0xf] %v15046_v60  ;;  %v16760_v57 = vld [vmem:[#allocation3 + $0x90c] ss:$36 sps:$4 sm:$0xff]   ;;  %4414 = vst [vmem:[#allocation3 + $0x34c] sm:$0xf] %v14970_v17 }
 0x30b   :  { %6336 = vst [vmem:[#allocation3 + $0x674] sm:$0xf] %v15308_v1  ;;  %v4493_v39 = vld [vmem:[#allocation2 + $0xd1] sm:$0xff]  ;;  %6340 = vst [vmem:[#allocation3 + $0x704] sm:$0xf] %v15312_v35  ;;  %v4020_v17 = vld [vmem:[#allocation2 + $0xe0] sm:$0xff] }
 0x30c   :  { %v15049_v14 = vpack.c.bf16 %v4493_v39, %v4493_v39  ;;  %v16762_v12 = vld [vmem:[#allocation3 + $0x948] ss:$36 sps:$4 sm:$0xff]   ;;  %v4052_v25 = vld [vmem:[#allocation2 + $0x1e0] sm:$0xff]  ;;  %v4061_v26 = vld [vmem:[#allocation2 + $0x228] sm:$0xff] }
 0x30d   :  { %9455 = vmatmul.mubr.bf16.gmra.mrb[224].mxu1 %v16749_v15  ;;  %v15307_v15 = vpack.c.bf16 %v5939_v18, %v5939_v18  ;;  %v4492_v18 = vld [vmem:[#allocation2 + $0xc9] sm:$0xff]  ;;  %v4526_v46 = vld [vmem:[#allocation2 + $0x1d9] sm:$0xff]  ;;  %v4535_v62 = vld [vmem:[#allocation2 + $0x221] sm:$0xff]  ;;  %v15013_v21 = vpack.c.bf16 %v4061_v26, %v4061_v26 }
 0x30e   :  { %9799 = vmatmul.mubr.bf16.gmra.mrb[180].mxu0 %v16750_v63  ;;  %9462 = vmatprep.mubr.bf16.mxu1 %v16752_v43  ;;  %v18846_v63 = vpop.f32.mrb[120].mxu1  ;;  %v15048_v31 = vpack.c.bf16 %v4492_v18, %v4492_v18  ;;  %4889 = vst [vmem:[#allocation3 + $0x350] sm:$0xf] %v15049_v14  ;;  %v16763_v5 = vld [vmem:[#allocation3 + $0x908] ss:$36 sps:$4 sm:$0xff]   ;;  %v4064_v26 = vld [vmem:[#allocation2 + $0x240] sm:$0xff] }
 0x30f   :  { %9806 = vmatprep.mubr.bf16.mxu0 %v16754_v19  ;;  %v9250_v43 = vpop.f32.mrb[121].mxu1  ;;  %v16756_v19 = vld [vmem:[#allocation3 + $0x900] ss:$36 sps:$4 sm:$0xff]   ;;  %6335 = vst [vmem:[#allocation3 + $0x650] sm:$0xf] %v15307_v15  ;;  %v4537_v47 = vld [vmem:[#allocation2 + $0x231] sm:$0xff] }
 0x310   :  { %v18848_v36 = vpop.f32.mrb[122].mxu1  ;;  %v5943_v43 = vld [vmem:[#allocation2 + $0x1ab] sm:$0xff]  ;;  %4888 = vst [vmem:[#allocation3 + $0x32c] sm:$0xf] %v15048_v31  ;;  %v16766_v18 = vld [vmem:[#allocation3 + $0x954] ss:$36 sps:$4 sm:$0xff]   ;;  %v15050_v31 = vpack.c.bf16 %v4494_v38, %v4494_v38 }
 0x311   :  { %v9253_v6 = vpop.f32.mrb[123].mxu1  ;;  %v15311_v60 = vpack.c.bf16 %v5943_v43, %v5943_v43  ;;  %v5947_v43 = vld [vmem:[#allocation2 + $0x1cb] sm:$0xff]  ;;  %4457 = vst [vmem:[#allocation3 + $0x958] sm:$0xf] %v15013_v21 }
 0x312   :  { %v18850_v15 = vpop.f32.mrb[124].mxu1  ;;  %v16764_v6 = vld [vmem:[#allocation3 + $0x994] ss:$36 sps:$4 sm:$0xff]   ;;  %v15315_v35 = vpack.c.bf16 %v5947_v43, %v5947_v43  ;;  %4890 = vst [vmem:[#allocation3 + $0x374] sm:$0xf] %v15050_v31  ;;  %v5951_v43 = vld [vmem:[#allocation2 + $0x1eb] sm:$0xff] }
 0x313   :  { %6339 = vst [vmem:[#allocation3 + $0x6e0] sm:$0xf] %v15311_v60  ;;  %v9258_v1 = vpop.f32.mrb[125].mxu1  ;;  %v5948_v60 = vld [vmem:[#allocation2 + $0x1d3] sm:$0xff]  ;;  %v5955_v41 = vld [vmem:[#allocation2 + $0x20b] sm:$0xff] }
 0x314   :  { %v18852_v44 = vpop.f32.mrb[126].mxu1  ;;  %v15316_v1 = vpack.c.bf16 %v5948_v60, %v5948_v60  ;;  %6343 = vst [vmem:[#allocation3 + $0x770] sm:$0xf] %v15315_v35  ;;  %v5952_v31 = vld [vmem:[#allocation2 + $0x1f3] sm:$0xff]  ;;  %v4536_v28 = vld [vmem:[#allocation2 + $0x229] sm:$0xff] }
 0x315   :  { %9463 = vmatmul.mubr.bf16.gmra.mrb[228].mxu1 %v16756_v19  ;;  %v4019_v19 = vld [vmem:[#allocation2 + $0xd8] sm:$0xff]  ;;  %v15320_v16 = vpack.c.bf16 %v5952_v31, %v5952_v31  ;;  %v16775_v31 = vld [vmem:[#allocation3 + $0x9d8] ss:$36 sps:$4 sm:$0xff]   ;;  %v5436_v10 = vld [vmem:[#allocation2 + $0xaa] sm:$0xff] }
 0x316   :  { %9807 = vmatmul.mubr.bf16.gmra.mrb[184].mxu0 %v16757_v22  ;;  %9470 = vmatprep.mubr.bf16.mxu1 %v16758_v27  ;;  %v9261_v22 = vpop.f32.mrb[127].mxu1  ;;  %v14971_v39 = vpack.c.bf16 %v4019_v19, %v4019_v19  ;;  %v4495_v27 = vld [vmem:[#allocation2 + $0xe1] sm:$0xff]  ;;  %6344 = vst [vmem:[#allocation3 + $0x794] sm:$0xf] %v15316_v1 }
 0x317   :  { %9814 = vmatprep.mubr.bf16.mxu0 %v16760_v57  ;;  %v14972_v57 = vpack.c.bf16 %v4020_v17, %v4020_v17  ;;  %v15051_v14 = vpack.c.bf16 %v4495_v27, %v4495_v27  ;;  %v18854_v19 = vpop.f32.mrb[128].mxu1  ;;  %v4021_v22 = vld [vmem:[#allocation2 + $0xe8] sm:$0xff]  ;;  %v4022_v17 = vld [vmem:[#allocation2 + $0xf0] sm:$0xff]  ;;  %v16769_v27 = vld [vmem:[#allocation3 + $0x990] ss:$36 sps:$4 sm:$0xff]  }
 0x318   :  { %4415 = vst [vmem:[#allocation3 + $0x370] sm:$0xf] %v14971_v39  ;;  %v9266_v38 = vpop.f32.mrb[129].mxu1  ;;  %v14973_v50 = vpack.c.bf16 %v4021_v22, %v4021_v22  ;;  %v4497_v39 = vld [vmem:[#allocation2 + $0xf1] sm:$0xff]  ;;  %v16773_v1 = vld [vmem:[#allocation3 + $0x99c] ss:$36 sps:$4 sm:$0xff]  }
 0x319   :  { %4416 = vst [vmem:[#allocation3 + $0x394] sm:$0xf] %v14972_v57  ;;  %4891 = vst [vmem:[#allocation3 + $0x398] sm:$0xf] %v15051_v14  ;;  %v18856_v60 = vpop.f32.mrb[130].mxu1  ;;  %v15053_v57 = vpack.c.bf16 %v4497_v39, %v4497_v39  ;;  %v15319_v14 = vpack.c.bf16 %v5951_v43, %v5951_v43  ;;  %v4023_v38 = vld [vmem:[#allocation2 + $0xf8] sm:$0xff]  ;;  %v15055_v39 = vpack.c.bf16 %v4499_v20, %v4499_v20 }
 0x31a   :  { %v9269_v35 = vpop.f32.mrb[131].mxu1  ;;  %4417 = vst [vmem:[#allocation3 + $0x3b8] sm:$0xf] %v14973_v50  ;;  %v14975_v22 = vpack.c.bf16 %v4023_v38, %v4023_v38  ;;  %6348 = vst [vmem:[#allocation3 + $0x824] sm:$0xf] %v15320_v16  ;;  %v15323_v43 = vpack.c.bf16 %v5955_v41, %v5955_v41  ;;  %v5956_v50 = vld [vmem:[#allocation2 + $0x213] sm:$0xff] }
 0x31b   :  { %4893 = vst [vmem:[#allocation3 + $0x3e0] sm:$0xf] %v15053_v57  ;;  %6347 = vst [vmem:[#allocation3 + $0x800] sm:$0xf] %v15319_v14  ;;  %v4501_v20 = vld [vmem:[#allocation2 + $0x111] sm:$0xff] }
 0x31c   :  { %4419 = vst [vmem:[#allocation3 + $0x400] sm:$0xf] %v14975_v22  ;;  %4895 = vst [vmem:[#allocation3 + $0x428] sm:$0xf] %v15055_v39  ;;  %v15057_v35 = vpack.c.bf16 %v4501_v20, %v4501_v20  ;;  %v5960_v38 = vld [vmem:[#allocation2 + $0x233] sm:$0xff] }
 0x31d   :  { %9471 = vmatmul.mubr.bf16.gmra.mrb[232].mxu1 %v16762_v12  ;;  %v14974_v12 = vpack.c.bf16 %v4022_v17, %v4022_v17  ;;  %v14976_v17 = vpack.c.bf16 %v4024_v53, %v4024_v53  ;;  %6351 = vst [vmem:[#allocation3 + $0x890] sm:$0xf] %v15323_v43  ;;  %v15324_v53 = vpack.c.bf16 %v5956_v50, %v5956_v50  ;;  %v16779_v43 = vld [vmem:[#allocation3 + $0x9e4] ss:$36 sps:$4 sm:$0xff]  }
 0x31e   :  { %9815 = vmatmul.mubr.bf16.gmra.mrb[188].mxu0 %v16763_v5  ;;  %9478 = vmatprep.mubr.bf16.mxu1 %v16764_v6  ;;  %v4496_v5 = vld [vmem:[#allocation2 + $0xe9] sm:$0xff]  ;;  %v15328_v39 = vpack.c.bf16 %v5960_v38, %v5960_v38  ;;  %4897 = vst [vmem:[#allocation3 + $0x470] sm:$0xf] %v15057_v35  ;;  %v4503_v38 = vld [vmem:[#allocation2 + $0x121] sm:$0xff]  ;;  %v5964_v35 = vld [vmem:[#allocation2 + $0x253] sm:$0xff] }
 0x31f   :  { %9822 = vmatprep.mubr.bf16.mxu0 %v16766_v18  ;;  %v16771_v6 = vld [vmem:[#allocation3 + $0x9dc] ss:$36 sps:$4 sm:$0xff]   ;;  %v15052_v18 = vpack.c.bf16 %v4496_v5, %v4496_v5  ;;  %4418 = vst [vmem:[#allocation3 + $0x3dc] sm:$0xf] %v14974_v12  ;;  %v15054_v5 = vpack.c.bf16 %v4498_v49, %v4498_v49  ;;  %4420 = vst [vmem:[#allocation3 + $0x424] sm:$0xf] %v14976_v17 }
 0x320   :  { %v18858_v12 = vpop.f32.mrb[132].mxu1  ;;  %v4500_v49 = vld [vmem:[#allocation2 + $0x109] sm:$0xff]  ;;  %6352 = vst [vmem:[#allocation3 + $0x8b4] sm:$0xf] %v15324_v53  ;;  %6356 = vst [vmem:[#allocation3 + $0x944] sm:$0xf] %v15328_v39  ;;  %v15332_v39 = vpack.c.bf16 %v5964_v35, %v5964_v35 }
 0x321   :  { %4892 = vst [vmem:[#allocation3 + $0x3bc] sm:$0xf] %v15052_v18  ;;  %4894 = vst [vmem:[#allocation3 + $0x404] sm:$0xf] %v15054_v5  ;;  %v4025_v18 = vld [vmem:[#allocation2 + $0x108] sm:$0xff]  ;;  %v9274_v57 = vpop.f32.mrb[133].mxu1  ;;  %v15056_v14 = vpack.c.bf16 %v4500_v49, %v4500_v49 }
 0x322   :  { %v14977_v16 = vpack.c.bf16 %v4025_v18, %v4025_v18  ;;  %v18860_v41 = vpop.f32.mrb[134].mxu1  ;;  %v16777_v17 = vld [vmem:[#allocation3 + $0xa24] ss:$36 sps:$4 sm:$0xff]   ;;  %v4027_v53 = vld [vmem:[#allocation2 + $0x118] sm:$0xff]  ;;  %v4028_v18 = vld [vmem:[#allocation2 + $0x120] sm:$0xff] }
 0x323   :  { %v9277_v22 = vpop.f32.mrb[135].mxu1  ;;  %4896 = vst [vmem:[#allocation3 + $0x44c] sm:$0xf] %v15056_v14  ;;  %v4502_v57 = vld [vmem:[#allocation2 + $0x119] sm:$0xff]  ;;  %v16781_v49 = vld [vmem:[#allocation3 + $0xa20] ss:$36 sps:$4 sm:$0xff]   ;;  %v14979_v20 = vpack.c.bf16 %v4027_v53, %v4027_v53 }
 0x324   :  { %4421 = vst [vmem:[#allocation3 + $0x448] sm:$0xf] %v14977_v16  ;;  %v18862_v50 = vpop.f32.mrb[136].mxu1  ;;  %v16782_v16 = vld [vmem:[#allocation3 + $0x9e0] ss:$36 sps:$4 sm:$0xff]  }
 0x325   :  { %9479 = vmatmul.mubr.bf16.gmra.mrb[236].mxu1 %v16769_v27  ;;  %v16776_v27 = vld [vmem:[#allocation3 + $0x998] ss:$36 sps:$4 sm:$0xff]   ;;  %4423 = vst [vmem:[#allocation3 + $0x490] sm:$0xf] %v14979_v20  ;;  %6360 = vst [vmem:[#allocation3 + $0x9d4] sm:$0xf] %v15332_v39 }
 0x326   :  { %9823 = vmatmul.mubr.bf16.gmra.mrb[192].mxu0 %v16770_v45  ;;  %9486 = vmatprep.mubr.bf16.mxu1 %v16771_v6  ;;  %v4026_v45 = vld [vmem:[#allocation2 + $0x110] sm:$0xff]  ;;  %v4029_v53 = vld [vmem:[#allocation2 + $0x128] sm:$0xff] }
 0x327   :  { %9830 = vmatprep.mubr.bf16.mxu0 %v16773_v1  ;;  %v14978_v6 = vpack.c.bf16 %v4026_v45, %v4026_v45  ;;  %v5959_v1 = vld [vmem:[#allocation2 + $0x22b] sm:$0xff]  ;;  %v9282_v45 = vpop.f32.mrb[137].mxu1 }
 0x328   :  { %v15327_v5 = vpack.c.bf16 %v5959_v1, %v5959_v1  ;;  %v14980_v1 = vpack.c.bf16 %v4028_v18, %v4028_v18  ;;  %v18864_v14 = vpop.f32.mrb[138].mxu1  ;;  %v4030_v18 = vld [vmem:[#allocation2 + $0x130] sm:$0xff]  ;;  %v14981_v45 = vpack.c.bf16 %v4029_v53, %v4029_v53 }
 0x329   :  { %4422 = vst [vmem:[#allocation3 + $0x46c] sm:$0xf] %v14978_v6  ;;  %v15058_v6 = vpack.c.bf16 %v4502_v57, %v4502_v57  ;;  %v9285_v22 = vpop.f32.mrb[139].mxu1  ;;  %v4504_v57 = vld [vmem:[#allocation2 + $0x129] sm:$0xff] }
 0x32a   :  { %6355 = vst [vmem:[#allocation3 + $0x920] sm:$0xf] %v15327_v5  ;;  %4424 = vst [vmem:[#allocation3 + $0x4b4] sm:$0xf] %v14980_v1  ;;  %v4505_v22 = vld [vmem:[#allocation2 + $0x131] sm:$0xff]  ;;  %v15060_v8 = vpack.c.bf16 %v4504_v57, %v4504_v57  ;;  %v4507_v57 = vld [vmem:[#allocation2 + $0x141] sm:$0xff] }
 0x32b   :  { %4898 = vst [vmem:[#allocation3 + $0x494] sm:$0xf] %v15058_v6  ;;  %v5967_v20 = vld [vmem:[#allocation2 + $0x26b] sm:$0xff]  ;;  %v5968_v1 = vld [vmem:[#allocation2 + $0x273] sm:$0xff]  ;;  %v18866_v6 = vpop.f32.mrb[140].mxu1 }
 0x32c   :  { %v15335_v35 = vpack.c.bf16 %v5967_v20, %v5967_v20  ;;  %4425 = vst [vmem:[#allocation3 + $0x4d8] sm:$0xf] %v14981_v45  ;;  %4900 = vst [vmem:[#allocation3 + $0x4dc] sm:$0xf] %v15060_v8  ;;  %v5972_v8 = vld [vmem:[#allocation2 + $0x293] sm:$0xff] }
 0x32d   :  { %9487 = vmatmul.mubr.bf16.gmra.mrb[240].mxu1 %v16775_v31  ;;  %v15059_v31 = vpack.c.bf16 %v4503_v38, %v4503_v38  ;;  %v14982_v38 = vpack.c.bf16 %v4030_v18, %v4030_v18 }
 0x32e   :  { %9831 = vmatmul.mubr.bf16.gmra.mrb[196].mxu0 %v16776_v27  ;;  %9494 = vmatprep.mubr.bf16.mxu1 %v16777_v17  ;;  %v5963_v27 = vld [vmem:[#allocation2 + $0x24b] sm:$0xff]  ;;  %v16785_v17 = vld [vmem:[#allocation3 + $0xa6c] ss:$36 sps:$4 sm:$0xff]   ;;  %6363 = vst [vmem:[#allocation3 + $0xa40] sm:$0xf] %v15335_v35 }
 0x32f   :  { %9838 = vmatprep.mubr.bf16.mxu0 %v16779_v43  ;;  %v15331_v5 = vpack.c.bf16 %v5963_v27, %v5963_v27  ;;  %v16787_v43 = vld [vmem:[#allocation3 + $0xa2c] ss:$36 sps:$4 sm:$0xff]   ;;  %4899 = vst [vmem:[#allocation3 + $0x4b8] sm:$0xf] %v15059_v31  ;;  %v15061_v27 = vpack.c.bf16 %v4505_v22, %v4505_v22  ;;  %v15336_v31 = vpack.c.bf16 %v5968_v1, %v5968_v1  ;;  %4426 = vst [vmem:[#allocation3 + $0x4fc] sm:$0xf] %v14982_v38 }
 0x330   :  { %v5971_v22 = vld [vmem:[#allocation2 + $0x28b] sm:$0xff]  ;;  %v16795_v38 = vld [vmem:[#allocation3 + $0xa74] ss:$36 sps:$4 sm:$0xff]  }
 0x331   :  { %6359 = vst [vmem:[#allocation3 + $0x9b0] sm:$0xf] %v15331_v5  ;;  %v16790_v5 = vld [vmem:[#allocation3 + $0xa68] ss:$36 sps:$4 sm:$0xff]   ;;  %4901 = vst [vmem:[#allocation3 + $0x500] sm:$0xf] %v15061_v27  ;;  %v15339_v45 = vpack.c.bf16 %v5971_v22, %v5971_v22 }
 0x332   :  { %6364 = vst [vmem:[#allocation3 + $0xa64] sm:$0xf] %v15336_v31  ;;  %v16791_v1 = vld [vmem:[#allocation3 + $0xa28] ss:$36 sps:$4 sm:$0xff]   ;;  %v4033_v27 = vld [vmem:[#allocation2 + $0x148] sm:$0xff]  ;;  %v15340_v31 = vpack.c.bf16 %v5972_v8, %v5972_v8 }
 0x333   :  { %6367 = vst [vmem:[#allocation3 + $0xad0] sm:$0xf] %v15339_v45  ;;  %v4034_v35 = vld [vmem:[#allocation2 + $0x150] sm:$0xff] }
 0x334   :  { %6368 = vst [vmem:[#allocation3 + $0xaf4] sm:$0xf] %v15340_v31  ;;  %v4038_v8 = vld [vmem:[#allocation2 + $0x170] sm:$0xff] }
 0x335   :  { %9495 = vmatmul.mubr.bf16.gmra.mrb[244].mxu1 %v16781_v49  ;;  %v4031_v49 = vld [vmem:[#allocation2 + $0x138] sm:$0xff]  ;;  %v4512_v31 = vld [vmem:[#allocation2 + $0x169] sm:$0xff] }
 0x336   :  { %9839 = vmatmul.mubr.bf16.gmra.mrb[200].mxu0 %v16782_v16  ;;  %9502 = vmatprep.mubr.bf16.mxu1 %v16785_v17  ;;  %v9290_v16 = vpop.f32.mrb[141].mxu1  ;;  %v4032_v17 = vld [vmem:[#allocation2 + $0x140] sm:$0xff]  ;;  %v14983_v39 = vpack.c.bf16 %v4031_v49, %v4031_v49  ;;  %v14985_v49 = vpack.c.bf16 %v4033_v27, %v4033_v27 }
 0x337   :  { %9846 = vmatprep.mubr.bf16.mxu0 %v16787_v43  ;;  %v4506_v43 = vld [vmem:[#allocation2 + $0x139] sm:$0xff]  ;;  %v18868_v53 = vpop.f32.mrb[142].mxu1  ;;  %v14984_v18 = vpack.c.bf16 %v4032_v17, %v4032_v17  ;;  %v15063_v16 = vpack.c.bf16 %v4507_v57, %v4507_v57  ;;  %v14986_v17 = vpack.c.bf16 %v4034_v35, %v4034_v35 }
 0x338   :  { %v15062_v55 = vpack.c.bf16 %v4506_v43, %v4506_v43  ;;  %v9293_v20 = vpop.f32.mrb[143].mxu1  ;;  %4427 = vst [vmem:[#allocation3 + $0x520] sm:$0xf] %v14983_v39  ;;  %v4508_v43 = vld [vmem:[#allocation2 + $0x149] sm:$0xff]  ;;  %v4035_v39 = vld [vmem:[#allocation2 + $0x158] sm:$0xff]  ;;  %v6760_v35 = vld [vmem:[#allocation3 + $0xaf8] sm:$0xff] }
 0x339   :  { %4428 = vst [vmem:[#allocation3 + $0x544] sm:$0xf] %v14984_v18  ;;  %4903 = vst [vmem:[#allocation3 + $0x548] sm:$0xf] %v15063_v16  ;;  %v4509_v20 = vld [vmem:[#allocation2 + $0x151] sm:$0xff]  ;;  %v15064_v57 = vpack.c.bf16 %v4508_v43, %v4508_v43  ;;  %v14987_v18 = vpack.c.bf16 %v4035_v39, %v4035_v39  ;;  %v14988_v16 = vpack.c.bf16 %v4036_v34, %v4036_v34 }
 0x33a   :  { %4902 = vst [vmem:[#allocation3 + $0x524] sm:$0xf] %v15062_v55  ;;  %v15065_v22 = vpack.c.bf16 %v4509_v20, %v4509_v20  ;;  %v4510_v55 = vld [vmem:[#allocation2 + $0x159] sm:$0xff]  ;;  %4429 = vst [vmem:[#allocation3 + $0x568] sm:$0xf] %v14985_v49  ;;  %v14990_v20 = vpack.c.bf16 %v4038_v8, %v4038_v8 }
 0x33b   :  { %4430 = vst [vmem:[#allocation3 + $0x58c] sm:$0xf] %v14986_v17  ;;  %4904 = vst [vmem:[#allocation3 + $0x56c] sm:$0xf] %v15064_v57  ;;  %v16798_v17 = vld [vmem:[#allocation3 + $0xab0] ss:$36 sps:$4 sm:$0xff]  }
 0x33c   :  { %4905 = vst [vmem:[#allocation3 + $0x590] sm:$0xf] %v15065_v22  ;;  %4431 = vst [vmem:[#allocation3 + $0x5b0] sm:$0xf] %v14987_v18  ;;  %v16799_v34 = vld [vmem:[#allocation3 + $0xa70] ss:$36 sps:$4 sm:$0xff]  }
 0x33d   :  { %9503 = vmatmul.mubr.bf16.gmra.mrb[248].mxu1 %v16790_v5  ;;  %v4511_v5 = vld [vmem:[#allocation2 + $0x161] sm:$0xff]  ;;  %4432 = vst [vmem:[#allocation3 + $0x5d4] sm:$0xf] %v14988_v16  ;;  %4434 = vst [vmem:[#allocation3 + $0x61c] sm:$0xf] %v14990_v20  ;;  %v4513_v57 = vld [vmem:[#allocation2 + $0x171] sm:$0xff] }
 0x33e   :  { %9847 = vmatmul.mubr.bf16.gmra.mrb[204].mxu0 %v16791_v1  ;;  %9510 = vmatprep.mubr.bf16.mxu1 %v16793_v32  ;;  %v18870_v1 = vpop.f32.mrb[144].mxu1  ;;  %v15066_v32 = vpack.c.bf16 %v4510_v55, %v4510_v55  ;;  %v15067_v45 = vpack.c.bf16 %v4511_v5, %v4511_v5  ;;  %v15068_v55 = vpack.c.bf16 %v4512_v31, %v4512_v31  ;;  %v4039_v22 = vld [vmem:[#allocation2 + $0x178] sm:$0xff]  ;;  %v4040_v16 = vld [vmem:[#allocation2 + $0x180] sm:$0xff] }
 0x33f   :  { %9854 = vmatprep.mubr.bf16.mxu0 %v16795_v38  ;;  %v4037_v38 = vld [vmem:[#allocation2 + $0x168] sm:$0xff]  ;;  %v9298_v27 = vpop.f32.mrb[145].mxu1  ;;  %v14413_v5 = vcombine.high %v6760_v35, %v6760_v35  ;;  %v15069_v18 = vpack.c.bf16 %v4513_v57, %v4513_v57  ;;  %v14992_v8 = vpack.c.bf16 %v4040_v16, %v4040_v16  ;;  %v4042_v57 = vld [vmem:[#allocation2 + $0x190] sm:$0xff] }
 0x340   :  { %v14989_v43 = vpack.c.bf16 %v4037_v38, %v4037_v38  ;;  %v18872_v39 = vpop.f32.mrb[146].mxu1  ;;  %4906 = vst [vmem:[#allocation3 + $0x5b4] sm:$0xf] %v15066_v32  ;;  %4907 = vst [vmem:[#allocation3 + $0x5d8] sm:$0xf] %v15067_v45  ;;  %v14991_v32 = vpack.c.bf16 %v4039_v22, %v4039_v22  ;;  %v4514_v45 = vld [vmem:[#allocation2 + $0x179] sm:$0xff]  ;;  %v14412_v22 = vcombine.low %v6760_v35, %v6760_v35 }
 0x341   :  { %v9301_v49 = vpop.f32.mrb[147].mxu1  ;;  %v16803_v27 = vld [vmem:[#allocation3 + $0xabc] ss:$36 sps:$4 sm:$0xff]   ;;  %4908 = vst [vmem:[#allocation3 + $0x5fc] sm:$0xf] %v15068_v55 }
 0x342   :  { %4433 = vst [vmem:[#allocation3 + $0x5f8] sm:$0xf] %v14989_v43  ;;  %v4515_v38 = vld [vmem:[#allocation2 + $0x181] sm:$0xff]  ;;  %v15070_v49 = vpack.c.bf16 %v4514_v45, %v4514_v45  ;;  %v18874_v20 = vpop.f32.mrb[148].mxu1  ;;  %4909 = vst [vmem:[#allocation3 + $0x620] sm:$0xf] %v15069_v18  ;;  %v14994_v45 = vpack.c.bf16 %v4042_v57, %v4042_v57  ;;  %v15075_v57 = vpack.c.bf16 %v4519_v54, %v4519_v54 }
 0x343   :  { %v15071_v11 = vpack.c.bf16 %v4515_v38, %v4515_v38  ;;  %v4041_v43 = vld [vmem:[#allocation2 + $0x188] sm:$0xff]  ;;  %20502 = vst [vmem:[#allocation164_spill] sm:$0xff] %v18874_v20  ;;  %4435 = vst [vmem:[#allocation3 + $0x640] sm:$0xf] %v14991_v32  ;;  %v4043_v18 = vld [vmem:[#allocation2 + $0x198] sm:$0xff] }
 0x344   :  { %v14993_v31 = vpack.c.bf16 %v4041_v43, %v4041_v43  ;;  %4436 = vst [vmem:[#allocation3 + $0x664] sm:$0xf] %v14992_v8  ;;  %4910 = vst [vmem:[#allocation3 + $0x644] sm:$0xf] %v15070_v49  ;;  %v4516_v38 = vld [vmem:[#allocation2 + $0x189] sm:$0xff]  ;;  %v4044_v8 = vld [vmem:[#allocation2 + $0x1a0] sm:$0xff]  ;;  %v14995_v49 = vpack.c.bf16 %v4043_v18, %v4043_v18 }
 0x345   :  { %9511 = vmatmul.mubr.bf16.gmra.mrb[252].mxu1 %v16798_v17  ;;  %v9306_v17 = vpop.f32.mrb[149].mxu1  ;;  %4911 = vst [vmem:[#allocation3 + $0x668] sm:$0xf] %v15071_v11  ;;  %v15072_v43 = vpack.c.bf16 %v4516_v38, %v4516_v38  ;;  %v4518_v11 = vld [vmem:[#allocation2 + $0x199] sm:$0xff]  ;;  %4438 = vst [vmem:[#allocation3 + $0x6ac] sm:$0xf] %v14994_v45  ;;  %v14996_v4 = vpack.c.bf16 %v4044_v8, %v4044_v8 }
 0x346   :  { %9855 = vmatmul.mubr.bf16.gmra.mrb[208].mxu0 %v16799_v34  ;;  %9518 = vmatprep.mubr.bf16.mxu1 %v14413_v5  ;;  %v18876_v34 = vld [vmem:[#allocation3 + $0xb00] sm:$0xff]  ;;  %v18878_v55 = vpop.f32.mrb[150].mxu1  ;;  %v16807_v5 = vld [vmem:[#allocation3 + $0xab8] ss:$36 sps:$4 sm:$0xff]   ;;  %4437 = vst [vmem:[#allocation3 + $0x688] sm:$0xf] %v14993_v31  ;;  %v15073_v17 = vpack.c.bf16 %v4517_v30, %v4517_v30  ;;  %v15074_v31 = vpack.c.bf16 %v4518_v11, %v4518_v11 }
 0x347   :  { %9862 = vmatprep.mubr.bf16.mxu0 %v16803_v27  ;;  %20503 = vst [vmem:[#allocation165_spill] sm:$0xff] %v18878_v55  ;;  %v16810_v27 = vld [vmem:[#allocation3 + $0x20] ss:$36 sps:$4 sm:$0xff]   ;;  %v9309_v16 = vpop.f32.mrb[151].mxu1  ;;  %v14415_v32 = vcombine.high %v18876_v34, %v18876_v34  ;;  %4912 = vst [vmem:[#allocation3 + $0x68c] sm:$0xf] %v15072_v43 }
 0x348   :  { %v4045_v35 = vld [vmem:[#allocation2 + $0x1a8] sm:$0xff]  ;;  %v4046_v16 = vld [vmem:[#allocation2 + $0x1b0] sm:$0xff]  ;;  %4913 = vst [vmem:[#allocation3 + $0x6b0] sm:$0xf] %v15073_v17  ;;  %4439 = vst [vmem:[#allocation3 + $0x6d0] sm:$0xf] %v14995_v49 }
 0x349   :  { %v14997_v56 = vpack.c.bf16 %v4045_v35, %v4045_v35  ;;  %v14998_v38 = vpack.c.bf16 %v4046_v16, %v4046_v16  ;;  %v4520_v30 = vld [vmem:[#allocation2 + $0x1a9] sm:$0xff]  ;;  %v4047_v18 = vld [vmem:[#allocation2 + $0x1b8] sm:$0xff]  ;;  %4440 = vst [vmem:[#allocation3 + $0x6f4] sm:$0xf] %v14996_v4  ;;  %4914 = vst [vmem:[#allocation3 + $0x6d4] sm:$0xf] %v15074_v31 }
 0x34a   :  { %v14999_v45 = vpack.c.bf16 %v4047_v18, %v4047_v18  ;;  %v18882_v8 = vpop.f32.mrb[152].mxu1  ;;  %4915 = vst [vmem:[#allocation3 + $0x6f8] sm:$0xf] %v15075_v57  ;;  %v4048_v54 = vld [vmem:[#allocation2 + $0x1c0] sm:$0xff]  ;;  %v16817_v4 = vld [vmem:[#allocation3 + $0xb0] ss:$36 sps:$4 sm:$0xff]  }
 0x34b   :  { %20504 = vst [vmem:[#allocation166_spill] sm:$0xff] %v18882_v8  ;;  %4441 = vst [vmem:[#allocation3 + $0x718] sm:$0xf] %v14997_v56  ;;  %v4522_v43 = vld [vmem:[#allocation2 + $0x1b9] sm:$0xff]  ;;  %v15000_v11 = vpack.c.bf16 %v4048_v54, %v4048_v54  ;;  %v4523_v31 = vld [vmem:[#allocation2 + $0x1c1] sm:$0xff]  ;;  %v14414_v56 = vcombine.low %v18876_v34, %v18876_v34  ;;  %v15004_v34 = vpack.c.bf16 %v4052_v25, %v4052_v25 }
 0x34c   :  { %4442 = vst [vmem:[#allocation3 + $0x73c] sm:$0xf] %v14998_v38  ;;  %4443 = vst [vmem:[#allocation3 + $0x760] sm:$0xf] %v14999_v45  ;;  %v16816_v49 = vld [vmem:[#allocation3 + $0x14] ss:$36 sps:$4 sm:$0xff]   ;;  %v15079_v57 = vpack.c.bf16 %v4523_v31, %v4523_v31  ;;  %v15082_v31 = vpack.c.bf16 %v4526_v46, %v4526_v46 }
 0x34d   :  { %9519 = vmatmul.mubr.bf16.gmra.mrb[0].mxu1 %v14412_v22  ;;  %v15077_v22 = vpack.c.bf16 %v4521_v24, %v4521_v24  ;;  %v15078_v24 = vpack.c.bf16 %v4522_v43, %v4522_v43  ;;  %v4049_v35 = vld [vmem:[#allocation2 + $0x1c8] sm:$0xff]  ;;  %v4050_v16 = vld [vmem:[#allocation2 + $0x1d0] sm:$0xff]  ;;  %v4051_v45 = vld [vmem:[#allocation2 + $0x1d8] sm:$0xff]  ;;  %4444 = vst [vmem:[#allocation3 + $0x784] sm:$0xf] %v15000_v11 }
 0x34e   :  { %9863 = vmatmul.mubr.bf16.gmra.mrb[212].mxu0 %v16807_v5  ;;  %15812 = vmatprep.mubr.bf16.mxu1 %v16810_v27  ;;  %v15076_v5 = vpack.c.bf16 %v4520_v30, %v4520_v30  ;;  %v9314_v27 = vpop.f32.mrb[153].mxu1  ;;  %v15001_v38 = vpack.c.bf16 %v4049_v35, %v4049_v35  ;;  %v15002_v18 = vpack.c.bf16 %v4050_v16, %v4050_v16  ;;  %v4527_v43 = vld [vmem:[#allocation2 + $0x1e1] sm:$0xff]  ;;  %v4054_v46 = vld [vmem:[#allocation2 + $0x1f0] sm:$0xff] }
 0x34f   :  { %9870 = vmatprep.mubr.bf16.mxu0 %v14415_v32  ;;  %v16813_v32 = vld [vmem:[#allocation3 + $0x68] ss:$36 sps:$4 sm:$0xff]   ;;  %4917 = vst [vmem:[#allocation3 + $0x740] sm:$0xf] %v15077_v22  ;;  %v18884_v17 = vpop.f32.mrb[154].mxu1  ;;  %v15003_v54 = vpack.c.bf16 %v4051_v45, %v4051_v45  ;;  %v15083_v35 = vpack.c.bf16 %v4527_v43, %v4527_v43  ;;  %v4053_v25 = vld [vmem:[#allocation2 + $0x1e8] sm:$0xff] }
 0x350   :  { %4916 = vst [vmem:[#allocation3 + $0x71c] sm:$0xf] %v15076_v5  ;;  %20505 = vst [vmem:[#allocation167_spill] sm:$0xff] %v18884_v17  ;;  %v9317_v30 = vpop.f32.mrb[155].mxu1  ;;  %v4524_v5 = vld [vmem:[#allocation2 + $0x1c9] sm:$0xff]  ;;  %v4525_v22 = vld [vmem:[#allocation2 + $0x1d1] sm:$0xff] }
 0x351   :  { %4918 = vst [vmem:[#allocation3 + $0x764] sm:$0xf] %v15078_v24  ;;  %v15080_v27 = vpack.c.bf16 %v4524_v5, %v4524_v5  ;;  %v15081_v40 = vpack.c.bf16 %v4525_v22, %v4525_v22  ;;  %4919 = vst [vmem:[#allocation3 + $0x788] sm:$0xf] %v15079_v57  ;;  %v18888_v11 = vpop.f32.mrb[156].mxu1  ;;  %v4529_v57 = vld [vmem:[#allocation2 + $0x1f1] sm:$0xff] }
 0x352   :  { %4445 = vst [vmem:[#allocation3 + $0x7a8] sm:$0xf] %v15001_v38  ;;  %4446 = vst [vmem:[#allocation3 + $0x7cc] sm:$0xf] %v15002_v18  ;;  %v16814_v24 = vld [vmem:[#allocation3 + $0x10] ss:$36 sps:$4 sm:$0xff]   ;;  %v15085_v22 = vpack.c.bf16 %v4529_v57, %v4529_v57 }
 0x353   :  { %4920 = vst [vmem:[#allocation3 + $0x7ac] sm:$0xf] %v15080_v27  ;;  %4921 = vst [vmem:[#allocation3 + $0x7d0] sm:$0xf] %v15081_v40  ;;  %v9322_v16 = vpop.f32.mrb[157].mxu1  ;;  %v4528_v40 = vld [vmem:[#allocation2 + $0x1e9] sm:$0xff] }
 0x354   :  { %4447 = vst [vmem:[#allocation3 + $0x7f0] sm:$0xf] %v15003_v54  ;;  %4448 = vst [vmem:[#allocation3 + $0x814] sm:$0xf] %v15004_v34  ;;  %v16819_v30 = vld [vmem:[#allocation3 + $0xf8] ss:$36 sps:$4 sm:$0xff]   ;;  %v15084_v5 = vpack.c.bf16 %v4528_v40, %v4528_v40 }
 0x355   :  { %15813 = vmatmul.mubr.bf16.vlgmr.msra.gmra.mrb[4].mxu1 %v16813_v32  ;;  %4922 = vst [vmem:[#allocation3 + $0x7f4] sm:$0xf] %v15082_v31  ;;  %4923 = vst [vmem:[#allocation3 + $0x818] sm:$0xf] %v15083_v35  ;;  %v16818_v32 = vld [vmem:[%s20104_s6 + $0x180] sm:$0xff]   ;;  %v4055_v38 = vld [vmem:[#allocation2 + $0x1f8] sm:$0xff] }
 0x356   :  { %9871 = vmatmul.mubr.bf16.gmra.mrb[216].mxu0 %v14414_v56  ;;  %15816 = vmatprep.mubr.bf16.mxu1 %v16817_v4  ;;  %20506 = vst [vmem:[#allocation168_spill] sm:$0xff] %v18888_v11  ;;  %v18893_v56 = vpop.f32.mrb[158].mxu1  ;;  %v15006_v4 = vpack.c.bf16 %v4054_v46, %v4054_v46  ;;  %v4056_v45 = vld [vmem:[#allocation2 + $0x200] sm:$0xff]  ;;  %v15007_v27 = vpack.c.bf16 %v4055_v38, %v4055_v38  ;;  %v16822_v35 = vld [vmem:[#allocation3 + $0x140] ss:$36 sps:$4 sm:$0xff]   ;;  %v16845_v38 = vld [vmem:[%s20104_s6 + $0x190] sm:$0xff]  }
 0x357   :  { %9910 = vmatprep.mubr.bf16.mxu0 %v16816_v49  ;;  %20507 = vst [vmem:[#allocation169_spill] sm:$0xff] %v18893_v56  ;;  %v15005_v49 = vpack.c.bf16 %v4053_v25, %v4053_v25  ;;  %v9325_v18 = vpop.f32.mrb[159].mxu1  ;;  %v4530_v54 = vld [vmem:[#allocation2 + $0x1f9] sm:$0xff]  ;;  %v16820_v43 = vld [vmem:[#allocation3 + $0x5c] ss:$36 sps:$4 sm:$0xff]   ;;  %v15008_v34 = vpack.c.bf16 %v4056_v45, %v4056_v45 }
 0x358   :  { %4450 = vst [vmem:[#allocation3 + $0x85c] sm:$0xf] %v15006_v4  ;;  %v15086_v31 = vpack.c.bf16 %v4530_v54, %v4530_v54  ;;  %4924 = vst [vmem:[#allocation3 + $0x83c] sm:$0xf] %v15084_v5  ;;  %v16833_v16 = vld [vmem:[%s20104_s6 + $0x188] sm:$0xff]   ;;  %v18899_v46 = vpop.f32.mrb[160].mxu1 }
 0x359   :  { %4449 = vst [vmem:[#allocation3 + $0x838] sm:$0xf] %v15005_v49  ;;  %4925 = vst [vmem:[#allocation3 + $0x860] sm:$0xf] %v15085_v22  ;;  %v4531_v25 = vld [vmem:[#allocation2 + $0x201] sm:$0xff]  ;;  %v4058_v49 = vld [vmem:[#allocation2 + $0x210] sm:$0xff] }
 0x35a   :  { %4451 = vst [vmem:[#allocation3 + $0x880] sm:$0xf] %v15007_v27  ;;  %4452 = vst [vmem:[#allocation3 + $0x8a4] sm:$0xf] %v15008_v34  ;;  %v4532_v4 = vld [vmem:[#allocation2 + $0x209] sm:$0xff]  ;;  %v9330_v40 = vpop.f32.mrb[161].mxu1  ;;  %v15010_v5 = vpack.c.bf16 %v4058_v49, %v4058_v49  ;;  %v15091_v49 = vpack.c.bf16 %v4535_v62, %v4535_v62 }
 0x35b   :  { %4926 = vst [vmem:[#allocation3 + $0x884] sm:$0xf] %v15086_v31  ;;  %20508 = vst [vmem:[#allocation170_spill] sm:$0xff] %v18899_v46  ;;  %v16823_v57 = vld [vmem:[#allocation3 + $0x58] ss:$36 sps:$4 sm:$0xff]   ;;  %v4533_v22 = vld [vmem:[#allocation2 + $0x211] sm:$0xff]  ;;  %v15088_v45 = vpack.c.bf16 %v4532_v4, %v4532_v4 }
 0x35c   :  { %v4059_v27 = vld [vmem:[#allocation2 + $0x218] sm:$0xff]  ;;  %v4060_v54 = vld [vmem:[#allocation2 + $0x220] sm:$0xff]  ;;  %v16825_v34 = vld [vmem:[#allocation3 + $0xa4] ss:$36 sps:$4 sm:$0xff]   ;;  %v15089_v31 = vpack.c.bf16 %v4533_v22, %v4533_v22  ;;  %4454 = vst [vmem:[#allocation3 + $0x8ec] sm:$0xf] %v15010_v5  ;;  %v15092_v22 = vpack.c.bf16 %v4536_v28, %v4536_v28 }
 0x35d   :  { %15817 = vmatmul.mubr.bf16.gmra.mrb[8].mxu1 %v16819_v30  ;;  %v4057_v30 = vld [vmem:[#allocation2 + $0x208] sm:$0xff]  ;;  %v4534_v40 = vld [vmem:[#allocation2 + $0x219] sm:$0xff]  ;;  %4928 = vst [vmem:[#allocation3 + $0x8cc] sm:$0xf] %v15088_v45  ;;  %v4062_v4 = vld [vmem:[#allocation2 + $0x230] sm:$0xff] }
 0x35e   :  { %9911 = vmatmul.mubr.bf16.vlgmr.msra.gmra.mrb[60].mxu0 %v16814_v24  ;;  %15820 = vmatprep.mubr.bf16.mxu1 %v16822_v35  ;;  %v15087_v24 = vpack.c.bf16 %v4531_v25, %v4531_v25  ;;  %v15009_v18 = vpack.c.bf16 %v4057_v30, %v4057_v30  ;;  %v15011_v35 = vpack.c.bf16 %v4059_v27, %v4059_v27  ;;  %v4063_v62 = vld [vmem:[#allocation2 + $0x238] sm:$0xff]  ;;  %v4539_v28 = vld [vmem:[#allocation2 + $0x241] sm:$0xff] }
 0x35f   :  { %10231 = vmatpush1.bf16.msra.mxu0 %v16818_v32  ;;  %9918 = vmatprep.mubr.bf16.mxu0 %v16820_v43  ;;  %v16824_v32 = vld [vmem:[#allocation3 + $0x188] ss:$36 sps:$4 sm:$0xff]   ;;  %v18904_v43 = vpop.f32.mrb[162].mxu1  ;;  %v15012_v25 = vpack.c.bf16 %v4060_v54, %v4060_v54  ;;  %v15090_v30 = vpack.c.bf16 %v4534_v40, %v4534_v40  ;;  %4929 = vst [vmem:[#allocation3 + $0x8f0] sm:$0xf] %v15089_v31  ;;  %v4538_v5 = vld [vmem:[#allocation2 + $0x239] sm:$0xff] }
 0x360   :  { %10232 = vmatprep.subr.bf16.mxu0 %v20379_v2  ;;  %20509 = vst [vmem:[#allocation171_spill] sm:$0xff] %v18904_v43  ;;  %4927 = vst [vmem:[#allocation3 + $0x8a8] sm:$0xf] %v15087_v24  ;;  %v9333_v23 = vpop.f32.mrb[163].mxu1  ;;  %v15014_v24 = vpack.c.bf16 %v4062_v4, %v4062_v4  ;;  %v15093_v27 = vpack.c.bf16 %v4537_v47, %v4537_v47  ;;  %v15016_v47 = vpack.c.bf16 %v4064_v26, %v4064_v26  ;;  %v4065_v45 = vld [vmem:[#allocation2 + $0x248] sm:$0xff]  ;;  %v4066_v54 = vld [vmem:[#allocation2 + $0x250] sm:$0xff] }
 0x361   :  { %4453 = vst [vmem:[#allocation3 + $0x8c8] sm:$0xf] %v15009_v18  ;;  %4455 = vst [vmem:[#allocation3 + $0x910] sm:$0xf] %v15011_v35  ;;  %v16860_v23 = vld [vmem:[%s20104_s6 + $0x198] sm:$0xff]   ;;  %v15015_v18 = vpack.c.bf16 %v4063_v62, %v4063_v62  ;;  %v4540_v31 = vld [vmem:[#allocation2 + $0x249] sm:$0xff]  ;;  %v15017_v21 = vpack.c.bf16 %v4065_v45, %v4065_v45 }
 0x362   :  { %4456 = vst [vmem:[#allocation3 + $0x934] sm:$0xf] %v15012_v25  ;;  %4930 = vst [vmem:[#allocation3 + $0x914] sm:$0xf] %v15090_v30  ;;  %v18910_v35 = vpop.f32.mrb[164].mxu1  ;;  %v4541_v25 = vld [vmem:[#allocation2 + $0x251] sm:$0xff]  ;;  %v15096_v40 = vpack.c.bf16 %v4540_v31, %v4540_v31 }
 0x363   :  { %10233 = vmatpush1.bf16.msra.mxu0 %v16833_v16  ;;  %v16827_v16 = vld [vmem:[#allocation3 + $0x1d0] ss:$36 sps:$4 sm:$0xff]   ;;  %4931 = vst [vmem:[#allocation3 + $0x938] sm:$0xf] %v15091_v49  ;;  %4458 = vst [vmem:[#allocation3 + $0x97c] sm:$0xf] %v15014_v24 }
 0x364   :  { %10234 = vmatprep.subr.bf16.mxu0 %v20379_v2  ;;  %4932 = vst [vmem:[#allocation3 + $0x95c] sm:$0xf] %v15092_v22  ;;  %4933 = vst [vmem:[#allocation3 + $0x980] sm:$0xf] %v15093_v27  ;;  %v4067_v30 = vld [vmem:[#allocation2 + $0x258] sm:$0xff]  ;;  %v4068_v49 = vld [vmem:[#allocation2 + $0x260] sm:$0xff] }
 0x365   :  { %15821 = vmatmul.mubr.bf16.gmra.mrb[12].mxu1 %v16824_v32  ;;  %v15095_v32 = vpack.c.bf16 %v4539_v28, %v4539_v28  ;;  %20510 = vst [vmem:[#allocation172_spill] sm:$0xff] %v18910_v35  ;;  %4459 = vst [vmem:[#allocation3 + $0x9a0] sm:$0xf] %v15015_v18  ;;  %v9338_v4 = vpop.f32.mrb[165].mxu1  ;;  %v15019_v24 = vpack.c.bf16 %v4067_v30, %v4067_v30  ;;  %v15020_v22 = vpack.c.bf16 %v4068_v49, %v4068_v49  ;;  %v16828_v62 = vld [vmem:[#allocation3 + $0xa0] ss:$36 sps:$4 sm:$0xff]  }
 0x366   :  { %9919 = vmatmul.mubr.bf16.gmra.mrb[64].mxu0 %v16823_v57  ;;  %15824 = vmatprep.mubr.bf16.mxu1 %v16827_v16  ;;  %v15094_v57 = vpack.c.bf16 %v4538_v5, %v4538_v5  ;;  %v16829_v16 = vld [vmem:[#allocation3 + $0x218] ss:$36 sps:$4 sm:$0xff]   ;;  %4460 = vst [vmem:[#allocation3 + $0x9c4] sm:$0xf] %v15016_v47  ;;  %v18913_v27 = vpop.f32.mrb[166].mxu1  ;;  %v4070_v31 = vld [vmem:[#allocation2 + $0x270] sm:$0xff] }
 0x367   :  { %9926 = vmatprep.mubr.bf16.mxu0 %v16825_v34  ;;  %10235 = vmatpush1.bf16.msra.mxu0 %v16845_v38  ;;  %v15018_v34 = vpack.c.bf16 %v4066_v54, %v4066_v54  ;;  %4935 = vst [vmem:[#allocation3 + $0x9c8] sm:$0xf] %v15095_v32  ;;  %v15097_v38 = vpack.c.bf16 %v4541_v25, %v4541_v25  ;;  %20511 = vst [vmem:[#allocation173_spill] sm:$0xff] %v18913_v27  ;;  %v4542_v26 = vld [vmem:[#allocation2 + $0x259] sm:$0xff]  ;;  %v9341_v18 = vpop.f32.mrb[167].mxu1  ;;  %v4543_v32 = vld [vmem:[#allocation2 + $0x261] sm:$0xff] }
 0x368   :  { %10236 = vmatprep.subr.bf16.mxu0 %v20379_v2  ;;  %4934 = vst [vmem:[#allocation3 + $0x9a4] sm:$0xf] %v15094_v57  ;;  %4461 = vst [vmem:[#allocation3 + $0x9e8] sm:$0xf] %v15017_v21  ;;  %v16830_v5 = vld [vmem:[#allocation3 + $0xec] ss:$36 sps:$4 sm:$0xff]   ;;  %v15098_v47 = vpack.c.bf16 %v4542_v26, %v4542_v26  ;;  %v15099_v45 = vpack.c.bf16 %v4543_v32, %v4543_v32 }
 0x369   :  { %4462 = vst [vmem:[#allocation3 + $0xa0c] sm:$0xf] %v15018_v34  ;;  %4936 = vst [vmem:[#allocation3 + $0x9ec] sm:$0xf] %v15096_v40  ;;  %v16872_v28 = vld [vmem:[%s20104_s6 + $0x1a0] sm:$0xff]   ;;  %v4069_v54 = vld [vmem:[#allocation2 + $0x268] sm:$0xff]  ;;  %v15022_v40 = vpack.c.bf16 %v4070_v31, %v4070_v31 }
 0x36a   :  { %4937 = vst [vmem:[#allocation3 + $0xa10] sm:$0xf] %v15097_v38  ;;  %4463 = vst [vmem:[#allocation3 + $0xa30] sm:$0xf] %v15019_v24  ;;  %v16832_v57 = vld [vmem:[#allocation3 + $0x260] ss:$36 sps:$4 sm:$0xff]   ;;  %v15021_v25 = vpack.c.bf16 %v4069_v54, %v4069_v54 }
 0x36b   :  { %10237 = vmatpush1.bf16.msra.mxu0 %v16860_v23  ;;  %4464 = vst [vmem:[#allocation3 + $0xa54] sm:$0xf] %v15020_v22  ;;  %4938 = vst [vmem:[#allocation3 + $0xa34] sm:$0xf] %v15098_v47  ;;  %v16887_v23 = vld [vmem:[%s20104_s6 + $0x1a8] sm:$0xff]   ;;  %v18922_v34 = vpop.f32.mrb[168].mxu1 }
 0x36c   :  { %10238 = vmatprep.subr.bf16.mxu0 %v20379_v2  ;;  %v4544_v21 = vld [vmem:[#allocation2 + $0x269] sm:$0xff]  ;;  %20512 = vst [vmem:[#allocation174_spill] sm:$0xff] %v18922_v34  ;;  %v9346_v49 = vpop.f32.mrb[169].mxu1  ;;  %4939 = vst [vmem:[#allocation3 + $0xa58] sm:$0xf] %v15099_v45  ;;  %v4545_v38 = vld [vmem:[#allocation2 + $0x271] sm:$0xff] }
 0x36d   :  { %15825 = vmatmul.mubr.bf16.gmra.mrb[16].mxu1 %v16829_v16  ;;  %v15100_v30 = vpack.c.bf16 %v4544_v21, %v4544_v21  ;;  %v16834_v4 = vld [vmem:[#allocation3 + $0xe8] ss:$36 sps:$4 sm:$0xff]   ;;  %v18925_v24 = vpop.f32.mrb[170].mxu1  ;;  %v16836_v22 = vld [vmem:[#allocation3 + $0x134] ss:$36 sps:$4 sm:$0xff]   ;;  %v15101_v18 = vpack.c.bf16 %v4545_v38, %v4545_v38  ;;  %v4073_v21 = vld [vmem:[#allocation2 + $0x288] sm:$0xff] }
 0x36e   :  { %9927 = vmatmul.mubr.bf16.gmra.mrb[68].mxu0 %v16828_v62  ;;  %15828 = vmatprep.mubr.bf16.mxu1 %v16832_v57  ;;  %v16835_v16 = vld [vmem:[#allocation3 + $0x2a8] ss:$36 sps:$4 sm:$0xff]   ;;  %20513 = vst [vmem:[#allocation175_spill] sm:$0xff] %v18925_v24  ;;  %v16838_v62 = vld [vmem:[#allocation3 + $0x2f0] ss:$36 sps:$4 sm:$0xff]   ;;  %v4072_v47 = vld [vmem:[#allocation2 + $0x280] sm:$0xff] }
 0x36f   :  { %9934 = vmatprep.mubr.bf16.mxu0 %v16830_v5  ;;  %10239 = vmatpush1.bf16.msra.mxu0 %v16872_v28  ;;  %v16899_v26 = vld [vmem:[%s20104_s6 + $0x1b0] sm:$0xff]   ;;  %4465 = vst [vmem:[#allocation3 + $0xa78] sm:$0xf] %v15021_v25  ;;  %4466 = vst [vmem:[#allocation3 + $0xa9c] sm:$0xf] %v15022_v40  ;;  %v9349_v5 = vpop.f32.mrb[171].mxu1  ;;  %v15024_v45 = vpack.c.bf16 %v4072_v47, %v4072_v47 }
 0x370   :  { %10240 = vmatprep.subr.bf16.mxu0 %v20379_v2  ;;  %4940 = vst [vmem:[#allocation3 + $0xa7c] sm:$0xf] %v15100_v30  ;;  %v4071_v28 = vld [vmem:[#allocation2 + $0x278] sm:$0xff]  ;;  %4941 = vst [vmem:[#allocation3 + $0xaa0] sm:$0xf] %v15101_v18  ;;  %v4547_v54 = vld [vmem:[#allocation2 + $0x281] sm:$0xff]  ;;  %v15025_v30 = vpack.c.bf16 %v4073_v21, %v4073_v21 }
 0x371   :  { %v4546_v57 = vld [vmem:[#allocation2 + $0x279] sm:$0xff]  ;;  %v15023_v32 = vpack.c.bf16 %v4071_v28, %v4071_v28  ;;  %v15103_v40 = vpack.c.bf16 %v4547_v54, %v4547_v54  ;;  %v4945_v49 = vld [vmem:[#allocation2 + $0x29] sm:$0xff]  ;;  %v4946_v38 = vld [vmem:[#allocation2 + $0x31] sm:$0xff]  ;;  %4468 = vst [vmem:[#allocation3 + $0xae4] sm:$0xf] %v15024_v45  ;;  %v15187_v45 = vpack.c.bf16 %v5423_v13, %v5423_v13 }
 0x372   :  { %v15102_v31 = vpack.c.bf16 %v4546_v57, %v4546_v57  ;;  %v16914_v25 = vld [vmem:[%s20104_s6 + $0x1b8] sm:$0xff]   ;;  %v15105_v5 = vpack.c.bf16 %v4945_v49, %v4945_v49  ;;  %v15106_v28 = vpack.c.bf16 %v4946_v38, %v4946_v38  ;;  %v5420_v47 = vld [vmem:[#allocation2 + $0x2a] sm:$0xff]  ;;  %4469 = vst [vmem:[#allocation3 + $0xb08] sm:$0xf] %v15025_v30  ;;  %v4948_v21 = vld [vmem:[#allocation2 + $0x41] sm:$0xff] }
 0x373   :  { %10241 = vmatpush1.bf16.msra.mxu0 %v16887_v23  ;;  %v4548_v23 = vld [vmem:[#allocation2 + $0x289] sm:$0xff]  ;;  %4467 = vst [vmem:[#allocation3 + $0xac0] sm:$0xf] %v15023_v32  ;;  %4943 = vst [vmem:[#allocation3 + $0xae8] sm:$0xf] %v15103_v40  ;;  %v15184_v57 = vpack.c.bf16 %v5420_v47, %v5420_v47  ;;  %v15186_v32 = vpack.c.bf16 %v5422_v33, %v5422_v33  ;;  %v4951_v47 = vld [vmem:[#allocation2 + $0x59] sm:$0xff] }
 0x374   :  { %10242 = vmatprep.subr.bf16.mxu0 %v20379_v2  ;;  %4942 = vst [vmem:[#allocation3 + $0xac4] sm:$0xf] %v15102_v31  ;;  %v15104_v18 = vpack.c.bf16 %v4548_v23, %v4548_v23  ;;  %5341 = vst [vmem:[#allocation3 + $0x18] sm:$0xf] %v15105_v5  ;;  %v16840_v40 = vld [vmem:[#allocation3 + $0x338] ss:$36 sps:$4 sm:$0xff]  }
 0x375   :  { %15829 = vmatmul.mubr.bf16.gmra.mrb[20].mxu1 %v16835_v16  ;;  %v4947_v16 = vld [vmem:[#allocation2 + $0x39] sm:$0xff]  ;;  %5342 = vst [vmem:[#allocation3 + $0x3c] sm:$0xf] %v15106_v28  ;;  %5816 = vst [vmem:[#allocation3 + $0x1c] sm:$0xf] %v15184_v57  ;;  %v4949_v30 = vld [vmem:[#allocation2 + $0x49] sm:$0xff] }
 0x376   :  { %9935 = vmatmul.mubr.bf16.gmra.mrb[72].mxu0 %v16834_v4  ;;  %15832 = vmatprep.mubr.bf16.mxu1 %v16838_v62  ;;  %v5421_v4 = vld [vmem:[#allocation2 + $0x32] sm:$0xff]  ;;  %v15107_v48 = vpack.c.bf16 %v4947_v16, %v4947_v16  ;;  %4944 = vst [vmem:[#allocation3 + $0xb0c] sm:$0xf] %v15104_v18  ;;  %v15108_v62 = vpack.c.bf16 %v4948_v21, %v4948_v21  ;;  %5818 = vst [vmem:[#allocation3 + $0x64] sm:$0xf] %v15186_v32  ;;  %v5424_v5 = vld [vmem:[#allocation2 + $0x4a] sm:$0xff] }
 0x377   :  { %9942 = vmatprep.mubr.bf16.mxu0 %v16836_v22  ;;  %10243 = vmatpush1.bf16.msra.mxu0 %v16899_v26  ;;  %v15185_v54 = vpack.c.bf16 %v5421_v4, %v5421_v4  ;;  %v16839_v26 = vld [vmem:[#allocation3 + $0x130] ss:$36 sps:$4 sm:$0xff]   ;;  %5819 = vst [vmem:[#allocation3 + $0x88] sm:$0xf] %v15187_v45  ;;  %v15109_v38 = vpack.c.bf16 %v4949_v30, %v4949_v30  ;;  %v16841_v13 = vld [vmem:[#allocation3 + $0x17c] ss:$36 sps:$4 sm:$0xff]  }
 0x378   :  { %v18934_v22 = vpop.f32.mrb[172].mxu1  ;;  %10244 = vmatprep.subr.bf16.mxu0 %v20379_v2  ;;  %5343 = vst [vmem:[#allocation3 + $0x60] sm:$0xf] %v15107_v48  ;;  %v4950_v23 = vld [vmem:[#allocation2 + $0x51] sm:$0xff]  ;;  %5344 = vst [vmem:[#allocation3 + $0x84] sm:$0xf] %v15108_v62  ;;  %v15188_v16 = vpack.c.bf16 %v5424_v5, %v5424_v5 }
 0x379   :  { %20514 = vst [vmem:[#allocation176_spill] sm:$0xff] %v18934_v22  ;;  %v9354_v31 = vpop.f32.mrb[173].mxu1  ;;  %5817 = vst [vmem:[#allocation3 + $0x40] sm:$0xf] %v15185_v54  ;;  %v15110_v18 = vpack.c.bf16 %v4950_v23, %v4950_v23  ;;  %v5425_v28 = vld [vmem:[#allocation2 + $0x52] sm:$0xff]  ;;  %v15111_v54 = vpack.c.bf16 %v4951_v47, %v4951_v47  ;;  %v4952_v48 = vld [vmem:[#allocation2 + $0x61] sm:$0xff] }
 0x37a   :  { %v18937_v49 = vpop.f32.mrb[174].mxu1  ;;  %v16843_v4 = vld [vmem:[#allocation3 + $0x380] ss:$36 sps:$4 sm:$0xff]   ;;  %v15189_v57 = vpack.c.bf16 %v5425_v28, %v5425_v28  ;;  %5345 = vst [vmem:[#allocation3 + $0xa8] sm:$0xf] %v15109_v38  ;;  %v5426_v21 = vld [vmem:[#allocation2 + $0x5a] sm:$0xff]  ;;  %v15112_v45 = vpack.c.bf16 %v4952_v48, %v4952_v48 }
 0x37b   :  { %20515 = vst [vmem:[#allocation177_spill] sm:$0xff] %v18937_v49  ;;  %v9357_v33 = vpop.f32.mrb[175].mxu1  ;;  %10245 = vmatpush1.bf16.msra.mxu0 %v16914_v25  ;;  %5346 = vst [vmem:[#allocation3 + $0xcc] sm:$0xf] %v15110_v18  ;;  %v5427_v62 = vld [vmem:[#allocation2 + $0x62] sm:$0xff]  ;;  %v15190_v25 = vpack.c.bf16 %v5426_v21, %v5426_v21  ;;  %v4955_v48 = vld [vmem:[#allocation2 + $0x79] sm:$0xff] }
 0x37c   :  { %10246 = vmatprep.subr.bf16.mxu0 %v20379_v2  ;;  %v16922_v32 = vld [vmem:[%s20104_s6 + $0x1c0] sm:$0xff]   ;;  %5820 = vst [vmem:[#allocation3 + $0xac] sm:$0xf] %v15188_v16  ;;  %5821 = vst [vmem:[#allocation3 + $0xd0] sm:$0xf] %v15189_v57  ;;  %v15191_v31 = vpack.c.bf16 %v5427_v62, %v5427_v62  ;;  %v4953_v30 = vld [vmem:[#allocation2 + $0x69] sm:$0xff] }
 0x37d   :  { %15833 = vmatmul.mubr.bf16.gmra.mrb[24].mxu1 %v16840_v40  ;;  %5347 = vst [vmem:[#allocation3 + $0xf0] sm:$0xf] %v15111_v54  ;;  %v15113_v23 = vpack.c.bf16 %v4953_v30, %v4953_v30  ;;  %5348 = vst [vmem:[#allocation3 + $0x114] sm:$0xf] %v15112_v45  ;;  %v5428_v40 = vld [vmem:[#allocation2 + $0x6a] sm:$0xff]  ;;  %v5429_v16 = vld [vmem:[#allocation2 + $0x72] sm:$0xff]  ;;  %v15115_v45 = vpack.c.bf16 %v4955_v48, %v4955_v48 }
 0x37e   :  { %9943 = vmatmul.mubr.bf16.gmra.mrb[76].mxu0 %v16839_v26  ;;  %15836 = vmatprep.mubr.bf16.mxu1 %v16843_v4  ;;  %5822 = vst [vmem:[#allocation3 + $0xf4] sm:$0xf] %v15190_v25  ;;  %5823 = vst [vmem:[#allocation3 + $0x118] sm:$0xf] %v15191_v31  ;;  %v4954_v26 = vld [vmem:[#allocation2 + $0x71] sm:$0xff]  ;;  %v15192_v5 = vpack.c.bf16 %v5428_v40, %v5428_v40  ;;  %v15193_v54 = vpack.c.bf16 %v5429_v16, %v5429_v16  ;;  %v4956_v21 = vld [vmem:[#allocation2 + $0x81] sm:$0xff] }
 0x37f   :  { %9950 = vmatprep.mubr.bf16.mxu0 %v16841_v13  ;;  %10247 = vmatpush1.bf16.msra.mxu0 %v16922_v32  ;;  %v15114_v18 = vpack.c.bf16 %v4954_v26, %v4954_v26  ;;  %5349 = vst [vmem:[#allocation3 + $0x138] sm:$0xf] %v15113_v23  ;;  %v16846_v47 = vld [vmem:[#allocation3 + $0x3c8] ss:$36 sps:$4 sm:$0xff]   ;;  %v16844_v13 = vld [vmem:[#allocation3 + $0x178] ss:$36 sps:$4 sm:$0xff]   ;;  %v15116_v25 = vpack.c.bf16 %v4956_v21, %v4956_v21 }
 0x380   :  { %v18943_v38 = vpop.f32.mrb[176].mxu1  ;;  %10248 = vmatprep.subr.bf16.mxu0 %v20379_v2  ;;  %v16847_v4 = vld [vmem:[#allocation3 + $0x1c4] ss:$36 sps:$4 sm:$0xff]   ;;  %5824 = vst [vmem:[#allocation3 + $0x13c] sm:$0xf] %v15192_v5  ;;  %v5430_v62 = vld [vmem:[#allocation2 + $0x7a] sm:$0xff] }
 0x381   :  { %20516 = vst [vmem:[#allocation178_spill] sm:$0xff] %v18943_v38  ;;  %v9362_v28 = vpop.f32.mrb[177].mxu1  ;;  %5350 = vst [vmem:[#allocation3 + $0x15c] sm:$0xf] %v15114_v18  ;;  %v16849_v32 = vld [vmem:[#allocation3 + $0x410] ss:$36 sps:$4 sm:$0xff]   ;;  %v15194_v31 = vpack.c.bf16 %v5430_v62, %v5430_v62 }
 0x382   :  { %v18946_v33 = vpop.f32.mrb[178].mxu1  ;;  %5825 = vst [vmem:[#allocation3 + $0x160] sm:$0xf] %v15193_v54  ;;  %v5431_v30 = vld [vmem:[#allocation2 + $0x82] sm:$0xff]  ;;  %5351 = vst [vmem:[#allocation3 + $0x180] sm:$0xf] %v15115_v45 }
 0x383   :  { %20517 = vst [vmem:[#allocation179_spill] sm:$0xff] %v18946_v33  ;;  %v9365_v57 = vpop.f32.mrb[179].mxu1  ;;  %v4957_v23 = vld [vmem:[#allocation2 + $0x89] sm:$0xff]  ;;  %5352 = vst [vmem:[#allocation3 + $0x1a4] sm:$0xf] %v15116_v25  ;;  %v15195_v26 = vpack.c.bf16 %v5431_v30, %v5431_v30  ;;  %v4958_v18 = vld [vmem:[#allocation2 + $0x91] sm:$0xff] }
 0x384   :  { %5826 = vst [vmem:[#allocation3 + $0x184] sm:$0xf] %v15194_v31  ;;  %v15117_v40 = vpack.c.bf16 %v4957_v23, %v4957_v23  ;;  %v5432_v5 = vld [vmem:[#allocation2 + $0x8a] sm:$0xff]  ;;  %v15118_v16 = vpack.c.bf16 %v4958_v18, %v4958_v18  ;;  %v5433_v57 = vld [vmem:[#allocation2 + $0x92] sm:$0xff]  ;;  %v4960_v54 = vld [vmem:[#allocation2 + $0xa1] sm:$0xff] }
 0x385   :  { %15837 = vmatmul.mubr.bf16.gmra.mrb[28].mxu1 %v16846_v47  ;;  %5827 = vst [vmem:[#allocation3 + $0x1a8] sm:$0xf] %v15195_v26  ;;  %v4959_v47 = vld [vmem:[#allocation2 + $0x99] sm:$0xff]  ;;  %v16850_v21 = vld [vmem:[#allocation3 + $0x1c0] ss:$36 sps:$4 sm:$0xff]   ;;  %v15197_v62 = vpack.c.bf16 %v5433_v57, %v5433_v57  ;;  %v15120_v45 = vpack.c.bf16 %v4960_v54, %v4960_v54 }
 0x386   :  { %9951 = vmatmul.mubr.bf16.gmra.mrb[80].mxu0 %v16844_v13  ;;  %15840 = vmatprep.mubr.bf16.mxu1 %v16849_v32  ;;  %5353 = vst [vmem:[#allocation3 + $0x1c8] sm:$0xf] %v15117_v40  ;;  %v15196_v13 = vpack.c.bf16 %v5432_v5, %v5432_v5  ;;  %v15119_v32 = vpack.c.bf16 %v4959_v47, %v4959_v47  ;;  %v5434_v25 = vld [vmem:[#allocation2 + $0x9a] sm:$0xff]  ;;  %v5435_v31 = vld [vmem:[#allocation2 + $0xa2] sm:$0xff]  ;;  %5354 = vst [vmem:[#allocation3 + $0x1ec] sm:$0xf] %v15118_v16 }
 0x387   :  { %9958 = vmatprep.mubr.bf16.mxu0 %v16847_v4  ;;  %v16851_v4 = vld [vmem:[#allocation3 + $0x458] ss:$36 sps:$4 sm:$0xff]   ;;  %v15198_v23 = vpack.c.bf16 %v5434_v25, %v5434_v25  ;;  %v15199_v26 = vpack.c.bf16 %v5435_v31, %v5435_v31  ;;  %v4961_v18 = vld [vmem:[#allocation2 + $0xa9] sm:$0xff]  ;;  %v4962_v40 = vld [vmem:[#allocation2 + $0xb1] sm:$0xff]  ;;  %5829 = vst [vmem:[#allocation3 + $0x1f0] sm:$0xf] %v15197_v62  ;;  %v15200_v47 = vpack.c.bf16 %v5436_v10, %v5436_v10 }
 0x388   :  { %v18948_v28 = vpop.f32.mrb[180].mxu1  ;;  %5828 = vst [vmem:[#allocation3 + $0x1cc] sm:$0xf] %v15196_v13  ;;  %5355 = vst [vmem:[#allocation3 + $0x210] sm:$0xf] %v15119_v32  ;;  %v15122_v7 = vpack.c.bf16 %v4962_v40, %v4962_v40  ;;  %v5437_v57 = vld [vmem:[#allocation2 + $0xb2] sm:$0xff]  ;;  %v15124_v25 = vpack.c.bf16 %v4964_v9, %v4964_v9 }
 0x389   :  { %20518 = vst [vmem:[#allocation180_spill] sm:$0xff] %v18948_v28  ;;  %v9370_v48 = vpop.f32.mrb[181].mxu1  ;;  %5356 = vst [vmem:[#allocation3 + $0x234] sm:$0xf] %v15120_v45  ;;  %v4963_v54 = vld [vmem:[#allocation2 + $0xb9] sm:$0xff]  ;;  %v15201_v16 = vpack.c.bf16 %v5437_v57, %v5437_v57  ;;  %v5439_v32 = vld [vmem:[#allocation2 + $0xc2] sm:$0xff] }
 0x38a   :  { %v18950_v30 = vpop.f32.mrb[182].mxu1  ;;  %v15121_v48 = vpack.c.bf16 %v4961_v18, %v4961_v18  ;;  %v16852_v28 = vld [vmem:[#allocation3 + $0x20c] ss:$36 sps:$4 sm:$0xff]   ;;  %v16854_v33 = vld [vmem:[#allocation3 + $0x4a0] ss:$36 sps:$4 sm:$0xff]   ;;  %v15123_v13 = vpack.c.bf16 %v4963_v54, %v4963_v54  ;;  %v15203_v45 = vpack.c.bf16 %v5439_v32, %v5439_v32 }
 0x38b   :  { %20519 = vst [vmem:[#allocation181_spill] sm:$0xff] %v18950_v30  ;;  %v9373_v5 = vpop.f32.mrb[183].mxu1  ;;  %5830 = vst [vmem:[#allocation3 + $0x214] sm:$0xf] %v15198_v23  ;;  %v5438_v62 = vld [vmem:[#allocation2 + $0xba] sm:$0xff]  ;;  %v4965_v31 = vld [vmem:[#allocation2 + $0xc9] sm:$0xff] }
 0x38c   :  { %5831 = vst [vmem:[#allocation3 + $0x238] sm:$0xf] %v15199_v26  ;;  %5357 = vst [vmem:[#allocation3 + $0x258] sm:$0xf] %v15121_v48  ;;  %v15202_v10 = vpack.c.bf16 %v5438_v62, %v5438_v62  ;;  %v4966_v23 = vld [vmem:[#allocation2 + $0xd1] sm:$0xff]  ;;  %v15125_v18 = vpack.c.bf16 %v4965_v31, %v4965_v31  ;;  %v4968_v5 = vld [vmem:[#allocation2 + $0xe1] sm:$0xff] }
 0x38d   :  { %15841 = vmatmul.mubr.bf16.gmra.mrb[32].mxu1 %v16851_v4  ;;  %5358 = vst [vmem:[#allocation3 + $0x27c] sm:$0xf] %v15122_v7  ;;  %5832 = vst [vmem:[#allocation3 + $0x25c] sm:$0xf] %v15200_v47  ;;  %v5440_v26 = vld [vmem:[#allocation2 + $0xca] sm:$0xff]  ;;  %v15126_v40 = vpack.c.bf16 %v4966_v23, %v4966_v23  ;;  %v5441_v7 = vld [vmem:[#allocation2 + $0xd2] sm:$0xff]  ;;  %v15128_v47 = vpack.c.bf16 %v4968_v5, %v4968_v5 }
 0x38e   :  { %9959 = vmatmul.mubr.bf16.gmra.mrb[84].mxu0 %v16850_v21  ;;  %15844 = vmatprep.mubr.bf16.mxu1 %v16854_v33  ;;  %5833 = vst [vmem:[#allocation3 + $0x280] sm:$0xf] %v15201_v16  ;;  %5359 = vst [vmem:[#allocation3 + $0x2a0] sm:$0xf] %v15123_v13  ;;  %v15204_v9 = vpack.c.bf16 %v5440_v26, %v5440_v26  ;;  %v4967_v4 = vld [vmem:[#allocation2 + $0xd9] sm:$0xff]  ;;  %v16931_v33 = vld [vmem:[%s20104_s6 + $0x1c8] sm:$0xff]   ;;  %v15205_v48 = vpack.c.bf16 %v5441_v7, %v5441_v7 }
 0x38f   :  { %9966 = vmatprep.mubr.bf16.mxu0 %v16852_v28  ;;  %5360 = vst [vmem:[#allocation3 + $0x2c4] sm:$0xf] %v15124_v25  ;;  %5834 = vst [vmem:[#allocation3 + $0x2a4] sm:$0xf] %v15202_v10  ;;  %v15127_v57 = vpack.c.bf16 %v4967_v4, %v4967_v4  ;;  %v5442_v54 = vld [vmem:[#allocation2 + $0xda] sm:$0xff]  ;;  %10249 = vmatpush1.bf16.msra.mxu0 %v16931_v33  ;;  %v5443_v31 = vld [vmem:[#allocation2 + $0xe2] sm:$0xff] }
 0x390   :  { %v18952_v21 = vpop.f32.mrb[184].mxu1  ;;  %5835 = vst [vmem:[#allocation3 + $0x2c8] sm:$0xf] %v15203_v45  ;;  %5361 = vst [vmem:[#allocation3 + $0x2e8] sm:$0xf] %v15125_v18  ;;  %v15206_v62 = vpack.c.bf16 %v5442_v54, %v5442_v54  ;;  %10250 = vmatprep.subr.bf16.mxu0 %v20379_v2  ;;  %v15207_v23 = vpack.c.bf16 %v5443_v31, %v5443_v31  ;;  %v4969_v26 = vld [vmem:[#allocation2 + $0xe9] sm:$0xff] }
 0x391   :  { %20520 = vst [vmem:[#allocation182_spill] sm:$0xff] %v18952_v21  ;;  %v9378_v28 = vpop.f32.mrb[185].mxu1  ;;  %5362 = vst [vmem:[#allocation3 + $0x30c] sm:$0xf] %v15126_v40  ;;  %v16855_v13 = vld [vmem:[#allocation3 + $0x208] ss:$36 sps:$4 sm:$0xff]  }
 0x392   :  { %5836 = vst [vmem:[#allocation3 + $0x2ec] sm:$0xf] %v15204_v9  ;;  %v18957_v16 = vpop.f32.mrb[186].mxu1  ;;  %v16856_v25 = vld [vmem:[#allocation3 + $0x4e8] ss:$36 sps:$4 sm:$0xff]   ;;  %v15129_v9 = vpack.c.bf16 %v4969_v26, %v4969_v26  ;;  %v4971_v54 = vld [vmem:[#allocation2 + $0xf9] sm:$0xff] }
 0x393   :  { %20521 = vst [vmem:[#allocation183_spill] sm:$0xff] %v18957_v16  ;;  %v9381_v32 = vpop.f32.mrb[187].mxu1  ;;  %v16857_v10 = vld [vmem:[#allocation3 + $0x254] ss:$36 sps:$4 sm:$0xff]   ;;  %5837 = vst [vmem:[#allocation3 + $0x310] sm:$0xf] %v15205_v48 }
 0x394   :  { %5363 = vst [vmem:[#allocation3 + $0x330] sm:$0xf] %v15127_v57  ;;  %5364 = vst [vmem:[#allocation3 + $0x354] sm:$0xf] %v15128_v47  ;;  %v16859_v45 = vld [vmem:[#allocation3 + $0x530] ss:$36 sps:$4 sm:$0xff]  }
 0x395   :  { %5838 = vst [vmem:[#allocation3 + $0x334] sm:$0xf] %v15206_v62  ;;  %15845 = vmatmul.mubr.bf16.gmra.mrb[36].mxu1 %v16856_v25  ;;  %v4970_v18 = vld [vmem:[#allocation2 + $0xf1] sm:$0xff]  ;;  %5839 = vst [vmem:[#allocation3 + $0x358] sm:$0xf] %v15207_v23  ;;  %v5446_v25 = vld [vmem:[#allocation2 + $0xfa] sm:$0xff] }
 0x396   :  { %9967 = vmatmul.mubr.bf16.gmra.mrb[88].mxu0 %v16855_v13  ;;  %15848 = vmatprep.mubr.bf16.mxu1 %v16859_v45  ;;  %v5444_v40 = vld [vmem:[#allocation2 + $0xea] sm:$0xff]  ;;  %v15130_v7 = vpack.c.bf16 %v4970_v18, %v4970_v18  ;;  %v5445_v28 = vld [vmem:[#allocation2 + $0xf2] sm:$0xff]  ;;  %v16862_v57 = vld [vmem:[#allocation3 + $0x578] ss:$36 sps:$4 sm:$0xff]   ;;  %5365 = vst [vmem:[#allocation3 + $0x378] sm:$0xf] %v15129_v9  ;;  %v15131_v45 = vpack.c.bf16 %v4971_v54, %v4971_v54 }
 0x397   :  { %9974 = vmatprep.mubr.bf16.mxu0 %v16857_v10  ;;  %v15208_v4 = vpack.c.bf16 %v5444_v40, %v5444_v40  ;;  %v16861_v48 = vld [vmem:[#allocation3 + $0x250] ss:$36 sps:$4 sm:$0xff]   ;;  %v15209_v47 = vpack.c.bf16 %v5445_v28, %v5445_v28  ;;  %v4972_v13 = vld [vmem:[#allocation2 + $0x101] sm:$0xff]  ;;  %v15210_v23 = vpack.c.bf16 %v5446_v25, %v5446_v25  ;;  %v4973_v40 = vld [vmem:[#allocation2 + $0x109] sm:$0xff] }
 0x398   :  { %v18960_v5 = vpop.f32.mrb[188].mxu1  ;;  %5366 = vst [vmem:[#allocation3 + $0x39c] sm:$0xf] %v15130_v7  ;;  %v16863_v32 = vld [vmem:[#allocation3 + $0x29c] ss:$36 sps:$4 sm:$0xff]   ;;  %v15132_v31 = vpack.c.bf16 %v4972_v13, %v4972_v13  ;;  %v4974_v7 = vld [vmem:[#allocation2 + $0x111] sm:$0xff] }
 0x399   :  { %20522 = vst [vmem:[#allocation184_spill] sm:$0xff] %v18960_v5  ;;  %v9386_v33 = vpop.f32.mrb[189].mxu1  ;;  %5840 = vst [vmem:[#allocation3 + $0x37c] sm:$0xf] %v15208_v4  ;;  %v16865_v10 = vld [vmem:[#allocation3 + $0x5c0] ss:$36 sps:$4 sm:$0xff]   ;;  %v15133_v4 = vpack.c.bf16 %v4973_v40, %v4973_v40 }
 0x39a   :  { %v18962_v62 = vpop.f32.mrb[190].mxu1  ;;  %5841 = vst [vmem:[#allocation3 + $0x3a0] sm:$0xf] %v15209_v47  ;;  %v5447_v18 = vld [vmem:[#allocation2 + $0x102] sm:$0xff]  ;;  %5367 = vst [vmem:[#allocation3 + $0x3c0] sm:$0xf] %v15131_v45 }
 0x39b   :  { %20523 = vst [vmem:[#allocation185_spill] sm:$0xff] %v18962_v62  ;;  %v9389_v26 = vpop.f32.mrb[191].mxu1  ;;  %5368 = vst [vmem:[#allocation3 + $0x3e4] sm:$0xf] %v15132_v31  ;;  %v15211_v9 = vpack.c.bf16 %v5447_v18, %v5447_v18  ;;  %v5448_v28 = vld [vmem:[#allocation2 + $0x10a] sm:$0xff]  ;;  %v5449_v33 = vld [vmem:[#allocation2 + $0x112] sm:$0xff]  ;;  %v15134_v62 = vpack.c.bf16 %v4974_v7, %v4974_v7 }
 0x39c   :  { %5842 = vst [vmem:[#allocation3 + $0x3c4] sm:$0xf] %v15210_v23  ;;  %v15212_v5 = vpack.c.bf16 %v5448_v28, %v5448_v28  ;;  %v15213_v16 = vpack.c.bf16 %v5449_v33, %v5449_v33  ;;  %v4975_v54 = vld [vmem:[#allocation2 + $0x119] sm:$0xff]  ;;  %v4976_v13 = vld [vmem:[#allocation2 + $0x121] sm:$0xff]  ;;  %5369 = vst [vmem:[#allocation3 + $0x408] sm:$0xf] %v15133_v4 }
 0x39d   :  { %15849 = vmatmul.mubr.bf16.gmra.mrb[40].mxu1 %v16862_v57  ;;  %v5450_v25 = vld [vmem:[#allocation2 + $0x11a] sm:$0xff]  ;;  %5843 = vst [vmem:[#allocation3 + $0x3e8] sm:$0xf] %v15211_v9  ;;  %v15135_v47 = vpack.c.bf16 %v4975_v54, %v4975_v54  ;;  %v15136_v45 = vpack.c.bf16 %v4976_v13, %v4976_v13  ;;  %5370 = vst [vmem:[#allocation3 + $0x42c] sm:$0xf] %v15134_v62  ;;  %v5451_v23 = vld [vmem:[#allocation2 + $0x122] sm:$0xff] }
 0x39e   :  { %9975 = vmatmul.mubr.bf16.gmra.mrb[92].mxu0 %v16861_v48  ;;  %15852 = vmatprep.mubr.bf16.mxu1 %v16865_v10  ;;  %v15214_v31 = vpack.c.bf16 %v5450_v25, %v5450_v25  ;;  %5844 = vst [vmem:[#allocation3 + $0x40c] sm:$0xf] %v15212_v5  ;;  %5845 = vst [vmem:[#allocation3 + $0x430] sm:$0xf] %v15213_v16  ;;  %v4977_v26 = vld [vmem:[#allocation2 + $0x129] sm:$0xff]  ;;  %v4978_v48 = vld [vmem:[#allocation2 + $0x131] sm:$0xff]  ;;  %v15215_v18 = vpack.c.bf16 %v5451_v23, %v5451_v23 }
 0x39f   :  { %9982 = vmatprep.mubr.bf16.mxu0 %v16863_v32  ;;  %5371 = vst [vmem:[#allocation3 + $0x450] sm:$0xf] %v15135_v47  ;;  %5372 = vst [vmem:[#allocation3 + $0x474] sm:$0xf] %v15136_v45  ;;  %v15137_v40 = vpack.c.bf16 %v4977_v26, %v4977_v26  ;;  %v15138_v32 = vpack.c.bf16 %v4978_v48, %v4978_v48  ;;  %v5452_v10 = vld [vmem:[#allocation2 + $0x12a] sm:$0xff]  ;;  %v5453_v9 = vld [vmem:[#allocation2 + $0x132] sm:$0xff] }
 0x3a0   :  { %v18964_v57 = vpop.f32.mrb[192].mxu1  ;;  %5846 = vst [vmem:[#allocation3 + $0x454] sm:$0xf] %v15214_v31  ;;  %v16866_v4 = vld [vmem:[#allocation3 + $0x298] ss:$36 sps:$4 sm:$0xff]   ;;  %v15216_v33 = vpack.c.bf16 %v5452_v10, %v5452_v10  ;;  %v15217_v62 = vpack.c.bf16 %v5453_v9, %v5453_v9  ;;  %v4981_v48 = vld [vmem:[#allocation2 + $0x149] sm:$0xff] }
 0x3a1   :  { %20524 = vst [vmem:[#allocation186_spill] sm:$0xff] %v18964_v57  ;;  %v9394_v7 = vpop.f32.mrb[193].mxu1  ;;  %v16867_v28 = vld [vmem:[#allocation3 + $0x608] ss:$36 sps:$4 sm:$0xff]   ;;  %v4979_v5 = vld [vmem:[#allocation2 + $0x139] sm:$0xff]  ;;  %v4980_v16 = vld [vmem:[#allocation2 + $0x141] sm:$0xff] }
 0x3a2   :  { %v5454_v54 = vld [vmem:[#allocation2 + $0x13a] sm:$0xff]  ;;  %v18966_v13 = vpop.f32.mrb[194].mxu1  ;;  %v16868_v25 = vld [vmem:[#allocation3 + $0x2e4] ss:$36 sps:$4 sm:$0xff]   ;;  %5847 = vst [vmem:[#allocation3 + $0x478] sm:$0xf] %v15215_v18  ;;  %v15139_v47 = vpack.c.bf16 %v4979_v5, %v4979_v5  ;;  %v15140_v45 = vpack.c.bf16 %v4980_v16, %v4980_v16  ;;  %v15141_v7 = vpack.c.bf16 %v4981_v48, %v4981_v48 }
 0x3a3   :  { %20525 = vst [vmem:[#allocation187_spill] sm:$0xff] %v18966_v13  ;;  %v16870_v57 = vld [vmem:[#allocation3 + $0x650] ss:$36 sps:$4 sm:$0xff]   ;;  %5373 = vst [vmem:[#allocation3 + $0x498] sm:$0xf] %v15137_v40  ;;  %v15218_v31 = vpack.c.bf16 %v5454_v54, %v5454_v54  ;;  %v9397_v23 = vpop.f32.mrb[195].mxu1 }
 0x3a4   :  { %5374 = vst [vmem:[#allocation3 + $0x4bc] sm:$0xf] %v15138_v32  ;;  %5848 = vst [vmem:[#allocation3 + $0x49c] sm:$0xf] %v15216_v33  ;;  %v5455_v26 = vld [vmem:[#allocation2 + $0x142] sm:$0xff]  ;;  %v4982_v9 = vld [vmem:[#allocation2 + $0x151] sm:$0xff] }
 0x3a5   :  { %5849 = vst [vmem:[#allocation3 + $0x4c0] sm:$0xf] %v15217_v62  ;;  %5375 = vst [vmem:[#allocation3 + $0x4e0] sm:$0xf] %v15139_v47  ;;  %v15219_v10 = vpack.c.bf16 %v5455_v26, %v5455_v26  ;;  %v5456_v13 = vld [vmem:[#allocation2 + $0x14a] sm:$0xff]  ;;  %v5457_v21 = vld [vmem:[#allocation2 + $0x152] sm:$0xff]  ;;  %15853 = vmatmul.mubr.bf16.gmra.mrb[44].mxu1 %v16867_v28  ;;  %v15142_v40 = vpack.c.bf16 %v4982_v9, %v4982_v9 }
 0x3a6   :  { %5376 = vst [vmem:[#allocation3 + $0x504] sm:$0xf] %v15140_v45  ;;  %5850 = vst [vmem:[#allocation3 + $0x4e4] sm:$0xf] %v15218_v31  ;;  %9983 = vmatmul.mubr.bf16.gmra.mrb[96].mxu0 %v16866_v4  ;;  %v16939_v18 = vld [vmem:[%s20104_s6 + $0x1d0] sm:$0xff]   ;;  %v15220_v32 = vpack.c.bf16 %v5456_v13, %v5456_v13  ;;  %v15221_v33 = vpack.c.bf16 %v5457_v21, %v5457_v21  ;;  %15856 = vmatprep.mubr.bf16.mxu1 %v16870_v57  ;;  %v4983_v4 = vld [vmem:[#allocation2 + $0x159] sm:$0xff] }
 0x3a7   :  { %9990 = vmatprep.mubr.bf16.mxu0 %v16868_v25  ;;  %5851 = vst [vmem:[#allocation3 + $0x508] sm:$0xf] %v15219_v10  ;;  %5377 = vst [vmem:[#allocation3 + $0x528] sm:$0xf] %v15141_v7  ;;  %10251 = vmatpush1.bf16.msra.mxu0 %v16939_v18  ;;  %v4984_v28 = vld [vmem:[#allocation2 + $0x161] sm:$0xff]  ;;  %v15143_v13 = vpack.c.bf16 %v4983_v4, %v4983_v4  ;;  %v4985_v10 = vld [vmem:[#allocation2 + $0x169] sm:$0xff] }
 0x3a8   :  { %5378 = vst [vmem:[#allocation3 + $0x54c] sm:$0xf] %v15142_v40  ;;  %5852 = vst [vmem:[#allocation3 + $0x52c] sm:$0xf] %v15220_v32  ;;  %v18971_v62 = vpop.f32.mrb[196].mxu1  ;;  %10252 = vmatprep.subr.bf16.mxu0 %v20379_v2  ;;  %v5458_v5 = vld [vmem:[#allocation2 + $0x15a] sm:$0xff]  ;;  %v15144_v21 = vpack.c.bf16 %v4984_v28, %v4984_v28  ;;  %v15145_v18 = vpack.c.bf16 %v4985_v10, %v4985_v10 }
 0x3a9   :  { %5853 = vst [vmem:[#allocation3 + $0x550] sm:$0xf] %v15221_v33  ;;  %20526 = vst [vmem:[#allocation188_spill] sm:$0xff] %v18971_v62  ;;  %v9402_v16 = vpop.f32.mrb[197].mxu1  ;;  %v16871_v54 = vld [vmem:[#allocation3 + $0x2e0] ss:$36 sps:$4 sm:$0xff]   ;;  %v15222_v25 = vpack.c.bf16 %v5458_v5, %v5458_v5 }
 0x3aa   :  { %v16873_v47 = vld [vmem:[#allocation3 + $0x698] ss:$36 sps:$4 sm:$0xff]   ;;  %v18974_v57 = vpop.f32.mrb[198].mxu1  ;;  %v16874_v45 = vld [vmem:[#allocation3 + $0x32c] ss:$36 sps:$4 sm:$0xff]   ;;  %v5460_v7 = vld [vmem:[#allocation2 + $0x16a] sm:$0xff] }
 0x3ab   :  { %20527 = vst [vmem:[#allocation189_spill] sm:$0xff] %v18974_v57  ;;  %v9405_v31 = vpop.f32.mrb[199].mxu1  ;;  %v16876_v23 = vld [vmem:[#allocation3 + $0x6e0] ss:$36 sps:$4 sm:$0xff]   ;;  %5379 = vst [vmem:[#allocation3 + $0x570] sm:$0xf] %v15143_v13  ;;  %v15224_v32 = vpack.c.bf16 %v5460_v7, %v5460_v7 }
 0x3ac   :  { %5380 = vst [vmem:[#allocation3 + $0x594] sm:$0xf] %v15144_v21  ;;  %v5459_v26 = vld [vmem:[#allocation2 + $0x162] sm:$0xff]  ;;  %5854 = vst [vmem:[#allocation3 + $0x574] sm:$0xf] %v15222_v25  ;;  %v4986_v9 = vld [vmem:[#allocation2 + $0x171] sm:$0xff] }
 0x3ad   :  { %v15223_v48 = vpack.c.bf16 %v5459_v26, %v5459_v26  ;;  %15857 = vmatmul.mubr.bf16.gmra.mrb[48].mxu1 %v16873_v47  ;;  %v15146_v40 = vpack.c.bf16 %v4986_v9, %v4986_v9  ;;  %5381 = vst [vmem:[#allocation3 + $0x5b8] sm:$0xf] %v15145_v18  ;;  %v5461_v33 = vld [vmem:[#allocation2 + $0x172] sm:$0xff]  ;;  %5856 = vst [vmem:[#allocation3 + $0x5bc] sm:$0xf] %v15224_v32  ;;  %v4988_v16 = vld [vmem:[#allocation2 + $0x181] sm:$0xff] }
 0x3ae   :  { %9991 = vmatmul.mubr.bf16.gmra.mrb[100].mxu0 %v16871_v54  ;;  %15860 = vmatprep.mubr.bf16.mxu1 %v16876_v23  ;;  %v4987_v4 = vld [vmem:[#allocation2 + $0x179] sm:$0xff]  ;;  %v15225_v5 = vpack.c.bf16 %v5461_v33, %v5461_v33  ;;  %v5463_v25 = vld [vmem:[#allocation2 + $0x182] sm:$0xff]  ;;  %v16877_v47 = vld [vmem:[#allocation3 + $0x328] ss:$36 sps:$4 sm:$0xff]   ;;  %v15148_v26 = vpack.c.bf16 %v4988_v16, %v4988_v16 }
 0x3af   :  { %9998 = vmatprep.mubr.bf16.mxu0 %v16874_v45  ;;  %5855 = vst [vmem:[#allocation3 + $0x598] sm:$0xf] %v15223_v48  ;;  %5382 = vst [vmem:[#allocation3 + $0x5dc] sm:$0xf] %v15146_v40  ;;  %v15147_v13 = vpack.c.bf16 %v4987_v4, %v4987_v4  ;;  %v5462_v21 = vld [vmem:[#allocation2 + $0x17a] sm:$0xff]  ;;  %v15227_v45 = vpack.c.bf16 %v5463_v25, %v5463_v25  ;;  %v4989_v23 = vld [vmem:[#allocation2 + $0x189] sm:$0xff] }
 0x3b0   :  { %v18976_v28 = vpop.f32.mrb[200].mxu1  ;;  %v16878_v31 = vld [vmem:[#allocation3 + $0x728] ss:$36 sps:$4 sm:$0xff]   ;;  %v15226_v10 = vpack.c.bf16 %v5462_v21, %v5462_v21  ;;  %v16879_v18 = vld [vmem:[#allocation3 + $0x374] ss:$36 sps:$4 sm:$0xff]   ;;  %v15149_v32 = vpack.c.bf16 %v4989_v23, %v4989_v23 }
 0x3b1   :  { %20528 = vst [vmem:[#allocation190_spill] sm:$0xff] %v18976_v28  ;;  %v9410_v54 = vpop.f32.mrb[201].mxu1  ;;  %v4990_v48 = vld [vmem:[#allocation2 + $0x191] sm:$0xff]  ;;  %5857 = vst [vmem:[#allocation3 + $0x5e0] sm:$0xf] %v15225_v5  ;;  %v4991_v57 = vld [vmem:[#allocation2 + $0x199] sm:$0xff] }
 0x3b2   :  { %v5464_v9 = vld [vmem:[#allocation2 + $0x18a] sm:$0xff]  ;;  %v18978_v7 = vpop.f32.mrb[202].mxu1  ;;  %v16881_v40 = vld [vmem:[#allocation3 + $0x770] ss:$36 sps:$4 sm:$0xff]   ;;  %5383 = vst [vmem:[#allocation3 + $0x600] sm:$0xf] %v15147_v13  ;;  %v15150_v33 = vpack.c.bf16 %v4990_v48, %v4990_v48  ;;  %v15151_v25 = vpack.c.bf16 %v4991_v57, %v4991_v57 }
 0x3b3   :  { %20529 = vst [vmem:[#allocation191_spill] sm:$0xff] %v18978_v7  ;;  %v5465_v4 = vld [vmem:[#allocation2 + $0x192] sm:$0xff]  ;;  %v15228_v28 = vpack.c.bf16 %v5464_v9, %v5464_v9  ;;  %v9413_v54 = vpop.f32.mrb[203].mxu1  ;;  %5384 = vst [vmem:[#allocation3 + $0x624] sm:$0xf] %v15148_v26  ;;  %v4992_v21 = vld [vmem:[#allocation2 + $0x1a1] sm:$0xff] }
 0x3b4   :  { %5858 = vst [vmem:[#allocation3 + $0x604] sm:$0xf] %v15226_v10  ;;  %5859 = vst [vmem:[#allocation3 + $0x628] sm:$0xf] %v15227_v45  ;;  %v15229_v16 = vpack.c.bf16 %v5465_v4, %v5465_v4  ;;  %v5466_v62 = vld [vmem:[#allocation2 + $0x19a] sm:$0xff]  ;;  %v5467_v30 = vld [vmem:[#allocation2 + $0x1a2] sm:$0xff]  ;;  %v15152_v7 = vpack.c.bf16 %v4992_v21, %v4992_v21 }
 0x3b5   :  { %5385 = vst [vmem:[#allocation3 + $0x648] sm:$0xf] %v15149_v32  ;;  %5386 = vst [vmem:[#allocation3 + $0x66c] sm:$0xf] %v15150_v33  ;;  %v15230_v5 = vpack.c.bf16 %v5466_v62, %v5466_v62  ;;  %v15231_v13 = vpack.c.bf16 %v5467_v30, %v5467_v30  ;;  %v4993_v23 = vld [vmem:[#allocation2 + $0x1a9] sm:$0xff]  ;;  %v4994_v48 = vld [vmem:[#allocation2 + $0x1b1] sm:$0xff]  ;;  %15861 = vmatmul.mubr.bf16.gmra.mrb[52].mxu1 %v16878_v31 }
 0x3b6   :  { %5860 = vst [vmem:[#allocation3 + $0x64c] sm:$0xf] %v15228_v28  ;;  %v5468_v38 = vld [vmem:[#allocation2 + $0x1aa] sm:$0xff]  ;;  %9999 = vmatmul.mubr.bf16.gmra.mrb[104].mxu0 %v16877_v47  ;;  %5861 = vst [vmem:[#allocation3 + $0x670] sm:$0xf] %v15229_v16  ;;  %v15153_v26 = vpack.c.bf16 %v4993_v23, %v4993_v23  ;;  %v15154_v10 = vpack.c.bf16 %v4994_v48, %v4994_v48  ;;  %15864 = vmatprep.mubr.bf16.mxu1 %v16881_v40  ;;  %v5469_v57 = vld [vmem:[#allocation2 + $0x1b2] sm:$0xff] }
 0x3b7   :  { %5387 = vst [vmem:[#allocation3 + $0x690] sm:$0xf] %v15151_v25  ;;  %v15232_v45 = vpack.c.bf16 %v5468_v38, %v5468_v38  ;;  %10006 = vmatprep.mubr.bf16.mxu0 %v16879_v18  ;;  %5388 = vst [vmem:[#allocation3 + $0x6b4] sm:$0xf] %v15152_v7  ;;  %v4995_v28 = vld [vmem:[#allocation2 + $0x1b9] sm:$0xff]  ;;  %v15233_v30 = vpack.c.bf16 %v5469_v57, %v5469_v57  ;;  %v4996_v62 = vld [vmem:[#allocation2 + $0x1c1] sm:$0xff] }
 0x3b8   :  { %5862 = vst [vmem:[#allocation3 + $0x694] sm:$0xf] %v15230_v5  ;;  %5863 = vst [vmem:[#allocation3 + $0x6b8] sm:$0xf] %v15231_v13  ;;  %v15155_v9 = vpack.c.bf16 %v4995_v28, %v4995_v28  ;;  %v5470_v47 = vld [vmem:[#allocation2 + $0x1ba] sm:$0xff]  ;;  %v5471_v31 = vld [vmem:[#allocation2 + $0x1c2] sm:$0xff]  ;;  %v15156_v18 = vpack.c.bf16 %v4996_v62, %v4996_v62 }
 0x3b9   :  { %5389 = vst [vmem:[#allocation3 + $0x6d8] sm:$0xf] %v15153_v26  ;;  %5390 = vst [vmem:[#allocation3 + $0x6fc] sm:$0xf] %v15154_v10  ;;  %v18980_v32 = vpop.f32.mrb[204].mxu1  ;;  %v16948_v38 = vld [vmem:[%s20104_s6 + $0x1d8] sm:$0xff]   ;;  %v15234_v7 = vpack.c.bf16 %v5470_v47, %v5470_v47  ;;  %v15235_v40 = vpack.c.bf16 %v5471_v31, %v5471_v31 }
 0x3ba   :  { %5864 = vst [vmem:[#allocation3 + $0x6dc] sm:$0xf] %v15232_v45  ;;  %20530 = vst [vmem:[#allocation192_spill] sm:$0xff] %v18980_v32  ;;  %v4997_v33 = vld [vmem:[#allocation2 + $0x1c9] sm:$0xff]  ;;  %v4998_v4 = vld [vmem:[#allocation2 + $0x1d1] sm:$0xff]  ;;  %v9418_v54 = vpop.f32.mrb[205].mxu1  ;;  %10253 = vmatpush1.bf16.msra.mxu0 %v16948_v38 }
 0x3bb   :  { %5865 = vst [vmem:[#allocation3 + $0x700] sm:$0xf] %v15233_v30  ;;  %5391 = vst [vmem:[#allocation3 + $0x720] sm:$0xf] %v15155_v9  ;;  %v15157_v16 = vpack.c.bf16 %v4997_v33, %v4997_v33  ;;  %v15158_v21 = vpack.c.bf16 %v4998_v4, %v4998_v4  ;;  %v18985_v25 = vpop.f32.mrb[206].mxu1  ;;  %10254 = vmatprep.subr.bf16.mxu0 %v20379_v2  ;;  %v5472_v48 = vld [vmem:[#allocation2 + $0x1ca] sm:$0xff] }
 0x3bc   :  { %20531 = vst [vmem:[#allocation193_spill] sm:$0xff] %v18985_v25  ;;  %v16883_v5 = vld [vmem:[#allocation3 + $0x7b8] ss:$36 sps:$4 sm:$0xff]   ;;  %5392 = vst [vmem:[#allocation3 + $0x744] sm:$0xf] %v15156_v18  ;;  %v9421_v13 = vpop.f32.mrb[207].mxu1  ;;  %v15236_v45 = vpack.c.bf16 %v5472_v48, %v5472_v48 }
 0x3bd   :  { %5866 = vst [vmem:[#allocation3 + $0x724] sm:$0xf] %v15234_v7  ;;  %5867 = vst [vmem:[#allocation3 + $0x748] sm:$0xf] %v15235_v40  ;;  %v16882_v23 = vld [vmem:[#allocation3 + $0x370] ss:$36 sps:$4 sm:$0xff]   ;;  %15865 = vmatmul.mubr.bf16.gmra.mrb[56].mxu1 %v16883_v5 }
 0x3be   :  { %5393 = vst [vmem:[#allocation3 + $0x768] sm:$0xf] %v15157_v16  ;;  %5394 = vst [vmem:[#allocation3 + $0x78c] sm:$0xf] %v15158_v21  ;;  %v16884_v26 = vld [vmem:[#allocation3 + $0x3bc] ss:$36 sps:$4 sm:$0xff]   ;;  %10007 = vmatmul.mubr.bf16.gmra.mrb[108].mxu0 %v16882_v23 }
 0x3bf   :  { %v16886_v10 = vld [vmem:[#allocation3 + $0x800] ss:$36 sps:$4 sm:$0xff]   ;;  %10014 = vmatprep.mubr.bf16.mxu0 %v16884_v26  ;;  %v5473_v57 = vld [vmem:[#allocation2 + $0x1d2] sm:$0xff]  ;;  %5868 = vst [vmem:[#allocation3 + $0x76c] sm:$0xf] %v15236_v45  ;;  %v5474_v9 = vld [vmem:[#allocation2 + $0x1da] sm:$0xff] }
 0x3c0   :  { %15868 = vmatprep.mubr.bf16.mxu1 %v16886_v10  ;;  %v15237_v28 = vpack.c.bf16 %v5473_v57, %v5473_v57  ;;  %v4999_v30 = vld [vmem:[#allocation2 + $0x1d9] sm:$0xff]  ;;  %v5000_v62 = vld [vmem:[#allocation2 + $0x1e1] sm:$0xff]  ;;  %v18988_v47 = vpop.f32.mrb[208].mxu1  ;;  %v15238_v18 = vpack.c.bf16 %v5474_v9, %v5474_v9  ;;  %v16889_v33 = vld [vmem:[#allocation3 + $0x848] ss:$36 sps:$4 sm:$0xff]  }
 0x3c1   :  { %20532 = vst [vmem:[#allocation194_spill] sm:$0xff] %v18988_v47  ;;  %v15159_v31 = vpack.c.bf16 %v4999_v30, %v4999_v30  ;;  %v15160_v38 = vpack.c.bf16 %v5000_v62, %v5000_v62  ;;  %v9426_v7 = vpop.f32.mrb[209].mxu1  ;;  %v16888_v40 = vld [vmem:[#allocation3 + $0x3b8] ss:$36 sps:$4 sm:$0xff]   ;;  %v16890_v54 = vld [vmem:[#allocation3 + $0x404] ss:$36 sps:$4 sm:$0xff]  }
 0x3c2   :  { %5869 = vst [vmem:[#allocation3 + $0x790] sm:$0xf] %v15237_v28  ;;  %v18990_v4 = vpop.f32.mrb[210].mxu1  ;;  %v16892_v16 = vld [vmem:[#allocation3 + $0x890] ss:$36 sps:$4 sm:$0xff]   ;;  %v5475_v21 = vld [vmem:[#allocation2 + $0x1e2] sm:$0xff] }
 0x3c3   :  { %20533 = vst [vmem:[#allocation195_spill] sm:$0xff] %v18990_v4  ;;  %5395 = vst [vmem:[#allocation3 + $0x7b0] sm:$0xf] %v15159_v31  ;;  %v5001_v5 = vld [vmem:[#allocation2 + $0x1e9] sm:$0xff]  ;;  %v9429_v13 = vpop.f32.mrb[211].mxu1  ;;  %v15239_v23 = vpack.c.bf16 %v5475_v21, %v5475_v21  ;;  %v5002_v48 = vld [vmem:[#allocation2 + $0x1f1] sm:$0xff] }
 0x3c4   :  { %5396 = vst [vmem:[#allocation3 + $0x7d4] sm:$0xf] %v15160_v38  ;;  %5870 = vst [vmem:[#allocation3 + $0x7b4] sm:$0xf] %v15238_v18  ;;  %v15161_v26 = vpack.c.bf16 %v5001_v5, %v5001_v5  ;;  %v5476_v10 = vld [vmem:[#allocation2 + $0x1ea] sm:$0xff]  ;;  %v5477_v45 = vld [vmem:[#allocation2 + $0x1f2] sm:$0xff]  ;;  %v15162_v57 = vpack.c.bf16 %v5002_v48, %v5002_v48 }
 0x3c5   :  { %v15240_v30 = vpack.c.bf16 %v5476_v10, %v5476_v10  ;;  %v15241_v62 = vpack.c.bf16 %v5477_v45, %v5477_v45  ;;  %v5003_v9 = vld [vmem:[#allocation2 + $0x1f9] sm:$0xff]  ;;  %v5004_v28 = vld [vmem:[#allocation2 + $0x201] sm:$0xff]  ;;  %15869 = vmatmul.mubr.bf16.gmra.mrb[60].mxu1 %v16889_v33  ;;  %5871 = vst [vmem:[#allocation3 + $0x7d8] sm:$0xf] %v15239_v23  ;;  %v5005_v13 = vld [vmem:[#allocation2 + $0x209] sm:$0xff] }
 0x3c6   :  { %v5478_v7 = vld [vmem:[#allocation2 + $0x1fa] sm:$0xff]  ;;  %10015 = vmatmul.mubr.bf16.gmra.mrb[112].mxu0 %v16888_v40  ;;  %5397 = vst [vmem:[#allocation3 + $0x7f8] sm:$0xf] %v15161_v26  ;;  %v15163_v31 = vpack.c.bf16 %v5003_v9, %v5003_v9  ;;  %v15164_v38 = vpack.c.bf16 %v5004_v28, %v5004_v28  ;;  %v5479_v18 = vld [vmem:[#allocation2 + $0x202] sm:$0xff]  ;;  %15872 = vmatprep.mubr.bf16.mxu1 %v16892_v16  ;;  %5398 = vst [vmem:[#allocation3 + $0x81c] sm:$0xf] %v15162_v57 }
 0x3c7   :  { %v15242_v4 = vpack.c.bf16 %v5478_v7, %v5478_v7  ;;  %10022 = vmatprep.mubr.bf16.mxu0 %v16890_v54  ;;  %5872 = vst [vmem:[#allocation3 + $0x7fc] sm:$0xf] %v15240_v30  ;;  %5873 = vst [vmem:[#allocation3 + $0x820] sm:$0xf] %v15241_v62  ;;  %v15243_v21 = vpack.c.bf16 %v5479_v18, %v5479_v18  ;;  %v5006_v5 = vld [vmem:[#allocation2 + $0x211] sm:$0xff]  ;;  %v15165_v48 = vpack.c.bf16 %v5005_v13, %v5005_v13  ;;  %v5007_v26 = vld [vmem:[#allocation2 + $0x219] sm:$0xff] }
 0x3c8   :  { %v5480_v10 = vld [vmem:[#allocation2 + $0x20a] sm:$0xff]  ;;  %v5481_v45 = vld [vmem:[#allocation2 + $0x212] sm:$0xff]  ;;  %5399 = vst [vmem:[#allocation3 + $0x840] sm:$0xf] %v15163_v31  ;;  %5400 = vst [vmem:[#allocation3 + $0x864] sm:$0xf] %v15164_v38  ;;  %v15166_v40 = vpack.c.bf16 %v5006_v5, %v5006_v5  ;;  %v15167_v54 = vpack.c.bf16 %v5007_v26, %v5007_v26 }
 0x3c9   :  { %5874 = vst [vmem:[#allocation3 + $0x844] sm:$0xf] %v15242_v4  ;;  %v15244_v33 = vpack.c.bf16 %v5480_v10, %v5480_v10  ;;  %v15245_v23 = vpack.c.bf16 %v5481_v45, %v5481_v45  ;;  %v5008_v9 = vld [vmem:[#allocation2 + $0x221] sm:$0xff]  ;;  %v18992_v7 = vpop.f32.mrb[212].mxu1  ;;  %5875 = vst [vmem:[#allocation3 + $0x868] sm:$0xf] %v15243_v21 }
 0x3ca   :  { %v5482_v28 = vld [vmem:[#allocation2 + $0x21a] sm:$0xff]  ;;  %20534 = vst [vmem:[#allocation196_spill] sm:$0xff] %v18992_v7  ;;  %5401 = vst [vmem:[#allocation3 + $0x888] sm:$0xf] %v15165_v48  ;;  %v15168_v16 = vpack.c.bf16 %v5008_v9, %v5008_v9  ;;  %v9434_v30 = vpop.f32.mrb[213].mxu1  ;;  %v5483_v4 = vld [vmem:[#allocation2 + $0x222] sm:$0xff] }
 0x3cb   :  { %v15246_v57 = vpack.c.bf16 %v5482_v28, %v5482_v28  ;;  %v16893_v62 = vld [vmem:[#allocation3 + $0x400] ss:$36 sps:$4 sm:$0xff]   ;;  %v16894_v18 = vld [vmem:[#allocation3 + $0x8d8] ss:$36 sps:$4 sm:$0xff]   ;;  %5402 = vst [vmem:[#allocation3 + $0x8ac] sm:$0xf] %v15166_v40  ;;  %v15247_v13 = vpack.c.bf16 %v5483_v4, %v5483_v4 }
 0x3cc   :  { %5876 = vst [vmem:[#allocation3 + $0x88c] sm:$0xf] %v15244_v33  ;;  %5877 = vst [vmem:[#allocation3 + $0x8b0] sm:$0xf] %v15245_v23  ;;  %v5009_v31 = vld [vmem:[#allocation2 + $0x229] sm:$0xff]  ;;  %v18994_v38 = vpop.f32.mrb[214].mxu1 }
 0x3cd   :  { %20535 = vst [vmem:[#allocation197_spill] sm:$0xff] %v18994_v38  ;;  %5403 = vst [vmem:[#allocation3 + $0x8d0] sm:$0xf] %v15167_v54  ;;  %v5010_v5 = vld [vmem:[#allocation2 + $0x231] sm:$0xff]  ;;  %v15169_v21 = vpack.c.bf16 %v5009_v31, %v5009_v31  ;;  %v9437_v45 = vpop.f32.mrb[215].mxu1  ;;  %v5011_v30 = vld [vmem:[#allocation2 + $0x239] sm:$0xff]  ;;  %15873 = vmatmul.mubr.bf16.gmra.mrb[64].mxu1 %v16894_v18 }
 0x3ce   :  { %5404 = vst [vmem:[#allocation3 + $0x8f4] sm:$0xf] %v15168_v16  ;;  %5878 = vst [vmem:[#allocation3 + $0x8d4] sm:$0xf] %v15246_v57  ;;  %v5484_v48 = vld [vmem:[#allocation2 + $0x22a] sm:$0xff]  ;;  %v5485_v10 = vld [vmem:[#allocation2 + $0x232] sm:$0xff]  ;;  %v15170_v26 = vpack.c.bf16 %v5010_v5, %v5010_v5  ;;  %v15171_v38 = vpack.c.bf16 %v5011_v30, %v5011_v30  ;;  %10023 = vmatmul.mubr.bf16.gmra.mrb[116].mxu0 %v16893_v62 }
 0x3cf   :  { %v15248_v9 = vpack.c.bf16 %v5484_v48, %v5484_v48  ;;  %v15249_v28 = vpack.c.bf16 %v5485_v10, %v5485_v10  ;;  %v5012_v40 = vld [vmem:[#allocation2 + $0x241] sm:$0xff]  ;;  %v16895_v23 = vld [vmem:[#allocation3 + $0x44c] ss:$36 sps:$4 sm:$0xff]   ;;  %5879 = vst [vmem:[#allocation3 + $0x8f8] sm:$0xf] %v15247_v13  ;;  %v5488_v10 = vld [vmem:[#allocation2 + $0x24a] sm:$0xff] }
 0x3d0   :  { %v5486_v33 = vld [vmem:[#allocation2 + $0x23a] sm:$0xff]  ;;  %v16897_v7 = vld [vmem:[#allocation3 + $0x920] ss:$36 sps:$4 sm:$0xff]   ;;  %5405 = vst [vmem:[#allocation3 + $0x918] sm:$0xf] %v15169_v21  ;;  %v15172_v54 = vpack.c.bf16 %v5012_v40, %v5012_v40  ;;  %10030 = vmatprep.mubr.bf16.mxu0 %v16895_v23  ;;  %v18999_v4 = vpop.f32.mrb[216].mxu1 }
 0x3d1   :  { %v15250_v16 = vpack.c.bf16 %v5486_v33, %v5486_v33  ;;  %v16956_v57 = vld [vmem:[%s20104_s6 + $0x1e0] sm:$0xff]   ;;  %5406 = vst [vmem:[#allocation3 + $0x93c] sm:$0xf] %v15170_v26  ;;  %5880 = vst [vmem:[#allocation3 + $0x91c] sm:$0xf] %v15248_v9  ;;  %15876 = vmatprep.mubr.bf16.mxu1 %v16897_v7  ;;  %v9442_v31 = vpop.f32.mrb[217].mxu1 }
 0x3d2   :  { %5881 = vst [vmem:[#allocation3 + $0x940] sm:$0xf] %v15249_v28  ;;  %5407 = vst [vmem:[#allocation3 + $0x960] sm:$0xf] %v15171_v38  ;;  %10255 = vmatpush1.bf16.msra.mxu0 %v16956_v57  ;;  %v16900_v62 = vld [vmem:[#allocation3 + $0x968] ss:$36 sps:$4 sm:$0xff]   ;;  %v15252_v28 = vpack.c.bf16 %v5488_v10, %v5488_v10 }
 0x3d3   :  { %5408 = vst [vmem:[#allocation3 + $0x984] sm:$0xf] %v15172_v54  ;;  %5882 = vst [vmem:[#allocation3 + $0x964] sm:$0xf] %v15250_v16  ;;  %10256 = vmatprep.subr.bf16.mxu0 %v20379_v2  ;;  %v5487_v18 = vld [vmem:[#allocation2 + $0x242] sm:$0xff]  ;;  %v19002_v13 = vpop.f32.mrb[218].mxu1 }
 0x3d4   :  { %20536 = vst [vmem:[#allocation198_spill] sm:$0xff] %v18999_v4  ;;  %20537 = vst [vmem:[#allocation199_spill] sm:$0xff] %v19002_v13  ;;  %v15251_v5 = vpack.c.bf16 %v5487_v18, %v5487_v18  ;;  %v5013_v21 = vld [vmem:[#allocation2 + $0x249] sm:$0xff]  ;;  %v5014_v48 = vld [vmem:[#allocation2 + $0x251] sm:$0xff]  ;;  %v9445_v45 = vpop.f32.mrb[219].mxu1 }
 0x3d5   :  { %v16898_v26 = vld [vmem:[#allocation3 + $0x448] ss:$36 sps:$4 sm:$0xff]   ;;  %v16901_v7 = vld [vmem:[#allocation3 + $0x494] ss:$36 sps:$4 sm:$0xff]   ;;  %v15173_v38 = vpack.c.bf16 %v5013_v21, %v5013_v21  ;;  %v15174_v9 = vpack.c.bf16 %v5014_v48, %v5014_v48  ;;  %15877 = vmatmul.mubr.bf16.gmra.mrb[68].mxu1 %v16900_v62  ;;  %5884 = vst [vmem:[#allocation3 + $0x9ac] sm:$0xf] %v15252_v28 }
 0x3d6   :  { %v16903_v30 = vld [vmem:[#allocation3 + $0x9b0] ss:$36 sps:$4 sm:$0xff]   ;;  %5883 = vst [vmem:[#allocation3 + $0x988] sm:$0xf] %v15251_v5  ;;  %10031 = vmatmul.mubr.bf16.gmra.mrb[120].mxu0 %v16898_v26  ;;  %v5016_v54 = vld [vmem:[#allocation2 + $0x261] sm:$0xff]  ;;  %v5017_v48 = vld [vmem:[#allocation2 + $0x269] sm:$0xff] }
 0x3d7   :  { %5409 = vst [vmem:[#allocation3 + $0x9a8] sm:$0xf] %v15173_v38  ;;  %5410 = vst [vmem:[#allocation3 + $0x9cc] sm:$0xf] %v15174_v9  ;;  %v5489_v40 = vld [vmem:[#allocation2 + $0x252] sm:$0xff]  ;;  %10038 = vmatprep.mubr.bf16.mxu0 %v16901_v7  ;;  %15880 = vmatprep.mubr.bf16.mxu1 %v16903_v30  ;;  %v5490_v16 = vld [vmem:[#allocation2 + $0x25a] sm:$0xff]  ;;  %v15176_v31 = vpack.c.bf16 %v5016_v54, %v5016_v54  ;;  %v15177_v5 = vpack.c.bf16 %v5017_v48, %v5017_v48 }
 0x3d8   :  { %v15253_v33 = vpack.c.bf16 %v5489_v40, %v5489_v40  ;;  %v5015_v23 = vld [vmem:[#allocation2 + $0x259] sm:$0xff]  ;;  %v5491_v18 = vld [vmem:[#allocation2 + $0x262] sm:$0xff]  ;;  %v15254_v21 = vpack.c.bf16 %v5490_v16, %v5490_v16  ;;  %v5018_v10 = vld [vmem:[#allocation2 + $0x271] sm:$0xff]  ;;  %v19004_v45 = vpop.f32.mrb[220].mxu1 }
 0x3d9   :  { %v15175_v57 = vpack.c.bf16 %v5015_v23, %v5015_v23  ;;  %20538 = vst [vmem:[#allocation200_spill] sm:$0xff] %v19004_v45  ;;  %v15255_v62 = vpack.c.bf16 %v5491_v18, %v5491_v18  ;;  %v15178_v26 = vpack.c.bf16 %v5018_v10, %v5018_v10  ;;  %v5492_v38 = vld [vmem:[#allocation2 + $0x26a] sm:$0xff]  ;;  %v5493_v9 = vld [vmem:[#allocation2 + $0x272] sm:$0xff]  ;;  %v9450_v28 = vpop.f32.mrb[221].mxu1  ;;  %v16905_v30 = vld [vmem:[#allocation3 + $0x9f8] ss:$36 sps:$4 sm:$0xff]  }
 0x3da   :  { %5885 = vst [vmem:[#allocation3 + $0x9d0] sm:$0xf] %v15253_v33  ;;  %v5019_v7 = vld [vmem:[#allocation2 + $0x279] sm:$0xff]  ;;  %5412 = vst [vmem:[#allocation3 + $0xa14] sm:$0xf] %v15176_v31  ;;  %v15256_v40 = vpack.c.bf16 %v5492_v38, %v5492_v38  ;;  %v15257_v23 = vpack.c.bf16 %v5493_v9, %v5493_v9  ;;  %v5020_v54 = vld [vmem:[#allocation2 + $0x281] sm:$0xff] }
 0x3db   :  { %5411 = vst [vmem:[#allocation3 + $0x9f0] sm:$0xf] %v15175_v57  ;;  %5886 = vst [vmem:[#allocation3 + $0x9f4] sm:$0xf] %v15254_v21  ;;  %v15179_v16 = vpack.c.bf16 %v5019_v7, %v5019_v7  ;;  %v5494_v13 = vld [vmem:[#allocation2 + $0x27a] sm:$0xff]  ;;  %v5495_v4 = vld [vmem:[#allocation2 + $0x282] sm:$0xff]  ;;  %v15180_v33 = vpack.c.bf16 %v5020_v54, %v5020_v54 }
 0x3dc   :  { %v19006_v47 = vpop.f32.mrb[222].mxu1  ;;  %5887 = vst [vmem:[#allocation3 + $0xa18] sm:$0xf] %v15255_v62  ;;  %5413 = vst [vmem:[#allocation3 + $0xa38] sm:$0xf] %v15177_v5  ;;  %v15258_v18 = vpack.c.bf16 %v5494_v13, %v5494_v13  ;;  %v15259_v48 = vpack.c.bf16 %v5495_v4, %v5495_v4  ;;  %v5021_v10 = vld [vmem:[#allocation2 + $0x289] sm:$0xff] }
 0x3dd   :  { %20539 = vst [vmem:[#allocation201_spill] sm:$0xff] %v19006_v47  ;;  %5414 = vst [vmem:[#allocation3 + $0xa5c] sm:$0xf] %v15178_v26  ;;  %v5022_v28 = vld [vmem:[#allocation2 + $0x291] sm:$0xff]  ;;  %v9453_v57 = vpop.f32.mrb[223].mxu1  ;;  %v15181_v38 = vpack.c.bf16 %v5021_v10, %v5021_v10  ;;  %15881 = vmatmul.mubr.bf16.gmra.mrb[72].mxu1 %v16905_v30 }
 0x3de   :  { %v5496_v45 = vld [vmem:[#allocation2 + $0x28a] sm:$0xff]  ;;  %v16904_v31 = vld [vmem:[#allocation3 + $0x490] ss:$36 sps:$4 sm:$0xff]   ;;  %5888 = vst [vmem:[#allocation3 + $0xa3c] sm:$0xf] %v15256_v40  ;;  %v15182_v9 = vpack.c.bf16 %v5022_v28, %v5022_v28 }
 0x3df   :  { %v16906_v21 = vld [vmem:[#allocation3 + $0x4dc] ss:$36 sps:$4 sm:$0xff]   ;;  %5889 = vst [vmem:[#allocation3 + $0xa60] sm:$0xf] %v15257_v23  ;;  %5415 = vst [vmem:[#allocation3 + $0xa80] sm:$0xf] %v15179_v16  ;;  %v15260_v7 = vpack.c.bf16 %v5496_v45, %v5496_v45  ;;  %10039 = vmatmul.mubr.bf16.gmra.mrb[124].mxu0 %v16904_v31 }
 0x3e0   :  { %v16908_v25 = vld [vmem:[#allocation3 + $0xa40] ss:$36 sps:$4 sm:$0xff]   ;;  %5416 = vst [vmem:[#allocation3 + $0xaa4] sm:$0xf] %v15180_v33  ;;  %5890 = vst [vmem:[#allocation3 + $0xa84] sm:$0xf] %v15258_v18  ;;  %10046 = vmatprep.mubr.bf16.mxu0 %v16906_v21 }
 0x3e1   :  { %5891 = vst [vmem:[#allocation3 + $0xaa8] sm:$0xf] %v15259_v48  ;;  %v5497_v62 = vld [vmem:[#allocation2 + $0x292] sm:$0xff]  ;;  %5417 = vst [vmem:[#allocation3 + $0xac8] sm:$0xf] %v15181_v38  ;;  %15884 = vmatprep.mubr.bf16.mxu1 %v16908_v25  ;;  %v19008_v13 = vpop.f32.mrb[224].mxu1 }
 0x3e2   :  { %5418 = vst [vmem:[#allocation3 + $0xaec] sm:$0xf] %v15182_v9  ;;  %v15261_v4 = vpack.c.bf16 %v5497_v62, %v5497_v62  ;;  %5892 = vst [vmem:[#allocation3 + $0xacc] sm:$0xf] %v15260_v7  ;;  %v16965_v45 = vld [vmem:[%s20104_s6 + $0x1e8] sm:$0xff]   ;;  %v9458_v5 = vpop.f32.mrb[225].mxu1 }
 0x3e3   :  { %20540 = vst [vmem:[#allocation202_spill] sm:$0xff] %v19008_v13  ;;  %v19013_v26 = vpop.f32.mrb[226].mxu1  ;;  %v16910_v40 = vld [vmem:[#allocation3 + $0xa88] ss:$36 sps:$4 sm:$0xff]   ;;  %10257 = vmatpush1.bf16.msra.mxu0 %v16965_v45  ;;  %v16909_v30 = vld [vmem:[#allocation3 + $0x4d8] ss:$36 sps:$4 sm:$0xff]  }
 0x3e4   :  { %5893 = vst [vmem:[#allocation3 + $0xaf0] sm:$0xf] %v15261_v4  ;;  %20541 = vst [vmem:[#allocation203_spill] sm:$0xff] %v19013_v26  ;;  %v9461_v23 = vpop.f32.mrb[227].mxu1  ;;  %10258 = vmatprep.subr.bf16.mxu0 %v20379_v2  ;;  %v16911_v54 = vld [vmem:[#allocation3 + $0x524] ss:$36 sps:$4 sm:$0xff]  }
 0x3e5   :  { %v16913_v16 = vld [vmem:[#allocation3 + $0xad0] ss:$36 sps:$4 sm:$0xff]   ;;  %15885 = vmatmul.mubr.bf16.gmra.mrb[76].mxu1 %v16910_v40  ;;  %v16915_v10 = vld [vmem:[#allocation3 + $0x520] ss:$36 sps:$4 sm:$0xff]   ;;  %v16918_v9 = vld [vmem:[#allocation3 + $0x568] ss:$36 sps:$4 sm:$0xff]  }
 0x3e6   :  { %15888 = vmatprep.mubr.bf16.mxu1 %v16913_v16  ;;  %v16916_v28 = vld [vmem:[#allocation3 + $0x56c] ss:$36 sps:$4 sm:$0xff]   ;;  %v16919_v7 = vld [vmem:[#allocation3 + $0x5b4] ss:$36 sps:$4 sm:$0xff]   ;;  %v16963_v46 = vld [vmem:[#allocation3 + $0x95c] ss:$36 sps:$4 sm:$0xff]  }
 0x3e7   :  { %10047 = vmatmul.mubr.bf16.gmra.mrb[128].mxu0 %v16909_v30  ;;  %v16973_v62 = vld [vmem:[%s20104_s6 + $0x1f0] sm:$0xff]   ;;  %v16921_v23 = vld [vmem:[#allocation3 + $0x5b0] ss:$36 sps:$4 sm:$0xff]   ;;  %v16923_v30 = vld [vmem:[#allocation3 + $0x5fc] ss:$36 sps:$4 sm:$0xff]  }
 0x3e8   :  { %10054 = vmatprep.mubr.bf16.mxu0 %v16911_v54  ;;  %v19016_v25 = vpop.f32.mrb[228].mxu1  ;;  %10259 = vmatpush1.bf16.msra.mxu0 %v16973_v62  ;;  %v16957_v32 = vld [vmem:[#allocation3 + $0x8cc] ss:$36 sps:$4 sm:$0xff]   ;;  %v16960_v34 = vld [vmem:[#allocation3 + $0x914] ss:$36 sps:$4 sm:$0xff]  }
 0x3e9   :  { %20542 = vst [vmem:[#allocation204_spill] sm:$0xff] %v19016_v25  ;;  %v9466_v33 = vpop.f32.mrb[229].mxu1  ;;  %10260 = vmatprep.subr.bf16.mxu0 %v20379_v2  ;;  %v16953_v25 = vld [vmem:[#allocation3 + $0x884] ss:$36 sps:$4 sm:$0xff]  }
 0x3ea   :  { %v19018_v18 = vpop.f32.mrb[230].mxu1  ;;  %v17069_v20 = vld [vmem:[#allocation3 + $0x768] ss:$36 sps:$4 sm:$0xff]  }
 0x3eb   :  { %20543 = vst [vmem:[#allocation205_spill] sm:$0xff] %v19018_v18  ;;  %v9469_v48 = vpop.f32.mrb[231].mxu1 }
 0x3ef   :  { %10055 = vmatmul.mubr.bf16.gmra.mrb[132].mxu0 %v16915_v10  ;;  %v16925_v10 = vld [vmem:[#allocation3 + $0x5f8] ss:$36 sps:$4 sm:$0xff]  }
 0x3f0   :  { %10062 = vmatprep.mubr.bf16.mxu0 %v16916_v28  ;;  %v19020_v57 = vpop.f32.mrb[232].mxu1  ;;  %v16926_v28 = vld [vmem:[#allocation3 + $0x644] ss:$36 sps:$4 sm:$0xff]  }
 0x3f1   :  { %20544 = vst [vmem:[#allocation206_spill] sm:$0xff] %v19020_v57  ;;  %v9474_v31 = vpop.f32.mrb[233].mxu1 }
 0x3f2   :  { %v19022_v21 = vpop.f32.mrb[234].mxu1 }
 0x3f3   :  { %20545 = vst [vmem:[#allocation207_spill] sm:$0xff] %v19022_v21  ;;  %v9477_v38 = vpop.f32.mrb[235].mxu1 }
 0x3f4   :  { %v16982_v38 = vld [vmem:[%s20104_s6 + $0x1f8] sm:$0xff]  }
 0x3f5   :  { %10261 = vmatpush1.bf16.msra.mxu0 %v16982_v38 }
 0x3f7   :  { %10063 = vmatmul.mubr.bf16.gmra.mrb[136].mxu0 %v16918_v9 }
 0x3f8   :  { %10070 = vmatprep.mubr.bf16.mxu0 %v16919_v7  ;;  %v19027_v4 = vpop.f32.mrb[236].mxu1 }
 0x3f9   :  { %20546 = vst [vmem:[#allocation208_spill] sm:$0xff] %v19027_v4  ;;  %v9482_v45 = vpop.f32.mrb[237].mxu1  ;;  %v16950_v4 = vld [vmem:[#allocation3 + $0x83c] ss:$36 sps:$4 sm:$0xff]  }
 0x3fa   :  { %v19030_v5 = vpop.f32.mrb[238].mxu1  ;;  %v16928_v45 = vld [vmem:[#allocation3 + $0x640] ss:$36 sps:$4 sm:$0xff]  }
 0x3fb   :  { %20547 = vst [vmem:[#allocation209_spill] sm:$0xff] %v19030_v5  ;;  %v9485_v40 = vpop.f32.mrb[239].mxu1 }
 0x3fc   :  { %v16929_v40 = vld [vmem:[#allocation3 + $0x68c] ss:$36 sps:$4 sm:$0xff]  }
 0x3ff   :  { %10071 = vmatmul.mubr.bf16.gmra.mrb[140].mxu0 %v16921_v23 }
 0x400   :  { %10078 = vmatprep.mubr.bf16.mxu0 %v16923_v30  ;;  %v19032_v54 = vpop.f32.mrb[240].mxu1 }
 0x401   :  { %20548 = vst [vmem:[#allocation210_spill] sm:$0xff] %v19032_v54  ;;  %v9490_v16 = vpop.f32.mrb[241].mxu1 }
 0x402   :  { %v19034_v33 = vpop.f32.mrb[242].mxu1 }
 0x403   :  { %20549 = vst [vmem:[#allocation211_spill] sm:$0xff] %v19034_v33  ;;  %v9493_v48 = vpop.f32.mrb[243].mxu1  ;;  %v16943_v33 = vld [vmem:[#allocation3 + $0x7ac] ss:$36 sps:$4 sm:$0xff]  }
 0x407   :  { %10079 = vmatmul.mubr.bf16.gmra.mrb[144].mxu0 %v16925_v10  ;;  %v16932_v10 = vld [vmem:[#allocation3 + $0x688] ss:$36 sps:$4 sm:$0xff]  }
 0x408   :  { %10086 = vmatprep.mubr.bf16.mxu0 %v16926_v28  ;;  %v19036_v31 = vpop.f32.mrb[244].mxu1  ;;  %v16933_v28 = vld [vmem:[#allocation3 + $0x6d4] ss:$36 sps:$4 sm:$0xff]  }
 0x409   :  { %20550 = vst [vmem:[#allocation212_spill] sm:$0xff] %v19036_v31  ;;  %v9498_v9 = vpop.f32.mrb[245].mxu1  ;;  %v16936_v31 = vld [vmem:[#allocation3 + $0x71c] ss:$36 sps:$4 sm:$0xff]  }
 0x40a   :  { %v19041_v7 = vpop.f32.mrb[246].mxu1 }
 0x40b   :  { %20551 = vst [vmem:[#allocation213_spill] sm:$0xff] %v19041_v7  ;;  %v9501_v62 = vpop.f32.mrb[247].mxu1 }
 0x40c   :  { %v16935_v62 = vld [vmem:[#allocation3 + $0x6d0] ss:$36 sps:$4 sm:$0xff]  }
 0x40f   :  { %10087 = vmatmul.mubr.bf16.gmra.mrb[148].mxu0 %v16928_v45 }
 0x410   :  { %10094 = vmatprep.mubr.bf16.mxu0 %v16929_v40  ;;  %v19043_v23 = vpop.f32.mrb[248].mxu1 }
 0x411   :  { %20552 = vst [vmem:[#allocation214_spill] sm:$0xff] %v19043_v23  ;;  %v9506_v30 = vpop.f32.mrb[249].mxu1 }
 0x412   :  { %v19045_v16 = vpop.f32.mrb[250].mxu1 }
 0x413   :  { %20553 = vst [vmem:[#allocation215_spill] sm:$0xff] %v19045_v16  ;;  %v9509_v48 = vpop.f32.mrb[251].mxu1  ;;  %v16938_v16 = vld [vmem:[#allocation3 + $0x718] ss:$36 sps:$4 sm:$0xff]  }
 0x414   :  { %v16940_v48 = vld [vmem:[#allocation3 + $0x764] ss:$36 sps:$4 sm:$0xff]  }
 0x417   :  { %10095 = vmatmul.mubr.bf16.gmra.mrb[152].mxu0 %v16932_v10  ;;  %v19054_v10 = vld [vmem:[%s20105_s7] ss:$0 sm:$0xff] }
 0x418   :  { %10102 = vmatprep.mubr.bf16.mxu0 %v16933_v28  ;;  %v19047_v2 = vpop.f32.mrb[252].mxu1 }
 0x419   :  { %20554 = vst [vmem:[#allocation216_spill] sm:$0xff] %v19047_v2  ;;  %v9514_v9 = vpop.f32.mrb[253].mxu1  ;;  %v16942_v2 = vld [vmem:[#allocation3 + $0x760] ss:$36 sps:$4 sm:$0xff]  }
 0x41a   :  { %v19049_v7 = vpop.f32.mrb[254].mxu1 }
 0x41b   :  { %20555 = vst [vmem:[#allocation217_spill] sm:$0xff] %v19049_v7  ;;  %v9517_v38 = vpop.f32.mrb[255].mxu1 }
 0x41f   :  { %10103 = vmatmul.mubr.bf16.gmra.mrb[156].mxu0 %v16935_v62 }
 0x420   :  { %10110 = vmatprep.mubr.bf16.mxu0 %v16936_v31  ;;  %v9520_v45 = vpop.f32.mrb[0].mxu1 }
 0x421   :  { %v9522_v40 = vpop.f32.mrb[1].mxu1  ;;  %v9521_v28 = vadd.f32 %v19054_v10, %v9520_v45 }
 0x422   :  { %v9523_v30 = vpop.f32.mrb[2].mxu1 }
 0x423   :  { %v9524_v23 = vpop.f32.mrb[3].mxu1 }
 0x427   :  { %10111 = vmatmul.mubr.bf16.gmra.mrb[160].mxu0 %v16938_v16 }
 0x428   :  { %10118 = vmatprep.mubr.bf16.mxu0 %v16940_v48  ;;  %v19057_v38 = vpop.f32.mrb[4].mxu1 }
 0x429   :  { %v9872_v9 = vpop.f32.mrb[216].mxu0  ;;  %v19061_v40 = vpop.f32.mrb[5].mxu1 }
 0x42a   :  { %v19059_v62 = vadd.f32 %v9872_v9, %v9521_v28  ;;  %v9874_v31 = vpop.f32.mrb[217].mxu0  ;;  %v19063_v30 = vpop.f32.mrb[6].mxu1  ;;  %v16945_v9 = vld [vmem:[#allocation3 + $0x7a8] ss:$36 sps:$4 sm:$0xff]  }
 0x42b   :  { %v9875_v23 = vpop.f32.mrb[218].mxu0  ;;  %v19065_v7 = vpop.f32.mrb[7].mxu1  ;;  %v16946_v31 = vld [vmem:[#allocation3 + $0x7f4] ss:$36 sps:$4 sm:$0xff]  }
 0x42c   :  { %v9876_v16 = vpop.f32.mrb[219].mxu0 }
 0x42f   :  { %10119 = vmatmul.mubr.bf16.gmra.mrb[164].mxu0 %v16942_v2 }
 0x430   :  { %10126 = vmatprep.mubr.bf16.mxu0 %v16943_v33  ;;  %v19067_v48 = vpop.f32.mrb[8].mxu1  ;;  %v16949_v33 = vld [vmem:[#allocation3 + $0x7f0] ss:$36 sps:$4 sm:$0xff]  }
 0x431   :  { %v19069_v45 = vpop.f32.mrb[9].mxu1 }
 0x432   :  { %v19071_v54 = vpop.f32.mrb[10].mxu1 }
 0x433   :  { %v19073_v28 = vpop.f32.mrb[11].mxu1 }
 0x437   :  { %10127 = vmatmul.mubr.bf16.gmra.mrb[168].mxu0 %v16945_v9 }
 0x438   :  { %10134 = vmatprep.mubr.bf16.mxu0 %v16946_v31  ;;  %v19075_v23 = vpop.f32.mrb[12].mxu1  ;;  %v16952_v31 = vld [vmem:[#allocation3 + $0x838] ss:$36 sps:$4 sm:$0xff]  }
 0x439   :  { %v19077_v16 = vpop.f32.mrb[13].mxu1 }
 0x43a   :  { %v19079_v5 = vpop.f32.mrb[14].mxu1 }
 0x43b   :  { %v19081_v2 = vpop.f32.mrb[15].mxu1 }
 0x43f   :  { %10135 = vmatmul.mubr.bf16.gmra.mrb[172].mxu0 %v16949_v33 }
 0x440   :  { %10142 = vmatprep.mubr.bf16.mxu0 %v16950_v4  ;;  %v19083_v21 = vpop.f32.mrb[16].mxu1  ;;  %v16955_v4 = vld [vmem:[#allocation3 + $0x880] ss:$36 sps:$4 sm:$0xff]  }
 0x441   :  { %v19085_v57 = vpop.f32.mrb[17].mxu1 }
 0x442   :  { %v19087_v18 = vpop.f32.mrb[18].mxu1 }
 0x443   :  { %v19089_v9 = vpop.f32.mrb[19].mxu1 }
 0x447   :  { %10143 = vmatmul.mubr.bf16.gmra.mrb[176].mxu0 %v16952_v31 }
 0x448   :  { %10150 = vmatprep.mubr.bf16.mxu0 %v16953_v25  ;;  %v19091_v26 = vpop.f32.mrb[20].mxu1  ;;  %v16959_v25 = vld [vmem:[#allocation3 + $0x8c8] ss:$36 sps:$4 sm:$0xff]  }
 0x449   :  { %v19093_v13 = vpop.f32.mrb[21].mxu1 }
 0x44a   :  { %v19095_v47 = vpop.f32.mrb[22].mxu1 }
 0x44b   :  { %v19097_v33 = vpop.f32.mrb[23].mxu1 }
 0x44f   :  { %10151 = vmatmul.mubr.bf16.gmra.mrb[180].mxu0 %v16955_v4 }
 0x450   :  { %10158 = vmatprep.mubr.bf16.mxu0 %v16957_v32  ;;  %v19099_v49 = vpop.f32.mrb[24].mxu1  ;;  %v16962_v32 = vld [vmem:[#allocation3 + $0x910] ss:$36 sps:$4 sm:$0xff]  }
 0x451   :  { %v19101_v22 = vpop.f32.mrb[25].mxu1 }
 0x452   :  { %v19103_v24 = vpop.f32.mrb[26].mxu1 }
 0x453   :  { %v19105_v31 = vpop.f32.mrb[27].mxu1 }
 0x457   :  { %10159 = vmatmul.mubr.bf16.gmra.mrb[184].mxu0 %v16959_v25 }
 0x458   :  { %10166 = vmatprep.mubr.bf16.mxu0 %v16960_v34  ;;  %v19107_v27 = vpop.f32.mrb[28].mxu1  ;;  %v16966_v34 = vld [vmem:[#allocation3 + $0x958] ss:$36 sps:$4 sm:$0xff]  }
 0x459   :  { %20556 = vst [vmem:[#allocation218_spill] sm:$0xff] %v19107_v27  ;;  %v19109_v35 = vpop.f32.mrb[29].mxu1  ;;  %v16967_v27 = vld [vmem:[#allocation3 + $0x9a4] ss:$36 sps:$4 sm:$0xff]  }
 0x45a   :  { %20557 = vst [vmem:[#allocation219_spill] sm:$0xff] %v19109_v35  ;;  %v19111_v43 = vpop.f32.mrb[30].mxu1 }
 0x45b   :  { %20558 = vst [vmem:[#allocation220_spill] sm:$0xff] %v19111_v43  ;;  %v19113_v4 = vpop.f32.mrb[31].mxu1 }
 0x45c   :  { %20559 = vst [vmem:[#allocation221_spill] sm:$0xff] %v19113_v4 }
 0x45f   :  { %10167 = vmatmul.mubr.bf16.gmra.mrb[188].mxu0 %v16962_v32 }
 0x460   :  { %10174 = vmatprep.mubr.bf16.mxu0 %v16963_v46  ;;  %v19115_v56 = vpop.f32.mrb[32].mxu1  ;;  %v16969_v46 = vld [vmem:[#allocation3 + $0x9a0] ss:$36 sps:$4 sm:$0xff]  }
 0x461   :  { %20560 = vst [vmem:[#allocation222_spill] sm:$0xff] %v19115_v56  ;;  %v19117_v11 = vpop.f32.mrb[33].mxu1  ;;  %v16970_v56 = vld [vmem:[#allocation3 + $0x9ec] ss:$36 sps:$4 sm:$0xff]  }
 0x462   :  { %20561 = vst [vmem:[#allocation223_spill] sm:$0xff] %v19117_v11  ;;  %v19119_v17 = vpop.f32.mrb[34].mxu1 }
 0x463   :  { %20562 = vst [vmem:[#allocation224_spill] sm:$0xff] %v19119_v17  ;;  %v19121_v25 = vpop.f32.mrb[35].mxu1 }
 0x464   :  { %20563 = vst [vmem:[#allocation225_spill] sm:$0xff] %v19121_v25 }
 0x467   :  { %10175 = vmatmul.mubr.bf16.gmra.mrb[192].mxu0 %v16966_v34 }
 0x468   :  { %10182 = vmatprep.mubr.bf16.mxu0 %v16967_v27  ;;  %v19123_v8 = vpop.f32.mrb[36].mxu1  ;;  %v16972_v27 = vld [vmem:[#allocation3 + $0x9e8] ss:$36 sps:$4 sm:$0xff]  }
 0x469   :  { %20564 = vst [vmem:[#allocation226_spill] sm:$0xff] %v19123_v8  ;;  %v19125_v43 = vpop.f32.mrb[37].mxu1  ;;  %v16974_v8 = vld [vmem:[#allocation3 + $0xa34] ss:$36 sps:$4 sm:$0xff]  }
 0x46a   :  { %20565 = vst [vmem:[#allocation227_spill] sm:$0xff] %v19125_v43  ;;  %v19127_v4 = vpop.f32.mrb[38].mxu1 }
 0x46b   :  { %20566 = vst [vmem:[#allocation228_spill] sm:$0xff] %v19127_v4  ;;  %v19129_v32 = vpop.f32.mrb[39].mxu1 }
 0x46c   :  { %20567 = vst [vmem:[#allocation229_spill] sm:$0xff] %v19129_v32 }
 0x46f   :  { %10183 = vmatmul.mubr.bf16.gmra.mrb[196].mxu0 %v16969_v46 }
 0x470   :  { %10190 = vmatprep.mubr.bf16.mxu0 %v16970_v56  ;;  %v19131_v11 = vpop.f32.mrb[40].mxu1  ;;  %v16976_v56 = vld [vmem:[#allocation3 + $0xa30] ss:$36 sps:$4 sm:$0xff]  }
 0x471   :  { %20568 = vst [vmem:[#allocation230_spill] sm:$0xff] %v19131_v11  ;;  %v19133_v17 = vpop.f32.mrb[41].mxu1  ;;  %v16977_v11 = vld [vmem:[#allocation3 + $0xa7c] ss:$36 sps:$4 sm:$0xff]  }
 0x472   :  { %20569 = vst [vmem:[#allocation231_spill] sm:$0xff] %v19133_v17  ;;  %v19135_v25 = vpop.f32.mrb[42].mxu1 }
 0x473   :  { %20570 = vst [vmem:[#allocation232_spill] sm:$0xff] %v19135_v25  ;;  %v19137_v34 = vpop.f32.mrb[43].mxu1 }
 0x474   :  { %20571 = vst [vmem:[#allocation233_spill] sm:$0xff] %v19137_v34 }
 0x477   :  { %10191 = vmatmul.mubr.bf16.gmra.mrb[200].mxu0 %v16972_v27 }
 0x478   :  { %10198 = vmatprep.mubr.bf16.mxu0 %v16974_v8  ;;  %v19139_v43 = vpop.f32.mrb[44].mxu1  ;;  %v16979_v8 = vld [vmem:[#allocation3 + $0xa78] ss:$36 sps:$4 sm:$0xff]  }
 0x479   :  { %20572 = vst [vmem:[#allocation234_spill] sm:$0xff] %v19139_v43  ;;  %v19141_v4 = vpop.f32.mrb[45].mxu1  ;;  %v16980_v43 = vld [vmem:[#allocation3 + $0xac4] ss:$36 sps:$4 sm:$0xff]  }
 0x47a   :  { %20573 = vst [vmem:[#allocation235_spill] sm:$0xff] %v19141_v4  ;;  %v19143_v32 = vpop.f32.mrb[46].mxu1 }
 0x47b   :  { %20574 = vst [vmem:[#allocation236_spill] sm:$0xff] %v19143_v32  ;;  %v19145_v46 = vpop.f32.mrb[47].mxu1 }
 0x47c   :  { %20575 = vst [vmem:[#allocation237_spill] sm:$0xff] %v19145_v46  ;;  %v6762_v46 = vld [vmem:[#allocation3 + $0xb08] sm:$0xff] }
 0x47f   :  { %10199 = vmatmul.mubr.bf16.gmra.mrb[204].mxu0 %v16976_v56  ;;  %v16983_v56 = vld [vmem:[#allocation3 + $0xac0] ss:$36 sps:$4 sm:$0xff]  }
 0x480   :  { %10206 = vmatprep.mubr.bf16.mxu0 %v16977_v11  ;;  %v19147_v17 = vpop.f32.mrb[48].mxu1 }
 0x481   :  { %20576 = vst [vmem:[#allocation238_spill] sm:$0xff] %v19147_v17  ;;  %v19149_v25 = vpop.f32.mrb[49].mxu1  ;;  %v14417_v17 = vcombine.high %v6762_v46, %v6762_v46 }
 0x482   :  { %20577 = vst [vmem:[#allocation239_spill] sm:$0xff] %v19149_v25  ;;  %v19151_v34 = vpop.f32.mrb[50].mxu1 }
 0x483   :  { %20578 = vst [vmem:[#allocation240_spill] sm:$0xff] %v19151_v34  ;;  %v19153_v27 = vpop.f32.mrb[51].mxu1 }
 0x484   :  { %20579 = vst [vmem:[#allocation241_spill] sm:$0xff] %v19153_v27 }
 0x487   :  { %10207 = vmatmul.mubr.bf16.gmra.mrb[208].mxu0 %v16979_v8  ;;  %v14416_v8 = vcombine.low %v6762_v46, %v6762_v46 }
 0x488   :  { %10214 = vmatprep.mubr.bf16.mxu0 %v16980_v43  ;;  %v19155_v4 = vpop.f32.mrb[52].mxu1 }
 0x489   :  { %20580 = vst [vmem:[#allocation242_spill] sm:$0xff] %v19155_v4  ;;  %v19157_v32 = vpop.f32.mrb[53].mxu1  ;;  %v16988_v4 = vld [vmem:[#allocation3 + $0x1c] ss:$36 sps:$4 sm:$0xff]  }
 0x48a   :  { %20581 = vst [vmem:[#allocation243_spill] sm:$0xff] %v19157_v32  ;;  %v19159_v35 = vpop.f32.mrb[54].mxu1 }
 0x48b   :  { %20582 = vst [vmem:[#allocation244_spill] sm:$0xff] %v19159_v35  ;;  %v19161_v11 = vpop.f32.mrb[55].mxu1 }
 0x48c   :  { %20583 = vst [vmem:[#allocation245_spill] sm:$0xff] %v19161_v11 }
 0x48f   :  { %10215 = vmatmul.mubr.bf16.gmra.mrb[212].mxu0 %v16983_v56  ;;  %v16986_v56 = vld [vmem:[#allocation3 + $0x18] ss:$36 sps:$4 sm:$0xff]  }
 0x490   :  { %10222 = vmatprep.mubr.bf16.mxu0 %v14417_v17  ;;  %v19163_v34 = vpop.f32.mrb[56].mxu1 }
 0x491   :  { %20584 = vst [vmem:[#allocation246_spill] sm:$0xff] %v19163_v34  ;;  %v19165_v27 = vpop.f32.mrb[57].mxu1  ;;  %v16989_v34 = vld [vmem:[#allocation3 + $0x64] ss:$36 sps:$4 sm:$0xff]  }
 0x492   :  { %20585 = vst [vmem:[#allocation247_spill] sm:$0xff] %v19165_v27  ;;  %v19167_v25 = vpop.f32.mrb[58].mxu1 }
 0x493   :  { %20586 = vst [vmem:[#allocation248_spill] sm:$0xff] %v19167_v25  ;;  %v19169_v43 = vpop.f32.mrb[59].mxu1 }
 0x494   :  { %20587 = vst [vmem:[#allocation249_spill] sm:$0xff] %v19169_v43  ;;  %v17007_v43 = vld [vmem:[#allocation3 + $0x214] ss:$36 sps:$4 sm:$0xff]  }
 0x497   :  { %10223 = vmatmul.mubr.bf16.gmra.mrb[220].mxu0 %v14416_v8 }
 0x498   :  { %10262 = vmatprep.mubr.bf16.mxu0 %v16988_v4  ;;  %v19171_v32 = vpop.f32.mrb[60].mxu1  ;;  %v16991_v4 = vld [vmem:[#allocation3 + $0x60] ss:$36 sps:$4 sm:$0xff]  }
 0x499   :  { %20588 = vst [vmem:[#allocation250_spill] sm:$0xff] %v19171_v32  ;;  %v19173_v35 = vpop.f32.mrb[61].mxu1  ;;  %v16992_v32 = vld [vmem:[#allocation3 + $0xac] ss:$36 sps:$4 sm:$0xff]  }
 0x49a   :  { %20589 = vst [vmem:[#allocation251_spill] sm:$0xff] %v19173_v35  ;;  %v19175_v11 = vpop.f32.mrb[62].mxu1 }
 0x49b   :  { %20590 = vst [vmem:[#allocation252_spill] sm:$0xff] %v19175_v11  ;;  %v19177_v17 = vpop.f32.mrb[63].mxu1 }
 0x49c   :  { %20591 = vst [vmem:[#allocation253_spill] sm:$0xff] %v19177_v17 }
 0x49f   :  { %10263 = vmatmul.mubr.bf16.vlgmr.msra.gmra.mrb[60].mxu0 %v16986_v56 }
 0x4a0   :  { %10270 = vmatprep.mubr.bf16.mxu0 %v16989_v34  ;;  %v19179_v27 = vpop.f32.mrb[64].mxu1  ;;  %v16994_v34 = vld [vmem:[#allocation3 + $0xa8] ss:$36 sps:$4 sm:$0xff]  }
 0x4a1   :  { %20592 = vst [vmem:[#allocation254_spill] sm:$0xff] %v19179_v27  ;;  %v19181_v25 = vpop.f32.mrb[65].mxu1  ;;  %v16995_v27 = vld [vmem:[#allocation3 + $0xf4] ss:$36 sps:$4 sm:$0xff]  }
 0x4a2   :  { %20593 = vst [vmem:[#allocation255_spill] sm:$0xff] %v19181_v25  ;;  %v19183_v46 = vpop.f32.mrb[66].mxu1 }
 0x4a3   :  { %20594 = vst [vmem:[#allocation256_spill] sm:$0xff] %v19183_v46  ;;  %v19185_v8 = vpop.f32.mrb[67].mxu1 }
 0x4a4   :  { %20595 = vst [vmem:[#allocation257_spill] sm:$0xff] %v19185_v8 }
 0x4a7   :  { %10271 = vmatmul.mubr.bf16.gmra.mrb[64].mxu0 %v16991_v4 }
 0x4a8   :  { %10278 = vmatprep.mubr.bf16.mxu0 %v16992_v32  ;;  %v19187_v35 = vpop.f32.mrb[68].mxu1  ;;  %v16997_v32 = vld [vmem:[#allocation3 + $0xf0] ss:$36 sps:$4 sm:$0xff]  }
 0x4a9   :  { %20596 = vst [vmem:[#allocation258_spill] sm:$0xff] %v19187_v35  ;;  %v19189_v11 = vpop.f32.mrb[69].mxu1  ;;  %v16998_v35 = vld [vmem:[#allocation3 + $0x13c] ss:$36 sps:$4 sm:$0xff]  }
 0x4aa   :  { %20597 = vst [vmem:[#allocation259_spill] sm:$0xff] %v19189_v11  ;;  %v19191_v17 = vpop.f32.mrb[70].mxu1 }
 0x4ab   :  { %20598 = vst [vmem:[#allocation260_spill] sm:$0xff] %v19191_v17  ;;  %v19193_v56 = vpop.f32.mrb[71].mxu1 }
 0x4ac   :  { %20599 = vst [vmem:[#allocation261_spill] sm:$0xff] %v19193_v56 }
 0x4af   :  { %10279 = vmatmul.mubr.bf16.gmra.mrb[68].mxu0 %v16994_v34 }
 0x4b0   :  { %10286 = vmatprep.mubr.bf16.mxu0 %v16995_v27  ;;  %v19195_v25 = vpop.f32.mrb[72].mxu1  ;;  %v17000_v27 = vld [vmem:[#allocation3 + $0x138] ss:$36 sps:$4 sm:$0xff]  }
 0x4b1   :  { %20600 = vst [vmem:[#allocation262_spill] sm:$0xff] %v19195_v25  ;;  %v19197_v46 = vpop.f32.mrb[73].mxu1  ;;  %v17001_v25 = vld [vmem:[#allocation3 + $0x184] ss:$36 sps:$4 sm:$0xff]  }
 0x4b2   :  { %20601 = vst [vmem:[#allocation263_spill] sm:$0xff] %v19197_v46  ;;  %v19199_v8 = vpop.f32.mrb[74].mxu1  ;;  %v17003_v46 = vld [vmem:[#allocation3 + $0x180] ss:$36 sps:$4 sm:$0xff]  }
 0x4b3   :  { %20602 = vst [vmem:[#allocation264_spill] sm:$0xff] %v19199_v8  ;;  %v19201_v4 = vpop.f32.mrb[75].mxu1  ;;  %v17004_v8 = vld [vmem:[#allocation3 + $0x1cc] ss:$36 sps:$4 sm:$0xff]  }
 0x4b4   :  { %20603 = vst [vmem:[#allocation265_spill] sm:$0xff] %v19201_v4  ;;  %v17006_v4 = vld [vmem:[#allocation3 + $0x1c8] ss:$36 sps:$4 sm:$0xff]  }
 0x4b7   :  { %10287 = vmatmul.mubr.bf16.gmra.mrb[72].mxu0 %v16997_v32  ;;  %v17010_v32 = vld [vmem:[#allocation3 + $0x25c] ss:$36 sps:$4 sm:$0xff]  }
 0x4b8   :  { %10294 = vmatprep.mubr.bf16.mxu0 %v16998_v35  ;;  %v19203_v11 = vpop.f32.mrb[76].mxu1  ;;  %v17009_v35 = vld [vmem:[#allocation3 + $0x210] ss:$36 sps:$4 sm:$0xff]  }
 0x4b9   :  { %20604 = vst [vmem:[#allocation266_spill] sm:$0xff] %v19203_v11  ;;  %v19205_v17 = vpop.f32.mrb[77].mxu1  ;;  %v17012_v11 = vld [vmem:[#allocation3 + $0x258] ss:$36 sps:$4 sm:$0xff]  }
 0x4ba   :  { %20605 = vst [vmem:[#allocation267_spill] sm:$0xff] %v19205_v17  ;;  %v19207_v56 = vpop.f32.mrb[78].mxu1  ;;  %v17037_v17 = vld [vmem:[#allocation3 + $0x4e4] ss:$36 sps:$4 sm:$0xff]  }
 0x4bb   :  { %20606 = vst [vmem:[#allocation268_spill] sm:$0xff] %v19207_v56  ;;  %v19209_v34 = vpop.f32.mrb[79].mxu1  ;;  %v17013_v56 = vld [vmem:[#allocation3 + $0x2a4] ss:$36 sps:$4 sm:$0xff]  }
 0x4bc   :  { %20607 = vst [vmem:[#allocation269_spill] sm:$0xff] %v19209_v34  ;;  %v17034_v34 = vld [vmem:[#allocation3 + $0x49c] ss:$36 sps:$4 sm:$0xff]  }
 0x4bf   :  { %10295 = vmatmul.mubr.bf16.gmra.mrb[76].mxu0 %v17000_v27  ;;  %v17072_v27 = vld [vmem:[%s20106_s8 + $0x18] sm:$0xff]  }
 0x4c0   :  { %10302 = vmatprep.mubr.bf16.mxu0 %v17001_v25  ;;  %v17063_v25 = vld [vmem:[%s20106_s8] sm:$0xff]  }
 0x4c1   :  { %15892 = vmatprep.subr.bf16.mxu1 %v17063_v25 }
 0x4c2   :  { %15893 = vmatpush3.bf16.msra.mxu1 %v17063_v25  ;;  %v17073_v25 = vld [vmem:[%s20106_s8 + $0x20] sm:$0xff]  }
 0x4c7   :  { %10303 = vmatmul.mubr.bf16.gmra.mrb[80].mxu0 %v17003_v46  ;;  %v17015_v46 = vld [vmem:[#allocation3 + $0x2a0] ss:$36 sps:$4 sm:$0xff]  }
 0x4c8   :  { %10310 = vmatprep.mubr.bf16.mxu0 %v17004_v8  ;;  %v17016_v8 = vld [vmem:[#allocation3 + $0x2ec] ss:$36 sps:$4 sm:$0xff]  }
 0x4cf   :  { %10311 = vmatmul.mubr.bf16.gmra.mrb[84].mxu0 %v17006_v4  ;;  %v17018_v4 = vld [vmem:[#allocation3 + $0x2e8] ss:$36 sps:$4 sm:$0xff]  }
 0x4d0   :  { %10318 = vmatprep.mubr.bf16.mxu0 %v17007_v43  ;;  %v17067_v43 = vld [vmem:[%s20106_s8 + $0x8] sm:$0xff]  }
 0x4d1   :  { %15894 = vmatprep.subr.bf16.mxu1 %v17067_v43 }
 0x4d2   :  { %15895 = vmatpush3.bf16.msra.mxu1 %v17067_v43  ;;  %v17025_v43 = vld [vmem:[#allocation3 + $0x3c4] ss:$36 sps:$4 sm:$0xff]  }
 0x4d7   :  { %10319 = vmatmul.mubr.bf16.gmra.mrb[88].mxu0 %v17009_v35  ;;  %v17021_v35 = vld [vmem:[#allocation3 + $0x330] ss:$36 sps:$4 sm:$0xff]  }
 0x4d8   :  { %10326 = vmatprep.mubr.bf16.mxu0 %v17010_v32  ;;  %v17022_v32 = vld [vmem:[#allocation3 + $0x37c] ss:$36 sps:$4 sm:$0xff]  }
 0x4df   :  { %10327 = vmatmul.mubr.bf16.gmra.mrb[92].mxu0 %v17012_v11  ;;  %v17068_v11 = vld [vmem:[%s20106_s8 + $0x10] sm:$0xff]  }
 0x4e0   :  { %10334 = vmatprep.mubr.bf16.mxu0 %v17013_v56  ;;  %v17019_v56 = vld [vmem:[#allocation3 + $0x334] ss:$36 sps:$4 sm:$0xff]   ;;  %15896 = vmatprep.subr.bf16.mxu1 %v17068_v11 }
 0x4e1   :  { %15897 = vmatpush3.bf16.msra.mxu1 %v17068_v11  ;;  %v17079_v11 = vld [vmem:[%s20106_s8 + $0x30] sm:$0xff]  }
 0x4e2   :  { %15898 = vmatprep.subr.bf16.mxu1 %v17072_v27 }
 0x4e5   :  { %15899 = vmatpush3.bf16.msra.mxu1 %v17072_v27 }
 0x4e6   :  { %15900 = vmatprep.subr.bf16.mxu1 %v17073_v25 }
 0x4e7   :  { %10335 = vmatmul.mubr.bf16.gmra.mrb[96].mxu0 %v17015_v46  ;;  %v17077_v46 = vld [vmem:[%s20106_s8 + $0x28] sm:$0xff]  }
 0x4e8   :  { %10342 = vmatprep.mubr.bf16.mxu0 %v17016_v8  ;;  %v17024_v8 = vld [vmem:[#allocation3 + $0x378] ss:$36 sps:$4 sm:$0xff]  }
 0x4e9   :  { %15901 = vmatpush3.bf16.msra.mxu1 %v17073_v25  ;;  %v17030_v25 = vld [vmem:[#allocation3 + $0x408] ss:$36 sps:$4 sm:$0xff]  }
 0x4ea   :  { %15902 = vmatprep.subr.bf16.mxu1 %v17077_v46 }
 0x4ed   :  { %15903 = vmatpush3.bf16.msra.mxu1 %v17077_v46 }
 0x4ee   :  { %15904 = vmatprep.subr.bf16.mxu1 %v17079_v11 }
 0x4ef   :  { %10343 = vmatmul.mubr.bf16.gmra.mrb[100].mxu0 %v17018_v4  ;;  %v5973_v4 = vld [vmem:[#allocation2 + $0x29b] sm:$0xff] }
 0x4f0   :  { %10350 = vmatprep.mubr.bf16.mxu0 %v17019_v56  ;;  %v17083_v56 = vld [vmem:[%s20106_s8 + $0x38] sm:$0xff]   ;;  %v15341_v27 = vpack.c.bf16 %v5973_v4, %v5973_v4  ;;  %v17036_v4 = vld [vmem:[#allocation3 + $0x498] ss:$36 sps:$4 sm:$0xff]  }
 0x4f1   :  { %15905 = vmatpush3.bf16.msra.mxu1 %v17079_v11  ;;  %v17040_v11 = vld [vmem:[#allocation3 + $0x52c] ss:$36 sps:$4 sm:$0xff]  }
 0x4f2   :  { %6369 = vst [vmem:[#allocation3 + $0xb18] sm:$0xf] %v15341_v27  ;;  %15906 = vmatprep.subr.bf16.mxu1 %v17083_v56  ;;  %v17039_v27 = vld [vmem:[#allocation3 + $0x4e0] ss:$36 sps:$4 sm:$0xff]  }
 0x4f5   :  { %15907 = vmatpush3.bf16.msra.mxu1 %v17083_v56  ;;  %v17043_v56 = vld [vmem:[#allocation3 + $0x574] ss:$36 sps:$4 sm:$0xff]  }
 0x4f7   :  { %10351 = vmatmul.mubr.bf16.gmra.mrb[104].mxu0 %v17021_v35  ;;  %v17027_v35 = vld [vmem:[#allocation3 + $0x3c0] ss:$36 sps:$4 sm:$0xff]  }
 0x4f8   :  { %10358 = vmatprep.mubr.bf16.mxu0 %v17022_v32  ;;  %v17028_v32 = vld [vmem:[#allocation3 + $0x40c] ss:$36 sps:$4 sm:$0xff]  }
 0x4f9   :  { %v17078_v46 = vld [vmem:[#allocation3 + $0xb18] ss:$0 sps:$4 sm:$0xff]  }
 0x4fa   :  { %15889 = vmatmul.mubr.bf16.gmra.mrb[80].mxu1 %v17078_v46  ;;  %v17048_v46 = vld [vmem:[#allocation3 + $0x5b8] ss:$36 sps:$4 sm:$0xff]  }
 0x4ff   :  { %10359 = vmatmul.mubr.bf16.gmra.mrb[108].mxu0 %v17024_v8  ;;  %v17031_v8 = vld [vmem:[#allocation3 + $0x454] ss:$36 sps:$4 sm:$0xff]  }
 0x500   :  { %10366 = vmatprep.mubr.bf16.mxu0 %v17025_v43  ;;  %v17033_v43 = vld [vmem:[#allocation3 + $0x450] ss:$36 sps:$4 sm:$0xff]  }
 0x507   :  { %10367 = vmatmul.mubr.bf16.gmra.mrb[112].mxu0 %v17027_v35  ;;  %v17042_v35 = vld [vmem:[#allocation3 + $0x528] ss:$36 sps:$4 sm:$0xff]  }
 0x508   :  { %10374 = vmatprep.mubr.bf16.mxu0 %v17028_v32  ;;  %v17045_v32 = vld [vmem:[#allocation3 + $0x570] ss:$36 sps:$4 sm:$0xff]  }
 0x50f   :  { %10375 = vmatmul.mubr.bf16.gmra.mrb[116].mxu0 %v17030_v25  ;;  %v17046_v25 = vld [vmem:[#allocation3 + $0x5bc] ss:$36 sps:$4 sm:$0xff]  }
 0x510   :  { %10382 = vmatprep.mubr.bf16.mxu0 %v17031_v8  ;;  %v17049_v8 = vld [vmem:[#allocation3 + $0x604] ss:$36 sps:$4 sm:$0xff]  }
 0x517   :  { %10383 = vmatmul.mubr.bf16.gmra.mrb[120].mxu0 %v17033_v43  ;;  %v17052_v43 = vld [vmem:[#allocation3 + $0x64c] ss:$36 sps:$4 sm:$0xff]  }
 0x518   :  { %10390 = vmatprep.mubr.bf16.mxu0 %v17034_v34  ;;  %v17051_v34 = vld [vmem:[#allocation3 + $0x600] ss:$36 sps:$4 sm:$0xff]  }
 0x51f   :  { %10391 = vmatmul.mubr.bf16.gmra.mrb[124].mxu0 %v17036_v4  ;;  %v17055_v4 = vld [vmem:[#allocation3 + $0x694] ss:$36 sps:$4 sm:$0xff]  }
 0x520   :  { %10398 = vmatprep.mubr.bf16.mxu0 %v17037_v17  ;;  %v17054_v17 = vld [vmem:[#allocation3 + $0x648] ss:$36 sps:$4 sm:$0xff]  }
 0x527   :  { %10399 = vmatmul.mubr.bf16.gmra.mrb[128].mxu0 %v17039_v27  ;;  %v17057_v27 = vld [vmem:[#allocation3 + $0x690] ss:$36 sps:$4 sm:$0xff]  }
 0x528   :  { %10406 = vmatprep.mubr.bf16.mxu0 %v17040_v11  ;;  %v17058_v11 = vld [vmem:[#allocation3 + $0x6dc] ss:$36 sps:$4 sm:$0xff]  }
 0x52f   :  { %10407 = vmatmul.mubr.bf16.gmra.mrb[132].mxu0 %v17042_v35  ;;  %v5023_v35 = vld [vmem:[#allocation2 + $0x299] sm:$0xff] }
 0x530   :  { %10414 = vmatprep.mubr.bf16.mxu0 %v17043_v56  ;;  %v5498_v56 = vld [vmem:[#allocation2 + $0x29a] sm:$0xff] }
 0x537   :  { %10415 = vmatmul.mubr.bf16.gmra.mrb[136].mxu0 %v17045_v32  ;;  %v15183_v32 = vpack.c.bf16 %v5023_v35, %v5023_v35  ;;  %v17070_v35 = vld [vmem:[#allocation3 + $0x7b4] ss:$36 sps:$4 sm:$0xff]  }
 0x538   :  { %10422 = vmatprep.mubr.bf16.mxu0 %v17046_v25  ;;  %v15262_v25 = vpack.c.bf16 %v5498_v56, %v5498_v56  ;;  %v9209_v56 = vadd.f32 %v19054_v10, %v18782_v58  ;;  %v9217_v58 = vadd.f32 %v19054_v10, %v18830_v42 }
 0x539   :  { %5419 = vst [vmem:[#allocation3 + $0xb10] sm:$0xf] %v15183_v32 }
 0x53a   :  { %5894 = vst [vmem:[#allocation3 + $0xb14] sm:$0xf] %v15262_v25 }
 0x53f   :  { %10423 = vmatmul.mubr.bf16.gmra.mrb[140].mxu0 %v17048_v46  ;;  %v17060_v46 = vld [vmem:[#allocation3 + $0x6d8] ss:$36 sps:$4 sm:$0xff]  }
 0x540   :  { %10430 = vmatprep.mubr.bf16.mxu0 %v17049_v8  ;;  %v17061_v8 = vld [vmem:[#allocation3 + $0x724] ss:$36 sps:$4 sm:$0xff]  }
 0x547   :  { %10431 = vmatmul.mubr.bf16.gmra.mrb[144].mxu0 %v17051_v34  ;;  %v17064_v34 = vld [vmem:[#allocation3 + $0x720] ss:$36 sps:$4 sm:$0xff]  }
 0x548   :  { %10438 = vmatprep.mubr.bf16.mxu0 %v17052_v43  ;;  %v17065_v43 = vld [vmem:[#allocation3 + $0x76c] ss:$36 sps:$4 sm:$0xff]  }
 0x54f   :  { %10439 = vmatmul.mubr.bf16.gmra.mrb[148].mxu0 %v17054_v17 }
 0x550   :  { %10446 = vmatprep.mubr.bf16.mxu0 %v17055_v4 }
 0x557   :  { %10447 = vmatmul.mubr.bf16.gmra.mrb[152].mxu0 %v17057_v27 }
 0x558   :  { %10454 = vmatprep.mubr.bf16.mxu0 %v17058_v11 }
 0x55f   :  { %10455 = vmatmul.mubr.bf16.gmra.mrb[156].mxu0 %v17060_v46 }
 0x560   :  { %10462 = vmatprep.mubr.bf16.mxu0 %v17061_v8  ;;  %v9212_v8 = vadd.f32 %v19054_v10, %v18787_v61  ;;  %v9220_v61 = vadd.f32 %v19054_v10, %v18832_v52 }
 0x567   :  { %10463 = vmatmul.mubr.bf16.gmra.mrb[160].mxu0 %v17064_v34 }
 0x568   :  { %10470 = vmatprep.mubr.bf16.mxu0 %v17065_v43 }
 0x56a   :  { %v10224_v17 = vpop.f32.mrb[220].mxu0 }
 0x56b   :  { %v19236_v4 = vadd.f32 %v10224_v17, %v19059_v62  ;;  %v10226_v27 = vpop.f32.mrb[221].mxu0 }
 0x56c   :  { %v10227_v11 = vpop.f32.mrb[222].mxu0  ;;  %v17074_v27 = vld [vmem:[#allocation3 + $0x7b0] ss:$36 sps:$4 sm:$0xff]  }
 0x56d   :  { %v10228_v55 = vpop.f32.mrb[223].mxu0 }
 0x56e   :  { %v17075_v55 = vld [vmem:[#allocation3 + $0x7fc] ss:$36 sps:$4 sm:$0xff]  }
 0x56f   :  { %10471 = vmatmul.mubr.bf16.gmra.mrb[164].mxu0 %v17069_v20 }
 0x570   :  { %10478 = vmatprep.mubr.bf16.mxu0 %v17070_v35 }
 0x572   :  { %v10264_v32 = vpop.f32.mrb[60].mxu0 }
 0x573   :  { %v15993_v25 = vadd.f32 %v10264_v32, %v9209_v56  ;;  %v10266_v46 = vpop.f32.mrb[61].mxu0 }
 0x574   :  { %v10267_v34 = vpop.f32.mrb[62].mxu0 }
 0x575   :  { %v10617_v62 = vadd.f32 %v15993_v25, %v19061_v40  ;;  %v15995_v43 = vadd.f32 %v10267_v34, %v9212_v8  ;;  %v10269_v17 = vpop.f32.mrb[63].mxu0 }
 0x577   :  { %v10620_v11 = vadd.f32 %v15995_v43, %v19065_v7  ;;  %10479 = vmatmul.mubr.bf16.gmra.mrb[168].mxu0 %v17074_v27  ;;  %v10934_v20 = vmax.f32 %v10617_v62, 0.0  ;;  %v17080_v7 = vld [vmem:[#allocation3 + $0x7f8] ss:$36 sps:$4 sm:$0xff]   ;;  %v17081_v43 = vld [vmem:[#allocation3 + $0x844] ss:$36 sps:$4 sm:$0xff]  }
 0x578   :  { %10486 = vmatprep.mubr.bf16.mxu0 %v17075_v55  ;;  %v9225_v55 = vadd.f32 %v19054_v10, %v18834_v51 }
 0x579   :  { %v10935_v35 = vmax.f32 %v10620_v11, 0.0 }
 0x57a   :  { %v10272_v56 = vpop.f32.mrb[64].mxu0 }
 0x57b   :  { %v15997_v32 = vadd.f32 %v10272_v56, %v9217_v58  ;;  %v10274_v46 = vpop.f32.mrb[65].mxu0  ;;  %v11013_v40 = vpack.c.bf16 %v10935_v35, %v10934_v20 }
 0x57c   :  { %v10275_v25 = vpop.f32.mrb[66].mxu0 }
 0x57d   :  { %v10625_v8 = vadd.f32 %v15997_v32, %v19057_v38  ;;  %v15999_v34 = vadd.f32 %v10275_v25, %v9220_v61  ;;  %v10277_v17 = vpop.f32.mrb[67].mxu0  ;;  %15908 = vmatprep.mubr.bf16.mxu1 %v11013_v40  ;;  %v9228_v38 = vadd.f32 %v19054_v10, %v18836_v0  ;;  %v17085_v61 = vld [vmem:[#allocation3 + $0x88c] ss:$36 sps:$4 sm:$0xff]  }
 0x57f   :  { %v10628_v62 = vadd.f32 %v15999_v34, %v19063_v30  ;;  %10487 = vmatmul.mubr.bf16.gmra.mrb[172].mxu0 %v17080_v7  ;;  %v10936_v42 = vmax.f32 %v10625_v8, 0.0  ;;  %v17084_v30 = vld [vmem:[#allocation3 + $0x840] ss:$36 sps:$4 sm:$0xff]   ;;  %v9233_v8 = vadd.f32 %v19054_v10, %v18838_v29 }
 0x580   :  { %10494 = vmatprep.mubr.bf16.mxu0 %v17081_v43 }
 0x581   :  { %v10937_v27 = vmax.f32 %v10628_v62, 0.0 }
 0x582   :  { %v10280_v11 = vpop.f32.mrb[68].mxu0 }
 0x583   :  { %v11014_v52 = vpack.c.bf16 %v10937_v27, %v10936_v42  ;;  %v16001_v20 = vadd.f32 %v10280_v11, %v9225_v55  ;;  %v10282_v35 = vpop.f32.mrb[69].mxu0  ;;  %v17088_v55 = vld [vmem:[#allocation3 + $0x8d4] ss:$36 sps:$4 sm:$0xff]  }
 0x584   :  { %v10283_v58 = vpop.f32.mrb[70].mxu0 }
 0x585   :  { %v10633_v56 = vadd.f32 %v16001_v20, %v19069_v45  ;;  %v16003_v32 = vadd.f32 %v10283_v58, %v9228_v38  ;;  %v10285_v46 = vpop.f32.mrb[71].mxu0  ;;  %15909 = vmatmul.mubr.bf16.vlgmr.msra.gmra.mrb[84].mxu1 %v11014_v52  ;;  %v9236_v45 = vadd.f32 %v19054_v10, %v18840_v3  ;;  %v9241_v20 = vadd.f32 %v19054_v10, %v18842_v37 }
 0x587   :  { %v10636_v40 = vadd.f32 %v16003_v32, %v19073_v28  ;;  %10495 = vmatmul.mubr.bf16.gmra.mrb[176].mxu0 %v17084_v30  ;;  %v10938_v51 = vmax.f32 %v10633_v56, 0.0  ;;  %v17087_v28 = vld [vmem:[#allocation3 + $0x888] ss:$36 sps:$4 sm:$0xff]  }
 0x588   :  { %10502 = vmatprep.mubr.bf16.mxu0 %v17085_v61  ;;  %v17091_v61 = vld [vmem:[#allocation3 + $0x91c] ss:$36 sps:$4 sm:$0xff]  }
 0x589   :  { %v10939_v25 = vmax.f32 %v10636_v40, 0.0 }
 0x58a   :  { %v10288_v34 = vpop.f32.mrb[72].mxu0 }
 0x58b   :  { %v16005_v17 = vadd.f32 %v10288_v34, %v9233_v8  ;;  %v10290_v0 = vpop.f32.mrb[73].mxu0  ;;  %v11015_v7 = vpack.c.bf16 %v10939_v25, %v10938_v51  ;;  %v9249_v25 = vadd.f32 %v19054_v10, %v18846_v63 }
 0x58c   :  { %v10291_v43 = vpop.f32.mrb[74].mxu0 }
 0x58d   :  { %v10641_v62 = vadd.f32 %v16005_v17, %v19067_v48  ;;  %v16007_v42 = vadd.f32 %v10291_v43, %v9236_v45  ;;  %v10293_v27 = vpop.f32.mrb[75].mxu0  ;;  %15912 = vmatprep.mubr.bf16.mxu1 %v11015_v7  ;;  %v9244_v48 = vadd.f32 %v19054_v10, %v18844_v59 }
 0x58f   :  { %v10644_v11 = vadd.f32 %v16007_v42, %v19071_v54  ;;  %10503 = vmatmul.mubr.bf16.gmra.mrb[180].mxu0 %v17087_v28  ;;  %v10940_v29 = vmax.f32 %v10641_v62, 0.0  ;;  %v17090_v54 = vld [vmem:[#allocation3 + $0x8d0] ss:$36 sps:$4 sm:$0xff]   ;;  %v17094_v62 = vld [vmem:[#allocation3 + $0x964] ss:$36 sps:$4 sm:$0xff]   ;;  %v9257_v28 = vadd.f32 %v19054_v10, %v18850_v15 }
 0x590   :  { %10510 = vmatprep.mubr.bf16.mxu0 %v17088_v55 }
 0x591   :  { %v10941_v52 = vmax.f32 %v10644_v11, 0.0 }
 0x592   :  { %v10296_v35 = vpop.f32.mrb[76].mxu0 }
 0x593   :  { %v11016_v3 = vpack.c.bf16 %v10941_v52, %v10940_v29  ;;  %v16009_v38 = vadd.f32 %v10296_v35, %v9241_v20  ;;  %v10298_v58 = vpop.f32.mrb[77].mxu0 }
 0x594   :  { %v10299_v56 = vpop.f32.mrb[78].mxu0 }
 0x595   :  { %v10649_v32 = vadd.f32 %v16009_v38, %v19077_v16  ;;  %v16011_v46 = vadd.f32 %v10299_v56, %v9244_v48  ;;  %v10301_v30 = vpop.f32.mrb[79].mxu0  ;;  %15913 = vmatmul.mubr.bf16.gmra.mrb[88].mxu1 %v11016_v3  ;;  %v9252_v16 = vadd.f32 %v19054_v10, %v18848_v36  ;;  %v17097_v38 = vld [vmem:[#allocation3 + $0x9ac] ss:$36 sps:$4 sm:$0xff]   ;;  %v9265_v56 = vadd.f32 %v19054_v10, %v18854_v19 }
 0x597   :  { %v10652_v40 = vadd.f32 %v16011_v46, %v19081_v2  ;;  %10511 = vmatmul.mubr.bf16.gmra.mrb[184].mxu0 %v17090_v54  ;;  %v10942_v37 = vmax.f32 %v10649_v32, 0.0  ;;  %v17093_v2 = vld [vmem:[#allocation3 + $0x918] ss:$36 sps:$4 sm:$0xff]  }
 0x598   :  { %10518 = vmatprep.mubr.bf16.mxu0 %v17091_v61 }
 0x599   :  { %v10943_v51 = vmax.f32 %v10652_v40, 0.0 }
 0x59a   :  { %v10304_v8 = vpop.f32.mrb[80].mxu0 }
 0x59b   :  { %v16013_v34 = vadd.f32 %v10304_v8, %v9249_v25  ;;  %v10306_v59 = vpop.f32.mrb[81].mxu0  ;;  %v11017_v17 = vpack.c.bf16 %v10943_v51, %v10942_v37  ;;  %v17100_v51 = vld [vmem:[#allocation3 + $0x9f4] ss:$36 sps:$4 sm:$0xff]  }
 0x59c   :  { %v10307_v0 = vpop.f32.mrb[82].mxu0 }
 0x59d   :  { %v10657_v45 = vadd.f32 %v16013_v34, %v19075_v23  ;;  %v16015_v7 = vadd.f32 %v10307_v0, %v9252_v16  ;;  %v10309_v43 = vpop.f32.mrb[83].mxu0  ;;  %15916 = vmatprep.mubr.bf16.mxu1 %v11017_v17  ;;  %v9260_v23 = vadd.f32 %v19054_v10, %v18852_v44  ;;  %v9273_v34 = vadd.f32 %v19054_v10, %v18858_v12 }
 0x59f   :  { %v10660_v42 = vadd.f32 %v16015_v7, %v19079_v5  ;;  %10519 = vmatmul.mubr.bf16.gmra.mrb[188].mxu0 %v17093_v2  ;;  %v10944_v63 = vmax.f32 %v10657_v45, 0.0  ;;  %v17096_v5 = vld [vmem:[#allocation3 + $0x960] ss:$36 sps:$4 sm:$0xff]  }
 0x5a0   :  { %10526 = vmatprep.mubr.bf16.mxu0 %v17094_v62  ;;  %v17103_v2 = vld [vmem:[#allocation3 + $0xa3c] ss:$36 sps:$4 sm:$0xff]  }
 0x5a1   :  { %v10945_v27 = vmax.f32 %v10660_v42, 0.0 }
 0x5a2   :  { %v10312_v55 = vpop.f32.mrb[84].mxu0 }
 0x5a3   :  { %v11018_v36 = vpack.c.bf16 %v10945_v27, %v10944_v63  ;;  %v16017_v11 = vadd.f32 %v10312_v55, %v9257_v28  ;;  %v10314_v29 = vpop.f32.mrb[85].mxu0  ;;  %v9281_v63 = vadd.f32 %v19054_v10, %v18862_v50 }
 0x5a4   :  { %v10315_v52 = vpop.f32.mrb[86].mxu0 }
 0x5a5   :  { %v10665_v20 = vadd.f32 %v16017_v11, %v19085_v57  ;;  %v16019_v35 = vadd.f32 %v10315_v52, %v9260_v23  ;;  %v10317_v3 = vpop.f32.mrb[87].mxu0  ;;  %15917 = vmatmul.mubr.bf16.gmra.mrb[92].mxu1 %v11018_v36  ;;  %v9268_v57 = vadd.f32 %v19054_v10, %v18856_v60  ;;  %v17106_v52 = vld [vmem:[#allocation3 + $0xa84] ss:$36 sps:$4 sm:$0xff]  }
 0x5a6   :  { %v9289_v3 = vadd.f32 %v19054_v10, %v18866_v6 }
 0x5a7   :  { %v10668_v58 = vadd.f32 %v16019_v35, %v19089_v9  ;;  %10527 = vmatmul.mubr.bf16.gmra.mrb[192].mxu0 %v17096_v5  ;;  %v10946_v15 = vmax.f32 %v10665_v20, 0.0  ;;  %v17099_v9 = vld [vmem:[#allocation3 + $0x9a8] ss:$36 sps:$4 sm:$0xff]  }
 0x5a8   :  { %10534 = vmatprep.mubr.bf16.mxu0 %v17097_v38 }
 0x5a9   :  { %v10947_v48 = vmax.f32 %v10668_v58, 0.0 }
 0x5aa   :  { %v10320_v32 = vpop.f32.mrb[88].mxu0 }
 0x5ab   :  { %v16021_v46 = vadd.f32 %v10320_v32, %v9265_v56  ;;  %v10322_v44 = vpop.f32.mrb[89].mxu0  ;;  %v11019_v30 = vpack.c.bf16 %v10947_v48, %v10946_v15 }
 0x5ac   :  { %v10323_v54 = vpop.f32.mrb[90].mxu0 }
 0x5ad   :  { %v10673_v61 = vadd.f32 %v16021_v46, %v19083_v21  ;;  %v16023_v40 = vadd.f32 %v10323_v54, %v9268_v57  ;;  %v10325_v37 = vpop.f32.mrb[91].mxu0  ;;  %15920 = vmatprep.mubr.bf16.mxu1 %v11019_v30  ;;  %v9276_v21 = vadd.f32 %v19054_v10, %v18860_v41  ;;  %v17109_v46 = vld [vmem:[#allocation3 + $0xacc] ss:$36 sps:$4 sm:$0xff]   ;;  %v9297_v30 = vadd.f32 %v19054_v10, %v18870_v1 }
 0x5ae   :  { %v6763_v54 = vld [vmem:[#allocation3 + $0xb10] sm:$0xff] }
 0x5af   :  { %v10676_v25 = vadd.f32 %v16023_v40, %v19087_v18  ;;  %10535 = vmatmul.mubr.bf16.gmra.mrb[196].mxu0 %v17099_v9  ;;  %v10948_v19 = vmax.f32 %v10673_v61, 0.0  ;;  %v17102_v18 = vld [vmem:[#allocation3 + $0x9f0] ss:$36 sps:$4 sm:$0xff]  }
 0x5b0   :  { %10542 = vmatprep.mubr.bf16.mxu0 %v17100_v51  ;;  %v14419_v51 = vcombine.high %v6763_v54, %v6763_v54 }
 0x5b1   :  { %v10949_v8 = vmax.f32 %v10676_v25, 0.0 }
 0x5b2   :  { %v10328_v59 = vpop.f32.mrb[92].mxu0 }
 0x5b3   :  { %v11020_v60 = vpack.c.bf16 %v10949_v8, %v10948_v19  ;;  %v16025_v16 = vadd.f32 %v10328_v59, %v9273_v34  ;;  %v10330_v17 = vpop.f32.mrb[93].mxu0  ;;  %v17111_v8 = vld [vmem:[#allocation3 + $0xac8] ss:$36 sps:$4 sm:$0xff]  }
 0x5b4   :  { %v10331_v0 = vpop.f32.mrb[94].mxu0 }
 0x5b5   :  { %v10681_v45 = vadd.f32 %v16025_v16, %v19093_v13  ;;  %v16027_v7 = vadd.f32 %v10331_v0, %v9276_v21  ;;  %v10333_v43 = vpop.f32.mrb[95].mxu0  ;;  %15921 = vmatmul.mubr.bf16.gmra.mrb[96].mxu1 %v11020_v60  ;;  %v9284_v13 = vadd.f32 %v19054_v10, %v18864_v14  ;;  %v20608_v60 = vld [vmem:[#allocation164_spill] sm:$0xff] }
 0x5b6   :  { %v9305_v16 = vadd.f32 %v19054_v10, %v20608_v60 }
 0x5b7   :  { %v10684_v62 = vadd.f32 %v16027_v7, %v19097_v33  ;;  %10543 = vmatmul.mubr.bf16.gmra.mrb[200].mxu0 %v17102_v18  ;;  %v10950_v12 = vmax.f32 %v10681_v45, 0.0  ;;  %v17105_v33 = vld [vmem:[#allocation3 + $0xa38] ss:$36 sps:$4 sm:$0xff]   ;;  %v14418_v7 = vcombine.low %v6763_v54, %v6763_v54  ;;  %v20610_v18 = vld [vmem:[#allocation219_spill] sm:$0xff] }
 0x5b8   :  { %10550 = vmatprep.mubr.bf16.mxu0 %v17103_v2  ;;  %v20609_v45 = vld [vmem:[#allocation165_spill] sm:$0xff]  ;;  %v20618_v54 = vld [vmem:[#allocation223_spill] sm:$0xff] }
 0x5b9   :  { %v10951_v42 = vmax.f32 %v10684_v62, 0.0 }
 0x5ba   :  { %v10336_v27 = vpop.f32.mrb[96].mxu0 }
 0x5bb   :  { %v16029_v28 = vadd.f32 %v10336_v27, %v9281_v63  ;;  %v10338_v41 = vpop.f32.mrb[97].mxu0  ;;  %v11021_v55 = vpack.c.bf16 %v10951_v42, %v10950_v12  ;;  %v20611_v12 = vld [vmem:[#allocation221_spill] sm:$0xff] }
 0x5bc   :  { %v10339_v36 = vpop.f32.mrb[98].mxu0  ;;  %v20612_v41 = vld [vmem:[#allocation166_spill] sm:$0xff] }
 0x5bd   :  { %v10689_v11 = vadd.f32 %v16029_v28, %v19091_v26  ;;  %v16031_v29 = vadd.f32 %v10339_v36, %v9284_v13  ;;  %v10341_v23 = vpop.f32.mrb[99].mxu0  ;;  %15924 = vmatprep.mubr.bf16.mxu1 %v11021_v55  ;;  %v9292_v26 = vadd.f32 %v19054_v10, %v18868_v53  ;;  %v19319_v28 = vld [vmem:[%s20105_s7] ss:$0 sm:$0xff]  ;;  %s17235_s7 = smov [#allocation7]  }
 0x5be   :  { %s13248_s17 = sshll.u32 %s17235_s7, 4  ;;  %s13249_s17 = int_to_ptr.vmem [resolvable:$true] %s13248_s17 }
 0x5bf   :  { %v10692_v20 = vadd.f32 %v16031_v29, %v19095_v47  ;;  %10551 = vmatmul.mubr.bf16.gmra.mrb[204].mxu0 %v17105_v33  ;;  %v10952_v50 = vmax.f32 %v10689_v11, 0.0  ;;  %v17108_v47 = vld [vmem:[#allocation3 + $0xa80] ss:$36 sps:$4 sm:$0xff]   ;;  %p17209_p9 = scmp.lt.s32.totalorder %s13249_s17, %s13249_s17 }
 0x5c0   :  { %10558 = vmatprep.mubr.bf16.mxu0 %v17106_v52  ;;  %v20613_v11 = vld [vmem:[#allocation167_spill] sm:$0xff]  ;;  %v20614_v52 = vld [vmem:[#allocation218_spill] sm:$0xff] }
 0x5c1   :  { %v10953_v35 = vmax.f32 %v10692_v20, 0.0  ;;  %v9316_v29 = vadd.f32 %v19319_v28, %v20613_v11 }
 0x5c2   :  { %v10344_v5 = vpop.f32.mrb[100].mxu0 }
 0x5c3   :  { %v11022_v14 = vpack.c.bf16 %v10953_v35, %v10952_v50  ;;  %v16033_v38 = vadd.f32 %v10344_v5, %v9289_v3  ;;  %v10346_v58 = vpop.f32.mrb[101].mxu0  ;;  %v20615_v3 = vld [vmem:[#allocation220_spill] sm:$0xff] }
 0x5c4   :  { %v10347_v15 = vpop.f32.mrb[102].mxu0  ;;  %v20616_v58 = vld [vmem:[#allocation168_spill] sm:$0xff] }
 0x5c5   :  { %v10697_v48 = vadd.f32 %v16033_v38, %v19101_v22  ;;  %v16035_v56 = vadd.f32 %v10347_v15, %v9292_v26  ;;  %v10349_v32 = vpop.f32.mrb[103].mxu0  ;;  %15925 = vmatmul.mubr.bf16.gmra.mrb[100].mxu1 %v11022_v14  ;;  %v9300_v22 = vadd.f32 %v19054_v10, %v18872_v39  ;;  %v9321_v26 = vadd.f32 %v19319_v28, %v20616_v58 }
 0x5c7   :  { %v10700_v44 = vadd.f32 %v16035_v56, %v19105_v31  ;;  %10559 = vmatmul.mubr.bf16.gmra.mrb[208].mxu0 %v17108_v47  ;;  %v10954_v6 = vmax.f32 %v10697_v48, 0.0 }
 0x5c8   :  { %10566 = vmatprep.mubr.bf16.mxu0 %v17109_v46  ;;  %v20617_v46 = vld [vmem:[#allocation169_spill] sm:$0xff] }
 0x5c9   :  { %v10955_v57 = vmax.f32 %v10700_v44, 0.0  ;;  %v9324_v44 = vadd.f32 %v19319_v28, %v20617_v46  ;;  %v20631_v46 = vld [vmem:[#allocation228_spill] sm:$0xff] }
 0x5ca   :  { %v10352_v61 = vpop.f32.mrb[104].mxu0 }
 0x5cb   :  { %v16037_v53 = vadd.f32 %v10352_v61, %v9297_v30  ;;  %v10354_v40 = vpop.f32.mrb[105].mxu0  ;;  %v11023_v37 = vpack.c.bf16 %v10955_v57, %v10954_v6 }
 0x5cc   :  { %v10355_v9 = vpop.f32.mrb[106].mxu0 }
 0x5cd   :  { %v10705_v25 = vadd.f32 %v16037_v53, %v19099_v49  ;;  %v16039_v31 = vadd.f32 %v10355_v9, %v9300_v22  ;;  %v10357_v19 = vpop.f32.mrb[107].mxu0  ;;  %15928 = vmatprep.mubr.bf16.mxu1 %v11023_v37  ;;  %v9308_v49 = vadd.f32 %v19054_v10, %v20609_v45  ;;  %v9313_v10 = vadd.f32 %v19319_v28, %v20612_v41  ;;  %v19329_v48 = vpop.f32.mrb[80].mxu1  ;;  %v20619_v37 = vld [vmem:[#allocation225_spill] sm:$0xff] }
 0x5ce   :  { %v19333_v6 = vpop.f32.mrb[81].mxu1 }
 0x5cf   :  { %v10708_v34 = vadd.f32 %v16039_v31, %v19103_v24  ;;  %10567 = vmatmul.mubr.bf16.gmra.mrb[212].mxu0 %v17111_v8  ;;  %v10956_v1 = vmax.f32 %v10705_v25, 0.0  ;;  %v15891_v30 = vpop.f32.mrb[82].mxu1  ;;  %v20620_v31 = vld [vmem:[#allocation170_spill] sm:$0xff] }
 0x5d0   :  { %10574 = vmatprep.mubr.bf16.mxu0 %v14419_v51  ;;  %v19336_v22 = vpop.f32.mrb[83].mxu1  ;;  %v9329_v19 = vadd.f32 %v19319_v28, %v20620_v31 }
 0x5d1   :  { %v10957_v59 = vmax.f32 %v10708_v34, 0.0 }
 0x5d2   :  { %v10360_v17 = vpop.f32.mrb[108].mxu0 }
 0x5d3   :  { %v11024_v39 = vpack.c.bf16 %v10957_v59, %v10956_v1  ;;  %v16041_v21 = vadd.f32 %v10360_v17, %v9305_v16  ;;  %v10362_v0 = vpop.f32.mrb[109].mxu0  ;;  %v20621_v59 = vld [vmem:[#allocation171_spill] sm:$0xff] }
 0x5d4   :  { %v10363_v43 = vpop.f32.mrb[110].mxu0  ;;  %v9332_v60 = vadd.f32 %v19319_v28, %v20621_v59  ;;  %v20635_v59 = vld [vmem:[#allocation233_spill] sm:$0xff] }
 0x5d5   :  { %v10713_v2 = vadd.f32 %v16041_v21, %v20610_v18  ;;  %v16043_v62 = vadd.f32 %v10363_v43, %v9308_v49  ;;  %v10365_v24 = vpop.f32.mrb[111].mxu0  ;;  %15929 = vmatmul.mubr.bf16.gmra.mrb[104].mxu1 %v11024_v39  ;;  %v20622_v39 = vld [vmem:[#allocation222_spill] sm:$0xff]  ;;  %v20623_v49 = vld [vmem:[#allocation224_spill] sm:$0xff] }
 0x5d7   :  { %v10716_v42 = vadd.f32 %v16043_v62, %v20611_v12  ;;  %10575 = vmatmul.mubr.bf16.gmra.mrb[224].mxu0 %v14418_v7  ;;  %v10958_v63 = vmax.f32 %v10713_v2, 0.0  ;;  %v20624_v2 = vld [vmem:[#allocation172_spill] sm:$0xff] }
 0x5d8   :  { %v9337_v62 = vadd.f32 %v19319_v28, %v20624_v2 }
 0x5d9   :  { %v10959_v27 = vmax.f32 %v10716_v42, 0.0 }
 0x5da   :  { %v10368_v13 = vpop.f32.mrb[112].mxu0 }
 0x5db   :  { %v16045_v55 = vadd.f32 %v10368_v13, %v9313_v10  ;;  %v10370_v36 = vpop.f32.mrb[113].mxu0  ;;  %v11025_v23 = vpack.c.bf16 %v10959_v27, %v10958_v63  ;;  %v20625_v27 = vld [vmem:[#allocation173_spill] sm:$0xff]  ;;  %v20626_v13 = vld [vmem:[#allocation227_spill] sm:$0xff] }
 0x5dc   :  { %v10371_v33 = vpop.f32.mrb[114].mxu0  ;;  %v9340_v41 = vadd.f32 %v19319_v28, %v20625_v27 }
 0x5dd   :  { %v10721_v20 = vadd.f32 %v16045_v55, %v20614_v52  ;;  %v16047_v50 = vadd.f32 %v10371_v33, %v9316_v29  ;;  %v10373_v35 = vpop.f32.mrb[115].mxu0  ;;  %15932 = vmatprep.mubr.bf16.mxu1 %v11025_v23  ;;  %v20627_v29 = vld [vmem:[#allocation229_spill] sm:$0xff] }
 0x5df   :  { %v10724_v5 = vadd.f32 %v16047_v50, %v20615_v3  ;;  %v10960_v14 = vmax.f32 %v10721_v20, 0.0  ;;  %v20628_v20 = vld [vmem:[#allocation174_spill] sm:$0xff] }
 0x5e0   :  { %v9345_v50 = vadd.f32 %v19319_v28, %v20628_v20 }
 0x5e1   :  { %v10961_v38 = vmax.f32 %v10724_v5, 0.0 }
 0x5e2   :  { %v10376_v15 = vpop.f32.mrb[116].mxu0 }
 0x5e3   :  { %v11026_v56 = vpack.c.bf16 %v10961_v38, %v10960_v14  ;;  %v16049_v32 = vadd.f32 %v10376_v15, %v9321_v26  ;;  %v10378_v47 = vpop.f32.mrb[117].mxu0  ;;  %v20629_v14 = vld [vmem:[#allocation175_spill] sm:$0xff]  ;;  %v20630_v15 = vld [vmem:[#allocation226_spill] sm:$0xff] }
 0x5e4   :  { %v10379_v57 = vpop.f32.mrb[118].mxu0  ;;  %v9348_v38 = vadd.f32 %v19319_v28, %v20629_v14  ;;  %v20643_v14 = vld [vmem:[#allocation237_spill] sm:$0xff] }
 0x5e5   :  { %v10729_v61 = vadd.f32 %v16049_v32, %v20618_v54  ;;  %v16051_v53 = vadd.f32 %v10379_v57, %v9324_v44  ;;  %v10381_v40 = vpop.f32.mrb[119].mxu0  ;;  %15933 = vmatmul.mubr.bf16.gmra.mrb[0].mxu1 %v11026_v56  ;;  %v20632_v54 = vld [vmem:[#allocation176_spill] sm:$0xff] }
 0x5e7   :  { %v10732_v9 = vadd.f32 %v16051_v53, %v20619_v37  ;;  %v10962_v51 = vmax.f32 %v10729_v61, 0.0  ;;  %v9353_v61 = vadd.f32 %v19319_v28, %v20632_v54 }
 0x5e9   :  { %v10963_v25 = vmax.f32 %v10732_v9, 0.0 }
 0x5ea   :  { %v10384_v8 = vpop.f32.mrb[120].mxu0 }
 0x5eb   :  { %v16053_v34 = vadd.f32 %v10384_v8, %v9329_v19  ;;  %v10386_v1 = vpop.f32.mrb[121].mxu0  ;;  %v11027_v16 = vpack.c.bf16 %v10963_v25, %v10962_v51  ;;  %v20633_v51 = vld [vmem:[#allocation177_spill] sm:$0xff]  ;;  %v20634_v19 = vld [vmem:[#allocation231_spill] sm:$0xff] }
 0x5ec   :  { %v10387_v17 = vpop.f32.mrb[122].mxu0  ;;  %v9356_v25 = vadd.f32 %v19319_v28, %v20633_v51 }
 0x5ed   :  { %v10737_v21 = vadd.f32 %v16053_v34, %v20622_v39  ;;  %v16055_v0 = vadd.f32 %v10387_v17, %v9332_v60  ;;  %v10389_v45 = vpop.f32.mrb[123].mxu0  ;;  %15936 = vmatprep.mubr.bf16.mxu1 %v11027_v16  ;;  %v20636_v39 = vld [vmem:[#allocation178_spill] sm:$0xff] }
 0x5ef   :  { %v10740_v7 = vadd.f32 %v16055_v0, %v20623_v49  ;;  %v10964_v43 = vmax.f32 %v10737_v21, 0.0  ;;  %v9361_v21 = vadd.f32 %v19319_v28, %v20636_v39 }
 0x5f1   :  { %v10965_v18 = vmax.f32 %v10740_v7, 0.0  ;;  %v20637_v7 = vld [vmem:[#allocation179_spill] sm:$0xff] }
 0x5f2   :  { %v10392_v24 = vpop.f32.mrb[124].mxu0 }
 0x5f3   :  { %v11028_v12 = vpack.c.bf16 %v10965_v18, %v10964_v43  ;;  %v16057_v42 = vadd.f32 %v10392_v24, %v9337_v62  ;;  %v10394_v63 = vpop.f32.mrb[125].mxu0  ;;  %v9364_v43 = vadd.f32 %v19319_v28, %v20637_v7  ;;  %v20638_v62 = vld [vmem:[#allocation230_spill] sm:$0xff]  ;;  %v20651_v7 = vld [vmem:[#allocation241_spill] sm:$0xff] }
 0x5f4   :  { %v10395_v10 = vpop.f32.mrb[126].mxu0  ;;  %v20639_v63 = vld [vmem:[#allocation232_spill] sm:$0xff] }
 0x5f5   :  { %v10745_v55 = vadd.f32 %v16057_v42, %v20626_v13  ;;  %v16059_v36 = vadd.f32 %v10395_v10, %v9340_v41  ;;  %v10397_v11 = vpop.f32.mrb[127].mxu0  ;;  %15937 = vmatmul.mubr.bf16.gmra.mrb[108].mxu1 %v11028_v12  ;;  %v20640_v13 = vld [vmem:[#allocation180_spill] sm:$0xff] }
 0x5f7   :  { %v10748_v23 = vadd.f32 %v16059_v36, %v20627_v29  ;;  %v10966_v33 = vmax.f32 %v10745_v55, 0.0  ;;  %v9369_v55 = vadd.f32 %v19319_v28, %v20640_v13 }
 0x5f9   :  { %v10967_v52 = vmax.f32 %v10748_v23, 0.0 }
 0x5fa   :  { %v10400_v35 = vpop.f32.mrb[128].mxu0 }
 0x5fb   :  { %v16061_v3 = vadd.f32 %v10400_v35, %v9345_v50  ;;  %v10402_v5 = vpop.f32.mrb[129].mxu0  ;;  %v11029_v58 = vpack.c.bf16 %v10967_v52, %v10966_v33  ;;  %v20641_v33 = vld [vmem:[#allocation181_spill] sm:$0xff]  ;;  %v20642_v50 = vld [vmem:[#allocation235_spill] sm:$0xff] }
 0x5fc   :  { %v10403_v26 = vpop.f32.mrb[130].mxu0  ;;  %v9372_v52 = vadd.f32 %v19319_v28, %v20641_v33 }
 0x5fd   :  { %v10753_v56 = vadd.f32 %v16061_v3, %v20630_v15  ;;  %v16063_v32 = vadd.f32 %v10403_v26, %v9348_v38  ;;  %v10405_v47 = vpop.f32.mrb[131].mxu0  ;;  %15940 = vmatprep.mubr.bf16.mxu1 %v11029_v58  ;;  %v20644_v15 = vld [vmem:[#allocation182_spill] sm:$0xff] }
 0x5ff   :  { %v10756_v44 = vadd.f32 %v16063_v32, %v20631_v46  ;;  %v10968_v57 = vmax.f32 %v10753_v56, 0.0  ;;  %v9377_v56 = vadd.f32 %v19319_v28, %v20644_v15 }
 0x601   :  { %v10969_v30 = vmax.f32 %v10756_v44, 0.0  ;;  %v20645_v44 = vld [vmem:[#allocation183_spill] sm:$0xff] }
 0x602   :  { %v10408_v53 = vpop.f32.mrb[132].mxu0 }
 0x603   :  { %v11030_v40 = vpack.c.bf16 %v10969_v30, %v10968_v57  ;;  %v16065_v37 = vadd.f32 %v10408_v53, %v9353_v61  ;;  %v10410_v9 = vpop.f32.mrb[133].mxu0  ;;  %v9380_v57 = vadd.f32 %v19319_v28, %v20645_v44  ;;  %v20646_v61 = vld [vmem:[#allocation234_spill] sm:$0xff]  ;;  %v20659_v44 = vld [vmem:[#allocation245_spill] sm:$0xff] }
 0x604   :  { %v10411_v31 = vpop.f32.mrb[134].mxu0  ;;  %v20647_v9 = vld [vmem:[#allocation236_spill] sm:$0xff] }
 0x605   :  { %v10761_v8 = vadd.f32 %v16065_v37, %v20634_v19  ;;  %v16067_v34 = vadd.f32 %v10411_v31, %v9356_v25  ;;  %v10413_v1 = vpop.f32.mrb[135].mxu0  ;;  %15941 = vmatmul.mubr.bf16.gmra.mrb[112].mxu1 %v11030_v40  ;;  %v20648_v19 = vld [vmem:[#allocation184_spill] sm:$0xff] }
 0x607   :  { %v10764_v60 = vadd.f32 %v16067_v34, %v20635_v59  ;;  %v10970_v16 = vmax.f32 %v10761_v8, 0.0  ;;  %v9385_v8 = vadd.f32 %v19319_v28, %v20648_v19 }
 0x609   :  { %v10971_v17 = vmax.f32 %v10764_v60, 0.0 }
 0x60a   :  { %v10416_v0 = vpop.f32.mrb[136].mxu0 }
 0x60b   :  { %v16069_v45 = vadd.f32 %v10416_v0, %v9361_v21  ;;  %v10418_v49 = vpop.f32.mrb[137].mxu0  ;;  %v11031_v18 = vpack.c.bf16 %v10971_v17, %v10970_v16  ;;  %v20649_v16 = vld [vmem:[#allocation185_spill] sm:$0xff]  ;;  %v20650_v21 = vld [vmem:[#allocation239_spill] sm:$0xff] }
 0x60c   :  { %v10419_v2 = vpop.f32.mrb[138].mxu0  ;;  %v9388_v17 = vadd.f32 %v19319_v28, %v20649_v16 }
 0x60d   :  { %v10769_v24 = vadd.f32 %v16069_v45, %v20638_v62  ;;  %v16071_v12 = vadd.f32 %v10419_v2, %v9364_v43  ;;  %v10421_v42 = vpop.f32.mrb[139].mxu0  ;;  %15944 = vmatprep.mubr.bf16.mxu1 %v11031_v18  ;;  %v20652_v18 = vld [vmem:[#allocation186_spill] sm:$0xff] }
 0x60e   :  { %v9393_v2 = vadd.f32 %v19319_v28, %v20652_v18  ;;  %v20653_v42 = vld [vmem:[#allocation187_spill] sm:$0xff] }
 0x60f   :  { %v10772_v27 = vadd.f32 %v16071_v12, %v20639_v63  ;;  %v10972_v41 = vmax.f32 %v10769_v24, 0.0  ;;  %v9396_v63 = vadd.f32 %v19319_v28, %v20653_v42 }
 0x611   :  { %v10973_v10 = vmax.f32 %v10772_v27, 0.0 }
 0x612   :  { %v10424_v36 = vpop.f32.mrb[140].mxu0 }
 0x613   :  { %v11032_v11 = vpack.c.bf16 %v10973_v10, %v10972_v41  ;;  %v16073_v29 = vadd.f32 %v10424_v36, %v9369_v55  ;;  %v10426_v23 = vpop.f32.mrb[141].mxu0  ;;  %v20654_v55 = vld [vmem:[#allocation238_spill] sm:$0xff] }
 0x614   :  { %v10427_v20 = vpop.f32.mrb[142].mxu0  ;;  %v20655_v23 = vld [vmem:[#allocation240_spill] sm:$0xff] }
 0x615   :  { %v10777_v35 = vadd.f32 %v16073_v29, %v20642_v50  ;;  %v16075_v3 = vadd.f32 %v10427_v20, %v9372_v52  ;;  %v10429_v5 = vpop.f32.mrb[143].mxu0  ;;  %15945 = vmatmul.mubr.bf16.gmra.mrb[116].mxu1 %v11032_v11  ;;  %v20656_v52 = vld [vmem:[#allocation188_spill] sm:$0xff] }
 0x616   :  { %v9401_v20 = vadd.f32 %v19319_v28, %v20656_v52  ;;  %v20657_v5 = vld [vmem:[#allocation189_spill] sm:$0xff] }
 0x617   :  { %v10780_v38 = vadd.f32 %v16075_v3, %v20643_v14  ;;  %v10974_v58 = vmax.f32 %v10777_v35, 0.0  ;;  %v9404_v14 = vadd.f32 %v19319_v28, %v20657_v5 }
 0x619   :  { %v10975_v26 = vmax.f32 %v10780_v38, 0.0 }
 0x61a   :  { %v10432_v32 = vpop.f32.mrb[144].mxu0 }
 0x61b   :  { %v16077_v47 = vadd.f32 %v10432_v32, %v9377_v56  ;;  %v10434_v46 = vpop.f32.mrb[145].mxu0  ;;  %v11033_v30 = vpack.c.bf16 %v10975_v26, %v10974_v58  ;;  %v20658_v56 = vld [vmem:[#allocation243_spill] sm:$0xff] }
 0x61c   :  { %v10435_v54 = vpop.f32.mrb[146].mxu0 }
 0x61d   :  { %v10785_v53 = vadd.f32 %v16077_v47, %v20646_v61  ;;  %v16079_v40 = vadd.f32 %v10435_v54, %v9380_v57  ;;  %v10437_v37 = vpop.f32.mrb[147].mxu0  ;;  %15948 = vmatprep.mubr.bf16.mxu1 %v11033_v30  ;;  %v20660_v30 = vld [vmem:[#allocation190_spill] sm:$0xff] }
 0x61e   :  { %v9409_v54 = vadd.f32 %v19319_v28, %v20660_v30  ;;  %v20661_v37 = vld [vmem:[#allocation191_spill] sm:$0xff] }
 0x61f   :  { %v10788_v51 = vadd.f32 %v16079_v40, %v20647_v9  ;;  %v10976_v25 = vmax.f32 %v10785_v53, 0.0  ;;  %v9412_v9 = vadd.f32 %v19319_v28, %v20661_v37 }
 0x621   :  { %v10977_v31 = vmax.f32 %v10788_v51, 0.0 }
 0x622   :  { %v10440_v34 = vpop.f32.mrb[148].mxu0 }
 0x623   :  { %v11034_v1 = vpack.c.bf16 %v10977_v31, %v10976_v25  ;;  %v16081_v59 = vadd.f32 %v10440_v34, %v9385_v8  ;;  %v10442_v60 = vpop.f32.mrb[149].mxu0  ;;  %v20662_v8 = vld [vmem:[#allocation242_spill] sm:$0xff] }
 0x624   :  { %v10443_v39 = vpop.f32.mrb[150].mxu0  ;;  %v20663_v60 = vld [vmem:[#allocation244_spill] sm:$0xff] }
 0x625   :  { %v10793_v0 = vadd.f32 %v16081_v59, %v20650_v21  ;;  %v16083_v45 = vadd.f32 %v10443_v39, %v9388_v17  ;;  %v10445_v49 = vpop.f32.mrb[151].mxu0  ;;  %15949 = vmatmul.mubr.bf16.gmra.mrb[120].mxu1 %v11034_v1  ;;  %v20664_v17 = vld [vmem:[#allocation192_spill] sm:$0xff] }
 0x626   :  { %v9417_v39 = vadd.f32 %v19319_v28, %v20664_v17  ;;  %v20665_v49 = vld [vmem:[#allocation193_spill] sm:$0xff] }
 0x627   :  { %v10796_v43 = vadd.f32 %v16083_v45, %v20651_v7  ;;  %v10978_v62 = vmax.f32 %v10793_v0, 0.0  ;;  %v9420_v7 = vadd.f32 %v19319_v28, %v20665_v49 }
 0x629   :  { %v10979_v24 = vmax.f32 %v10796_v43, 0.0 }
 0x62a   :  { %v10448_v12 = vpop.f32.mrb[152].mxu0 }
 0x62b   :  { %v16085_v27 = vadd.f32 %v10448_v12, %v9393_v2  ;;  %v10450_v41 = vpop.f32.mrb[153].mxu0  ;;  %v11035_v10 = vpack.c.bf16 %v10979_v24, %v10978_v62  ;;  %v20666_v24 = vld [vmem:[#allocation247_spill] sm:$0xff] }
 0x62c   :  { %v10451_v13 = vpop.f32.mrb[154].mxu0 }
 0x62d   :  { %v10801_v36 = vadd.f32 %v16085_v27, %v20654_v55  ;;  %v16087_v11 = vadd.f32 %v10451_v13, %v9396_v63  ;;  %v10453_v29 = vpop.f32.mrb[155].mxu0  ;;  %15952 = vmatprep.mubr.bf16.mxu1 %v11035_v10  ;;  %v20667_v27 = vld [vmem:[#allocation249_spill] sm:$0xff]  ;;  %v20668_v10 = vld [vmem:[#allocation194_spill] sm:$0xff] }
 0x62e   :  { %v9425_v13 = vadd.f32 %v19319_v28, %v20668_v10  ;;  %v20669_v29 = vld [vmem:[#allocation195_spill] sm:$0xff] }
 0x62f   :  { %v10804_v33 = vadd.f32 %v16087_v11, %v20655_v23  ;;  %v10980_v50 = vmax.f32 %v10801_v36, 0.0  ;;  %v9428_v23 = vadd.f32 %v19319_v28, %v20669_v29 }
 0x631   :  { %v10981_v35 = vmax.f32 %v10804_v33, 0.0 }
 0x632   :  { %v10456_v3 = vpop.f32.mrb[156].mxu0 }
 0x633   :  { %v11036_v38 = vpack.c.bf16 %v10981_v35, %v10980_v50  ;;  %v16089_v58 = vadd.f32 %v10456_v3, %v9401_v20  ;;  %v10458_v26 = vpop.f32.mrb[157].mxu0  ;;  %v20670_v35 = vld [vmem:[#allocation246_spill] sm:$0xff] }
 0x634   :  { %v10459_v15 = vpop.f32.mrb[158].mxu0  ;;  %v20672_v26 = vld [vmem:[#allocation196_spill] sm:$0xff] }
 0x635   :  { %v10809_v32 = vadd.f32 %v16089_v58, %v20658_v56  ;;  %v16091_v47 = vadd.f32 %v10459_v15, %v9404_v14  ;;  %v10461_v46 = vpop.f32.mrb[159].mxu0  ;;  %15953 = vmatmul.mubr.bf16.gmra.mrb[124].mxu1 %v11036_v38  ;;  %v20671_v38 = vld [vmem:[#allocation248_spill] sm:$0xff]  ;;  %v9433_v15 = vadd.f32 %v19319_v28, %v20672_v26 }
 0x636   :  { %v20673_v46 = vld [vmem:[#allocation197_spill] sm:$0xff] }
 0x637   :  { %v10812_v57 = vadd.f32 %v16091_v47, %v20659_v44  ;;  %v10982_v61 = vmax.f32 %v10809_v32, 0.0  ;;  %v9436_v44 = vadd.f32 %v19319_v28, %v20673_v46 }
 0x639   :  { %v10983_v53 = vmax.f32 %v10812_v57, 0.0 }
 0x63a   :  { %v10464_v40 = vpop.f32.mrb[160].mxu0 }
 0x63b   :  { %v16093_v51 = vadd.f32 %v10464_v40, %v9409_v54  ;;  %v10466_v25 = vpop.f32.mrb[161].mxu0  ;;  %v11037_v31 = vpack.c.bf16 %v10983_v53, %v10982_v61  ;;  %v20674_v53 = vld [vmem:[#allocation251_spill] sm:$0xff] }
 0x63c   :  { %v10467_v19 = vpop.f32.mrb[162].mxu0  ;;  %v20675_v25 = vld [vmem:[#allocation253_spill] sm:$0xff] }
 0x63d   :  { %v10817_v34 = vadd.f32 %v16093_v51, %v20662_v8  ;;  %v16095_v1 = vadd.f32 %v10467_v19, %v9412_v9  ;;  %v10469_v59 = vpop.f32.mrb[163].mxu0  ;;  %15956 = vmatprep.mubr.bf16.mxu1 %v11037_v31  ;;  %v19425_v51 = vld [vmem:[%s20107_s9] ss:$0 sm:$0xff]  ;;  %v20676_v8 = vld [vmem:[#allocation198_spill] sm:$0xff] }
 0x63f   :  { %v10820_v16 = vadd.f32 %v16095_v1, %v20663_v60  ;;  %v10984_v21 = vmax.f32 %v10817_v34, 0.0  ;;  %v9441_v34 = vadd.f32 %v19319_v28, %v20676_v8  ;;  %v20693_v8 = vld [vmem:[#allocation255_spill] sm:$0xff] }
 0x641   :  { %v10985_v0 = vmax.f32 %v10820_v16, 0.0 }
 0x642   :  { %v10472_v45 = vpop.f32.mrb[164].mxu0 }
 0x643   :  { %v11038_v43 = vpack.c.bf16 %v10985_v0, %v10984_v21  ;;  %v16097_v18 = vadd.f32 %v10472_v45, %v9417_v39  ;;  %v10474_v2 = vpop.f32.mrb[165].mxu0  ;;  %v20677_v0 = vld [vmem:[#allocation199_spill] sm:$0xff] }
 0x644   :  { %v10475_v62 = vpop.f32.mrb[166].mxu0  ;;  %v9444_v45 = vadd.f32 %v19319_v28, %v20677_v0 }
 0x645   :  { %v10825_v12 = vadd.f32 %v16097_v18, %v20666_v24  ;;  %v16099_v42 = vadd.f32 %v10475_v62, %v9420_v7  ;;  %v10477_v63 = vpop.f32.mrb[167].mxu0  ;;  %15957 = vmatmul.mubr.bf16.gmra.mrb[128].mxu1 %v11038_v43  ;;  %v20678_v62 = vld [vmem:[#allocation11_spill] sm:$0xff] }
 0x646   :  { %v20679_v24 = vmax.f32 %v20678_v62, 0.0 }
 0x647   :  { %v10828_v41 = vadd.f32 %v16099_v42, %v20667_v27  ;;  %v10986_v55 = vmax.f32 %v10825_v12, 0.0  ;;  %v20680_v42 = vld [vmem:[#allocation10_spill] sm:$0xff] }
 0x648   :  { %v20681_v63 = vmax.f32 %v20680_v42, 0.0 }
 0x649   :  { %v10987_v36 = vmax.f32 %v10828_v41, 0.0 }
 0x64a   :  { %v10480_v11 = vpop.f32.mrb[168].mxu0 }
 0x64b   :  { %v16101_v33 = vadd.f32 %v10480_v11, %v9425_v13  ;;  %v10482_v52 = vpop.f32.mrb[169].mxu0  ;;  %v11039_v20 = vpack.c.bf16 %v10987_v36, %v10986_v55  ;;  %v20682_v13 = vld [vmem:[#allocation250_spill] sm:$0xff] }
 0x64c   :  { %v10483_v50 = vpop.f32.mrb[170].mxu0 }
 0x64d   :  { %v10833_v3 = vadd.f32 %v16101_v33, %v20670_v35  ;;  %v16103_v5 = vadd.f32 %v10483_v50, %v9428_v23  ;;  %v10485_v14 = vpop.f32.mrb[171].mxu0  ;;  %15960 = vmatprep.mubr.bf16.mxu1 %v11039_v20  ;;  %v20683_v23 = vld [vmem:[#allocation12_spill] sm:$0xff]  ;;  %v20685_v20 = vld [vmem:[#allocation13_spill] sm:$0xff] }
 0x64e   :  { %v20684_v33 = vmax.f32 %v20683_v23, 0.0  ;;  %v20686_v50 = vmax.f32 %v20685_v20, 0.0 }
 0x64f   :  { %v10836_v58 = vadd.f32 %v16103_v5, %v20671_v38  ;;  %v10988_v56 = vmax.f32 %v10833_v3, 0.0  ;;  %v20687_v3 = vld [vmem:[#allocation252_spill] sm:$0xff] }
 0x651   :  { %v10989_v32 = vmax.f32 %v10836_v58, 0.0  ;;  %v20688_v58 = vld [vmem:[#allocation200_spill] sm:$0xff] }
 0x652   :  { %v10488_v47 = vpop.f32.mrb[172].mxu0  ;;  %v9449_v26 = vadd.f32 %v19319_v28, %v20688_v58 }
 0x653   :  { %v11040_v57 = vpack.c.bf16 %v10989_v32, %v10988_v56  ;;  %v16105_v30 = vadd.f32 %v10488_v47, %v9433_v15  ;;  %v10490_v54 = vpop.f32.mrb[173].mxu0  ;;  %v20689_v32 = vld [vmem:[#allocation84_spill] sm:$0xff] }
 0x654   :  { %v10491_v61 = vpop.f32.mrb[174].mxu0  ;;  %v20691_v54 = vld [vmem:[#allocation201_spill] sm:$0xff] }
 0x655   :  { %v10841_v40 = vadd.f32 %v16105_v30, %v20674_v53  ;;  %v16107_v37 = vadd.f32 %v10491_v61, %v9436_v44  ;;  %v10493_v9 = vpop.f32.mrb[175].mxu0  ;;  %15961 = vmatmul.mubr.bf16.gmra.mrb[132].mxu1 %v11040_v57  ;;  %v20690_v44 = vld [vmem:[#allocation88_spill] sm:$0xff]  ;;  %v9452_v61 = vadd.f32 %v19319_v28, %v20691_v54  ;;  %v20708_v54 = vld [vmem:[#allocation90_spill] sm:$0xff] }
 0x656   :  { %v20692_v9 = vld [vmem:[#allocation89_spill] sm:$0xff] }
 0x657   :  { %v10844_v31 = vadd.f32 %v16107_v37, %v20675_v25  ;;  %v10990_v1 = vmax.f32 %v10841_v40, 0.0 }
 0x658   :  { %v15910_v19 = vpop.f32.mrb[84].mxu1 }
 0x659   :  { %v10991_v59 = vmax.f32 %v10844_v31, 0.0  ;;  %v11167_v60 = vadd.f32 %v15910_v19, %v19425_v51  ;;  %v11158_v16 = vpop.f32.mrb[85].mxu1 }
 0x65a   :  { %v11159_v17 = vadd.f32 %v19425_v51, %v11158_v16  ;;  %v10496_v39 = vpop.f32.mrb[176].mxu0  ;;  %v15911_v21 = vpop.f32.mrb[86].mxu1 }
 0x65b   :  { %v16109_v49 = vadd.f32 %v10496_v39, %v9441_v34  ;;  %v11170_v7 = vadd.f32 %v15911_v21, %v19425_v51  ;;  %v10498_v43 = vpop.f32.mrb[177].mxu0  ;;  %v11161_v18 = vpop.f32.mrb[87].mxu1  ;;  %v11041_v2 = vpack.c.bf16 %v10991_v59, %v10990_v1  ;;  %v11476_v12 = vadd.f32 %v11167_v60, %v20679_v24  ;;  %v20694_v60 = vld [vmem:[#allocation91_spill] sm:$0xff]  ;;  %v20695_v39 = vld [vmem:[#allocation257_spill] sm:$0xff] }
 0x65c   :  { %v11474_v27 = vadd.f32 %v11159_v17, %v20681_v63  ;;  %v11162_v41 = vadd.f32 %v19425_v51, %v11161_v18  ;;  %v10499_v10 = vpop.f32.mrb[178].mxu0  ;;  %v20697_v63 = vld [vmem:[#allocation203_spill] sm:$0xff] }
 0x65d   :  { %v10849_v55 = vadd.f32 %v16109_v49, %v20682_v13  ;;  %v16111_v36 = vadd.f32 %v10499_v10, %v9444_v45  ;;  %v10501_v11 = vpop.f32.mrb[179].mxu0  ;;  %15964 = vmatprep.mubr.bf16.mxu1 %v11041_v2  ;;  %v11477_v52 = vadd.f32 %v11170_v7, %v20684_v33  ;;  %v11553_v14 = vmax.f32 %v11476_v12, 0.0  ;;  %v20696_v49 = vld [vmem:[#allocation202_spill] sm:$0xff]  ;;  %v20700_v33 = vld [vmem:[#allocation15_spill] sm:$0xff] }
 0x65e   :  { %v11551_v29 = vmax.f32 %v11474_v27, 0.0  ;;  %v11475_v35 = vadd.f32 %v11162_v41, %v20686_v50  ;;  %v9457_v7 = vadd.f32 %v19319_v28, %v20696_v49  ;;  %v9460_v27 = vadd.f32 %v19319_v28, %v20697_v63  ;;  %v20698_v11 = vld [vmem:[#allocation14_spill] sm:$0xff] }
 0x65f   :  { %v10852_v5 = vadd.f32 %v16111_v36, %v20687_v3  ;;  %v10992_v15 = vmax.f32 %v10849_v55, 0.0  ;;  %v11554_v46 = vmax.f32 %v11477_v52, 0.0  ;;  %v11630_v25 = vmul.f32 %v11553_v14, %v20692_v9  ;;  %v20702_v3 = vld [vmem:[#allocation254_spill] sm:$0xff] }
 0x660   :  { %v11552_v38 = vmax.f32 %v11475_v35, 0.0  ;;  %v11628_v47 = vmul.f32 %v11551_v29, %v20689_v32  ;;  %v20699_v29 = vmax.f32 %v20698_v11, 0.0  ;;  %v20701_v52 = vmax.f32 %v20700_v33, 0.0  ;;  %v20705_v32 = vld [vmem:[#allocation17_spill] sm:$0xff] }
 0x661   :  { %v10993_v56 = vmax.f32 %v10852_v5, 0.0  ;;  %v11631_v16 = vmul.f32 %v11554_v46, %v20694_v60 }
 0x662   :  { %v11629_v57 = vmul.f32 %v11552_v38, %v20690_v44  ;;  %v10504_v30 = vpop.f32.mrb[180].mxu0  ;;  %v20707_v44 = vld [vmem:[#allocation256_spill] sm:$0xff] }
 0x663   :  { %v11042_v53 = vpack.c.bf16 %v10993_v56, %v10992_v15  ;;  %v16113_v40 = vadd.f32 %v10504_v30, %v9449_v26  ;;  %v10506_v37 = vpop.f32.mrb[181].mxu0  ;;  %v20703_v26 = vld [vmem:[#allocation16_spill] sm:$0xff] }
 0x664   :  { %v11705_v31 = vadd.f32 %v11629_v57, %v11628_v47  ;;  %v10507_v19 = vpop.f32.mrb[182].mxu0  ;;  %v20704_v15 = vmax.f32 %v20703_v26, 0.0  ;;  %v20706_v47 = vmax.f32 %v20705_v32, 0.0 }
 0x665   :  { %v10857_v34 = vadd.f32 %v16113_v40, %v20693_v8  ;;  %v16115_v1 = vadd.f32 %v10507_v19, %v9452_v61  ;;  %v10509_v59 = vpop.f32.mrb[183].mxu0  ;;  %15965 = vmatmul.mubr.bf16.gmra.mrb[136].mxu1 %v11042_v53  ;;  %v20709_v40 = vld [vmem:[#allocation204_spill] sm:$0xff]  ;;  %v20710_v8 = vld [vmem:[#allocation93_spill] sm:$0xff] }
 0x666   :  { %v11706_v17 = vadd.f32 %v11705_v31, %v11630_v25  ;;  %v9465_v37 = vadd.f32 %v19319_v28, %v20709_v40  ;;  %v20711_v59 = vld [vmem:[#allocation205_spill] sm:$0xff]  ;;  %v20723_v40 = vld [vmem:[#allocation20_spill] sm:$0xff] }
 0x667   :  { %v10860_v21 = vadd.f32 %v16115_v1, %v20695_v39  ;;  %v10994_v43 = vmax.f32 %v10857_v34, 0.0  ;;  %v9468_v60 = vadd.f32 %v19319_v28, %v20711_v59  ;;  %v20728_v59 = vld [vmem:[#allocation94_spill] sm:$0xff] }
 0x668   :  { %v15914_v0 = vpop.f32.mrb[88].mxu1  ;;  %v11707_v45 = vadd.f32 %v11706_v17, %v11631_v16 }
 0x669   :  { %v10995_v18 = vmax.f32 %v10860_v21, 0.0  ;;  %v11183_v2 = vadd.f32 %v15914_v0, %v19425_v51  ;;  %v11174_v62 = vpop.f32.mrb[89].mxu1  ;;  %v20712_v21 = vld [vmem:[#allocation92_spill] sm:$0xff] }
 0x66a   :  { %v11175_v24 = vadd.f32 %v19425_v51, %v11174_v62  ;;  %v10512_v12 = vpop.f32.mrb[184].mxu0  ;;  %v15915_v42 = vpop.f32.mrb[90].mxu1 }
 0x66b   :  { %v16117_v41 = vadd.f32 %v10512_v12, %v9457_v7  ;;  %v11186_v10 = vadd.f32 %v15915_v42, %v19425_v51  ;;  %v10514_v13 = vpop.f32.mrb[185].mxu0  ;;  %v11177_v55 = vpop.f32.mrb[91].mxu1  ;;  %v11043_v36 = vpack.c.bf16 %v10995_v18, %v10994_v43  ;;  %v11480_v23 = vadd.f32 %v11183_v2, %v20699_v29  ;;  %v20713_v43 = vld [vmem:[#allocation259_spill] sm:$0xff]  ;;  %v20715_v42 = vld [vmem:[#allocation261_spill] sm:$0xff] }
 0x66c   :  { %v11478_v20 = vadd.f32 %v11175_v24, %v20701_v52  ;;  %v11178_v50 = vadd.f32 %v19425_v51, %v11177_v55  ;;  %v10515_v35 = vpop.f32.mrb[186].mxu0 }
 0x66d   :  { %v10865_v5 = vadd.f32 %v16117_v41, %v20702_v3  ;;  %v16119_v14 = vadd.f32 %v10515_v35, %v9460_v27  ;;  %v10517_v38 = vpop.f32.mrb[187].mxu0  ;;  %15968 = vmatprep.mubr.bf16.mxu1 %v11043_v36  ;;  %v11481_v56 = vadd.f32 %v11186_v10, %v20704_v15  ;;  %v11557_v30 = vmax.f32 %v11480_v23, 0.0  ;;  %v20716_v10 = vld [vmem:[#allocation206_spill] sm:$0xff] }
 0x66e   :  { %v11555_v58 = vmax.f32 %v11478_v20, 0.0  ;;  %v11479_v46 = vadd.f32 %v11178_v50, %v20706_v47  ;;  %v9473_v13 = vadd.f32 %v19319_v28, %v20716_v10  ;;  %v20717_v20 = vld [vmem:[#allocation207_spill] sm:$0xff] }
 0x66f   :  { %v10868_v57 = vadd.f32 %v16119_v14, %v20707_v44  ;;  %v10996_v9 = vmax.f32 %v10865_v5, 0.0  ;;  %v11558_v19 = vmax.f32 %v11481_v56, 0.0  ;;  %v11634_v0 = vmul.f32 %v11557_v30, %v20712_v21  ;;  %v20720_v56 = vld [vmem:[#allocation19_spill] sm:$0xff] }
 0x670   :  { %v11632_v61 = vmul.f32 %v11555_v58, %v20708_v54  ;;  %v11556_v53 = vmax.f32 %v11479_v46, 0.0  ;;  %v9476_v50 = vadd.f32 %v19319_v28, %v20717_v20  ;;  %v20718_v58 = vld [vmem:[#allocation18_spill] sm:$0xff]  ;;  %v20721_v32 = vmax.f32 %v20720_v56, 0.0 }
 0x671   :  { %v10997_v25 = vmax.f32 %v10868_v57, 0.0  ;;  %v20719_v26 = vmax.f32 %v20718_v58, 0.0  ;;  %v20722_v57 = vld [vmem:[#allocation258_spill] sm:$0xff] }
 0x672   :  { %v11708_v31 = vadd.f32 %v11707_v45, %v11632_v61  ;;  %v11633_v34 = vmul.f32 %v11556_v53, %v20710_v8  ;;  %v10520_v1 = vpop.f32.mrb[188].mxu0  ;;  %v20714_v45 = vld [vmem:[#allocation95_spill] sm:$0xff]  ;;  %v20727_v8 = vld [vmem:[#allocation260_spill] sm:$0xff]  ;;  %v11960_v56 = vld [vmem:[%s20108_s10 + $0x20] sm:$0xff] }
 0x673   :  { %v11044_v16 = vpack.c.bf16 %v10997_v25, %v10996_v9  ;;  %v16121_v17 = vadd.f32 %v10520_v1, %v9465_v37  ;;  %v10522_v39 = vpop.f32.mrb[189].mxu0  ;;  %v11635_v24 = vmul.f32 %v11558_v19, %v20714_v45  ;;  %v20724_v37 = vmax.f32 %v20723_v40, 0.0  ;;  %v20725_v25 = vld [vmem:[#allocation21_spill] sm:$0xff] }
 0x674   :  { %v11709_v49 = vadd.f32 %v11708_v31, %v11633_v34  ;;  %v10523_v7 = vpop.f32.mrb[190].mxu0  ;;  %v20726_v31 = vmax.f32 %v20725_v25, 0.0  ;;  %v20738_v25 = vld [vmem:[#allocation22_spill] sm:$0xff] }
 0x675   :  { %v10873_v18 = vadd.f32 %v16121_v17, %v20713_v43  ;;  %v16123_v2 = vadd.f32 %v10523_v7, %v9468_v60  ;;  %v10525_v62 = vpop.f32.mrb[191].mxu0  ;;  %15969 = vmatmul.mubr.bf16.gmra.mrb[140].mxu1 %v11044_v16  ;;  %v20729_v17 = vld [vmem:[#allocation208_spill] sm:$0xff]  ;;  %v20730_v43 = vld [vmem:[#allocation97_spill] sm:$0xff] }
 0x676   :  { %v11710_v12 = vadd.f32 %v11709_v49, %v11634_v0  ;;  %v9481_v39 = vadd.f32 %v19319_v28, %v20729_v17  ;;  %v20731_v62 = vld [vmem:[#allocation209_spill] sm:$0xff] }
 0x677   :  { %v10876_v63 = vadd.f32 %v16123_v2, %v20715_v42  ;;  %v10998_v55 = vmax.f32 %v10873_v18, 0.0  ;;  %v9484_v45 = vadd.f32 %v19319_v28, %v20731_v62 }
 0x678   :  { %v15918_v27 = vpop.f32.mrb[92].mxu1  ;;  %v11711_v41 = vadd.f32 %v11710_v12, %v11635_v24 }
 0x679   :  { %v10999_v36 = vmax.f32 %v10876_v63, 0.0  ;;  %v11199_v11 = vadd.f32 %v15918_v27, %v19425_v51  ;;  %v11190_v29 = vpop.f32.mrb[93].mxu1  ;;  %v20732_v63 = vld [vmem:[#allocation96_spill] sm:$0xff] }
 0x67a   :  { %v11191_v23 = vadd.f32 %v19425_v51, %v11190_v29  ;;  %v10528_v33 = vpop.f32.mrb[192].mxu0  ;;  %v15919_v52 = vpop.f32.mrb[94].mxu1 }
 0x67b   :  { %v16125_v35 = vadd.f32 %v10528_v33, %v9473_v13  ;;  %v11202_v3 = vadd.f32 %v15919_v52, %v19425_v51  ;;  %v10530_v5 = vpop.f32.mrb[193].mxu0  ;;  %v11193_v14 = vpop.f32.mrb[95].mxu1  ;;  %v11045_v38 = vpack.c.bf16 %v10999_v36, %v10998_v55  ;;  %v11484_v15 = vadd.f32 %v11199_v11, %v20719_v26  ;;  %v20733_v55 = vld [vmem:[#allocation263_spill] sm:$0xff]  ;;  %v20735_v52 = vld [vmem:[#allocation265_spill] sm:$0xff] }
 0x67c   :  { %v11482_v47 = vadd.f32 %v11191_v23, %v20721_v32  ;;  %v11194_v46 = vadd.f32 %v19425_v51, %v11193_v14  ;;  %v10531_v44 = vpop.f32.mrb[194].mxu0 }
 0x67d   :  { %v10881_v30 = vadd.f32 %v16125_v35, %v20722_v57  ;;  %v16127_v54 = vadd.f32 %v10531_v44, %v9476_v50  ;;  %v10533_v61 = vpop.f32.mrb[195].mxu0  ;;  %15972 = vmatprep.mubr.bf16.mxu1 %v11045_v38  ;;  %v11485_v9 = vadd.f32 %v11202_v3, %v20724_v37  ;;  %v11561_v1 = vmax.f32 %v11484_v15, 0.0  ;;  %v20736_v3 = vld [vmem:[#allocation210_spill] sm:$0xff] }
 0x67e   :  { %v11559_v53 = vmax.f32 %v11482_v47, 0.0  ;;  %v11483_v19 = vadd.f32 %v11194_v46, %v20726_v31  ;;  %v9489_v5 = vadd.f32 %v19319_v28, %v20736_v3  ;;  %v11956_v15 = vld [vmem:[%s20108_s10] sm:$0xff]  ;;  %v20739_v31 = vmax.f32 %v20738_v25, 0.0 }
 0x67f   :  { %v10884_v34 = vadd.f32 %v16127_v54, %v20727_v8  ;;  %v11000_v21 = vmax.f32 %v10881_v30, 0.0  ;;  %v11562_v7 = vmax.f32 %v11485_v9, 0.0  ;;  %v11638_v27 = vmul.f32 %v11561_v1, %v20732_v63  ;;  %v20737_v30 = vld [vmem:[#allocation211_spill] sm:$0xff] }
 0x680   :  { %v11636_v60 = vmul.f32 %v11559_v53, %v20728_v59  ;;  %v11560_v16 = vmax.f32 %v11483_v19, 0.0  ;;  %v14502_v44 = vcombine.low %v11956_v15, %v11960_v56  ;;  %v14503_v57 = vcombine.high %v11956_v15, %v11960_v56  ;;  %v20740_v8 = vld [vmem:[#allocation23_spill] sm:$0xff] }
 0x681   :  { %v11001_v0 = vmax.f32 %v10884_v34, 0.0  ;;  %v9492_v54 = vadd.f32 %v19319_v28, %v20737_v30  ;;  %v20741_v34 = vmax.f32 %v20740_v8, 0.0  ;;  %v20753_v15 = vld [vmem:[#allocation267_spill] sm:$0xff] }
 0x682   :  { %v11712_v49 = vadd.f32 %v11711_v41, %v11636_v60  ;;  %v11637_v18 = vmul.f32 %v11560_v16, %v20730_v43  ;;  %v10536_v2 = vpop.f32.mrb[196].mxu0  ;;  %v20734_v41 = vld [vmem:[#allocation99_spill] sm:$0xff]  ;;  %12382 = vmatprep.subr.bf16.mxu1 %v14503_v57  ;;  %v20742_v16 = vld [vmem:[#allocation262_spill] sm:$0xff]  ;;  %v20755_v57 = vld [vmem:[#allocation269_spill] sm:$0xff] }
 0x683   :  { %v11046_v24 = vpack.c.bf16 %v11001_v0, %v11000_v21  ;;  %v16129_v12 = vadd.f32 %v10536_v2, %v9481_v39  ;;  %v10538_v42 = vpop.f32.mrb[197].mxu0  ;;  %v11639_v23 = vmul.f32 %v11562_v7, %v20734_v41  ;;  %12383 = vmatpush1.bf16.msra.mxu1 %v14502_v44  ;;  %v20750_v41 = vld [vmem:[#allocation101_spill] sm:$0xff] }
 0x684   :  { %v11713_v10 = vadd.f32 %v11712_v49, %v11637_v18  ;;  %v10539_v13 = vpop.f32.mrb[198].mxu0  ;;  %v20743_v49 = vld [vmem:[#allocation24_spill] sm:$0xff]  ;;  %v20745_v18 = vld [vmem:[#allocation25_spill] sm:$0xff]  ;;  %v20748_v42 = vld [vmem:[#allocation98_spill] sm:$0xff] }
 0x685   :  { %v10889_v36 = vadd.f32 %v16129_v12, %v20733_v55  ;;  %v16131_v11 = vadd.f32 %v10539_v13, %v9484_v45  ;;  %v10541_v29 = vpop.f32.mrb[199].mxu0  ;;  %15973 = vmatmul.mubr.bf16.gmra.mrb[144].mxu1 %v11046_v24  ;;  %v20744_v7 = vmax.f32 %v20743_v49, 0.0  ;;  %v20746_v2 = vmax.f32 %v20745_v18, 0.0  ;;  %v20747_v45 = vld [vmem:[#allocation264_spill] sm:$0xff] }
 0x686   :  { %v11714_v33 = vadd.f32 %v11713_v10, %v11638_v27  ;;  %v20749_v10 = vld [vmem:[#allocation212_spill] sm:$0xff] }
 0x687   :  { %v10892_v20 = vadd.f32 %v16131_v11, %v20735_v52  ;;  %v11002_v14 = vmax.f32 %v10889_v36, 0.0  ;;  %v9497_v13 = vadd.f32 %v19319_v28, %v20749_v10  ;;  %v20751_v52 = vld [vmem:[#allocation213_spill] sm:$0xff]  ;;  %v20763_v10 = vld [vmem:[#allocation28_spill] sm:$0xff] }
 0x688   :  { %v15922_v50 = vpop.f32.mrb[96].mxu1  ;;  %v11715_v35 = vadd.f32 %v11714_v33, %v11639_v23 }
 0x689   :  { %v11003_v38 = vmax.f32 %v10892_v20, 0.0  ;;  %v11215_v58 = vadd.f32 %v15922_v50, %v19425_v51  ;;  %v11206_v26 = vpop.f32.mrb[97].mxu1  ;;  %v9500_v20 = vadd.f32 %v19319_v28, %v20751_v52  ;;  %v20768_v52 = vld [vmem:[#allocation102_spill] sm:$0xff] }
 0x68a   :  { %v11207_v32 = vadd.f32 %v19425_v51, %v11206_v26  ;;  %v10544_v47 = vpop.f32.mrb[200].mxu0  ;;  %v15923_v46 = vpop.f32.mrb[98].mxu1 }
 0x68b   :  { %v16133_v61 = vadd.f32 %v10544_v47, %v9489_v5  ;;  %v11218_v53 = vadd.f32 %v15923_v46, %v19425_v51  ;;  %v10546_v40 = vpop.f32.mrb[201].mxu0  ;;  %v11209_v37 = vpop.f32.mrb[99].mxu1  ;;  %v11047_v9 = vpack.c.bf16 %v11003_v38, %v11002_v14  ;;  %v11488_v19 = vadd.f32 %v11215_v58, %v20739_v31  ;;  %v20752_v14 = vld [vmem:[#allocation100_spill] sm:$0xff] }
 0x68c   :  { %v11486_v1 = vadd.f32 %v11207_v32, %v20741_v34  ;;  %v11210_v59 = vadd.f32 %v19425_v51, %v11209_v37  ;;  %v10547_v60 = vpop.f32.mrb[202].mxu0 }
 0x68d   :  { %v10897_v17 = vadd.f32 %v16133_v61, %v20742_v16  ;;  %v16135_v39 = vadd.f32 %v10547_v60, %v9492_v54  ;;  %v10549_v21 = vpop.f32.mrb[203].mxu0  ;;  %15976 = vmatprep.mubr.bf16.mxu1 %v11047_v9  ;;  %v11489_v43 = vadd.f32 %v11218_v53, %v20744_v7  ;;  %v11565_v12 = vmax.f32 %v11488_v19, 0.0  ;;  %v20756_v53 = vld [vmem:[#allocation214_spill] sm:$0xff] }
 0x68e   :  { %v11563_v0 = vmax.f32 %v11486_v1, 0.0  ;;  %v11487_v62 = vadd.f32 %v11210_v59, %v20746_v2  ;;  %v9505_v40 = vadd.f32 %v19319_v28, %v20756_v53  ;;  %v20757_v1 = vld [vmem:[#allocation215_spill] sm:$0xff] }
 0x68f   :  { %v10900_v24 = vadd.f32 %v16135_v39, %v20747_v45  ;;  %v11004_v55 = vmax.f32 %v10897_v17, 0.0  ;;  %v11566_v29 = vmax.f32 %v11489_v43, 0.0  ;;  %v11642_v38 = vmul.f32 %v11565_v12, %v20752_v14  ;;  %v20760_v43 = vld [vmem:[#allocation27_spill] sm:$0xff] }
 0x690   :  { %v11640_v63 = vmul.f32 %v11563_v0, %v20748_v42  ;;  %v11564_v27 = vmax.f32 %v11487_v62, 0.0  ;;  %v9508_v59 = vadd.f32 %v19319_v28, %v20757_v1  ;;  %v20758_v0 = vld [vmem:[#allocation26_spill] sm:$0xff]  ;;  %v20761_v18 = vmax.f32 %v20760_v43, 0.0 }
 0x691   :  { %v11005_v36 = vmax.f32 %v10900_v24, 0.0  ;;  %v20759_v49 = vmax.f32 %v20758_v0, 0.0  ;;  %v20762_v24 = vld [vmem:[#allocation266_spill] sm:$0xff] }
 0x692   :  { %v11716_v11 = vadd.f32 %v11715_v35, %v11640_v63  ;;  %v11641_v23 = vmul.f32 %v11564_v27, %v20750_v41  ;;  %v10552_v33 = vpop.f32.mrb[204].mxu0  ;;  %v20754_v35 = vld [vmem:[#allocation103_spill] sm:$0xff]  ;;  %v20767_v41 = vld [vmem:[#allocation268_spill] sm:$0xff] }
 0x693   :  { %v11048_v50 = vpack.c.bf16 %v11005_v36, %v11004_v55  ;;  %v16137_v3 = vadd.f32 %v10552_v33, %v9497_v13  ;;  %v10554_v5 = vpop.f32.mrb[205].mxu0  ;;  %v11643_v46 = vmul.f32 %v11566_v29, %v20754_v35  ;;  %v20764_v13 = vmax.f32 %v20763_v10, 0.0  ;;  %v20765_v36 = vld [vmem:[#allocation29_spill] sm:$0xff] }
 0x694   :  { %v11717_v58 = vadd.f32 %v11716_v11, %v11641_v23  ;;  %v10555_v26 = vpop.f32.mrb[206].mxu0  ;;  %v20766_v11 = vmax.f32 %v20765_v36, 0.0 }
 0x695   :  { %v10905_v56 = vadd.f32 %v16137_v3, %v20753_v15  ;;  %v16139_v32 = vadd.f32 %v10555_v26, %v9500_v20  ;;  %v10557_v47 = vpop.f32.mrb[207].mxu0  ;;  %15977 = vmatmul.mubr.bf16.gmra.mrb[148].mxu1 %v11048_v50  ;;  %v20769_v3 = vld [vmem:[#allocation216_spill] sm:$0xff]  ;;  %v20770_v15 = vld [vmem:[#allocation105_spill] sm:$0xff] }
 0x696   :  { %v11718_v44 = vadd.f32 %v11717_v58, %v11642_v38  ;;  %v9513_v5 = vadd.f32 %v19319_v28, %v20769_v3  ;;  %v20771_v47 = vld [vmem:[#allocation217_spill] sm:$0xff]  ;;  %v20782_v3 = vld [vmem:[#allocation106_spill] sm:$0xff] }
 0x697   :  { %v10908_v30 = vadd.f32 %v16139_v32, %v20755_v57  ;;  %v11006_v37 = vmax.f32 %v10905_v56, 0.0  ;;  %v9516_v35 = vadd.f32 %v19319_v28, %v20771_v47 }
 0x698   :  { %v15926_v54 = vpop.f32.mrb[100].mxu1  ;;  %v11719_v61 = vadd.f32 %v11718_v44, %v11643_v46 }
 0x699   :  { %v11007_v9 = vmax.f32 %v10908_v30, 0.0  ;;  %v11231_v25 = vadd.f32 %v15926_v54, %v19425_v51  ;;  %v11222_v31 = vpop.f32.mrb[101].mxu1  ;;  %v20772_v30 = vld [vmem:[#allocation104_spill] sm:$0xff] }
 0x69a   :  { %v11223_v19 = vadd.f32 %v19425_v51, %v11222_v31  ;;  %v10560_v8 = vpop.f32.mrb[208].mxu0  ;;  %v15927_v34 = vpop.f32.mrb[102].mxu1 }
 0x69b   :  { %v16141_v60 = vadd.f32 %v10560_v8, %v9505_v40  ;;  %v11234_v16 = vadd.f32 %v15927_v34, %v19425_v51  ;;  %v10562_v17 = vpop.f32.mrb[209].mxu0  ;;  %v11225_v39 = vpop.f32.mrb[103].mxu1  ;;  %v11049_v21 = vpack.c.bf16 %v11007_v9, %v11006_v37  ;;  %v11492_v7 = vadd.f32 %v11231_v25, %v20759_v49 }
 0x69c   :  { %v11490_v2 = vadd.f32 %v11223_v19, %v20761_v18  ;;  %v11226_v62 = vadd.f32 %v19425_v51, %v11225_v39  ;;  %v10563_v45 = vpop.f32.mrb[210].mxu0  ;;  %v11964_v17 = vld [vmem:[%s20108_s10 + $0x40] sm:$0xff] }
 0x69d   :  { %v10913_v12 = vadd.f32 %v16141_v60, %v20762_v24  ;;  %v16143_v42 = vadd.f32 %v10563_v45, %v9508_v59  ;;  %v10565_v63 = vpop.f32.mrb[211].mxu0  ;;  %15980 = vmatprep.mubr.bf16.mxu1 %v11049_v21  ;;  %v11493_v55 = vadd.f32 %v11234_v16, %v20764_v13  ;;  %v11569_v33 = vmax.f32 %v11492_v7, 0.0  ;;  %v20774_v45 = vld [vmem:[#allocation30_spill] sm:$0xff] }
 0x69e   :  { %v11567_v27 = vmax.f32 %v11490_v2, 0.0  ;;  %v11491_v29 = vadd.f32 %v11226_v62, %v20766_v11  ;;  %v20775_v24 = vmax.f32 %v20774_v45, 0.0  ;;  %v20778_v11 = vld [vmem:[#allocation32_spill] sm:$0xff] }
 0x69f   :  { %v10916_v23 = vadd.f32 %v16143_v42, %v20767_v41  ;;  %v11008_v14 = vmax.f32 %v10913_v12, 0.0  ;;  %v11570_v26 = vmax.f32 %v11493_v55, 0.0  ;;  %v11646_v54 = vmul.f32 %v11569_v33, %v20772_v30  ;;  %v20776_v42 = vld [vmem:[#allocation31_spill] sm:$0xff] }
 0x6a0   :  { %v11644_v20 = vmul.f32 %v11567_v27, %v20768_v52  ;;  %v11568_v50 = vmax.f32 %v11491_v29, 0.0  ;;  %v20777_v63 = vmax.f32 %v20776_v42, 0.0  ;;  %v20779_v29 = vmax.f32 %v20778_v11, 0.0  ;;  %v20796_v42 = vld [vmem:[#allocation113_spill] sm:$0xff] }
 0x6a1   :  { %v11009_v38 = vmax.f32 %v10916_v23, 0.0  ;;  %v20780_v23 = vld [vmem:[#allocation33_spill] sm:$0xff] }
 0x6a2   :  { %v11720_v58 = vadd.f32 %v11719_v61, %v11644_v20  ;;  %v11645_v56 = vmul.f32 %v11568_v50, %v20770_v15  ;;  %v10568_v32 = vpop.f32.mrb[212].mxu0  ;;  %v20773_v61 = vld [vmem:[#allocation107_spill] sm:$0xff]  ;;  %v20781_v33 = vmax.f32 %v20780_v23, 0.0  ;;  %v20783_v15 = vld [vmem:[#allocation109_spill] sm:$0xff] }
 0x6a3   :  { %v11050_v46 = vpack.c.bf16 %v11009_v38, %v11008_v14  ;;  %v16145_v44 = vadd.f32 %v10568_v32, %v9513_v5  ;;  %v10570_v57 = vpop.f32.mrb[213].mxu0  ;;  %v11647_v31 = vmul.f32 %v11570_v26, %v20773_v61 }
 0x6a4   :  { %v11721_v53 = vadd.f32 %v11720_v58, %v11645_v56  ;;  %v10571_v40 = vpop.f32.mrb[214].mxu0  ;;  %v20784_v56 = vld [vmem:[#allocation108_spill] sm:$0xff] }
 0x6a5   :  { %v10921_v37 = vadd.f32 %v16145_v44, %v19333_v6  ;;  %v16147_v9 = vadd.f32 %v10571_v40, %v9516_v35  ;;  %v10573_v25 = vpop.f32.mrb[215].mxu0  ;;  %15981 = vmatmul.mubr.bf16.gmra.mrb[152].mxu1 %v11050_v46  ;;  %v11968_v6 = vld [vmem:[%s20108_s10 + $0x60] sm:$0xff]  ;;  %v20785_v35 = vmov 0   ;;  %v20786_v46 = vld [vmem:[#allocation111_spill] sm:$0xff] }
 0x6a6   :  { %v11722_v19 = vadd.f32 %v11721_v53, %v11646_v54  ;;  %v14511_v49 = vcombine.high %v11964_v17, %v11968_v6 }
 0x6a7   :  { %v10924_v8 = vadd.f32 %v16147_v9, %v19336_v22  ;;  %v11010_v28 = vmax.f32 %v10921_v37, 0.0  ;;  %v14510_v22 = vcombine.low %v11964_v17, %v11968_v6  ;;  %v11972_v37 = vld [vmem:[%s20108_s10 + $0x80] sm:$0xff] }
 0x6a8   :  { %v15930_v34 = vpop.f32.mrb[104].mxu1  ;;  %v11723_v1 = vadd.f32 %v11722_v19, %v11647_v31  ;;  %12384 = vmatprep.subr.bf16.mxu1 %v14511_v49  ;;  %v11976_v9 = vld [vmem:[%s20108_s10 + $0xa0] sm:$0xff] }
 0x6a9   :  { %v11011_v59 = vmax.f32 %v10924_v8, 0.0  ;;  %v11247_v60 = vadd.f32 %v15930_v34, %v19425_v51  ;;  %v11238_v16 = vpop.f32.mrb[105].mxu1  ;;  %12385 = vmatpush1.bf16.msra.mxu1 %v14510_v22  ;;  %v14518_v31 = vcombine.low %v11972_v37, %v11976_v9  ;;  %v14519_v19 = vcombine.high %v11972_v37, %v11976_v9  ;;  %v20793_v49 = vld [vmem:[#allocation37_spill] sm:$0xff]  ;;  %v20807_v9 = vld [vmem:[#allocation114_spill] sm:$0xff] }
 0x6aa   :  { %v11239_v39 = vadd.f32 %v19425_v51, %v11238_v16  ;;  %v10576_v21 = vpop.f32.mrb[224].mxu0  ;;  %v15931_v0 = vpop.f32.mrb[106].mxu1 }
 0x6ab   :  { %v10577_v7 = vadd.f32 %v10576_v21, %v19236_v4  ;;  %v11250_v43 = vadd.f32 %v15931_v0, %v19425_v51  ;;  %v10578_v18 = vpop.f32.mrb[225].mxu0  ;;  %v11241_v2 = vpop.f32.mrb[107].mxu1  ;;  %v11051_v62 = vpack.c.bf16 %v11011_v59, %v11010_v28  ;;  %v11496_v12 = vadd.f32 %v11247_v60, %v20775_v24  ;;  %v20789_v60 = vld [vmem:[#allocation35_spill] sm:$0xff]  ;;  %12386 = vmatprep.subr.bf16.mxu1 %v14519_v19  ;;  %v20791_v21 = vld [vmem:[#allocation36_spill] sm:$0xff] }
 0x6ac   :  { %v11494_v27 = vadd.f32 %v11239_v39, %v20777_v63  ;;  %v11242_v10 = vadd.f32 %v19425_v51, %v11241_v2  ;;  %v10579_v13 = vpop.f32.mrb[226].mxu0  ;;  %v20790_v16 = vmax.f32 %v20789_v60, 0.0  ;;  %v20792_v0 = vmax.f32 %v20791_v21, 0.0  ;;  %v20795_v2 = vld [vmem:[#allocation110_spill] sm:$0xff]  ;;  %v20810_v60 = vld [vmem:[#allocation119_spill] sm:$0xff] }
 0x6ad   :  { %v10929_v55 = vadd.f32 %v19329_v48, %v10577_v7  ;;  %v10580_v36 = vpop.f32.mrb[227].mxu0  ;;  %15984 = vmatprep.mubr.bf16.mxu1 %v11051_v62  ;;  %v11497_v41 = vadd.f32 %v11250_v43, %v20779_v29  ;;  %v11573_v50 = vmax.f32 %v11496_v12, 0.0  ;;  %12387 = vmatpush1.bf16.msra.mxu1 %v14518_v31  ;;  %v20794_v7 = vmax.f32 %v20793_v49, 0.0  ;;  %v11992_v49 = vld [vmem:[%s20108_s10 + $0x120] sm:$0xff] }
 0x6ae   :  { %v11571_v4 = vmax.f32 %v11494_v27, 0.0  ;;  %v11495_v52 = vadd.f32 %v11242_v10, %v20781_v33  ;;  %v20797_v27 = vld [vmem:[#allocation112_spill] sm:$0xff]  ;;  %v11980_v33 = vld [vmem:[%s20108_s10 + $0xc0] sm:$0xff] }
 0x6af   :  { %v11012_v20 = vmax.f32 %v10929_v55, 0.0  ;;  %v11574_v26 = vmax.f32 %v11497_v41, 0.0  ;;  %v11650_v32 = vmul.f32 %v11573_v50, %v20784_v56  ;;  %v20798_v55 = vld [vmem:[#allocation115_spill] sm:$0xff] }
 0x6b0   :  { %v11648_v5 = vmul.f32 %v11571_v4, %v20782_v3  ;;  %v11572_v14 = vmax.f32 %v11495_v52, 0.0  ;;  %v11984_v52 = vld [vmem:[%s20108_s10 + $0xe0] sm:$0xff] }
 0x6b1   :  { %v11052_v38 = vpack.c.bf16 %v11012_v20, %v11012_v20  ;;  %v11651_v44 = vmul.f32 %v11574_v26, %v20786_v46  ;;  %v14526_v3 = vcombine.low %v11980_v33, %v11984_v52 }
 0x6b2   :  { %v11724_v58 = vadd.f32 %v11723_v1, %v11648_v5  ;;  %v11649_v48 = vmul.f32 %v11572_v14, %v20783_v15  ;;  %v20787_v1 = vld [vmem:[#allocation34_spill] sm:$0xff]  ;;  %v14527_v5 = vcombine.high %v11980_v33, %v11984_v52 }
 0x6b3   :  { %15985 = vmatmul.mubr.bf16.gmra.mrb[156].mxu1 %v11052_v38  ;;  %v20788_v28 = vmax.f32 %v20787_v1, 0.0  ;;  %v20809_v1 = vld [vmem:[#allocation116_spill] sm:$0xff]  ;;  %v20819_v52 = vld [vmem:[#allocation118_spill] sm:$0xff] }
 0x6b4   :  { %v11725_v47 = vadd.f32 %v11724_v58, %v11649_v48  ;;  %12414 = vmatprep.mubr.bf16.mxu1 %v20785_v35  ;;  %v20799_v58 = vld [vmem:[#allocation38_spill] sm:$0xff]  ;;  %v20801_v48 = vld [vmem:[#allocation39_spill] sm:$0xff]  ;;  %12388 = vmatprep.subr.bf16.mxu1 %v14527_v5 }
 0x6b5   :  { %v20800_v26 = vmax.f32 %v20799_v58, 0.0  ;;  %v20802_v56 = vmax.f32 %v20801_v48, 0.0  ;;  %12389 = vmatpush1.bf16.msra.mxu1 %v14526_v3  ;;  %v20821_v58 = vld [vmem:[#allocation120_spill] sm:$0xff]  ;;  %v20822_v48 = vld [vmem:[#allocation123_spill] sm:$0xff] }
 0x6b6   :  { %v11726_v57 = vadd.f32 %v11725_v47, %v11650_v32 }
 0x6b8   :  { %v15934_v30 = vpop.f32.mrb[0].mxu1  ;;  %v11727_v54 = vadd.f32 %v11726_v57, %v11651_v44  ;;  %v20803_v44 = vld [vmem:[#allocation40_spill] sm:$0xff] }
 0x6b9   :  { %v11263_v53 = vadd.f32 %v15934_v30, %v19425_v51  ;;  %v11254_v40 = vpop.f32.mrb[1].mxu1  ;;  %v20804_v57 = vmax.f32 %v20803_v44, 0.0 }
 0x6ba   :  { %v11255_v25 = vadd.f32 %v19425_v51, %v11254_v40  ;;  %v15935_v61 = vpop.f32.mrb[2].mxu1 }
 0x6bb   :  { %v11266_v8 = vadd.f32 %v15935_v61, %v19425_v51  ;;  %v11257_v34 = vpop.f32.mrb[3].mxu1  ;;  %v11500_v59 = vadd.f32 %v11263_v53, %v20788_v28 }
 0x6bc   :  { %v11498_v17 = vadd.f32 %v11255_v25, %v20790_v16  ;;  %v11258_v6 = vadd.f32 %v19425_v51, %v11257_v34 }
 0x6bd   :  { %v11501_v22 = vadd.f32 %v11266_v8, %v20792_v0  ;;  %v11577_v18 = vmax.f32 %v11500_v59, 0.0  ;;  %v20808_v8 = vld [vmem:[#allocation117_spill] sm:$0xff] }
 0x6be   :  { %v11575_v39 = vmax.f32 %v11498_v17, 0.0  ;;  %v11499_v43 = vadd.f32 %v11258_v6, %v20794_v7 }
 0x6bf   :  { %v11578_v12 = vmax.f32 %v11501_v22, 0.0  ;;  %v11654_v10 = vmul.f32 %v11577_v18, %v20797_v27  ;;  %v11988_v22 = vld [vmem:[%s20108_s10 + $0x100] sm:$0xff] }
 0x6c0   :  { %v11652_v62 = vmul.f32 %v11575_v39, %v20795_v2  ;;  %v11576_v45 = vmax.f32 %v11499_v43, 0.0  ;;  %v14534_v18 = vcombine.low %v11988_v22, %v11992_v49  ;;  %v14535_v2 = vcombine.high %v11988_v22, %v11992_v49  ;;  %v20832_v22 = vld [vmem:[#allocation122_spill] sm:$0xff] }
 0x6c1   :  { %v11655_v36 = vmul.f32 %v11578_v12, %v20798_v55 }
 0x6c2   :  { %v11728_v24 = vadd.f32 %v11727_v54, %v11652_v62  ;;  %v11653_v63 = vmul.f32 %v11576_v45, %v20796_v42  ;;  %v20805_v54 = vld [vmem:[#allocation41_spill] sm:$0xff]  ;;  %12390 = vmatprep.subr.bf16.mxu1 %v14535_v2 }
 0x6c3   :  { %v20806_v53 = vmax.f32 %v20805_v54, 0.0  ;;  %12391 = vmatpush1.bf16.msra.mxu1 %v14534_v18 }
 0x6c4   :  { %v11729_v13 = vadd.f32 %v11728_v24, %v11653_v63  ;;  %v20811_v24 = vld [vmem:[#allocation42_spill] sm:$0xff]  ;;  %v20813_v63 = vld [vmem:[#allocation43_spill] sm:$0xff] }
 0x6c5   :  { %v20812_v12 = vmax.f32 %v20811_v24, 0.0  ;;  %v20814_v27 = vmax.f32 %v20813_v63, 0.0 }
 0x6c6   :  { %v11730_v4 = vadd.f32 %v11729_v13, %v11654_v10 }
 0x6c8   :  { %v15938_v11 = vpop.f32.mrb[108].mxu1  ;;  %v11731_v29 = vadd.f32 %v11730_v4, %v11655_v36  ;;  %v20815_v36 = vld [vmem:[#allocation44_spill] sm:$0xff] }
 0x6c9   :  { %v11279_v41 = vadd.f32 %v15938_v11, %v19425_v51  ;;  %v11270_v23 = vpop.f32.mrb[109].mxu1  ;;  %v20816_v4 = vmax.f32 %v20815_v36, 0.0 }
 0x6ca   :  { %v11271_v20 = vadd.f32 %v19425_v51, %v11270_v23  ;;  %v15939_v50 = vpop.f32.mrb[110].mxu1 }
 0x6cb   :  { %v11282_v14 = vadd.f32 %v15939_v50, %v19425_v51  ;;  %v11273_v38 = vpop.f32.mrb[111].mxu1  ;;  %v11504_v15 = vadd.f32 %v11279_v41, %v20800_v26 }
 0x6cc   :  { %v11502_v32 = vadd.f32 %v11271_v20, %v20802_v56  ;;  %v11274_v47 = vadd.f32 %v19425_v51, %v11273_v38 }
 0x6cd   :  { %v11505_v30 = vadd.f32 %v11282_v14, %v20804_v57  ;;  %v11581_v37 = vmax.f32 %v11504_v15, 0.0  ;;  %v20820_v14 = vld [vmem:[#allocation121_spill] sm:$0xff] }
 0x6ce   :  { %v11579_v46 = vmax.f32 %v11502_v32, 0.0  ;;  %v11503_v40 = vadd.f32 %v11274_v47, %v20806_v53  ;;  %v20823_v53 = vld [vmem:[#allocation46_spill] sm:$0xff] }
 0x6cf   :  { %v11582_v19 = vmax.f32 %v11505_v30, 0.0  ;;  %v11658_v28 = vmul.f32 %v11581_v37, %v20809_v1  ;;  %v20827_v1 = vld [vmem:[#allocation48_spill] sm:$0xff] }
 0x6d0   :  { %v11656_v25 = vmul.f32 %v11579_v46, %v20807_v9  ;;  %v11580_v61 = vmax.f32 %v11503_v40, 0.0  ;;  %v20824_v40 = vmax.f32 %v20823_v53, 0.0 }
 0x6d1   :  { %v11659_v16 = vmul.f32 %v11582_v19, %v20810_v60 }
 0x6d2   :  { %v11732_v31 = vadd.f32 %v11731_v29, %v11656_v25  ;;  %v11657_v34 = vmul.f32 %v11580_v61, %v20808_v8  ;;  %v20817_v29 = vld [vmem:[#allocation45_spill] sm:$0xff]  ;;  %v20825_v61 = vld [vmem:[#allocation47_spill] sm:$0xff] }
 0x6d3   :  { %v20818_v41 = vmax.f32 %v20817_v29, 0.0 }
 0x6d4   :  { %v11733_v59 = vadd.f32 %v11732_v31, %v11657_v34  ;;  %v20826_v31 = vmax.f32 %v20825_v61, 0.0 }
 0x6d6   :  { %v11734_v17 = vadd.f32 %v11733_v59, %v11658_v28  ;;  %v20828_v28 = vmax.f32 %v20827_v1, 0.0 }
 0x6d8   :  { %v15942_v6 = vpop.f32.mrb[112].mxu1  ;;  %v11735_v39 = vadd.f32 %v11734_v17, %v11659_v16  ;;  %v20829_v16 = vld [vmem:[#allocation49_spill] sm:$0xff] }
 0x6d9   :  { %v11295_v21 = vadd.f32 %v15942_v6, %v19425_v51  ;;  %v11286_v0 = vpop.f32.mrb[113].mxu1  ;;  %v20830_v17 = vmax.f32 %v20829_v16, 0.0 }
 0x6da   :  { %v11287_v7 = vadd.f32 %v19425_v51, %v11286_v0  ;;  %v15943_v43 = vpop.f32.mrb[114].mxu1 }
 0x6db   :  { %v11298_v62 = vadd.f32 %v15943_v43, %v19425_v51  ;;  %v11289_v45 = vpop.f32.mrb[115].mxu1  ;;  %v11508_v42 = vadd.f32 %v11295_v21, %v20812_v12  ;;  %v20833_v43 = vld [vmem:[#allocation127_spill] sm:$0xff] }
 0x6dc   :  { %v11506_v10 = vadd.f32 %v11287_v7, %v20814_v27  ;;  %v11290_v13 = vadd.f32 %v19425_v51, %v11289_v45 }
 0x6dd   :  { %v11509_v11 = vadd.f32 %v11298_v62, %v20816_v4  ;;  %v11585_v33 = vmax.f32 %v11508_v42, 0.0  ;;  %v20834_v62 = vld [vmem:[#allocation125_spill] sm:$0xff] }
 0x6de   :  { %v11583_v55 = vmax.f32 %v11506_v10, 0.0  ;;  %v11507_v23 = vadd.f32 %v11290_v13, %v20818_v41  ;;  %v11996_v4 = vld [vmem:[%s20108_s10 + $0x140] sm:$0xff] }
 0x6df   :  { %v11586_v5 = vmax.f32 %v11509_v11, 0.0  ;;  %v11662_v26 = vmul.f32 %v11585_v33, %v20821_v58  ;;  %v12000_v11 = vld [vmem:[%s20108_s10 + $0x160] sm:$0xff] }
 0x6e0   :  { %v11660_v20 = vmul.f32 %v11583_v55, %v20819_v52  ;;  %v11584_v50 = vmax.f32 %v11507_v23, 0.0  ;;  %v14542_v23 = vcombine.low %v11996_v4, %v12000_v11  ;;  %v14543_v33 = vcombine.high %v11996_v4, %v12000_v11  ;;  %v20835_v52 = vld [vmem:[#allocation50_spill] sm:$0xff] }
 0x6e1   :  { %v11663_v56 = vmul.f32 %v11586_v5, %v20822_v48  ;;  %v20839_v48 = vld [vmem:[#allocation52_spill] sm:$0xff] }
 0x6e2   :  { %v11736_v3 = vadd.f32 %v11735_v39, %v11660_v20  ;;  %v11661_v38 = vmul.f32 %v11584_v50, %v20820_v14  ;;  %v20831_v39 = vld [vmem:[#allocation124_spill] sm:$0xff]  ;;  %v20836_v20 = vmax.f32 %v20835_v52, 0.0  ;;  %v20837_v14 = vld [vmem:[#allocation51_spill] sm:$0xff]  ;;  %12392 = vmatprep.subr.bf16.mxu1 %v14543_v33 }
 0x6e3   :  { %12393 = vmatpush1.bf16.msra.mxu1 %v14542_v23 }
 0x6e4   :  { %v11737_v15 = vadd.f32 %v11736_v3, %v11661_v38  ;;  %v20838_v38 = vmax.f32 %v20837_v14, 0.0 }
 0x6e6   :  { %v11738_v32 = vadd.f32 %v11737_v15, %v11662_v26 }
 0x6e8   :  { %v15946_v47 = vpop.f32.mrb[116].mxu1  ;;  %v11739_v46 = vadd.f32 %v11738_v32, %v11663_v56  ;;  %v20840_v56 = vmax.f32 %v20839_v48, 0.0  ;;  %v20857_v48 = vld [vmem:[#allocation135_spill] sm:$0xff] }
 0x6e9   :  { %v11311_v44 = vadd.f32 %v15946_v47, %v19425_v51  ;;  %v11302_v57 = vpop.f32.mrb[117].mxu1 }
 0x6ea   :  { %v11303_v30 = vadd.f32 %v19425_v51, %v11302_v57  ;;  %v15947_v54 = vpop.f32.mrb[118].mxu1 }
 0x6eb   :  { %v11512_v37 = vadd.f32 %v11311_v44, %v20824_v40  ;;  %v11314_v9 = vadd.f32 %v15947_v54, %v19425_v51  ;;  %v11305_v25 = vpop.f32.mrb[119].mxu1  ;;  %v20844_v40 = vld [vmem:[#allocation126_spill] sm:$0xff] }
 0x6ec   :  { %v11510_v19 = vadd.f32 %v11303_v30, %v20826_v31  ;;  %v11306_v8 = vadd.f32 %v19425_v51, %v11305_v25  ;;  %v20843_v30 = vld [vmem:[#allocation128_spill] sm:$0xff]  ;;  %v20845_v25 = vld [vmem:[#allocation131_spill] sm:$0xff] }
 0x6ed   :  { %v11589_v34 = vmax.f32 %v11512_v37, 0.0  ;;  %v11513_v59 = vadd.f32 %v11314_v9, %v20828_v28 }
 0x6ee   :  { %v11587_v60 = vmax.f32 %v11510_v19, 0.0  ;;  %v11511_v6 = vadd.f32 %v11306_v8, %v20830_v17  ;;  %v20846_v19 = vld [vmem:[#allocation129_spill] sm:$0xff] }
 0x6ef   :  { %v11666_v21 = vmul.f32 %v11589_v34, %v20831_v39  ;;  %v11590_v0 = vmax.f32 %v11513_v59, 0.0 }
 0x6f0   :  { %v11664_v49 = vmul.f32 %v11587_v60, %v20832_v22  ;;  %v11588_v7 = vmax.f32 %v11511_v6, 0.0 }
 0x6f1   :  { %v11667_v18 = vmul.f32 %v11590_v0, %v20833_v43  ;;  %v11791_v24 = vrot.slane %v11666_v21, 2  ;;  %v11743_v63 = vsel %vm11742_vm1, %v11666_v21, 0.0  ;;  %v12008_v43 = vld [vmem:[%s20108_s10 + $0x1a0] sm:$0xff] }
 0x6f2   :  { %v11740_v2 = vadd.f32 %v11739_v46, %v11664_v49  ;;  %v11665_v45 = vmul.f32 %v11588_v7, %v20834_v62  ;;  %v20841_v46 = vld [vmem:[#allocation53_spill] sm:$0xff] }
 0x6f3   :  { %v11792_v12 = vrot.slane %v11667_v18, 2  ;;  %v20842_v44 = vmax.f32 %v20841_v46, 0.0  ;;  %v12004_v7 = vld [vmem:[%s20108_s10 + $0x180] sm:$0xff] }
 0x6f4   :  { %v11741_v42 = vadd.f32 %v11740_v2, %v11665_v45  ;;  %v14550_v62 = vcombine.low %v12004_v7, %v12008_v43  ;;  %v14551_v45 = vcombine.high %v12004_v7, %v12008_v43 }
 0x6f5   :  { %v11793_v27 = vsel %vm11790_vm2, %v11791_v24, %v11792_v12  ;;  %v20847_v24 = vld [vmem:[#allocation54_spill] sm:$0xff] }
 0x6f6   :  { %v19683_v10 = vadd.f32 %v11743_v63, %v11741_v42  ;;  %12394 = vmatprep.subr.bf16.mxu1 %v14551_v45 }
 0x6f7   :  { %12395 = vmatpush1.bf16.msra.mxu1 %v14550_v62  ;;  %v20865_v62 = vld [vmem:[#allocation61_spill] sm:$0xff] }
 0x6f8   :  { %v15950_v13 = vpop.f32.mrb[120].mxu1  ;;  %v20866_v45 = vmax.f32 %v20865_v62, 0.0  ;;  %v20881_v62 = vld [vmem:[#allocation143_spill] sm:$0xff] }
 0x6f9   :  { %v11327_v55 = vadd.f32 %v15950_v13, %v19425_v51  ;;  %v11318_v36 = vpop.f32.mrb[121].mxu1 }
 0x6fa   :  { %v11319_v29 = vadd.f32 %v19425_v51, %v11318_v36  ;;  %v15951_v41 = vpop.f32.mrb[122].mxu1 }
 0x6fb   :  { %v11516_v50 = vadd.f32 %v11327_v55, %v20836_v20  ;;  %v11330_v3 = vadd.f32 %v15951_v41, %v19425_v51  ;;  %v11321_v5 = vpop.f32.mrb[123].mxu1  ;;  %v20849_v55 = vld [vmem:[#allocation55_spill] sm:$0xff]  ;;  %v20851_v41 = vld [vmem:[#allocation56_spill] sm:$0xff]  ;;  %v20853_v20 = vld [vmem:[#allocation57_spill] sm:$0xff] }
 0x6fc   :  { %v11514_v58 = vadd.f32 %v11319_v29, %v20838_v38  ;;  %v11322_v26 = vadd.f32 %v19425_v51, %v11321_v5  ;;  %v20850_v36 = vmax.f32 %v20849_v55, 0.0  ;;  %v20852_v23 = vmax.f32 %v20851_v41, 0.0  ;;  %v20855_v5 = vld [vmem:[#allocation132_spill] sm:$0xff] }
 0x6fd   :  { %v11593_v15 = vmax.f32 %v11516_v50, 0.0  ;;  %v11517_v32 = vadd.f32 %v11330_v3, %v20840_v56  ;;  %v20854_v50 = vmax.f32 %v20853_v20, 0.0 }
 0x6fe   :  { %v11591_v47 = vmax.f32 %v11514_v58, 0.0  ;;  %v11515_v57 = vadd.f32 %v11322_v26, %v20842_v44  ;;  %v20856_v58 = vld [vmem:[#allocation130_spill] sm:$0xff] }
 0x6ff   :  { %v11670_v54 = vmul.f32 %v11593_v15, %v20843_v30  ;;  %v11594_v53 = vmax.f32 %v11517_v32, 0.0 }
 0x700   :  { %v11668_v37 = vmul.f32 %v11591_v47, %v20844_v40  ;;  %v11592_v9 = vmax.f32 %v11515_v57, 0.0  ;;  %v20858_v47 = vld [vmem:[#allocation133_spill] sm:$0xff] }
 0x701   :  { %v11671_v61 = vmul.f32 %v11594_v53, %v20845_v25  ;;  %v11798_v34 = vrot.slane %v11670_v54, 2 }
 0x702   :  { %v11794_v31 = vrot.slane %v11668_v37, 2  ;;  %v11669_v8 = vmul.f32 %v11592_v9, %v20846_v19 }
 0x703   :  { %v11800_v1 = vrot.slane %v11671_v61, 2 }
 0x704   :  { %v11795_v28 = vsel %vm11790_vm2, %v11792_v12, %v11794_v31  ;;  %v11796_v59 = vrot.slane %v11669_v8, 2  ;;  %v20848_v12 = vmax.f32 %v20847_v24, 0.0 }
 0x705   :  { %v11907_v60 = vadd.f32 %v11795_v28, %v11793_v27  ;;  %v11801_v16 = vsel %vm11790_vm2, %v11798_v34, %v11800_v1 }
 0x706   :  { %v11797_v17 = vsel %vm11790_vm2, %v11794_v31, %v11796_v59  ;;  %v11799_v6 = vsel %vm11790_vm2, %v11796_v59, %v11798_v34  ;;  %v20859_v59 = vld [vmem:[#allocation58_spill] sm:$0xff] }
 0x707   :  { %v11908_v39 = vadd.f32 %v11907_v60, %v11797_v17  ;;  %v20860_v60 = vmax.f32 %v20859_v59, 0.0  ;;  %v19744_v17 = vld [vmem:[%s20107_s9] ss:$0 sm:$0xff] }
 0x708   :  { %v15954_v21 = vpop.f32.mrb[124].mxu1 }
 0x709   :  { %v11909_v0 = vadd.f32 %v11908_v39, %v11799_v6  ;;  %v11343_v22 = vadd.f32 %v15954_v21, %v19425_v51  ;;  %v11334_v49 = vpop.f32.mrb[125].mxu1  ;;  %v20861_v21 = vld [vmem:[#allocation59_spill] sm:$0xff] }
 0x70a   :  { %v11335_v18 = vadd.f32 %v19425_v51, %v11334_v49  ;;  %v15955_v2 = vpop.f32.mrb[126].mxu1 }
 0x70b   :  { %v11520_v42 = vadd.f32 %v11343_v22, %v20848_v12  ;;  %v11910_v63 = vadd.f32 %v11909_v0, %v11801_v16  ;;  %v11346_v27 = vadd.f32 %v15955_v2, %v19425_v51  ;;  %v11337_v13 = vpop.f32.mrb[127].mxu1  ;;  %v20862_v0 = vmax.f32 %v20861_v21, 0.0  ;;  %v20867_v12 = vld [vmem:[#allocation136_spill] sm:$0xff]  ;;  %v20877_v21 = vld [vmem:[#allocation65_spill] sm:$0xff] }
 0x70c   :  { %v11518_v4 = vadd.f32 %v11335_v18, %v20850_v36  ;;  %v11338_v11 = vadd.f32 %v19425_v51, %v11337_v13  ;;  %v20869_v36 = vld [vmem:[#allocation139_spill] sm:$0xff] }
 0x70d   :  { %v11597_v29 = vmax.f32 %v11520_v42, 0.0  ;;  %v11521_v33 = vadd.f32 %v11346_v27, %v20852_v23  ;;  %v20868_v27 = vld [vmem:[#allocation134_spill] sm:$0xff] }
 0x70e   :  { %v11595_v52 = vmax.f32 %v11518_v4, 0.0  ;;  %v11519_v3 = vadd.f32 %v11338_v11, %v20854_v50 }
 0x70f   :  { %v11674_v14 = vmul.f32 %v11597_v29, %v20855_v5  ;;  %v11598_v38 = vmax.f32 %v11521_v33, 0.0  ;;  %v20870_v29 = vld [vmem:[#allocation137_spill] sm:$0xff] }
 0x710   :  { %v11672_v26 = vmul.f32 %v11595_v52, %v20856_v58  ;;  %v11596_v15 = vmax.f32 %v11519_v3, 0.0  ;;  %v12016_v58 = vld [vmem:[%s20108_s10 + $0x1e0] sm:$0xff] }
 0x711   :  { %v11675_v56 = vmul.f32 %v11598_v38, %v20857_v48  ;;  %v11806_v44 = vrot.slane %v11674_v14, 2  ;;  %v12012_v38 = vld [vmem:[%s20108_s10 + $0x1c0] sm:$0xff] }
 0x712   :  { %v11802_v32 = vrot.slane %v11672_v26, 2  ;;  %v11673_v46 = vmul.f32 %v11596_v15, %v20858_v47  ;;  %v19771_v26 = vld [vmem:[%s20108_s10 + $0x8] sm:$0xff]  ;;  %v14558_v48 = vcombine.low %v12012_v38, %v12016_v58 }
 0x713   :  { %v11808_v57 = vrot.slane %v11675_v56, 2  ;;  %v14559_v56 = vcombine.high %v12012_v38, %v12016_v58 }
 0x714   :  { %v11803_v30 = vsel %vm11790_vm2, %v11800_v1, %v11802_v32  ;;  %v11804_v54 = vrot.slane %v11673_v46, 2 }
 0x715   :  { %v11911_v53 = vadd.f32 %v11910_v63, %v11803_v30  ;;  %v11809_v40 = vsel %vm11790_vm2, %v11806_v44, %v11808_v57  ;;  %12396 = vmatprep.subr.bf16.mxu1 %v14559_v56  ;;  %v20885_v56 = vld [vmem:[#allocation69_spill] sm:$0xff] }
 0x716   :  { %v11805_v37 = vsel %vm11790_vm2, %v11802_v32, %v11804_v54  ;;  %v11807_v9 = vsel %vm11790_vm2, %v11804_v54, %v11806_v44  ;;  %v19776_v32 = vld [vmem:[%s20108_s10 + $0x28] sm:$0xff]  ;;  %12397 = vmatpush1.bf16.msra.mxu1 %v14558_v48 }
 0x717   :  { %v11912_v25 = vadd.f32 %v11911_v53, %v11805_v37  ;;  %v14504_v46 = vcombine.low %v19771_v26, %v19776_v32  ;;  %v14505_v44 = vcombine.high %v19771_v26, %v19776_v32  ;;  %v20871_v37 = vld [vmem:[#allocation62_spill] sm:$0xff] }
 0x718   :  { %v15958_v61 = vpop.f32.mrb[128].mxu1  ;;  %v11989_v26 = vld [vmem:[%s20108_s10 + $0x108] sm:$0xff] }
 0x719   :  { %v11913_v31 = vadd.f32 %v11912_v25, %v11807_v9  ;;  %v11359_v19 = vadd.f32 %v15958_v61, %v19425_v51  ;;  %v11350_v8 = vpop.f32.mrb[129].mxu1  ;;  %v20872_v9 = vmax.f32 %v20871_v37, 0.0  ;;  %12423 = vmatprep.subr.bf16.mxu1 %v14505_v44  ;;  %v11993_v32 = vld [vmem:[%s20108_s10 + $0x128] sm:$0xff] }
 0x71a   :  { %v11351_v34 = vadd.f32 %v19425_v51, %v11350_v8  ;;  %v15959_v28 = vpop.f32.mrb[130].mxu1  ;;  %v20863_v51 = vld [vmem:[#allocation60_spill] sm:$0xff]  ;;  %v20873_v8 = vld [vmem:[#allocation63_spill] sm:$0xff] }
 0x71b   :  { %v11524_v1 = vadd.f32 %v11359_v19, %v20860_v60  ;;  %v11914_v16 = vadd.f32 %v11913_v31, %v11809_v40  ;;  %v11362_v6 = vadd.f32 %v19744_v17, %v15959_v28  ;;  %v11353_v39 = vpop.f32.mrb[131].mxu1  ;;  %v20864_v43 = vmax.f32 %v20863_v51, 0.0 }
 0x71c   :  { %v11522_v22 = vadd.f32 %v11351_v34, %v20862_v0  ;;  %v11354_v49 = vadd.f32 %v19744_v17, %v11353_v39  ;;  %v20874_v34 = vmax.f32 %v20873_v8, 0.0  ;;  %v20878_v0 = vmax.f32 %v20877_v21, 0.0 }
 0x71d   :  { %v11601_v7 = vmax.f32 %v11524_v1, 0.0  ;;  %v11525_v18 = vadd.f32 %v11362_v6, %v20864_v43  ;;  %v20875_v1 = vld [vmem:[#allocation64_spill] sm:$0xff]  ;;  %v20880_v43 = vld [vmem:[#allocation138_spill] sm:$0xff] }
 0x71e   :  { %v11599_v2 = vmax.f32 %v11522_v22, 0.0  ;;  %v11523_v24 = vadd.f32 %v11354_v49, %v20866_v45  ;;  %v20879_v49 = vld [vmem:[#allocation140_spill] sm:$0xff] }
 0x71f   :  { %v11678_v42 = vmul.f32 %v11601_v7, %v20867_v12  ;;  %v11602_v63 = vmax.f32 %v11525_v18, 0.0  ;;  %v20882_v12 = vld [vmem:[#allocation141_spill] sm:$0xff] }
 0x720   :  { %v11676_v13 = vmul.f32 %v11599_v2, %v20868_v27  ;;  %v11600_v55 = vmax.f32 %v11523_v24, 0.0 }
 0x721   :  { %v11679_v4 = vmul.f32 %v11602_v63, %v20869_v36  ;;  %v11814_v23 = vrot.slane %v11678_v42, 2 }
 0x722   :  { %v11810_v11 = vrot.slane %v11676_v13, 2  ;;  %v11677_v41 = vmul.f32 %v11600_v55, %v20870_v29 }
 0x723   :  { %v11816_v33 = vrot.slane %v11679_v4, 2 }
 0x724   :  { %v11811_v52 = vsel %vm11790_vm2, %v11808_v57, %v11810_v11  ;;  %v11812_v20 = vrot.slane %v11677_v41, 2 }
 0x725   :  { %v11915_v50 = vadd.f32 %v11914_v16, %v11811_v52  ;;  %v11817_v3 = vsel %vm11790_vm2, %v11814_v23, %v11816_v33  ;;  %v20876_v16 = vmax.f32 %v20875_v1, 0.0 }
 0x726   :  { %v11813_v5 = vsel %vm11790_vm2, %v11810_v11, %v11812_v20  ;;  %v11815_v14 = vsel %vm11790_vm2, %v11812_v20, %v11814_v23 }
 0x727   :  { %v11916_v15 = vadd.f32 %v11915_v50, %v11813_v5 }
 0x728   :  { %v15962_v47 = vpop.f32.mrb[132].mxu1 }
 0x729   :  { %v11917_v57 = vadd.f32 %v11916_v15, %v11815_v14  ;;  %v11375_v30 = vadd.f32 %v19744_v17, %v15962_v47  ;;  %v11366_v54 = vpop.f32.mrb[133].mxu1  ;;  %v20883_v14 = vld [vmem:[#allocation68_spill] sm:$0xff]  ;;  %v20886_v47 = vmax.f32 %v20885_v56, 0.0 }
 0x72a   :  { %v11367_v53 = vadd.f32 %v19744_v17, %v11366_v54  ;;  %v15963_v40 = vpop.f32.mrb[134].mxu1  ;;  %v20884_v38 = vmax.f32 %v20883_v14, 0.0  ;;  %v20887_v54 = vld [vmem:[#allocation70_spill] sm:$0xff] }
 0x72b   :  { %v11528_v25 = vadd.f32 %v11375_v30, %v20872_v9  ;;  %v11918_v61 = vadd.f32 %v11917_v57, %v11817_v3  ;;  %v11378_v31 = vadd.f32 %v19744_v17, %v15963_v40  ;;  %v11369_v19 = vpop.f32.mrb[135].mxu1  ;;  %v20889_v9 = vld [vmem:[#allocation71_spill] sm:$0xff] }
 0x72c   :  { %v11526_v28 = vadd.f32 %v11367_v53, %v20874_v34  ;;  %v11370_v59 = vadd.f32 %v19744_v17, %v11369_v19  ;;  %v20888_v53 = vmax.f32 %v20887_v54, 0.0  ;;  %v20892_v34 = vld [vmem:[#allocation142_spill] sm:$0xff] }
 0x72d   :  { %v11605_v60 = vmax.f32 %v11528_v25, 0.0  ;;  %v11529_v6 = vadd.f32 %v11378_v31, %v20876_v16  ;;  %v20890_v25 = vmax.f32 %v20889_v9, 0.0  ;;  %v20891_v31 = vld [vmem:[#allocation144_spill] sm:$0xff] }
 0x72e   :  { %v11603_v39 = vmax.f32 %v11526_v28, 0.0  ;;  %v11527_v22 = vadd.f32 %v11370_v59, %v20878_v0 }
 0x72f   :  { %v11682_v7 = vmul.f32 %v11605_v60, %v20879_v49  ;;  %v11606_v51 = vmax.f32 %v11529_v6, 0.0  ;;  %v20893_v60 = vld [vmem:[#allocation147_spill] sm:$0xff]  ;;  %v20894_v6 = vld [vmem:[#allocation145_spill] sm:$0xff] }
 0x730   :  { %v11680_v18 = vmul.f32 %v11603_v39, %v20880_v43  ;;  %v11604_v2 = vmax.f32 %v11527_v22, 0.0 }
 0x731   :  { %v11683_v45 = vmul.f32 %v11606_v51, %v20881_v62  ;;  %v11822_v63 = vrot.slane %v11682_v7, 2 }
 0x732   :  { %v11818_v24 = vrot.slane %v11680_v18, 2  ;;  %v11681_v42 = vmul.f32 %v11604_v2, %v20882_v12 }
 0x733   :  { %v11824_v27 = vrot.slane %v11683_v45, 2 }
 0x734   :  { %v11819_v13 = vsel %vm11790_vm2, %v11816_v33, %v11818_v24  ;;  %v11820_v55 = vrot.slane %v11681_v42, 2 }
 0x735   :  { %v11919_v36 = vadd.f32 %v11918_v61, %v11819_v13  ;;  %v11825_v4 = vsel %vm11790_vm2, %v11822_v63, %v11824_v27  ;;  %v20895_v13 = vld [vmem:[#allocation72_spill] sm:$0xff] }
 0x736   :  { %v11821_v11 = vsel %vm11790_vm2, %v11818_v24, %v11820_v55  ;;  %v11823_v29 = vsel %vm11790_vm2, %v11820_v55, %v11822_v63  ;;  %v20896_v55 = vmax.f32 %v20895_v13, 0.0 }
 0x737   :  { %v11920_v41 = vadd.f32 %v11919_v36, %v11821_v11 }
 0x738   :  { %v15966_v23 = vpop.f32.mrb[136].mxu1 }
 0x739   :  { %v11921_v52 = vadd.f32 %v11920_v41, %v11823_v29  ;;  %v11391_v20 = vadd.f32 %v19744_v17, %v15966_v23  ;;  %v11382_v50 = vpop.f32.mrb[137].mxu1  ;;  %v20897_v29 = vld [vmem:[#allocation66_spill] sm:$0xff] }
 0x73a   :  { %v11383_v3 = vadd.f32 %v19744_v17, %v11382_v50  ;;  %v15967_v5 = vpop.f32.mrb[138].mxu1  ;;  %v20898_v41 = vmax.f32 %v20897_v29, 0.0  ;;  %v20899_v50 = vld [vmem:[#allocation73_spill] sm:$0xff] }
 0x73b   :  { %v11532_v33 = vadd.f32 %v11391_v20, %v20884_v38  ;;  %v11922_v58 = vadd.f32 %v11921_v52, %v11825_v4  ;;  %v11394_v15 = vadd.f32 %v19744_v17, %v15967_v5  ;;  %v11385_v48 = vpop.f32.mrb[139].mxu1  ;;  %v20901_v38 = vld [vmem:[#allocation67_spill] sm:$0xff] }
 0x73c   :  { %v11530_v44 = vadd.f32 %v11383_v3, %v20886_v47  ;;  %v11386_v57 = vadd.f32 %v19744_v17, %v11385_v48  ;;  %v20900_v3 = vmax.f32 %v20899_v50, 0.0  ;;  %v20904_v47 = vld [vmem:[#allocation146_spill] sm:$0xff] }
 0x73d   :  { %v11609_v30 = vmax.f32 %v11532_v33, 0.0  ;;  %v11533_v40 = vadd.f32 %v11394_v15, %v20888_v53  ;;  %v20902_v33 = vmax.f32 %v20901_v38, 0.0  ;;  %v20903_v15 = vld [vmem:[#allocation148_spill] sm:$0xff] }
 0x73e   :  { %v11607_v37 = vmax.f32 %v11530_v44, 0.0  ;;  %v11531_v61 = vadd.f32 %v11386_v57, %v20890_v25 }
 0x73f   :  { %v11686_v19 = vmul.f32 %v11609_v30, %v20891_v31  ;;  %v11610_v8 = vmax.f32 %v11533_v40, 0.0  ;;  %v20905_v30 = vld [vmem:[#allocation151_spill] sm:$0xff]  ;;  %v20906_v40 = vld [vmem:[#allocation149_spill] sm:$0xff] }
 0x740   :  { %v11684_v28 = vmul.f32 %v11607_v37, %v20892_v34  ;;  %v11608_v59 = vmax.f32 %v11531_v61, 0.0 }
 0x741   :  { %v11687_v1 = vmul.f32 %v11610_v8, %v20893_v60  ;;  %v11830_v21 = vrot.slane %v11686_v19, 2 }
 0x742   :  { %v11826_v16 = vrot.slane %v11684_v28, 2  ;;  %v11685_v39 = vmul.f32 %v11608_v59, %v20894_v6 }
 0x743   :  { %v11832_v0 = vrot.slane %v11687_v1, 2 }
 0x744   :  { %v11827_v22 = vsel %vm11790_vm2, %v11824_v27, %v11826_v16  ;;  %v11828_v49 = vrot.slane %v11685_v39, 2 }
 0x745   :  { %v11923_v7 = vadd.f32 %v11922_v58, %v11827_v22  ;;  %v11833_v51 = vsel %vm11790_vm2, %v11830_v21, %v11832_v0  ;;  %v20907_v22 = vld [vmem:[#allocation76_spill] sm:$0xff] }
 0x746   :  { %v11829_v43 = vsel %vm11790_vm2, %v11826_v16, %v11828_v49  ;;  %v11831_v18 = vsel %vm11790_vm2, %v11828_v49, %v11830_v21  ;;  %v20908_v49 = vmax.f32 %v20907_v22, 0.0 }
 0x747   :  { %v11924_v2 = vadd.f32 %v11923_v7, %v11829_v43 }
 0x748   :  { %v15970_v62 = vpop.f32.mrb[140].mxu1 }
 0x749   :  { %v11925_v45 = vadd.f32 %v11924_v2, %v11831_v18  ;;  %v11407_v24 = vadd.f32 %v19744_v17, %v15970_v62  ;;  %v11398_v12 = vpop.f32.mrb[141].mxu1  ;;  %v20909_v18 = vld [vmem:[#allocation74_spill] sm:$0xff] }
 0x74a   :  { %v11399_v42 = vadd.f32 %v19744_v17, %v11398_v12  ;;  %v15971_v63 = vpop.f32.mrb[142].mxu1  ;;  %v20910_v2 = vmax.f32 %v20909_v18, 0.0  ;;  %v20911_v12 = vld [vmem:[#allocation77_spill] sm:$0xff] }
 0x74b   :  { %v11536_v27 = vadd.f32 %v11407_v24, %v20896_v55  ;;  %v11926_v36 = vadd.f32 %v11925_v45, %v11833_v51  ;;  %v11410_v4 = vadd.f32 %v19744_v17, %v15971_v63  ;;  %v11401_v11 = vpop.f32.mrb[143].mxu1  ;;  %v20913_v55 = vld [vmem:[#allocation75_spill] sm:$0xff] }
 0x74c   :  { %v11534_v23 = vadd.f32 %v11399_v42, %v20898_v41  ;;  %v11402_v52 = vadd.f32 %v19744_v17, %v11401_v11  ;;  %v20912_v42 = vmax.f32 %v20911_v12, 0.0  ;;  %v20916_v41 = vld [vmem:[#allocation150_spill] sm:$0xff] }
 0x74d   :  { %v11613_v20 = vmax.f32 %v11536_v27, 0.0  ;;  %v11537_v5 = vadd.f32 %v11410_v4, %v20900_v3  ;;  %v20914_v27 = vmax.f32 %v20913_v55, 0.0  ;;  %v20915_v4 = vld [vmem:[#allocation152_spill] sm:$0xff] }
 0x74e   :  { %v11611_v14 = vmax.f32 %v11534_v23, 0.0  ;;  %v11535_v58 = vadd.f32 %v11402_v52, %v20902_v33 }
 0x74f   :  { %v11690_v48 = vmul.f32 %v11613_v20, %v20903_v15  ;;  %v11614_v56 = vmax.f32 %v11537_v5, 0.0  ;;  %v20917_v20 = vld [vmem:[#allocation155_spill] sm:$0xff]  ;;  %v20918_v5 = vld [vmem:[#allocation153_spill] sm:$0xff] }
 0x750   :  { %v11688_v44 = vmul.f32 %v11611_v14, %v20904_v47  ;;  %v11612_v57 = vmax.f32 %v11535_v58, 0.0 }
 0x751   :  { %v11691_v54 = vmul.f32 %v11614_v56, %v20905_v30  ;;  %v11838_v9 = vrot.slane %v11690_v48, 2 }
 0x752   :  { %v11834_v53 = vrot.slane %v11688_v44, 2  ;;  %v11689_v37 = vmul.f32 %v11612_v57, %v20906_v40 }
 0x753   :  { %v11840_v25 = vrot.slane %v11691_v54, 2 }
 0x754   :  { %v11835_v61 = vsel %vm11790_vm2, %v11832_v0, %v11834_v53  ;;  %v11836_v31 = vrot.slane %v11689_v37, 2 }
 0x755   :  { %v11927_v19 = vadd.f32 %v11926_v36, %v11835_v61  ;;  %v11841_v8 = vsel %vm11790_vm2, %v11838_v9, %v11840_v25  ;;  %v20919_v61 = vld [vmem:[#allocation80_spill] sm:$0xff] }
 0x756   :  { %v11837_v34 = vsel %vm11790_vm2, %v11834_v53, %v11836_v31  ;;  %v11839_v28 = vsel %vm11790_vm2, %v11836_v31, %v11838_v9  ;;  %v20920_v31 = vmax.f32 %v20919_v61, 0.0 }
 0x757   :  { %v11928_v59 = vadd.f32 %v11927_v19, %v11837_v34 }
 0x758   :  { %v15974_v60 = vpop.f32.mrb[144].mxu1 }
 0x759   :  { %v11929_v1 = vadd.f32 %v11928_v59, %v11839_v28  ;;  %v11423_v16 = vadd.f32 %v19744_v17, %v15974_v60  ;;  %v11414_v6 = vpop.f32.mrb[145].mxu1  ;;  %v20921_v28 = vld [vmem:[#allocation78_spill] sm:$0xff] }
 0x75a   :  { %v11415_v39 = vadd.f32 %v19744_v17, %v11414_v6  ;;  %v15975_v21 = vpop.f32.mrb[146].mxu1  ;;  %v20922_v59 = vmax.f32 %v20921_v28, 0.0  ;;  %v20923_v6 = vld [vmem:[#allocation81_spill] sm:$0xff] }
 0x75b   :  { %v11540_v0 = vadd.f32 %v11423_v16, %v20908_v49  ;;  %v11930_v7 = vadd.f32 %v11929_v1, %v11841_v8  ;;  %v11426_v51 = vadd.f32 %v19744_v17, %v15975_v21  ;;  %v11417_v43 = vpop.f32.mrb[147].mxu1  ;;  %v20925_v49 = vld [vmem:[#allocation79_spill] sm:$0xff] }
 0x75c   :  { %v11538_v62 = vadd.f32 %v11415_v39, %v20910_v2  ;;  %v11418_v45 = vadd.f32 %v19744_v17, %v11417_v43  ;;  %v20924_v39 = vmax.f32 %v20923_v6, 0.0  ;;  %v20928_v2 = vld [vmem:[#allocation154_spill] sm:$0xff] }
 0x75d   :  { %v11617_v24 = vmax.f32 %v11540_v0, 0.0  ;;  %v11541_v63 = vadd.f32 %v11426_v51, %v20912_v42  ;;  %v20926_v0 = vmax.f32 %v20925_v49, 0.0  ;;  %v20927_v51 = vld [vmem:[#allocation156_spill] sm:$0xff] }
 0x75e   :  { %v11615_v13 = vmax.f32 %v11538_v62, 0.0  ;;  %v11539_v36 = vadd.f32 %v11418_v45, %v20914_v27 }
 0x75f   :  { %v11694_v11 = vmul.f32 %v11617_v24, %v20915_v4  ;;  %v11618_v29 = vmax.f32 %v11541_v63, 0.0  ;;  %v20929_v24 = vld [vmem:[#allocation159_spill] sm:$0xff]  ;;  %v20930_v63 = vld [vmem:[#allocation157_spill] sm:$0xff] }
 0x760   :  { %v11692_v23 = vmul.f32 %v11615_v13, %v20916_v41  ;;  %v11616_v52 = vmax.f32 %v11539_v36, 0.0 }
 0x761   :  { %v11695_v50 = vmul.f32 %v11618_v29, %v20917_v20  ;;  %v11846_v38 = vrot.slane %v11694_v11, 2 }
 0x762   :  { %v11842_v3 = vrot.slane %v11692_v23, 2  ;;  %v11693_v14 = vmul.f32 %v11616_v52, %v20918_v5 }
 0x763   :  { %v11848_v33 = vrot.slane %v11695_v50, 2 }
 0x764   :  { %v11843_v58 = vsel %vm11790_vm2, %v11840_v25, %v11842_v3  ;;  %v11844_v15 = vrot.slane %v11693_v14, 2 }
 0x765   :  { %v11931_v48 = vadd.f32 %v11930_v7, %v11843_v58  ;;  %v11849_v56 = vsel %vm11790_vm2, %v11846_v38, %v11848_v33  ;;  %v20931_v58 = vld [vmem:[#allocation85_spill] sm:$0xff] }
 0x766   :  { %v11845_v47 = vsel %vm11790_vm2, %v11842_v3, %v11844_v15  ;;  %v11847_v44 = vsel %vm11790_vm2, %v11844_v15, %v11846_v38  ;;  %v20932_v15 = vmax.f32 %v20931_v58, 0.0 }
 0x767   :  { %v11932_v57 = vadd.f32 %v11931_v48, %v11845_v47 }
 0x768   :  { %v15978_v30 = vpop.f32.mrb[148].mxu1 }
 0x769   :  { %v11933_v54 = vadd.f32 %v11932_v57, %v11847_v44  ;;  %v11439_v53 = vadd.f32 %v19744_v17, %v15978_v30  ;;  %v11430_v40 = vpop.f32.mrb[149].mxu1  ;;  %v20933_v44 = vld [vmem:[#allocation82_spill] sm:$0xff] }
 0x76a   :  { %v11431_v37 = vadd.f32 %v19744_v17, %v11430_v40  ;;  %v15979_v9 = vpop.f32.mrb[150].mxu1  ;;  %v20934_v57 = vmax.f32 %v20933_v44, 0.0  ;;  %v20935_v40 = vld [vmem:[#allocation86_spill] sm:$0xff] }
 0x76b   :  { %v11544_v25 = vadd.f32 %v11439_v53, %v20920_v31  ;;  %v11934_v19 = vadd.f32 %v11933_v54, %v11849_v56  ;;  %v11442_v8 = vadd.f32 %v19744_v17, %v15979_v9  ;;  %v11433_v34 = vpop.f32.mrb[151].mxu1  ;;  %v20937_v31 = vld [vmem:[#allocation83_spill] sm:$0xff] }
 0x76c   :  { %v11542_v60 = vadd.f32 %v11431_v37, %v20922_v59  ;;  %v11434_v1 = vadd.f32 %v19744_v17, %v11433_v34  ;;  %v20936_v37 = vmax.f32 %v20935_v40, 0.0  ;;  %v20940_v59 = vld [vmem:[#allocation158_spill] sm:$0xff] }
 0x76d   :  { %v11621_v16 = vmax.f32 %v11544_v25, 0.0  ;;  %v11545_v21 = vadd.f32 %v11442_v8, %v20924_v39  ;;  %v20938_v25 = vmax.f32 %v20937_v31, 0.0  ;;  %v20939_v8 = vld [vmem:[#allocation160_spill] sm:$0xff]  ;;  %v11977_v31 = vld [vmem:[%s20108_s10 + $0xa8] sm:$0xff] }
 0x76e   :  { %v11619_v22 = vmax.f32 %v11542_v60, 0.0  ;;  %v11543_v7 = vadd.f32 %v11434_v1, %v20926_v0 }
 0x76f   :  { %v11698_v43 = vmul.f32 %v11621_v16, %v20927_v51  ;;  %v11622_v18 = vmax.f32 %v11545_v21, 0.0  ;;  %v20941_v16 = vld [vmem:[#allocation163_spill] sm:$0xff]  ;;  %v20942_v21 = vld [vmem:[#allocation161_spill] sm:$0xff] }
 0x770   :  { %v11696_v62 = vmul.f32 %v11619_v22, %v20928_v2  ;;  %v11620_v45 = vmax.f32 %v11543_v7, 0.0 }
 0x771   :  { %v11699_v12 = vmul.f32 %v11622_v18, %v20929_v24  ;;  %v11854_v55 = vrot.slane %v11698_v43, 2 }
 0x772   :  { %v11850_v42 = vrot.slane %v11696_v62, 2  ;;  %v11697_v13 = vmul.f32 %v11620_v45, %v20930_v63 }
 0x773   :  { %v11856_v27 = vrot.slane %v11699_v12, 2 }
 0x774   :  { %v11851_v36 = vsel %vm11790_vm2, %v11848_v33, %v11850_v42  ;;  %v11852_v4 = vrot.slane %v11697_v13, 2 }
 0x775   :  { %v11935_v11 = vadd.f32 %v11934_v19, %v11851_v36  ;;  %v11857_v29 = vsel %vm11790_vm2, %v11854_v55, %v11856_v27  ;;  %v20943_v36 = vld [vmem:[#allocation87_spill] sm:$0xff] }
 0x776   :  { %v11853_v41 = vsel %vm11790_vm2, %v11850_v42, %v11852_v4  ;;  %v11855_v23 = vsel %vm11790_vm2, %v11852_v4, %v11854_v55  ;;  %v20944_v4 = vmax.f32 %v20943_v36, 0.0  ;;  %v11978_v36 = vld [vmem:[%s20108_s10 + $0xb0] sm:$0xff] }
 0x777   :  { %v11936_v52 = vadd.f32 %v11935_v11, %v11853_v41  ;;  %v11745_v41 = vrot.slane %v19683_v10, 4 }
 0x778   :  { %v15982_v20 = vpop.f32.mrb[152].mxu1 }
 0x779   :  { %v11937_v50 = vadd.f32 %v11936_v52, %v11855_v23  ;;  %v11455_v3 = vadd.f32 %v19744_v17, %v15982_v20  ;;  %v11446_v5 = vpop.f32.mrb[153].mxu1  ;;  %v20945_v23 = vld [vmem:[#allocation162_spill] sm:$0xff] }
 0x77a   :  { %v11447_v14 = vadd.f32 %v19744_v17, %v11446_v5  ;;  %v15983_v38 = vpop.f32.mrb[154].mxu1 }
 0x77b   :  { %v11548_v33 = vadd.f32 %v11455_v3, %v20932_v15  ;;  %v11938_v48 = vadd.f32 %v11937_v50, %v11857_v29  ;;  %v11458_v56 = vadd.f32 %v19744_v17, %v15983_v38  ;;  %v11449_v47 = vpop.f32.mrb[155].mxu1  ;;  %v11746_v50 = vadd.f32 %v11745_v41, %v19683_v10  ;;  %v11965_v10 = vld [vmem:[%s20108_s10 + $0x48] sm:$0xff] }
 0x77c   :  { %v11546_v30 = vadd.f32 %v11447_v14, %v20934_v57  ;;  %v11450_v54 = vadd.f32 %v19744_v17, %v11449_v47 }
 0x77d   :  { %v11625_v53 = vmax.f32 %v11548_v33, 0.0  ;;  %v11549_v9 = vadd.f32 %v11458_v56, %v20936_v37  ;;  %v11747_v14 = vrot.slane %v11746_v50, 2 }
 0x77e   :  { %v11623_v61 = vmax.f32 %v11546_v30, 0.0  ;;  %v11547_v19 = vadd.f32 %v11450_v54, %v20938_v25 }
 0x77f   :  { %v11702_v34 = vmul.f32 %v11625_v53, %v20939_v8  ;;  %v11626_v28 = vmax.f32 %v11549_v9, 0.0  ;;  %v11748_v15 = vadd.f32 %v11747_v14, %v11746_v50  ;;  %v11969_v53 = vld [vmem:[%s20108_s10 + $0x68] sm:$0xff] }
 0x780   :  { %v11700_v60 = vmul.f32 %v11623_v61, %v20940_v59  ;;  %v11624_v1 = vmax.f32 %v11547_v19, 0.0  ;;  %v14513_v9 = vcombine.high %v11965_v10, %v11969_v53  ;;  %v11973_v61 = vld [vmem:[%s20108_s10 + $0x88] sm:$0xff]  ;;  %v14512_v25 = vcombine.low %v11965_v10, %v11969_v53 }
 0x781   :  { %v11703_v6 = vmul.f32 %v11626_v28, %v20941_v16  ;;  %v11862_v49 = vrot.slane %v11702_v34, 2  ;;  %v11749_v56 = vrot.slane %v11748_v15, 1  ;;  %v14521_v19 = vcombine.high %v11973_v61, %v11977_v31  ;;  %v11981_v8 = vld [vmem:[%s20108_s10 + $0xc8] sm:$0xff] }
 0x782   :  { %v11858_v39 = vrot.slane %v11700_v60, 2  ;;  %v11701_v22 = vmul.f32 %v11624_v1, %v20942_v21  ;;  %v11985_v34 = vld [vmem:[%s20108_s10 + $0xe8] sm:$0xff]  ;;  %v14520_v28 = vcombine.low %v11973_v61, %v11977_v31  ;;  %v14537_v60 = vcombine.high %v11989_v26, %v11993_v32 }
 0x783   :  { %v11864_v0 = vrot.slane %v11703_v6, 2  ;;  %v11750_v57 = vadd.f32 %v11749_v56, %v11748_v15  ;;  %v14529_v59 = vcombine.high %v11981_v8, %v11985_v34  ;;  %v11997_v1 = vld [vmem:[%s20108_s10 + $0x148] sm:$0xff]  ;;  %v14536_v6 = vcombine.low %v11989_v26, %v11993_v32  ;;  %v12010_v15 = vld [vmem:[%s20108_s10 + $0x1b0] sm:$0xff] }
 0x784   :  { %v11859_v7 = vsel %vm11790_vm2, %v11856_v27, %v11858_v39  ;;  %v11860_v51 = vrot.slane %v11701_v22, 2  ;;  %v12001_v16 = vld [vmem:[%s20108_s10 + $0x168] sm:$0xff]  ;;  %v12014_v56 = vld [vmem:[%s20108_s10 + $0x1d0] sm:$0xff] }
 0x785   :  { %v11939_v43 = vadd.f32 %v11938_v48, %v11859_v7  ;;  %v11865_v18 = vsel %vm11790_vm2, %v11862_v49, %v11864_v0  ;;  %v12005_v21 = vld [vmem:[%s20108_s10 + $0x188] sm:$0xff] }
 0x786   :  { %v11861_v2 = vsel %vm11790_vm2, %v11858_v39, %v11860_v51  ;;  %v11863_v62 = vsel %vm11790_vm2, %v11860_v51, %v11862_v49  ;;  %v15986_v45 = vpop.f32.mrb[156].mxu1  ;;  %v14545_v39 = vcombine.high %v11997_v1, %v12001_v16  ;;  %v12009_v22 = vld [vmem:[%s20108_s10 + $0x1a8] sm:$0xff]  ;;  %v14544_v49 = vcombine.low %v11997_v1, %v12001_v16  ;;  %v11999_v16 = vld [vmem:[%s20108_s10 + $0x158] sm:$0xff] }
 0x787   :  { %v11940_v24 = vadd.f32 %v11939_v43, %v11861_v2  ;;  %v11462_v12 = vpop.f32.mrb[157].mxu1  ;;  %v12013_v7 = vld [vmem:[%s20108_s10 + $0x1c8] sm:$0xff]  ;;  %v14552_v43 = vcombine.low %v12005_v21, %v12009_v22  ;;  %v11958_v2 = vld [vmem:[%s20108_s10 + $0x10] sm:$0xff] }
 0x788   :  { %v11463_v42 = vadd.f32 %v19744_v17, %v11462_v12  ;;  %v15987_v63 = vpop.f32.mrb[158].mxu1  ;;  %v12017_v51 = vld [vmem:[%s20108_s10 + $0x1e8] sm:$0xff]  ;;  %v11966_v12 = vld [vmem:[%s20108_s10 + $0x50] sm:$0xff] }
 0x789   :  { %v11941_v13 = vadd.f32 %v11940_v24, %v11863_v62  ;;  %v11465_v55 = vpop.f32.mrb[159].mxu1  ;;  %v11962_v62 = vld [vmem:[%s20108_s10 + $0x30] sm:$0xff]  ;;  %v14560_v45 = vcombine.low %v12013_v7, %v12017_v51 }
 0x78a   :  { %v11550_v11 = vadd.f32 %v11463_v42, %v20944_v4  ;;  %v14507_v24 = vcombine.high %v11958_v2, %v11962_v62  ;;  %v11970_v42 = vld [vmem:[%s20108_s10 + $0x70] sm:$0xff]  ;;  %v14506_v63 = vcombine.low %v11958_v2, %v11962_v62 }
 0x78b   :  { %v11942_v27 = vadd.f32 %v11941_v13, %v11865_v18  ;;  %v14561_v18 = vcombine.high %v12013_v7, %v12017_v51  ;;  %v14515_v13 = vcombine.high %v11966_v12, %v11970_v42  ;;  %v11974_v55 = vld [vmem:[%s20108_s10 + $0x90] sm:$0xff]  ;;  %v14514_v4 = vcombine.low %v11966_v12, %v11970_v42  ;;  %v12015_v51 = vld [vmem:[%s20108_s10 + $0x1d8] sm:$0xff] }
 0x78c   :  { %v11627_v29 = vmax.f32 %v11550_v11, 0.0  ;;  %v14523_v11 = vcombine.high %v11974_v55, %v11978_v36  ;;  %v14522_v41 = vcombine.low %v11974_v55, %v11978_v36  ;;  %v17116_v12 = vld [vmem:[#allocation4 + $0x48] sm:$0xff]   ;;  %v17120_v55 = vld [vmem:[#allocation4 + $0x58] sm:$0xff]  }
 0x78d   :  { %v17117_v42 = vld [vmem:[#allocation4 + $0x8] sm:$0xff]   ;;  %v17121_v36 = vld [vmem:[#allocation4 + $0x18] sm:$0xff]  }
 0x78e   :  { %v11704_v52 = vmul.f32 %v11627_v29, %v20945_v23  ;;  %v11986_v29 = vld [vmem:[%s20108_s10 + $0xf0] sm:$0xff] }
 0x790   :  { %v11866_v20 = vrot.slane %v11704_v52, 2  ;;  %v11990_v52 = vld [vmem:[%s20108_s10 + $0x110] sm:$0xff] }
 0x792   :  { %v11867_v3 = vsel %vm11790_vm2, %v11864_v0, %v11866_v20  ;;  %v11944_v17 = vsel %vm11742_vm1, %v11866_v20, 0.0  ;;  %v14553_v0 = vcombine.high %v12005_v21, %v12009_v22  ;;  %v11994_v20 = vld [vmem:[%s20108_s10 + $0x130] sm:$0xff]  ;;  %v12007_v22 = vld [vmem:[%s20108_s10 + $0x198] sm:$0xff] }
 0x793   :  { %v11943_v5 = vadd.f32 %v11942_v27, %v11867_v3  ;;  %v11982_v27 = vld [vmem:[%s20108_s10 + $0xd0] sm:$0xff]  ;;  %v14539_v3 = vcombine.high %v11990_v52, %v11994_v20  ;;  %v14538_v14 = vcombine.low %v11990_v52, %v11994_v20  ;;  %v17129_v52 = vld [vmem:[#allocation4 + $0x38] sm:$0xff]   ;;  %v17130_v20 = vld [vmem:[#allocation4 + $0xc0] sm:$0xff]  }
 0x794   :  { %v14531_v23 = vcombine.high %v11982_v27, %v11986_v29  ;;  %v14530_v50 = vcombine.low %v11982_v27, %v11986_v29  ;;  %v17124_v27 = vld [vmem:[#allocation4 + $0x68] sm:$0xff]  }
 0x795   :  { %v11945_v38 = vadd.f32 %v11944_v17, %v11943_v5  ;;  %v11998_v5 = vld [vmem:[%s20108_s10 + $0x150] sm:$0xff] }
 0x796   :  { %v12002_v17 = vld [vmem:[%s20108_s10 + $0x170] sm:$0xff] }
 0x797   :  { %v11946_v58 = vrot.slane %v11945_v38, 4  ;;  %v17125_v29 = vld [vmem:[#allocation4 + $0x28] sm:$0xff]  }
 0x799   :  { %v11947_v33 = vadd.f32 %v11946_v58, %v11945_v38  ;;  %v14547_v38 = vcombine.high %v11998_v5, %v12002_v17  ;;  %v12006_v58 = vld [vmem:[%s20108_s10 + $0x190] sm:$0xff] }
 0x79b   :  { %v11948_v48 = vrot.slane %v11947_v33, 2 }
 0x79d   :  { %v11949_v47 = vadd.f32 %v11948_v48, %v11947_v33  ;;  %v14546_v33 = vcombine.low %v11998_v5, %v12002_v17  ;;  %v14555_v48 = vcombine.high %v12006_v58, %v12010_v15  ;;  %v20066_v17 = vld [vmem:[%s20109_s11] sm:$0xff] }
 0x79f   :  { %v11950_v44 = vrot.slane %v11949_v47, 1 }
 0x7a1   :  { %v11951_v30 = vadd.f32 %v11950_v44, %v11949_v47  ;;  %v12018_v47 = vld [vmem:[%s20108_s10 + $0x1f0] sm:$0xff]  ;;  %v14554_v44 = vcombine.low %v12006_v58, %v12010_v15 }
 0x7a2   :  { %v14562_v10 = vcombine.low %v12014_v56, %v12018_v47 }
 0x7a3   :  { %v11953_v54 = vsel %vm11952_vm3, %v11750_v57, %v11951_v30  ;;  %v14563_v57 = vcombine.high %v12014_v56, %v12018_v47  ;;  %v11959_v30 = vld [vmem:[%s20108_s10 + $0x18] sm:$0xff] }
 0x7a4   :  { %v11954_v40 = vmul.f32 0.00390625, %v11953_v54  ;;  %v11963_v54 = vld [vmem:[%s20108_s10 + $0x38] sm:$0xff] }
 0x7a5   :  { %v14509_v53 = vcombine.high %v11959_v30, %v11963_v54  ;;  %v14508_v61 = vcombine.low %v11959_v30, %v11963_v54 }
 0x7a6   :  { %v19916_v37 = vpack.c.bf16 %v11954_v40, %v11954_v40  ;;  %v11967_v40 = vld [vmem:[%s20108_s10 + $0x58] sm:$0xff] }
 0x7a8   :  { %12415 = vmatmul.mubr.bf16.vlgmr.msra.gmra.mrb[160].mxu1 %v19916_v37 }
 0x7a9   :  { %12424 = vmatpush1.bf16.msra.mxu1 %v14504_v46  ;;  %12455 = vmatprep.mubr.bf16.mxu1 %v20785_v35  ;;  %v14528_v46 = vcombine.low %v11981_v8, %v11985_v34 }
 0x7aa   :  { %12425 = vmatprep.subr.bf16.mxu1 %v14513_v9  ;;  %v11971_v9 = vld [vmem:[%s20108_s10 + $0x78] sm:$0xff] }
 0x7ab   :  { %v14517_v31 = vcombine.high %v11967_v40, %v11971_v9  ;;  %v14516_v8 = vcombine.low %v11967_v40, %v11971_v9  ;;  %v17132_v40 = vld [vmem:[#allocation4 + $0xc8] sm:$0xff]  }
 0x7ac   :  { %v17133_v9 = vld [vmem:[#allocation4 + $0x88] sm:$0xff]  }
 0x7ad   :  { %12426 = vmatpush1.bf16.msra.mxu1 %v14512_v25  ;;  %v11975_v25 = vld [vmem:[%s20108_s10 + $0x98] sm:$0xff] }
 0x7ae   :  { %12427 = vmatprep.subr.bf16.mxu1 %v14521_v19  ;;  %v11979_v19 = vld [vmem:[%s20108_s10 + $0xb8] sm:$0xff] }
 0x7af   :  { %v14525_v34 = vcombine.high %v11975_v25, %v11979_v19  ;;  %v14524_v26 = vcombine.low %v11975_v25, %v11979_v19  ;;  %v17136_v25 = vld [vmem:[#allocation4 + $0xd8] sm:$0xff]  }
 0x7b0   :  { %v17137_v19 = vld [vmem:[#allocation4 + $0x98] sm:$0xff]  }
 0x7b1   :  { %12428 = vmatpush1.bf16.msra.mxu1 %v14520_v28  ;;  %v11983_v28 = vld [vmem:[%s20108_s10 + $0xd8] sm:$0xff] }
 0x7b2   :  { %12429 = vmatprep.subr.bf16.mxu1 %v14529_v59  ;;  %v11987_v59 = vld [vmem:[%s20108_s10 + $0xf8] sm:$0xff] }
 0x7b3   :  { %v14533_v32 = vcombine.high %v11983_v28, %v11987_v59 }
 0x7b5   :  { %12430 = vmatpush1.bf16.msra.mxu1 %v14528_v46  ;;  %v11991_v46 = vld [vmem:[%s20108_s10 + $0x118] sm:$0xff] }
 0x7b6   :  { %12431 = vmatprep.subr.bf16.mxu1 %v14537_v60  ;;  %v14532_v60 = vcombine.low %v11983_v28, %v11987_v59  ;;  %v17140_v28 = vld [vmem:[#allocation4 + $0xe8] sm:$0xff]  }
 0x7b9   :  { %12432 = vmatpush1.bf16.msra.mxu1 %v14536_v6  ;;  %v12003_v6 = vld [vmem:[%s20108_s10 + $0x178] sm:$0xff] }
 0x7ba   :  { %12433 = vmatprep.subr.bf16.mxu1 %v14545_v39  ;;  %v14549_v21 = vcombine.high %v11999_v16, %v12003_v6 }
 0x7bd   :  { %12434 = vmatpush1.bf16.msra.mxu1 %v14544_v49  ;;  %v12011_v49 = vld [vmem:[%s20108_s10 + $0x1b8] sm:$0xff] }
 0x7be   :  { %12435 = vmatprep.subr.bf16.mxu1 %v14553_v0  ;;  %v14548_v0 = vcombine.low %v11999_v16, %v12003_v6  ;;  %v14557_v7 = vcombine.high %v12007_v22, %v12011_v49  ;;  %v17144_v16 = vld [vmem:[#allocation4 + $0xf8] sm:$0xff]  }
 0x7c1   :  { %12436 = vmatpush1.bf16.msra.mxu1 %v14552_v43  ;;  %v12019_v43 = vld [vmem:[%s20108_s10 + $0x1f8] sm:$0xff] }
 0x7c2   :  { %12437 = vmatprep.subr.bf16.mxu1 %v14561_v18  ;;  %v14556_v18 = vcombine.low %v12007_v22, %v12011_v49  ;;  %v14565_v2 = vcombine.high %v12015_v51, %v12019_v43  ;;  %v14564_v62 = vcombine.low %v12015_v51, %v12019_v43  ;;  %v17146_v43 = vld [vmem:[#allocation4 + $0x140] sm:$0xff]  }
 0x7c5   :  { %12438 = vmatpush1.bf16.msra.mxu1 %v14560_v45  ;;  %v17114_v45 = vld [vmem:[#allocation4 + $0x40] sm:$0xff]  }
 0x7c6   :  { %12464 = vmatprep.subr.bf16.mxu1 %v14507_v24  ;;  %v17115_v24 = vld [vmem:[#allocation4] sm:$0xff]  }
 0x7c8   :  { %12456 = vmatmul.mubr.bf16.vlgmr.msra.gmra.mrb[164].mxu1 %v19916_v37 }
 0x7c9   :  { %12465 = vmatpush1.bf16.msra.mxu1 %v14506_v63  ;;  %12496 = vmatprep.mubr.bf16.mxu1 %v20785_v35  ;;  %v17118_v63 = vld [vmem:[#allocation4 + $0x50] sm:$0xff]  }
 0x7ca   :  { %12466 = vmatprep.subr.bf16.mxu1 %v14515_v13  ;;  %v17119_v13 = vld [vmem:[#allocation4 + $0x10] sm:$0xff]  }
 0x7cd   :  { %12467 = vmatpush1.bf16.msra.mxu1 %v14514_v4  ;;  %v17122_v4 = vld [vmem:[#allocation4 + $0x60] sm:$0xff]  }
 0x7ce   :  { %12468 = vmatprep.subr.bf16.mxu1 %v14523_v11  ;;  %v17123_v11 = vld [vmem:[#allocation4 + $0x20] sm:$0xff]  }
 0x7d1   :  { %12469 = vmatpush1.bf16.msra.mxu1 %v14522_v41  ;;  %v17127_v41 = vld [vmem:[#allocation4 + $0x30] sm:$0xff]  }
 0x7d2   :  { %12470 = vmatprep.subr.bf16.mxu1 %v14531_v23  ;;  %v17128_v23 = vld [vmem:[#allocation4 + $0x78] sm:$0xff]  }
 0x7d5   :  { %12471 = vmatpush1.bf16.msra.mxu1 %v14530_v50  ;;  %v12022_v50 = vlaneseq }
 0x7d6   :  { %12472 = vmatprep.subr.bf16.mxu1 %v14539_v3 }
 0x7d7   :  { %v20060_v3 = vshrl.u32 %v12022_v50, 7  ;;  %v17160_v50 = vld [vmem:[#allocation4 + $0x178] sm:$0xff]  }
 0x7d9   :  { %12473 = vmatpush1.bf16.msra.mxu1 %v14538_v14  ;;  %v12024_v5 = vsub.s32 0, %v20060_v3  ;;  %v12028_v14 = vsub.s32 1, %v20060_v3  ;;  %v12032_v59 = vsub.s32 2, %v20060_v3 }
 0x7da   :  { %12474 = vmatprep.subr.bf16.mxu1 %v14547_v38 }
 0x7db   :  { %v12025_v38 = vrot.slane %v20066_v17, %v12024_v5  ;;  %v12029_v58 = vrot.slane %v20066_v17, %v12028_v14 }
 0x7dd   :  { %12475 = vmatpush1.bf16.msra.mxu1 %v14546_v33 }
 0x7de   :  { %12476 = vmatprep.subr.bf16.mxu1 %v14555_v48 }
 0x7e1   :  { %12477 = vmatpush1.bf16.msra.mxu1 %v14554_v44 }
 0x7e2   :  { %12478 = vmatprep.subr.bf16.mxu1 %v14563_v57 }
 0x7e5   :  { %12479 = vmatpush1.bf16.msra.mxu1 %v14562_v10  ;;  %v17131_v10 = vld [vmem:[#allocation4 + $0x80] sm:$0xff]  }
 0x7e6   :  { %12505 = vmatprep.subr.bf16.mxu1 %v14509_v53 }
 0x7e8   :  { %12497 = vmatmul.mubr.bf16.vlgmr.msra.gmra.mrb[168].mxu1 %v19916_v37 }
 0x7e9   :  { %12506 = vmatpush1.bf16.msra.mxu1 %v14508_v61  ;;  %12537 = vmatprep.mubr.bf16.mxu1 %v20785_v35  ;;  %v11995_v35 = vld [vmem:[%s20108_s10 + $0x138] sm:$0xff] }
 0x7ea   :  { %12507 = vmatprep.subr.bf16.mxu1 %v14517_v31  ;;  %v14541_v1 = vcombine.high %v11991_v46, %v11995_v35  ;;  %v14540_v39 = vcombine.low %v11991_v46, %v11995_v35  ;;  %v17134_v61 = vld [vmem:[#allocation4 + $0xd0] sm:$0xff]   ;;  %v12033_v35 = vrot.slane %v20066_v17, %v12032_v59  ;;  %v12052_v59 = vsub.s32 7, %v20060_v3 }
 0x7eb   :  { %v17135_v31 = vld [vmem:[#allocation4 + $0x90] sm:$0xff]  }
 0x7ec   :  { %v17142_v46 = vld [vmem:[#allocation4 + $0xf0] sm:$0xff]  }
 0x7ed   :  { %12508 = vmatpush1.bf16.msra.mxu1 %v14516_v8  ;;  %v17138_v8 = vld [vmem:[#allocation4 + $0xe0] sm:$0xff]  }
 0x7ee   :  { %12509 = vmatprep.subr.bf16.mxu1 %v14525_v34  ;;  %v17139_v34 = vld [vmem:[#allocation4 + $0xa0] sm:$0xff]  }
 0x7f1   :  { %12510 = vmatpush1.bf16.msra.mxu1 %v14524_v26  ;;  %v17141_v26 = vld [vmem:[#allocation4 + $0xa8] sm:$0xff]  }
 0x7f2   :  { %12511 = vmatprep.subr.bf16.mxu1 %v14533_v32  ;;  %v12036_v32 = vsub.s32 3, %v20060_v3 }
 0x7f5   :  { %12512 = vmatpush1.bf16.msra.mxu1 %v14532_v60  ;;  %v12037_v60 = vrot.slane %v20066_v17, %v12036_v32 }
 0x7f6   :  { %12513 = vmatprep.subr.bf16.mxu1 %v14541_v1  ;;  %v17143_v1 = vld [vmem:[#allocation4 + $0xb0] sm:$0xff]  }
 0x7f9   :  { %12514 = vmatpush1.bf16.msra.mxu1 %v14540_v39 }
 0x7fa   :  { %12515 = vmatprep.subr.bf16.mxu1 %v14549_v21 }
 0x7fd   :  { %12516 = vmatpush1.bf16.msra.mxu1 %v14548_v0  ;;  %v17145_v0 = vld [vmem:[#allocation4 + $0xb8] sm:$0xff]  }
 0x7fe   :  { %12517 = vmatprep.subr.bf16.mxu1 %v14557_v7 }
 0x801   :  { %12518 = vmatpush1.bf16.msra.mxu1 %v14556_v18 }
 0x802   :  { %12519 = vmatprep.subr.bf16.mxu1 %v14565_v2 }
 0x805   :  { %12520 = vmatpush1.bf16.msra.mxu1 %v14564_v62  ;;  %v17147_v62 = vld [vmem:[#allocation4 + $0x100] sm:$0xff]  }
 0x806   :  { %15528 = vmatprep.subr.bf16.mxu1 %v17114_v45 }
 0x808   :  { %12538 = vmatmul.mubr.bf16.vlgmr.msra.gmra.mrb[172].mxu1 %v19916_v37  ;;  %v17126_v37 = vld [vmem:[#allocation4 + $0x70] sm:$0xff]  }
 0x809   :  { %15529 = vmatpush3.bf16.msra.mxu1 %v17115_v24  ;;  %v17148_v24 = vld [vmem:[#allocation4 + $0x148] sm:$0xff]  }
 0x80a   :  { %15530 = vmatprep.subr.bf16.mxu1 %v17116_v12  ;;  %v17149_v12 = vld [vmem:[#allocation4 + $0x108] sm:$0xff]  }
 0x80d   :  { %15531 = vmatpush3.bf16.msra.mxu1 %v17117_v42  ;;  %v17150_v42 = vld [vmem:[#allocation4 + $0x150] sm:$0xff]  }
 0x80e   :  { %15532 = vmatprep.subr.bf16.mxu1 %v17118_v63  ;;  %v17151_v63 = vld [vmem:[#allocation4 + $0x110] sm:$0xff]  }
 0x811   :  { %15533 = vmatpush3.bf16.msra.mxu1 %v17119_v13  ;;  %v17152_v13 = vld [vmem:[#allocation4 + $0x158] sm:$0xff]  }
 0x812   :  { %15534 = vmatprep.subr.bf16.mxu1 %v17120_v55  ;;  %v17153_v55 = vld [vmem:[#allocation4 + $0x118] sm:$0xff]  }
 0x815   :  { %15535 = vmatpush3.bf16.msra.mxu1 %v17121_v36  ;;  %v17154_v36 = vld [vmem:[#allocation4 + $0x160] sm:$0xff]  }
 0x816   :  { %15536 = vmatprep.subr.bf16.mxu1 %v17122_v4  ;;  %v17155_v4 = vld [vmem:[#allocation4 + $0x120] sm:$0xff]  }
 0x819   :  { %15537 = vmatpush3.bf16.msra.mxu1 %v17123_v11  ;;  %v17156_v11 = vld [vmem:[#allocation4 + $0x168] sm:$0xff]  }
 0x81a   :  { %15538 = vmatprep.subr.bf16.mxu1 %v17124_v27  ;;  %v12040_v27 = vsub.s32 4, %v20060_v3 }
 0x81d   :  { %15539 = vmatpush3.bf16.msra.mxu1 %v17125_v29  ;;  %v17157_v29 = vld [vmem:[#allocation4 + $0x128] sm:$0xff]  }
 0x81e   :  { %15540 = vmatprep.subr.bf16.mxu1 %v17126_v37  ;;  %v12044_v37 = vsub.s32 5, %v20060_v3 }
 0x821   :  { %15541 = vmatpush3.bf16.msra.mxu1 %v17127_v41  ;;  %v17158_v41 = vld [vmem:[#allocation4 + $0x170] sm:$0xff]  }
 0x822   :  { %15542 = vmatprep.subr.bf16.mxu1 %v17128_v23  ;;  %v12041_v23 = vrot.slane %v20066_v17, %v12040_v27 }
 0x825   :  { %15543 = vmatpush3.bf16.msra.mxu1 %v17129_v52  ;;  %v12045_v52 = vrot.slane %v20066_v17, %v12044_v37 }
 0x826   :  { %15550 = vmatprep.subr.bf16.mxu1 %v17130_v20  ;;  %v17159_v20 = vld [vmem:[#allocation4 + $0x130] sm:$0xff]  }
 0x87b   :  { %v12416_v15 = vpop.f32.mrb[160].mxu1 }
 0x87c   :  { %v12417_v33 = vadd.f32 %v12416_v15, %v12025_v38  ;;  %v12418_v48 = vpop.f32.mrb[161].mxu1 }
 0x87d   :  { %v12419_v56 = vadd.f32 %v12418_v48, %v12029_v58  ;;  %v12420_v47 = vpop.f32.mrb[162].mxu1 }
 0x87e   :  { %v12546_v44 = vmax.f32 %v12417_v33, 0.0  ;;  %v12421_v57 = vpop.f32.mrb[163].mxu1  ;;  %v17161_v33 = vld [vmem:[#allocation4 + $0x138] sm:$0xff]   ;;  %v17162_v47 = vld [vmem:[#allocation4 + $0x1c0] sm:$0xff]  }
 0x87f   :  { %v12547_v30 = vmax.f32 %v12419_v56, 0.0 }
 0x880   :  { %v12554_v53 = vpack.c.bf16 %v12546_v44, %v12546_v44 }
 0x881   :  { %v12555_v54 = vpack.c.bf16 %v12547_v30, %v12547_v30  ;;  %v17163_v30 = vld [vmem:[#allocation4 + $0x180] sm:$0xff]  }
 0x883   :  { %13113 = vmatprep.mubr.bf16.mxu1 %v12555_v54 }
 0x884   :  { %13114 = vmatmul.mubr.bf16.vlgmr.msra.gmra.mrb[176].mxu1 %v12554_v53  ;;  %v17165_v53 = vld [vmem:[#allocation4 + $0x188] sm:$0xff]  }
 0x885   :  { %15551 = vmatpush3.bf16.msra.mxu1 %v17131_v10  ;;  %v17164_v10 = vld [vmem:[#allocation4 + $0x1c8] sm:$0xff]  }
 0x886   :  { %15552 = vmatprep.subr.bf16.mxu1 %v17132_v40  ;;  %v17166_v40 = vld [vmem:[#allocation4 + $0x1d0] sm:$0xff]  }
 0x889   :  { %15553 = vmatpush3.bf16.msra.mxu1 %v17133_v9  ;;  %v17167_v9 = vld [vmem:[#allocation4 + $0x190] sm:$0xff]  }
 0x88a   :  { %15554 = vmatprep.subr.bf16.mxu1 %v17134_v61  ;;  %v17168_v61 = vld [vmem:[#allocation4 + $0x1d8] sm:$0xff]  }
 0x88d   :  { %15555 = vmatpush3.bf16.msra.mxu1 %v17135_v31  ;;  %v17169_v31 = vld [vmem:[#allocation4 + $0x198] sm:$0xff]  }
 0x88e   :  { %15556 = vmatprep.subr.bf16.mxu1 %v17136_v25  ;;  %v17170_v25 = vld [vmem:[#allocation4 + $0x1e0] sm:$0xff]  }
 0x891   :  { %15557 = vmatpush3.bf16.msra.mxu1 %v17137_v19  ;;  %v17171_v19 = vld [vmem:[#allocation4 + $0x1a0] sm:$0xff]  }
 0x892   :  { %15558 = vmatprep.subr.bf16.mxu1 %v17138_v8  ;;  %v17172_v8 = vld [vmem:[#allocation4 + $0x1e8] sm:$0xff]  }
 0x895   :  { %15559 = vmatpush3.bf16.msra.mxu1 %v17139_v34  ;;  %v12048_v34 = vsub.s32 6, %v20060_v3 }
 0x896   :  { %15560 = vmatprep.subr.bf16.mxu1 %v17140_v28  ;;  %v17173_v28 = vld [vmem:[#allocation4 + $0x1a8] sm:$0xff]  }
 0x897   :  { %v12049_v32 = vrot.slane %v20066_v17, %v12048_v34 }
 0x899   :  { %15561 = vmatpush3.bf16.msra.mxu1 %v17141_v26  ;;  %v17174_v26 = vld [vmem:[#allocation4 + $0x1f0] sm:$0xff]  }
 0x89a   :  { %15562 = vmatprep.subr.bf16.mxu1 %v17142_v46  ;;  %v12053_v46 = vrot.slane %v20066_v17, %v12052_v59 }
 0x89b   :  { %v12457_v6 = vpop.f32.mrb[164].mxu1 }
 0x89c   :  { %v12458_v39 = vadd.f32 %v12457_v6, %v12033_v35  ;;  %v12459_v21 = vpop.f32.mrb[165].mxu1  ;;  %v17175_v35 = vld [vmem:[#allocation4 + $0x1b0] sm:$0xff]  }
 0x89d   :  { %v12460_v22 = vadd.f32 %v12459_v21, %v12037_v60  ;;  %v12461_v49 = vpop.f32.mrb[166].mxu1  ;;  %15563 = vmatpush3.bf16.msra.mxu1 %v17143_v1  ;;  %v17176_v60 = vld [vmem:[#allocation4 + $0x1f8] sm:$0xff]  }
 0x89e   :  { %v12548_v7 = vmax.f32 %v12458_v39, 0.0  ;;  %v12462_v51 = vpop.f32.mrb[167].mxu1  ;;  %15564 = vmatprep.subr.bf16.mxu1 %v17144_v16 }
 0x89f   :  { %v12549_v18 = vmax.f32 %v12460_v22, 0.0  ;;  %v17177_v22 = vld [vmem:[#allocation4 + $0x1b8] sm:$0xff]  }
 0x8a0   :  { %v12556_v45 = vpack.c.bf16 %v12548_v7, %v12548_v7 }
 0x8a1   :  { %v12557_v2 = vpack.c.bf16 %v12549_v18, %v12549_v18  ;;  %15565 = vmatpush3.bf16.msra.mxu1 %v17145_v0 }
 0x8a2   :  { %15572 = vmatprep.subr.bf16.mxu1 %v17146_v43 }
 0x8a3   :  { %13153 = vmatprep.mubr.bf16.mxu1 %v12557_v2 }
 0x8a4   :  { %13154 = vmatmul.mubr.bf16.vlgmr.msra.gmra.mrb[180].mxu1 %v12556_v45  ;;  %v14566_v45 = vld [vmem:[%s20111_s13] ss:$0 sm:$0xff]  ;;  %s17204_s13 = scalar_lea.vmem %s13249_s17, 32 }
 0x8a5   :  { %15573 = vmatpush3.bf16.msra.mxu1 %v17147_v62  ;;  %p17205_p8 = scmp.ne.s32.totalorder %s13249_s17, %s17204_s13  ;;  %p17210_p10 = scmp.lt.s32.totalorder %s17204_s13, %s17204_s13 }
 0x8a6   :  { %15574 = vmatprep.subr.bf16.mxu1 %v17148_v24 }
 0x8a7   :  { %p17211_p11 = por %p17210_p10, %p17209_p9 }
 0x8a9   :  { %15575 = vmatpush3.bf16.msra.mxu1 %v17149_v12  ;;  %p17212_p12 = pnand %p17211_p11, %p17205_p8 }
 0x8aa   :  { %15576 = vmatprep.subr.bf16.mxu1 %v17150_v42 }
 0x8ad   :  { %15577 = vmatpush3.bf16.msra.mxu1 %v17151_v63 }
 0x8ae   :  { %15578 = vmatprep.subr.bf16.mxu1 %v17152_v13 }
 0x8b1   :  { %15579 = vmatpush3.bf16.msra.mxu1 %v17153_v55 }
 0x8b2   :  { %15580 = vmatprep.subr.bf16.mxu1 %v17154_v36 }
 0x8b5   :  { %15581 = vmatpush3.bf16.msra.mxu1 %v17155_v4 }
 0x8b6   :  { %15582 = vmatprep.subr.bf16.mxu1 %v17156_v11 }
 0x8b9   :  { %15583 = vmatpush3.bf16.msra.mxu1 %v17157_v29 }
 0x8ba   :  { %15584 = vmatprep.subr.bf16.mxu1 %v17158_v41 }
 0x8bb   :  { %v12498_v5 = vpop.f32.mrb[168].mxu1 }
 0x8bc   :  { %v12499_v14 = vadd.f32 %v12498_v5, %v12041_v23  ;;  %v12500_v38 = vpop.f32.mrb[169].mxu1 }
 0x8bd   :  { %v12501_v58 = vadd.f32 %v12500_v38, %v12045_v52  ;;  %v12502_v15 = vpop.f32.mrb[170].mxu1  ;;  %15585 = vmatpush3.bf16.msra.mxu1 %v17159_v20 }
 0x8be   :  { %v12550_v48 = vmax.f32 %v12499_v14, 0.0  ;;  %v12503_v56 = vpop.f32.mrb[171].mxu1  ;;  %15586 = vmatprep.subr.bf16.mxu1 %v17160_v50 }
 0x8bf   :  { %v12551_v44 = vmax.f32 %v12501_v58, 0.0 }
 0x8c0   :  { %v12558_v54 = vpack.c.bf16 %v12550_v48, %v12550_v48 }
 0x8c1   :  { %v12559_v57 = vpack.c.bf16 %v12551_v44, %v12551_v44  ;;  %15587 = vmatpush3.bf16.msra.mxu1 %v17161_v33 }
 0x8c2   :  { %15594 = vmatprep.subr.bf16.mxu1 %v17162_v47 }
 0x8c3   :  { %13193 = vmatprep.mubr.bf16.mxu1 %v12559_v57 }
 0x8c4   :  { %13194 = vmatmul.mubr.bf16.vlgmr.msra.gmra.mrb[184].mxu1 %v12558_v54 }
 0x8c5   :  { %15595 = vmatpush3.bf16.msra.mxu1 %v17163_v30 }
 0x8c6   :  { %15596 = vmatprep.subr.bf16.mxu1 %v17164_v10 }
 0x8c9   :  { %15597 = vmatpush3.bf16.msra.mxu1 %v17165_v53 }
 0x8ca   :  { %15598 = vmatprep.subr.bf16.mxu1 %v17166_v40 }
 0x8cd   :  { %15599 = vmatpush3.bf16.msra.mxu1 %v17167_v9 }
 0x8ce   :  { %15600 = vmatprep.subr.bf16.mxu1 %v17168_v61 }
 0x8d1   :  { %15601 = vmatpush3.bf16.msra.mxu1 %v17169_v31 }
 0x8d2   :  { %15602 = vmatprep.subr.bf16.mxu1 %v17170_v25 }
 0x8d5   :  { %15603 = vmatpush3.bf16.msra.mxu1 %v17171_v19 }
 0x8d6   :  { %15604 = vmatprep.subr.bf16.mxu1 %v17172_v8 }
 0x8d9   :  { %15605 = vmatpush3.bf16.msra.mxu1 %v17173_v28 }
 0x8da   :  { %15606 = vmatprep.subr.bf16.mxu1 %v17174_v26 }
 0x8db   :  { %v12539_v1 = vpop.f32.mrb[172].mxu1 }
 0x8dc   :  { %v12540_v16 = vadd.f32 %v12539_v1, %v12049_v32  ;;  %v12541_v6 = vpop.f32.mrb[173].mxu1 }
 0x8dd   :  { %v12542_v39 = vadd.f32 %v12541_v6, %v12053_v46  ;;  %v12543_v21 = vpop.f32.mrb[174].mxu1  ;;  %15607 = vmatpush3.bf16.msra.mxu1 %v17175_v35 }
 0x8de   :  { %v12552_v49 = vmax.f32 %v12540_v16, 0.0  ;;  %v12544_v0 = vpop.f32.mrb[175].mxu1  ;;  %15608 = vmatprep.subr.bf16.mxu1 %v17176_v60 }
 0x8df   :  { %v12553_v3 = vmax.f32 %v12542_v39, 0.0 }
 0x8e0   :  { %v12560_v51 = vpack.c.bf16 %v12552_v49, %v12552_v49 }
 0x8e1   :  { %v12561_v7 = vpack.c.bf16 %v12553_v3, %v12553_v3  ;;  %15609 = vmatpush3.bf16.msra.mxu1 %v17177_v22 }
 0x8e3   :  { %13233 = vmatprep.mubr.bf16.mxu1 %v12561_v7 }
 0x8e4   :  { %13234 = vmatmul.mubr.bf16.vlgmr.msra.gmra.mrb[188].mxu1 %v12560_v51 }
 0x957   :  { %v15544_v17 = vpop.f32.mrb[176].mxu1 }
 0x958   :  { %v15545_v43 = vpop.f32.mrb[177].mxu1 }
 0x959   :  { %v15546_v18 = vadd.f32 %v15545_v43, %v15544_v17  ;;  %v15547_v2 = vpop.f32.mrb[178].mxu1 }
 0x95a   :  { %v15548_v62 = vpop.f32.mrb[179].mxu1 }
 0x95b   :  { %v13116_v42 = vadd.f32 %v15546_v18, %v14566_v45 }
 0x977   :  { %v15566_v24 = vpop.f32.mrb[180].mxu1 }
 0x978   :  { %v15567_v12 = vpop.f32.mrb[181].mxu1 }
 0x979   :  { %v15568_v63 = vadd.f32 %v15567_v12, %v15566_v24  ;;  %v15569_v13 = vpop.f32.mrb[182].mxu1 }
 0x97a   :  { %v15570_v55 = vpop.f32.mrb[183].mxu1 }
 0x97b   :  { %v13156_v36 = vadd.f32 %v15568_v63, %v13116_v42 }
 0x997   :  { %v15588_v4 = vpop.f32.mrb[184].mxu1 }
 0x998   :  { %v15589_v11 = vpop.f32.mrb[185].mxu1 }
 0x999   :  { %v15590_v27 = vadd.f32 %v15589_v11, %v15588_v4  ;;  %v15591_v29 = vpop.f32.mrb[186].mxu1 }
 0x99a   :  { %v15592_v37 = vpop.f32.mrb[187].mxu1 }
 0x99b   :  { %v13196_v41 = vadd.f32 %v15590_v27, %v13156_v36 }
 0x9b7   :  { %v15610_v23 = vpop.f32.mrb[188].mxu1 }
 0x9b8   :  { %v15611_v52 = vpop.f32.mrb[189].mxu1 }
 0x9b9   :  { %v15612_v20 = vadd.f32 %v15611_v52, %v15610_v23  ;;  %v15613_v50 = vpop.f32.mrb[190].mxu1 }
 0x9ba   :  { %v15614_v5 = vpop.f32.mrb[191].mxu1 }
 0x9bb   :  { %v13236_v14 = vadd.f32 %v15612_v20, %v13196_v41 }
 0x9bd   :  { %13241 = vst [vmem:[#allocation7] sm:$0x3] %v13236_v14 }
 0x9be   :  { %17215 = shalt.err (!%p17212_p12)
}
 0x9bf   :  { %s17216_s18 = scalar_lea.hbm %s20112_s14, 32 }
 0x9c0   :  { %p17217_p13 = scmp.ne.s32.totalorder %s20112_s14, %s17216_s18  ;;  %p17220_p0 = scmp.lt.u32.totalorder %s17216_s18, %s20112_s14 }
 0x9c2   :  { %p17222_p1 = pnand %p17220_p0, %p17217_p13 }
 0x9c4   :  { %17225 = shalt.err (!%p17222_p1)
}
 0x9c5   :  { %13251 = dma.vmem_to_hbm [thread:$0]  %s13249_s17, 32, %s20112_s14, [#allocation6]  }
 0x9c6   :  { %17228 = dma.done.wait [#allocation6], 32  }
 0x9c7   :  { %17229 = vsyncadd [#allocation6], 4294967264 }
 0x9c8   :  { %13255 = vsyncpa [#allocation5], 1 }
 0x9c9   :  { %13256 = vsyncpa [#allocation6], 1 }

</bundles_post_ra>
